<compile_context>
chip_gen: v7x
topology: tpu7x:2x2x1
jax: 0.10.0
libtpu: 0.0.40
codegen_flags: <defaults>
</compile_context>

<pallas_src>
import functools

import jax
import jax.numpy as jnp
from jax import lax
from jax.experimental import pallas as pl
from jax.experimental.pallas import tpu as pltpu

_EPS = 1e-5
_LANE = 128


# ------------------------------ small helpers ------------------------------ #

def _round_up(n, mult):
    return ((n + mult - 1) // mult) * mult


def _pick_tile(n, candidates=(2048, 1024, 512, 256, 128, 64, 32, 16, 8),
               row_bytes=0, vmem_budget=24 << 20):
    """Largest candidate that divides n and keeps the per-tile footprint under a
    conservative VMEM budget (v7x only has 64 MiB physical VMEM)."""
    for c in candidates:
        if n % c == 0 and (row_bytes == 0 or c * row_bytes <= vmem_budget):
            return c
    return n


def _num_stat_splits(m, min_rows=256):
    """v7x has 2 TensorCores; a single 'arbitrary' reduction axis over M would
    leave one idle, so accumulate per-split (per-core) partial BN stats when M is
    large enough. Harmless on 1-TC v5e/v6e (just one extra tiny stats block)."""
    return 2 if (m % (2 * min_rows) == 0) else 1


def _pad2d(a, rows, cols):
    """Zero-pad a 2-D array up to (rows, cols)."""
    return jnp.pad(a, ((0, rows - a.shape[0]), (0, cols - a.shape[1])))


# ----------------------------- Pallas kernels ------------------------------ #

def _proj_stats_kernel(x_ref, w_ref, b_ref, y_ref, st_ref):
    """y = x @ w + b (bf16 out); accumulate per-channel [sum; sumsq] partials
    into the per-split resident stats block (row-slice accumulation, no concat)."""
    @pl.when(pl.program_id(1) == 0)
    def _():
        st_ref[...] = jnp.zeros_like(st_ref)

    y = jnp.dot(x_ref[...], w_ref[...], preferred_element_type=jnp.float32)
    y = y + b_ref[...]
    y_ref[...] = y.astype(y_ref.dtype)
    st_ref[:, 0:1, :] += jnp.sum(y, axis=0, keepdims=True)[None]
    st_ref[:, 1:2, :] += jnp.sum(y * y, axis=0, keepdims=True)[None]


def _ctx_proj_stats_kernel(c_ref, w1_ref, b1_ref, w2_ref, b2_ref, y_ref, st_ref):
    """Fused W-conv + head-conv: y = (c @ w1 + b1) @ w2 + b2 (bf16 out) + BN stats."""
    @pl.when(pl.program_id(1) == 0)
    def _():
        st_ref[...] = jnp.zeros_like(st_ref)

    t = jnp.dot(c_ref[...], w1_ref[...], preferred_element_type=jnp.float32)
    t = t + b1_ref[...]
    y = jnp.dot(t.astype(w2_ref.dtype), w2_ref[...],
                preferred_element_type=jnp.float32)
    y = y + b2_ref[...]
    y_ref[...] = y.astype(y_ref.dtype)
    st_ref[:, 0:1, :] += jnp.sum(y, axis=0, keepdims=True)[None]
    st_ref[:, 1:2, :] += jnp.sum(y * y, axis=0, keepdims=True)[None]


def _bn_apply_kernel(y_ref, st_ref, g_ref, b_ref, o_ref, *,
                     n_splits, inv_count, relu, eps):
    """Apply training-mode BN (combine per-split [sum; sumsq] partials) [+ ReLU]."""
    y = y_ref[...].astype(jnp.float32)
    tot = st_ref[0]                                   # (2, n)
    for s in range(1, n_splits):
        tot = tot + st_ref[s]
    mean = tot[0:1, :] * inv_count
    var = tot[1:2, :] * inv_count - mean * mean
    o = (y - mean) * (g_ref[...] * lax.rsqrt(var + eps)) + b_ref[...]
    if relu:
        o = jnp.maximum(o, 0.0)
    o_ref[...] = o.astype(o_ref.dtype)


def _bn_relu_qk(pre, st, g, b, inv_count, eps):
    """key/query BatchNorm(batch stats) + ReLU applied to a (1, T, CP) tile."""
    mean = st[0:1, :] * inv_count
    var = st[1:2, :] * inv_count - mean * mean
    a = g * lax.rsqrt(var + eps)                      # (1, CP)
    c = b - mean * a                                  # (1, CP)
    return jnp.maximum(pre.astype(jnp.float32) * a[None] + c[None], 0.0)


def _attn_single_kernel(q_ref, k_ref, v_ref, st_ref, g_ref, b_ref, o_ref, *,
                        scale, inv_count, eps):
    """Single-kv-tile fast path: plain softmax (no online-softmax machinery).
    query == key; the shared key/query BN+ReLU is fused in-kernel."""
    st = st_ref[...]
    q = _bn_relu_qk(q_ref[...], st, g_ref[...], b_ref[...], inv_count, eps)
    k = _bn_relu_qk(k_ref[...], st, g_ref[...], b_ref[...], inv_count, eps)
    s = jnp.einsum('bqd,bkd->bqk', q.astype(jnp.bfloat16), k.astype(jnp.bfloat16),
                   preferred_element_type=jnp.float32) * scale
    mx = jnp.max(s, axis=-1, keepdims=True)
    p = jnp.exp(s - mx)
    l = jnp.sum(p, axis=-1, keepdims=True)
    ctx = jnp.einsum('bqk,bkd->bqd', p.astype(v_ref.dtype), v_ref[...],
                     preferred_element_type=jnp.float32)
    o_ref[...] = (ctx * pl.reciprocal(l, approx=True)).astype(o_ref.dtype)


def _attn_flash_kernel(q_ref, k_ref, v_ref, st_ref, g_ref, b_ref, o_ref,
                       m_sc, l_sc, acc_sc, *, scale, inv_count, eps):
    """Flash-style self-attention (online softmax over kv tiles); the shared
    key/query BN+ReLU is fused in-kernel (cheap VPU work under the MXU shadow)."""
    ki = pl.program_id(2)

    @pl.when(ki == 0)
    def _():
        m_sc[...] = jnp.full_like(m_sc, -jnp.inf)
        l_sc[...] = jnp.zeros_like(l_sc)
        acc_sc[...] = jnp.zeros_like(acc_sc)

    st = st_ref[...]
    q = _bn_relu_qk(q_ref[...], st, g_ref[...], b_ref[...], inv_count, eps)
    k = _bn_relu_qk(k_ref[...], st, g_ref[...], b_ref[...], inv_count, eps)
    s = jnp.einsum('bqd,bkd->bqk', q.astype(jnp.bfloat16), k.astype(jnp.bfloat16),
                   preferred_element_type=jnp.float32) * scale
    m_prev = m_sc[...]
    m_new = jnp.maximum(m_prev, jnp.max(s, axis=-1, keepdims=True))
    alpha = jnp.exp(m_prev - m_new)
    p = jnp.exp(s - m_new)
    l_sc[...] = alpha * l_sc[...] + jnp.sum(p, axis=-1, keepdims=True)
    acc_sc[...] = alpha * acc_sc[...] + jnp.einsum(
        'bqk,bkd->bqd', p.astype(v_ref.dtype), v_ref[...],
        preferred_element_type=jnp.float32)
    m_sc[...] = m_new

    @pl.when(ki == pl.num_programs(2) - 1)
    def _():
        o_ref[...] = (acc_sc[...] *
                      pl.reciprocal(l_sc[...], approx=True)).astype(o_ref.dtype)


# ------------------------------ thin wrappers ------------------------------ #

def proj_stats(x, w, b, *, n_splits):
    """Fused key|value 1x1 conv; bf16 output + per-split BN-stat partials."""
    m, k = x.shape
    n = w.shape[1]
    rows = m // n_splits
    tm = _pick_tile(rows, row_bytes=4 * (k + n))
    steps = rows // tm
    return pl.pallas_call(
        _proj_stats_kernel,
        out_shape=(jax.ShapeDtypeStruct((m, n), jnp.bfloat16),
                   jax.ShapeDtypeStruct((n_splits, 2, n), jnp.float32)),
        grid_spec=pltpu.PrefetchScalarGridSpec(
            num_scalar_prefetch=0, grid=(n_splits, steps),
            in_specs=[pl.BlockSpec((tm, k), lambda s, i: (s * steps + i, 0)),
                      pl.BlockSpec((k, n), lambda s, i: (0, 0)),
                      pl.BlockSpec((1, n), lambda s, i: (0, 0))],
            out_specs=[pl.BlockSpec((tm, n), lambda s, i: (s * steps + i, 0)),
                       pl.BlockSpec((1, 2, n), lambda s, i: (s, 0, 0))]),
        compiler_params=pltpu.CompilerParams(
            dimension_semantics=("parallel", "arbitrary")),
    )(x, w, b)


def ctx_proj_stats(c, w1, b1, w2, b2, *, n_splits):
    """Fused attention-output conv W + head conv; bf16 output + BN-stat partials."""
    m, kc = c.shape
    n1 = w1.shape[1]
    n = w2.shape[1]
    rows = m // n_splits
    tm = _pick_tile(rows, row_bytes=4 * (kc + n) + 4 * n1)
    steps = rows // tm
    return pl.pallas_call(
        _ctx_proj_stats_kernel,
        out_shape=(jax.ShapeDtypeStruct((m, n), jnp.bfloat16),
                   jax.ShapeDtypeStruct((n_splits, 2, n), jnp.float32)),
        grid_spec=pltpu.PrefetchScalarGridSpec(
            num_scalar_prefetch=0, grid=(n_splits, steps),
            in_specs=[pl.BlockSpec((tm, kc), lambda s, i: (s * steps + i, 0)),
                      pl.BlockSpec((kc, n1), lambda s, i: (0, 0)),
                      pl.BlockSpec((1, n1), lambda s, i: (0, 0)),
                      pl.BlockSpec((n1, n), lambda s, i: (0, 0)),
                      pl.BlockSpec((1, n), lambda s, i: (0, 0))],
            out_specs=[pl.BlockSpec((tm, n), lambda s, i: (s * steps + i, 0)),
                       pl.BlockSpec((1, 2, n), lambda s, i: (s, 0, 0))]),
        compiler_params=pltpu.CompilerParams(
            dimension_semantics=("parallel", "arbitrary")),
    )(c, w1, b1, w2, b2)


def bn_apply(y, stats, gamma, beta, *, count, relu, out_dtype):
    m, n = y.shape
    n_splits = stats.shape[0]
    tm = _pick_tile(m, row_bytes=12 * n)
    kern = functools.partial(_bn_apply_kernel, n_splits=n_splits,
                             inv_count=1.0 / float(count), relu=relu, eps=_EPS)
    return pl.pallas_call(
        kern,
        out_shape=jax.ShapeDtypeStruct((m, n), out_dtype),
        grid_spec=pltpu.PrefetchScalarGridSpec(
            num_scalar_prefetch=0, grid=(m // tm,),
            in_specs=[pl.BlockSpec((tm, n), lambda i: (i, 0)),
                      pl.BlockSpec((n_splits, 2, n), lambda i: (0, 0, 0)),
                      pl.BlockSpec((1, n), lambda i: (0, 0)),
                      pl.BlockSpec((1, n), lambda i: (0, 0))],
            out_specs=pl.BlockSpec((tm, n), lambda i: (i, 0))),
        compiler_params=pltpu.CompilerParams(
            dimension_semantics=("parallel",)),
    )(y, stats, gamma, beta)


def self_attention_bn(kv3, key_stats, gamma, beta, *, kc_real, cp, count):
    """Attention over kv3 = [key_pre | value] (two CP-wide lane blocks).
    The key/query BN+ReLU is applied inside the kernel; query == key."""
    b, hw, _ = kv3.shape
    scale = float(kc_real) ** -0.5
    inv_count = 1.0 / float(count)
    # Big q tiles cut K/V re-streaming (K/V are re-read once per q tile); the
    # row_bytes cap keeps q + acc + the (tq, tk) logits block well inside VMEM
    # (conservative for v7x's 64 MiB).
    tq = _pick_tile(hw, row_bytes=8 * cp + 4 * 512)
    # v5e note: never shrink kv tiles below 256 (per-step overhead dominates).
    tk = _pick_tile(hw, candidates=(512, 256, 128, 64, 32, 16, 8))
    nk = hw // tk

    if nk == 1:
        # Single kv tile covers the whole row: skip the online-softmax machinery.
        kern = functools.partial(_attn_single_kernel, scale=scale,
                                 inv_count=inv_count, eps=_EPS)
        grid = (b, hw // tq)
        in_specs = [pl.BlockSpec((1, tq, cp), lambda bi, qi: (bi, qi, 0)),
                    pl.BlockSpec((1, tk, cp), lambda bi, qi: (bi, 0, 0)),
                    pl.BlockSpec((1, tk, cp), lambda bi, qi: (bi, 0, 1)),
                    pl.BlockSpec((2, cp), lambda bi, qi: (0, 0)),
                    pl.BlockSpec((1, cp), lambda bi, qi: (0, 0)),
                    pl.BlockSpec((1, cp), lambda bi, qi: (0, 0))]
        out_specs = pl.BlockSpec((1, tq, cp), lambda bi, qi: (bi, qi, 0))
        scratch = []
        dims = ("parallel", "parallel")
    else:
        kern = functools.partial(_attn_flash_kernel, scale=scale,
                                 inv_count=inv_count, eps=_EPS)
        grid = (b, hw // tq, nk)
        in_specs = [pl.BlockSpec((1, tq, cp), lambda bi, qi, ki: (bi, qi, 0)),
                    pl.BlockSpec((1, tk, cp), lambda bi, qi, ki: (bi, ki, 0)),
                    pl.BlockSpec((1, tk, cp), lambda bi, qi, ki: (bi, ki, 1)),
                    pl.BlockSpec((2, cp), lambda bi, qi, ki: (0, 0)),
                    pl.BlockSpec((1, cp), lambda bi, qi, ki: (0, 0)),
                    pl.BlockSpec((1, cp), lambda bi, qi, ki: (0, 0))]
        out_specs = pl.BlockSpec((1, tq, cp), lambda bi, qi, ki: (bi, qi, 0))
        scratch = [pltpu.VMEM((1, tq, 1), jnp.float32),
                   pltpu.VMEM((1, tq, 1), jnp.float32),
                   pltpu.VMEM((1, tq, cp), jnp.float32)]
        dims = ("parallel", "parallel", "arbitrary")

    return pl.pallas_call(
        kern,
        out_shape=jax.ShapeDtypeStruct((b, hw, cp), jnp.bfloat16),
        grid_spec=pltpu.PrefetchScalarGridSpec(
            num_scalar_prefetch=0, grid=grid,
            in_specs=in_specs, out_specs=out_specs, scratch_shapes=scratch),
        compiler_params=pltpu.CompilerParams(dimension_semantics=dims),
    )(kv3, kv3, kv3, key_stats, gamma, beta)


# ------------------------------ forward pass -------------------------------- #

@jax.jit
def baseoc_context_forward(x_nchw, params):
    b, c, h, w = x_nchw.shape
    m = b * h * w
    hw = h * w
    xf = jnp.transpose(x_nchw, (0, 2, 3, 1)).reshape(m, c).astype(jnp.bfloat16)

    kc = params['fk_w'].shape[1]
    vc = params['fv_w'].shape[1]
    oc = params['out_w'].shape[1]
    cp = _round_up(max(kc, vc), _LANE)     # common lane-padded key/value width
    op = _round_up(oc, _LANE)              # lane-padded output width

    # Lane-padded, fused projection weights (zero padding keeps the math exact).
    w_kv = jnp.concatenate(
        [_pad2d(params['fk_w'].astype(jnp.bfloat16), c, cp),
         _pad2d(params['fv_w'].astype(jnp.bfloat16), c, cp)], axis=1)
    b_kv = jnp.concatenate(
        [_pad2d(params['fk_b'], 1, cp), _pad2d(params['fv_b'], 1, cp)], axis=1)
    fk_g = _pad2d(params['fk_g'], 1, cp)
    fk_beta = _pad2d(params['fk_beta'], 1, cp)
    w_W = _pad2d(params['W_w'].astype(jnp.bfloat16), cp, op)
    b_W = _pad2d(params['W_b'], 1, op)
    w_out = _pad2d(params['out_w'].astype(jnp.bfloat16), op, op)
    b_out = _pad2d(params['out_b'], 1, op)
    out_g = _pad2d(params['out_g'], 1, op)
    out_beta = _pad2d(params['out_beta'], 1, op)

    n_splits = _num_stat_splits(m)

    # Fused f_key/f_query + f_value 1x1 convs (x streamed from HBM once),
    # bf16 output + per-split BN-stat partials for the key/query BatchNorm.
    kv_pre, kv_st = proj_stats(xf, w_kv, b_kv, n_splits=n_splits)

    # Combine split partials & slice the key-part stats (tiny XLA op).
    key_st = jnp.sum(kv_st, axis=0)[:, :cp]

    # Attention with the key/query BN+ReLU fused in-kernel; query == key.
    kv3 = kv_pre.reshape(b, hw, 2 * cp)
    ctx = self_attention_bn(kv3, key_st, fk_g, fk_beta,
                            kc_real=kc, cp=cp, count=m)
    ctx2 = ctx.reshape(m, cp)

    # Fused attention-output conv W + head conv (bf16 out) with BN stats.
    y_pre, y_st = ctx_proj_stats(ctx2, w_W, b_W, w_out, b_out, n_splits=n_splits)

    out = bn_apply(y_pre, y_st, out_g, out_beta, count=m, relu=True,
                   out_dtype=jnp.float32)
    # TODO(synk): nn.Dropout2d(0.05) is identity in eval mode; training-mode
    # channel dropout is not implemented here.

    out = out[:, :oc]
    return jnp.transpose(out.reshape(b, h, w, oc), (0, 3, 1, 2))


# ---------------------------- pure-JAX reference ---------------------------- #

def _reference_forward(x_nchw, p):
    """bf16-matched reference (no Pallas) for a sanity check."""
    b, c, h, w = x_nchw.shape
    m = b * h * w
    hw = h * w
    xf = jnp.transpose(x_nchw, (0, 2, 3, 1)).reshape(m, c).astype(jnp.bfloat16)

    def bn(y_stats, y_apply, g, bb, relu):
        mean = jnp.mean(y_stats, axis=0, keepdims=True)
        var = jnp.mean(y_stats * y_stats, axis=0, keepdims=True) - mean * mean
        o = (y_apply.astype(jnp.float32) - mean) * (g * lax.rsqrt(var + _EPS)) + bb
        return jnp.maximum(o, 0.0) if relu else o

    key_pre = jnp.dot(xf, p['fk_w'], preferred_element_type=jnp.float32) + p['fk_b']
    keyq = bn(key_pre, key_pre.astype(jnp.bfloat16), p['fk_g'], p['fk_beta'], True)
    value = (jnp.dot(xf, p['fv_w'], preferred_element_type=jnp.float32)
             + p['fv_b']).astype(jnp.bfloat16)

    kc = keyq.shape[-1]
    q3 = keyq.astype(jnp.bfloat16).astype(jnp.float32).reshape(b, hw, kc)
    v3 = value.astype(jnp.float32).reshape(b, hw, -1)
    sim = jnp.einsum('bqd,bkd->bqk', q3, q3) * (float(kc) ** -0.5)
    sim = jax.nn.softmax(sim, axis=-1)
    ctx = jnp.einsum('bqk,bkd->bqd', sim, v3).astype(jnp.bfloat16).reshape(m, -1)

    t = jnp.dot(ctx, p['W_w'], preferred_element_type=jnp.float32) + p['W_b']
    y = (jnp.dot(t.astype(jnp.bfloat16), p['out_w'],
                 preferred_element_type=jnp.float32) + p['out_b'])
    out = bn(y, y.astype(jnp.bfloat16), p['out_g'], p['out_beta'], True)
    return jnp.transpose(out.reshape(b, h, w, -1), (0, 3, 1, 2))


# --------------------------- deterministic params --------------------------- #

def init_baseoc_params(in_channels, out_channels, key_channels, value_channels,
                       seed=0):
    ks = jax.random.split(jax.random.PRNGKey(seed), 6)

    def wmat(k, shape, fan_in):
        return (jax.random.normal(k, shape, jnp.float32)
                / (fan_in ** 0.5)).astype(jnp.bfloat16)

    # NOTE: PyTorch zero-initializes W.weight/W.bias; random values are used
    # here so the kernels are exercised with non-degenerate data.
    return dict(
        fk_w=wmat(ks[0], (in_channels, key_channels), in_channels),
        fk_b=jax.random.normal(ks[1], (1, key_channels), jnp.float32) * 0.1,
        fk_g=jnp.ones((1, key_channels), jnp.float32),
        fk_beta=jnp.zeros((1, key_channels), jnp.float32),
        fv_w=wmat(ks[2], (in_channels, value_channels), in_channels),
        fv_b=jax.random.normal(ks[3], (1, value_channels), jnp.float32) * 0.1,
        W_w=wmat(ks[4], (value_channels, out_channels), value_channels),
        W_b=jnp.zeros((1, out_channels), jnp.float32),
        out_w=wmat(ks[5], (in_channels, out_channels), in_channels),
        out_b=jnp.zeros((1, out_channels), jnp.float32),
        out_g=jnp.ones((1, out_channels), jnp.float32),
        out_beta=jnp.zeros((1, out_channels), jnp.float32),
    )


# ----------------------------------- main ----------------------------------- #

if __name__ == "__main__":
    B, C, H, W = 4, 64, 16, 16          # in_channels == out_channels (as in OCNet)
    KEY_C, VAL_C = 32, 64
    params = init_baseoc_params(C, C, KEY_C, VAL_C, seed=0)
    x = jax.random.normal(jax.random.PRNGKey(0), (B, C, H, W), jnp.float32)

    out = baseoc_context_forward(x, params)
    jax.block_until_ready(out)

    assert out.shape == (B, C, H, W), out.shape
    assert bool(jnp.all(jnp.isfinite(out))), "non-finite output"
    ref = _reference_forward(x, params)
    max_err = float(jnp.max(jnp.abs(out - ref)))
    assert bool(jnp.allclose(out, ref, atol=1e-1, rtol=1e-1)), max_err
    print("KERNEL_OK")
</pallas_src>

<mosaic_0001>
module attributes {stable_mosaic.version = 11 : i64} {
  func.func @_proj_stats_kernel(%arg0: i32, %arg1: i32, %arg2: memref<512x64xbf16, #tpu.memory_space<vmem>>, %arg3: memref<64x256xbf16, #tpu.memory_space<vmem>>, %arg4: memref<1x256xf32, #tpu.memory_space<vmem>>, %arg5: memref<512x256xbf16, #tpu.memory_space<vmem>>, %arg6: memref<1x2x256xf32, #tpu.memory_space<vmem>>) attributes {dimension_semantics = [#tpu.dimension_semantics<parallel>, #tpu.dimension_semantics<arbitrary>], iteration_bounds = array<i64: 2, 1>, scalar_prefetch = 0 : i64, scratch_operands = 0 : i64, tpu.core_type = #tpu.core_type<tc>, window_params = [{transform_indices = @transform_0, window_bounds = array<i64: 512, 64>}, {pipeline_mode = #tpu.pipeline_mode<synchronous>, transform_indices = @transform_1, window_bounds = array<i64: 64, 256>}, {pipeline_mode = #tpu.pipeline_mode<synchronous>, transform_indices = @transform_2, window_bounds = array<i64: 1, 256>}, {transform_indices = @transform_3, window_bounds = array<i64: 512, 256>}, {transform_indices = @transform_4, window_bounds = array<i64: 1, 2, 256>}]} {
    %c0_i32 = arith.constant 0 : i32
    %0 = arith.cmpi eq, %arg1, %c0_i32 : i32
    %1 = arith.extui %0 : i1 to i32
    %c0_i32_0 = arith.constant 0 : i32
    %2 = arith.cmpi ne, %1, %c0_i32_0 : i32
    scf.if %2 {
      %cst_21 = arith.constant 0.000000e+00 : f32
      %24 = vector.broadcast %cst_21 : f32 to vector<1x2x256xf32>
      %c0_22 = arith.constant 0 : index
      %c0_23 = arith.constant 0 : index
      %c0_24 = arith.constant 0 : index
      %25 = vector.load %arg6[%c0_22, %c0_23, %c0_24] : memref<1x2x256xf32, #tpu.memory_space<vmem>>, vector<1x2x256xf32>
      tpu.vector_store %arg6[%c0_22, %c0_23, %c0_24], %24 {strides = array<i32>} : memref<1x2x256xf32, #tpu.memory_space<vmem>>, vector<1x2x256xf32>,
    } else {
    }
    %c0 = arith.constant 0 : index
    %c0_1 = arith.constant 0 : index
    %3 = vector.load %arg2[%c0, %c0_1] : memref<512x64xbf16, #tpu.memory_space<vmem>>, vector<512x64xbf16>
    %c0_2 = arith.constant 0 : index
    %c0_3 = arith.constant 0 : index
    %4 = vector.load %arg3[%c0_2, %c0_3] : memref<64x256xbf16, #tpu.memory_space<vmem>>, vector<64x256xbf16>
    %cst = arith.constant dense<0.000000e+00> : vector<512x256xf32>
    %5 = tpu.matmul %3, %4, %cst {dimension_numbers = #tpu.dot_dimension_numbers<[1], [0], [0], [1], [0, 0, 1, 1], [], []>} : vector<512x64xbf16>, vector<64x256xbf16>, vector<512x256xf32> -> vector<512x256xf32>
    %c0_4 = arith.constant 0 : index
    %c0_5 = arith.constant 0 : index
    %6 = vector.load %arg4[%c0_4, %c0_5] : memref<1x256xf32, #tpu.memory_space<vmem>>, vector<1x256xf32>
    %7 = vector.broadcast %6 : vector<1x256xf32> to vector<512x256xf32>
    %8 = arith.addf %5, %7 : vector<512x256xf32>
    %9 = arith.truncf %8 : vector<512x256xf32> to vector<512x256xbf16>
    %c0_6 = arith.constant 0 : index
    %c0_7 = arith.constant 0 : index
    %10 = vector.load %arg5[%c0_6, %c0_7] : memref<512x256xbf16, #tpu.memory_space<vmem>>, vector<512x256xbf16>
    tpu.vector_store %arg5[%c0_6, %c0_7], %9 {strides = array<i32>} : memref<512x256xbf16, #tpu.memory_space<vmem>>, vector<512x256xbf16>,
    %c0_8 = arith.constant 0 : index
    %c0_9 = arith.constant 0 : index
    %c0_10 = arith.constant 0 : index
    %11 = vector.load %arg6[%c0_8, %c0_9, %c0_10] : memref<1x2x256xf32, #tpu.memory_space<vmem>>, vector<1x1x256xf32>
    %cst_11 = arith.constant dense<0.000000e+00> : vector<256xf32>
    %12 = vector.multi_reduction <add>, %8, %cst_11 [0] : vector<512x256xf32> to vector<256xf32>
    %13 = vector.shape_cast %12 : vector<256xf32> to vector<1x256xf32>
    %14 = vector.shape_cast %13 : vector<1x256xf32> to vector<1x1x256xf32>
    %15 = arith.addf %11, %14 : vector<1x1x256xf32>
    %c0_12 = arith.constant 0 : index
    %c0_13 = arith.constant 0 : index
    %c0_14 = arith.constant 0 : index
    %16 = vector.load %arg6[%c0_12, %c0_13, %c0_14] : memref<1x2x256xf32, #tpu.memory_space<vmem>>, vector<1x1x256xf32>
    tpu.vector_store %arg6[%c0_12, %c0_13, %c0_14], %15 {strides = array<i32>} : memref<1x2x256xf32, #tpu.memory_space<vmem>>, vector<1x1x256xf32>,
    %c0_15 = arith.constant 0 : index
    %c1 = arith.constant 1 : index
    %c0_16 = arith.constant 0 : index
    %17 = vector.load %arg6[%c0_15, %c1, %c0_16] : memref<1x2x256xf32, #tpu.memory_space<vmem>>, vector<1x1x256xf32>
    %18 = arith.mulf %8, %8 : vector<512x256xf32>
    %cst_17 = arith.constant dense<0.000000e+00> : vector<256xf32>
    %19 = vector.multi_reduction <add>, %18, %cst_17 [0] : vector<512x256xf32> to vector<256xf32>
    %20 = vector.shape_cast %19 : vector<256xf32> to vector<1x256xf32>
    %21 = vector.shape_cast %20 : vector<1x256xf32> to vector<1x1x256xf32>
    %22 = arith.addf %17, %21 : vector<1x1x256xf32>
    %c0_18 = arith.constant 0 : index
    %c1_19 = arith.constant 1 : index
    %c0_20 = arith.constant 0 : index
    %23 = vector.load %arg6[%c0_18, %c1_19, %c0_20] : memref<1x2x256xf32, #tpu.memory_space<vmem>>, vector<1x1x256xf32>
    tpu.vector_store %arg6[%c0_18, %c1_19, %c0_20], %22 {strides = array<i32>} : memref<1x2x256xf32, #tpu.memory_space<vmem>>, vector<1x1x256xf32>,
    return
  }
  func.func @transform_0(%arg0: i32, %arg1: i32) -> (i32, i32) {
    %c1_i32 = arith.constant 1 : i32
    %0 = arith.muli %arg0, %c1_i32 : i32
    %1 = arith.addi %0, %arg1 : i32
    %c0_i32 = arith.constant 0 : i32
    %c0_i32_0 = arith.constant 0 : i32
    return %1, %c0_i32 : i32, i32
  }
  func.func @transform_1(%arg0: i32, %arg1: i32) -> (i32, i32) {
    %c0_i32 = arith.constant 0 : i32
    %c0_i32_0 = arith.constant 0 : i32
    %c0_i32_1 = arith.constant 0 : i32
    return %c0_i32, %c0_i32_0 : i32, i32
  }
  func.func @transform_2(%arg0: i32, %arg1: i32) -> (i32, i32) {
    %c0_i32 = arith.constant 0 : i32
    %c0_i32_0 = arith.constant 0 : i32
    %c0_i32_1 = arith.constant 0 : i32
    return %c0_i32, %c0_i32_0 : i32, i32
  }
  func.func @transform_3(%arg0: i32, %arg1: i32) -> (i32, i32) {
    %c1_i32 = arith.constant 1 : i32
    %0 = arith.muli %arg0, %c1_i32 : i32
    %1 = arith.addi %0, %arg1 : i32
    %c0_i32 = arith.constant 0 : i32
    %c0_i32_0 = arith.constant 0 : i32
    return %1, %c0_i32 : i32, i32
  }
  func.func @transform_4(%arg0: i32, %arg1: i32) -> (i32, i32, i32) {
    %c0_i32 = arith.constant 0 : i32
    %c0_i32_0 = arith.constant 0 : i32
    %c0_i32_1 = arith.constant 0 : i32
    return %arg0, %c0_i32, %c0_i32_0 : i32, i32, i32
  }
}

module attributes {stable_mosaic.version = 11 : i64} {
  func.func @_attn_single_kernel(%arg0: i32, %arg1: i32, %arg2: memref<1x256x128xbf16, #tpu.memory_space<vmem>>, %arg3: memref<1x256x128xbf16, #tpu.memory_space<vmem>>, %arg4: memref<1x256x128xbf16, #tpu.memory_space<vmem>>, %arg5: memref<2x128xf32, #tpu.memory_space<vmem>>, %arg6: memref<1x128xf32, #tpu.memory_space<vmem>>, %arg7: memref<1x128xf32, #tpu.memory_space<vmem>>, %arg8: memref<1x256x128xbf16, #tpu.memory_space<vmem>>) attributes {dimension_semantics = [#tpu.dimension_semantics<parallel>, #tpu.dimension_semantics<parallel>], iteration_bounds = array<i64: 4, 1>, scalar_prefetch = 0 : i64, scratch_operands = 0 : i64, tpu.core_type = #tpu.core_type<tc>, window_params = [{transform_indices = @transform_0, window_bounds = array<i64: 1, 256, 128>}, {transform_indices = @transform_1, window_bounds = array<i64: 1, 256, 128>}, {transform_indices = @transform_2, window_bounds = array<i64: 1, 256, 128>}, {pipeline_mode = #tpu.pipeline_mode<synchronous>, transform_indices = @transform_3, window_bounds = array<i64: 2, 128>}, {pipeline_mode = #tpu.pipeline_mode<synchronous>, transform_indices = @transform_4, window_bounds = array<i64: 1, 128>}, {pipeline_mode = #tpu.pipeline_mode<synchronous>, transform_indices = @transform_5, window_bounds = array<i64: 1, 128>}, {transform_indices = @transform_6, window_bounds = array<i64: 1, 256, 128>}]} {
    %c0 = arith.constant 0 : index
    %c0_0 = arith.constant 0 : index
    %0 = vector.load %arg5[%c0, %c0_0] : memref<2x128xf32, #tpu.memory_space<vmem>>, vector<2x128xf32>
    %c0_1 = arith.constant 0 : index
    %c0_2 = arith.constant 0 : index
    %c0_3 = arith.constant 0 : index
    %1 = vector.load %arg2[%c0_1, %c0_2, %c0_3] : memref<1x256x128xbf16, #tpu.memory_space<vmem>>, vector<1x256x128xbf16>
    %c0_4 = arith.constant 0 : index
    %c0_5 = arith.constant 0 : index
    %2 = vector.load %arg6[%c0_4, %c0_5] : memref<1x128xf32, #tpu.memory_space<vmem>>, vector<1x128xf32>
    %c0_6 = arith.constant 0 : index
    %c0_7 = arith.constant 0 : index
    %3 = vector.load %arg7[%c0_6, %c0_7] : memref<1x128xf32, #tpu.memory_space<vmem>>, vector<1x128xf32>
    %4 = vector.extract_strided_slice %0 {offsets = [0, 0], sizes = [1, 128], strides = [1, 1]} : vector<2x128xf32> to vector<1x128xf32>
    %cst = arith.constant 9.765625E-4 : f32
    %5 = vector.broadcast %cst : f32 to vector<1x128xf32>
    %6 = arith.mulf %4, %5 : vector<1x128xf32>
    %7 = vector.extract_strided_slice %0 {offsets = [1, 0], sizes = [1, 128], strides = [1, 1]} : vector<2x128xf32> to vector<1x128xf32>
    %cst_8 = arith.constant 9.765625E-4 : f32
    %8 = vector.broadcast %cst_8 : f32 to vector<1x128xf32>
    %9 = arith.mulf %7, %8 : vector<1x128xf32>
    %10 = arith.mulf %6, %6 : vector<1x128xf32>
    %11 = arith.subf %9, %10 : vector<1x128xf32>
    %cst_9 = arith.constant 9.99999974E-6 : f32
    %12 = vector.broadcast %cst_9 : f32 to vector<1x128xf32>
    %13 = arith.addf %11, %12 : vector<1x128xf32>
    %14 = math.rsqrt %13 : vector<1x128xf32>
    %15 = arith.mulf %2, %14 : vector<1x128xf32>
    %16 = arith.mulf %6, %15 : vector<1x128xf32>
    %17 = arith.subf %3, %16 : vector<1x128xf32>
    %18 = arith.extf %1 : vector<1x256x128xbf16> to vector<1x256x128xf32>
    %19 = vector.shape_cast %15 : vector<1x128xf32> to vector<1x1x128xf32>
    %20 = vector.broadcast %19 : vector<1x1x128xf32> to vector<1x256x128xf32>
    %21 = arith.mulf %18, %20 : vector<1x256x128xf32>
    %22 = vector.shape_cast %17 : vector<1x128xf32> to vector<1x1x128xf32>
    %23 = vector.broadcast %22 : vector<1x1x128xf32> to vector<1x256x128xf32>
    %24 = arith.addf %21, %23 : vector<1x256x128xf32>
    %cst_10 = arith.constant 0.000000e+00 : f32
    %25 = vector.broadcast %cst_10 : f32 to vector<1x256x128xf32>
    %26 = arith.maximumf %24, %25 : vector<1x256x128xf32>
    %c0_11 = arith.constant 0 : index
    %c0_12 = arith.constant 0 : index
    %c0_13 = arith.constant 0 : index
    %27 = vector.load %arg3[%c0_11, %c0_12, %c0_13] : memref<1x256x128xbf16, #tpu.memory_space<vmem>>, vector<1x256x128xbf16>
    %c0_14 = arith.constant 0 : index
    %c0_15 = arith.constant 0 : index
    %28 = vector.load %arg6[%c0_14, %c0_15] : memref<1x128xf32, #tpu.memory_space<vmem>>, vector<1x128xf32>
    %c0_16 = arith.constant 0 : index
    %c0_17 = arith.constant 0 : index
    %29 = vector.load %arg7[%c0_16, %c0_17] : memref<1x128xf32, #tpu.memory_space<vmem>>, vector<1x128xf32>
    %30 = vector.extract_strided_slice %0 {offsets = [0, 0], sizes = [1, 128], strides = [1, 1]} : vector<2x128xf32> to vector<1x128xf32>
    %cst_18 = arith.constant 9.765625E-4 : f32
    %31 = vector.broadcast %cst_18 : f32 to vector<1x128xf32>
    %32 = arith.mulf %30, %31 : vector<1x128xf32>
    %33 = vector.extract_strided_slice %0 {offsets = [1, 0], sizes = [1, 128], strides = [1, 1]} : vector<2x128xf32> to vector<1x128xf32>
    %cst_19 = arith.constant 9.765625E-4 : f32
    %34 = vector.broadcast %cst_19 : f32 to vector<1x128xf32>
    %35 = arith.mulf %33, %34 : vector<1x128xf32>
    %36 = arith.mulf %32, %32 : vector<1x128xf32>
    %37 = arith.subf %35, %36 : vector<1x128xf32>
    %cst_20 = arith.constant 9.99999974E-6 : f32
    %38 = vector.broadcast %cst_20 : f32 to vector<1x128xf32>
    %39 = arith.addf %37, %38 : vector<1x128xf32>
    %40 = math.rsqrt %39 : vector<1x128xf32>
    %41 = arith.mulf %28, %40 : vector<1x128xf32>
    %42 = arith.mulf %32, %41 : vector<1x128xf32>
    %43 = arith.subf %29, %42 : vector<1x128xf32>
    %44 = arith.extf %27 : vector<1x256x128xbf16> to vector<1x256x128xf32>
    %45 = vector.shape_cast %41 : vector<1x128xf32> to vector<1x1x128xf32>
    %46 = vector.broadcast %45 : vector<1x1x128xf32> to vector<1x256x128xf32>
    %47 = arith.mulf %44, %46 : vector<1x256x128xf32>
    %48 = vector.shape_cast %43 : vector<1x128xf32> to vector<1x1x128xf32>
    %49 = vector.broadcast %48 : vector<1x1x128xf32> to vector<1x256x128xf32>
    %50 = arith.addf %47, %49 : vector<1x256x128xf32>
    %cst_21 = arith.constant 0.000000e+00 : f32
    %51 = vector.broadcast %cst_21 : f32 to vector<1x256x128xf32>
    %52 = arith.maximumf %50, %51 : vector<1x256x128xf32>
    %53 = arith.truncf %26 : vector<1x256x128xf32> to vector<1x256x128xbf16>
    %54 = arith.truncf %52 : vector<1x256x128xf32> to vector<1x256x128xbf16>
    "tpu.trace_start"() <{level = 10 : i32, message = "bqd,bkd->bqk"}> : () -> ()
    %cst_22 = arith.constant dense<0.000000e+00> : vector<1x256x256xf32>
    %55 = tpu.matmul %53, %54, %cst_22 {dimension_numbers = #tpu.dot_dimension_numbers<[2], [2], [1], [1], [0, 0, 0, 1, 1, 1], [0], [0]>} : vector<1x256x128xbf16>, vector<1x256x128xbf16>, vector<1x256x256xf32> -> vector<1x256x256xf32>
    "tpu.trace_stop"() : () -> ()
    %cst_23 = arith.constant 0.176776692 : f32
    %56 = vector.broadcast %cst_23 : f32 to vector<1x256x256xf32>
    %57 = arith.mulf %55, %56 : vector<1x256x256xf32>
    %cst_24 = arith.constant dense<0xFF800000> : vector<1x256xf32>
    %58 = vector.multi_reduction <maximumf>, %57, %cst_24 [2] : vector<1x256x256xf32> to vector<1x256xf32>
    %59 = vector.shape_cast %58 : vector<1x256xf32> to vector<1x256x1xf32>
    %60 = vector.broadcast %59 : vector<1x256x1xf32> to vector<1x256x256xf32>
    %61 = arith.subf %57, %60 : vector<1x256x256xf32>
    %62 = math.exp %61 : vector<1x256x256xf32>
    %cst_25 = arith.constant dense<0.000000e+00> : vector<1x256xf32>
    %63 = vector.multi_reduction <add>, %62, %cst_25 [2] : vector<1x256x256xf32> to vector<1x256xf32>
    %64 = vector.shape_cast %63 : vector<1x256xf32> to vector<1x256x1xf32>
    %65 = arith.truncf %62 : vector<1x256x256xf32> to vector<1x256x256xbf16>
    %c0_26 = arith.constant 0 : index
    %c0_27 = arith.constant 0 : index
    %c0_28 = arith.constant 0 : index
    %66 = vector.load %arg4[%c0_26, %c0_27, %c0_28] : memref<1x256x128xbf16, #tpu.memory_space<vmem>>, vector<1x256x128xbf16>
    "tpu.trace_start"() <{level = 10 : i32, message = "bqk,bkd->bqd"}> : () -> ()
    %cst_29 = arith.constant dense<0.000000e+00> : vector<1x256x128xf32>
    %67 = tpu.matmul %65, %66, %cst_29 {dimension_numbers = #tpu.dot_dimension_numbers<[2], [1], [1], [2], [0, 0, 0, 1, 1, 2], [0], [0]>} : vector<1x256x256xbf16>, vector<1x256x128xbf16>, vector<1x256x128xf32> -> vector<1x256x128xf32>
    "tpu.trace_stop"() : () -> ()
    %68 = tpu.reciprocal %64 {approx = true} : vector<1x256x1xf32> -> vector<1x256x1xf32>
    %69 = vector.broadcast %68 : vector<1x256x1xf32> to vector<1x256x128xf32>
    %70 = arith.mulf %67, %69 : vector<1x256x128xf32>
    %71 = arith.truncf %70 : vector<1x256x128xf32> to vector<1x256x128xbf16>
    %c0_30 = arith.constant 0 : index
    %c0_31 = arith.constant 0 : index
    %c0_32 = arith.constant 0 : index
    %72 = vector.load %arg8[%c0_30, %c0_31, %c0_32] : memref<1x256x128xbf16, #tpu.memory_space<vmem>>, vector<1x256x128xbf16>
    tpu.vector_store %arg8[%c0_30, %c0_31, %c0_32], %71 {strides = array<i32>} : memref<1x256x128xbf16, #tpu.memory_space<vmem>>, vector<1x256x128xbf16>,
    return
  }
  func.func @transform_0(%arg0: i32, %arg1: i32) -> (i32, i32, i32) {
    %c0_i32 = arith.constant 0 : i32
    %c0_i32_0 = arith.constant 0 : i32
    return %arg0, %arg1, %c0_i32 : i32, i32, i32
  }
  func.func @transform_1(%arg0: i32, %arg1: i32) -> (i32, i32, i32) {
    %c0_i32 = arith.constant 0 : i32
    %c0_i32_0 = arith.constant 0 : i32
    %c0_i32_1 = arith.constant 0 : i32
    return %arg0, %c0_i32, %c0_i32_0 : i32, i32, i32
  }
  func.func @transform_2(%arg0: i32, %arg1: i32) -> (i32, i32, i32) {
    %c0_i32 = arith.constant 0 : i32
    %c1_i32 = arith.constant 1 : i32
    %c0_i32_0 = arith.constant 0 : i32
    return %arg0, %c0_i32, %c1_i32 : i32, i32, i32
  }
  func.func @transform_3(%arg0: i32, %arg1: i32) -> (i32, i32) {
    %c0_i32 = arith.constant 0 : i32
    %c0_i32_0 = arith.constant 0 : i32
    %c0_i32_1 = arith.constant 0 : i32
    return %c0_i32, %c0_i32_0 : i32, i32
  }
  func.func @transform_4(%arg0: i32, %arg1: i32) -> (i32, i32) {
    %c0_i32 = arith.constant 0 : i32
    %c0_i32_0 = arith.constant 0 : i32
    %c0_i32_1 = arith.constant 0 : i32
    return %c0_i32, %c0_i32_0 : i32, i32
  }
  func.func @transform_5(%arg0: i32, %arg1: i32) -> (i32, i32) {
    %c0_i32 = arith.constant 0 : i32
    %c0_i32_0 = arith.constant 0 : i32
    %c0_i32_1 = arith.constant 0 : i32
    return %c0_i32, %c0_i32_0 : i32, i32
  }
  func.func @transform_6(%arg0: i32, %arg1: i32) -> (i32, i32, i32) {
    %c0_i32 = arith.constant 0 : i32
    %c0_i32_0 = arith.constant 0 : i32
    return %arg0, %arg1, %c0_i32 : i32, i32, i32
  }
}

module attributes {stable_mosaic.version = 11 : i64} {
  func.func @_bn_apply_kernel(%arg0: i32, %arg1: memref<1024x128xbf16, #tpu.memory_space<vmem>>, %arg2: memref<2x2x128xf32, #tpu.memory_space<vmem>>, %arg3: memref<1x128xf32, #tpu.memory_space<vmem>>, %arg4: memref<1x128xf32, #tpu.memory_space<vmem>>, %arg5: memref<1024x128xf32, #tpu.memory_space<vmem>>) attributes {dimension_semantics = [#tpu.dimension_semantics<parallel>], iteration_bounds = array<i64: 1>, scalar_prefetch = 0 : i64, scratch_operands = 0 : i64, tpu.core_type = #tpu.core_type<tc>, window_params = [{transform_indices = @transform_0, window_bounds = array<i64: 1024, 128>}, {pipeline_mode = #tpu.pipeline_mode<synchronous>, transform_indices = @transform_1, window_bounds = array<i64: 2, 2, 128>}, {pipeline_mode = #tpu.pipeline_mode<synchronous>, transform_indices = @transform_2, window_bounds = array<i64: 1, 128>}, {pipeline_mode = #tpu.pipeline_mode<synchronous>, transform_indices = @transform_3, window_bounds = array<i64: 1, 128>}, {transform_indices = @transform_4, window_bounds = array<i64: 1024, 128>}]} {
    %c0 = arith.constant 0 : index
    %c0_0 = arith.constant 0 : index
    %0 = vector.load %arg1[%c0, %c0_0] : memref<1024x128xbf16, #tpu.memory_space<vmem>>, vector<1024x128xbf16>
    %1 = arith.extf %0 : vector<1024x128xbf16> to vector<1024x128xf32>
    %c0_1 = arith.constant 0 : index
    %c0_2 = arith.constant 0 : index
    %c0_3 = arith.constant 0 : index
    %2 = vector.load %arg2[%c0_1, %c0_2, %c0_3] : memref<2x2x128xf32, #tpu.memory_space<vmem>>, vector<1x2x128xf32>
    %3 = vector.shape_cast %2 : vector<1x2x128xf32> to vector<2x128xf32>
    %c1 = arith.constant 1 : index
    %c0_4 = arith.constant 0 : index
    %c0_5 = arith.constant 0 : index
    %4 = vector.load %arg2[%c1, %c0_4, %c0_5] : memref<2x2x128xf32, #tpu.memory_space<vmem>>, vector<1x2x128xf32>
    %5 = vector.shape_cast %4 : vector<1x2x128xf32> to vector<2x128xf32>
    %6 = arith.addf %3, %5 : vector<2x128xf32>
    %7 = vector.extract_strided_slice %6 {offsets = [0, 0], sizes = [1, 128], strides = [1, 1]} : vector<2x128xf32> to vector<1x128xf32>
    %cst = arith.constant 9.765625E-4 : f32
    %8 = vector.broadcast %cst : f32 to vector<1x128xf32>
    %9 = arith.mulf %7, %8 : vector<1x128xf32>
    %10 = vector.extract_strided_slice %6 {offsets = [1, 0], sizes = [1, 128], strides = [1, 1]} : vector<2x128xf32> to vector<1x128xf32>
    %cst_6 = arith.constant 9.765625E-4 : f32
    %11 = vector.broadcast %cst_6 : f32 to vector<1x128xf32>
    %12 = arith.mulf %10, %11 : vector<1x128xf32>
    %13 = arith.mulf %9, %9 : vector<1x128xf32>
    %14 = arith.subf %12, %13 : vector<1x128xf32>
    %15 = vector.broadcast %9 : vector<1x128xf32> to vector<1024x128xf32>
    %16 = arith.subf %1, %15 : vector<1024x128xf32>
    %c0_7 = arith.constant 0 : index
    %c0_8 = arith.constant 0 : index
    %17 = vector.load %arg3[%c0_7, %c0_8] : memref<1x128xf32, #tpu.memory_space<vmem>>, vector<1x128xf32>
    %cst_9 = arith.constant 9.99999974E-6 : f32
    %18 = vector.broadcast %cst_9 : f32 to vector<1x128xf32>
    %19 = arith.addf %14, %18 : vector<1x128xf32>
    %20 = math.rsqrt %19 : vector<1x128xf32>
    %21 = arith.mulf %17, %20 : vector<1x128xf32>
    %22 = vector.broadcast %21 : vector<1x128xf32> to vector<1024x128xf32>
    %23 = arith.mulf %16, %22 : vector<1024x128xf32>
    %c0_10 = arith.constant 0 : index
    %c0_11 = arith.constant 0 : index
    %24 = vector.load %arg4[%c0_10, %c0_11] : memref<1x128xf32, #tpu.memory_space<vmem>>, vector<1x128xf32>
    %25 = vector.broadcast %24 : vector<1x128xf32> to vector<1024x128xf32>
    %26 = arith.addf %23, %25 : vector<1024x128xf32>
    %cst_12 = arith.constant 0.000000e+00 : f32
    %27 = vector.broadcast %cst_12 : f32 to vector<1024x128xf32>
    %28 = arith.maximumf %26, %27 : vector<1024x128xf32>
    %c0_13 = arith.constant 0 : index
    %c0_14 = arith.constant 0 : index
    %29 = vector.load %arg5[%c0_13, %c0_14] : memref<1024x128xf32, #tpu.memory_space<vmem>>, vector<1024x128xf32>
    tpu.vector_store %arg5[%c0_13, %c0_14], %28 {strides = array<i32>} : memref<1024x128xf32, #tpu.memory_space<vmem>>, vector<1024x128xf32>,
    return
  }
  func.func @transform_0(%arg0: i32) -> (i32, i32) {
    %c0_i32 = arith.constant 0 : i32
    %c0_i32_0 = arith.constant 0 : i32
    return %arg0, %c0_i32 : i32, i32
  }
  func.func @transform_1(%arg0: i32) -> (i32, i32, i32) {
    %c0_i32 = arith.constant 0 : i32
    %c0_i32_0 = arith.constant 0 : i32
    %c0_i32_1 = arith.constant 0 : i32
    %c0_i32_2 = arith.constant 0 : i32
    return %c0_i32, %c0_i32_0, %c0_i32_1 : i32, i32, i32
  }
  func.func @transform_2(%arg0: i32) -> (i32, i32) {
    %c0_i32 = arith.constant 0 : i32
    %c0_i32_0 = arith.constant 0 : i32
    %c0_i32_1 = arith.constant 0 : i32
    return %c0_i32, %c0_i32_0 : i32, i32
  }
  func.func @transform_3(%arg0: i32) -> (i32, i32) {
    %c0_i32 = arith.constant 0 : i32
    %c0_i32_0 = arith.constant 0 : i32
    %c0_i32_1 = arith.constant 0 : i32
    return %c0_i32, %c0_i32_0 : i32, i32
  }
  func.func @transform_4(%arg0: i32) -> (i32, i32) {
    %c0_i32 = arith.constant 0 : i32
    %c0_i32_0 = arith.constant 0 : i32
    return %arg0, %c0_i32 : i32, i32
  }
}

module attributes {stable_mosaic.version = 11 : i64} {
  func.func @_ctx_proj_stats_kernel(%arg0: i32, %arg1: i32, %arg2: memref<512x128xbf16, #tpu.memory_space<vmem>>, %arg3: memref<128x128xbf16, #tpu.memory_space<vmem>>, %arg4: memref<1x128xf32, #tpu.memory_space<vmem>>, %arg5: memref<128x128xbf16, #tpu.memory_space<vmem>>, %arg6: memref<1x128xf32, #tpu.memory_space<vmem>>, %arg7: memref<512x128xbf16, #tpu.memory_space<vmem>>, %arg8: memref<1x2x128xf32, #tpu.memory_space<vmem>>) attributes {dimension_semantics = [#tpu.dimension_semantics<parallel>, #tpu.dimension_semantics<arbitrary>], iteration_bounds = array<i64: 2, 1>, scalar_prefetch = 0 : i64, scratch_operands = 0 : i64, tpu.core_type = #tpu.core_type<tc>, window_params = [{transform_indices = @transform_0, window_bounds = array<i64: 512, 128>}, {pipeline_mode = #tpu.pipeline_mode<synchronous>, transform_indices = @transform_1, window_bounds = array<i64: 128, 128>}, {pipeline_mode = #tpu.pipeline_mode<synchronous>, transform_indices = @transform_2, window_bounds = array<i64: 1, 128>}, {pipeline_mode = #tpu.pipeline_mode<synchronous>, transform_indices = @transform_3, window_bounds = array<i64: 128, 128>}, {pipeline_mode = #tpu.pipeline_mode<synchronous>, transform_indices = @transform_4, window_bounds = array<i64: 1, 128>}, {transform_indices = @transform_5, window_bounds = array<i64: 512, 128>}, {transform_indices = @transform_6, window_bounds = array<i64: 1, 2, 128>}]} {
    %c0_i32 = arith.constant 0 : i32
    %0 = arith.cmpi eq, %arg1, %c0_i32 : i32
    %1 = arith.extui %0 : i1 to i32
    %c0_i32_0 = arith.constant 0 : i32
    %2 = arith.cmpi ne, %1, %c0_i32_0 : i32
    scf.if %2 {
      %cst_26 = arith.constant 0.000000e+00 : f32
      %30 = vector.broadcast %cst_26 : f32 to vector<1x2x128xf32>
      %c0_27 = arith.constant 0 : index
      %c0_28 = arith.constant 0 : index
      %c0_29 = arith.constant 0 : index
      %31 = vector.load %arg8[%c0_27, %c0_28, %c0_29] : memref<1x2x128xf32, #tpu.memory_space<vmem>>, vector<1x2x128xf32>
      tpu.vector_store %arg8[%c0_27, %c0_28, %c0_29], %30 {strides = array<i32>} : memref<1x2x128xf32, #tpu.memory_space<vmem>>, vector<1x2x128xf32>,
    } else {
    }
    %c0 = arith.constant 0 : index
    %c0_1 = arith.constant 0 : index
    %3 = vector.load %arg2[%c0, %c0_1] : memref<512x128xbf16, #tpu.memory_space<vmem>>, vector<512x128xbf16>
    %c0_2 = arith.constant 0 : index
    %c0_3 = arith.constant 0 : index
    %4 = vector.load %arg3[%c0_2, %c0_3] : memref<128x128xbf16, #tpu.memory_space<vmem>>, vector<128x128xbf16>
    %cst = arith.constant dense<0.000000e+00> : vector<512x128xf32>
    %5 = tpu.matmul %3, %4, %cst {dimension_numbers = #tpu.dot_dimension_numbers<[1], [0], [0], [1], [0, 0, 1, 1], [], []>} : vector<512x128xbf16>, vector<128x128xbf16>, vector<512x128xf32> -> vector<512x128xf32>
    %c0_4 = arith.constant 0 : index
    %c0_5 = arith.constant 0 : index
    %6 = vector.load %arg4[%c0_4, %c0_5] : memref<1x128xf32, #tpu.memory_space<vmem>>, vector<1x128xf32>
    %7 = vector.broadcast %6 : vector<1x128xf32> to vector<512x128xf32>
    %8 = arith.addf %5, %7 : vector<512x128xf32>
    %9 = arith.truncf %8 : vector<512x128xf32> to vector<512x128xbf16>
    %c0_6 = arith.constant 0 : index
    %c0_7 = arith.constant 0 : index
    %10 = vector.load %arg5[%c0_6, %c0_7] : memref<128x128xbf16, #tpu.memory_space<vmem>>, vector<128x128xbf16>
    %cst_8 = arith.constant dense<0.000000e+00> : vector<512x128xf32>
    %11 = tpu.matmul %9, %10, %cst_8 {dimension_numbers = #tpu.dot_dimension_numbers<[1], [0], [0], [1], [0, 0, 1, 1], [], []>} : vector<512x128xbf16>, vector<128x128xbf16>, vector<512x128xf32> -> vector<512x128xf32>
    %c0_9 = arith.constant 0 : index
    %c0_10 = arith.constant 0 : index
    %12 = vector.load %arg6[%c0_9, %c0_10] : memref<1x128xf32, #tpu.memory_space<vmem>>, vector<1x128xf32>
    %13 = vector.broadcast %12 : vector<1x128xf32> to vector<512x128xf32>
    %14 = arith.addf %11, %13 : vector<512x128xf32>
    %15 = arith.truncf %14 : vector<512x128xf32> to vector<512x128xbf16>
    %c0_11 = arith.constant 0 : index
    %c0_12 = arith.constant 0 : index
    %16 = vector.load %arg7[%c0_11, %c0_12] : memref<512x128xbf16, #tpu.memory_space<vmem>>, vector<512x128xbf16>
    tpu.vector_store %arg7[%c0_11, %c0_12], %15 {strides = array<i32>} : memref<512x128xbf16, #tpu.memory_space<vmem>>, vector<512x128xbf16>,
    %c0_13 = arith.constant 0 : index
    %c0_14 = arith.constant 0 : index
    %c0_15 = arith.constant 0 : index
    %17 = vector.load %arg8[%c0_13, %c0_14, %c0_15] : memref<1x2x128xf32, #tpu.memory_space<vmem>>, vector<1x1x128xf32>
    %cst_16 = arith.constant dense<0.000000e+00> : vector<128xf32>
    %18 = vector.multi_reduction <add>, %14, %cst_16 [0] : vector<512x128xf32> to vector<128xf32>
    %19 = vector.shape_cast %18 : vector<128xf32> to vector<1x128xf32>
    %20 = vector.shape_cast %19 : vector<1x128xf32> to vector<1x1x128xf32>
    %21 = arith.addf %17, %20 : vector<1x1x128xf32>
    %c0_17 = arith.constant 0 : index
    %c0_18 = arith.constant 0 : index
    %c0_19 = arith.constant 0 : index
    %22 = vector.load %arg8[%c0_17, %c0_18, %c0_19] : memref<1x2x128xf32, #tpu.memory_space<vmem>>, vector<1x1x128xf32>
    tpu.vector_store %arg8[%c0_17, %c0_18, %c0_19], %21 {strides = array<i32>} : memref<1x2x128xf32, #tpu.memory_space<vmem>>, vector<1x1x128xf32>,
    %c0_20 = arith.constant 0 : index
    %c1 = arith.constant 1 : index
    %c0_21 = arith.constant 0 : index
    %23 = vector.load %arg8[%c0_20, %c1, %c0_21] : memref<1x2x128xf32, #tpu.memory_space<vmem>>, vector<1x1x128xf32>
    %24 = arith.mulf %14, %14 : vector<512x128xf32>
    %cst_22 = arith.constant dense<0.000000e+00> : vector<128xf32>
    %25 = vector.multi_reduction <add>, %24, %cst_22 [0] : vector<512x128xf32> to vector<128xf32>
    %26 = vector.shape_cast %25 : vector<128xf32> to vector<1x128xf32>
    %27 = vector.shape_cast %26 : vector<1x128xf32> to vector<1x1x128xf32>
    %28 = arith.addf %23, %27 : vector<1x1x128xf32>
    %c0_23 = arith.constant 0 : index
    %c1_24 = arith.constant 1 : index
    %c0_25 = arith.constant 0 : index
    %29 = vector.load %arg8[%c0_23, %c1_24, %c0_25] : memref<1x2x128xf32, #tpu.memory_space<vmem>>, vector<1x1x128xf32>
    tpu.vector_store %arg8[%c0_23, %c1_24, %c0_25], %28 {strides = array<i32>} : memref<1x2x128xf32, #tpu.memory_space<vmem>>, vector<1x1x128xf32>,
    return
  }
  func.func @transform_0(%arg0: i32, %arg1: i32) -> (i32, i32) {
    %c1_i32 = arith.constant 1 : i32
    %0 = arith.muli %arg0, %c1_i32 : i32
    %1 = arith.addi %0, %arg1 : i32
    %c0_i32 = arith.constant 0 : i32
    %c0_i32_0 = arith.constant 0 : i32
    return %1, %c0_i32 : i32, i32
  }
  func.func @transform_1(%arg0: i32, %arg1: i32) -> (i32, i32) {
    %c0_i32 = arith.constant 0 : i32
    %c0_i32_0 = arith.constant 0 : i32
    %c0_i32_1 = arith.constant 0 : i32
    return %c0_i32, %c0_i32_0 : i32, i32
  }
  func.func @transform_2(%arg0: i32, %arg1: i32) -> (i32, i32) {
    %c0_i32 = arith.constant 0 : i32
    %c0_i32_0 = arith.constant 0 : i32
    %c0_i32_1 = arith.constant 0 : i32
    return %c0_i32, %c0_i32_0 : i32, i32
  }
  func.func @transform_3(%arg0: i32, %arg1: i32) -> (i32, i32) {
    %c0_i32 = arith.constant 0 : i32
    %c0_i32_0 = arith.constant 0 : i32
    %c0_i32_1 = arith.constant 0 : i32
    return %c0_i32, %c0_i32_0 : i32, i32
  }
  func.func @transform_4(%arg0: i32, %arg1: i32) -> (i32, i32) {
    %c0_i32 = arith.constant 0 : i32
    %c0_i32_0 = arith.constant 0 : i32
    %c0_i32_1 = arith.constant 0 : i32
    return %c0_i32, %c0_i32_0 : i32, i32
  }
  func.func @transform_5(%arg0: i32, %arg1: i32) -> (i32, i32) {
    %c1_i32 = arith.constant 1 : i32
    %0 = arith.muli %arg0, %c1_i32 : i32
    %1 = arith.addi %0, %arg1 : i32
    %c0_i32 = arith.constant 0 : i32
    %c0_i32_0 = arith.constant 0 : i32
    return %1, %c0_i32 : i32, i32
  }
  func.func @transform_6(%arg0: i32, %arg1: i32) -> (i32, i32, i32) {
    %c0_i32 = arith.constant 0 : i32
    %c0_i32_0 = arith.constant 0 : i32
    %c0_i32_1 = arith.constant 0 : i32
    return %arg0, %c0_i32, %c0_i32_0 : i32, i32, i32
  }
}

</mosaic_0001>

<bundles_post_ra>
// kernel: baseoc_context_forward.7
= control target key start
LH: loop header
LB: loop body
LE: loop exit
PB: predicated region body
PF: predicated region fallthrough
CT: control target
= control target key end

     0   :  { %v284_v3 = vlaneseq  ;;  %v1330_v7 = vmov 1966171168   ;;  %s2163_s0 = inlined_call_operand.vmem [shape: bf16[1024,128], index: 0, kind: input, shape index: {}]   ;;  %s2164_s1 = inlined_call_operand.vmem [shape: f32[2,2,128], index: 1, kind: input, shape index: {}]   ;;  %s2165_s2 = inlined_call_operand.vmem [shape: f32[1,128], index: 2, kind: input, shape index: {}]   ;;  %s2166_s3 = inlined_call_operand.vmem [shape: f32[1,128], index: 3, kind: input, shape index: {}]   ;;  %s2167_s4 = inlined_call_operand.hbm [shape: f32[1024,128], index: 4, kind: output, shape index: {}]  }
   0x1   :  { %v981_v0 = vld [vmem:[%s2163_s0] sm:$0xff]   ;;  %v421_v8 = vunpack.c.l.s4 %v1330_v7  ;;  %v1236_v10 = vld [vmem:[%s2163_s0 + $0x8] sm:$0xff]   ;;  %v1237_v11 = vld [vmem:[%s2163_s0 + $0x10] sm:$0xff]  }
   0x2   :  { %v274_v1 = vld [vmem:[%s2164_s1] sm:$0x3]  ;;  %v978_v2 = vld [vmem:[%s2164_s1 + $0x2] sm:$0x3]  ;;  %v982_v5 = vunpack.c.l.bf16 %v981_v0  ;;  %v1368_v6 = vshrl.u32 %v284_v3, 7  ;;  %v983_v9 = vunpack.c.h.bf16 %v981_v0  ;;  %v1238_v12 = vld [vmem:[%s2163_s0 + $0x18] sm:$0xff]   ;;  %v986_v14 = vunpack.c.l.bf16 %v1236_v10 }
   0x3   :  { %v277_v4 = vadd.f32 %v978_v2, %v274_v1  ;;  %v987_v15 = vunpack.c.h.bf16 %v1236_v10  ;;  %v990_v16 = vunpack.c.l.bf16 %v1237_v11  ;;  %v1239_v17 = vld [vmem:[%s2163_s0 + $0x20] sm:$0xff]   ;;  %v1240_v18 = vld [vmem:[%s2163_s0 + $0x28] sm:$0xff]   ;;  %v422_v20 = vunpack.c.0.s8 %v421_v8  ;;  %v1241_v23 = vld [vmem:[%s2163_s0 + $0x30] sm:$0xff]  }
   0x4   :  { %v2168_v19 = vsub.s32 0, %v1368_v6  ;;  %v991_v21 = vunpack.c.h.bf16 %v1237_v11  ;;  %v994_v22 = vunpack.c.l.bf16 %v1238_v12  ;;  %v1242_v24 = vld [vmem:[%s2163_s0 + $0x38] sm:$0xff]   ;;  %v995_v26 = vunpack.c.h.bf16 %v1238_v12  ;;  %v1243_v45 = vld [vmem:[%s2163_s0 + $0x40] sm:$0xff]   ;;  %v1244_v50 = vld [vmem:[%s2163_s0 + $0x48] sm:$0xff]  }
   0x5   :  { %v278_v13 = vmul.f32 0.0009765625, %v277_v4  ;;  %v998_v27 = vunpack.c.l.bf16 %v1239_v17  ;;  %v999_v28 = vunpack.c.h.bf16 %v1239_v17  ;;  %v1397_v30 = vsub.s32 %v422_v20, %v1368_v6  ;;  %v1245_v51 = vld [vmem:[%s2163_s0 + $0x50] sm:$0xff]   ;;  %v1246_v60 = vld [vmem:[%s2163_s0 + $0x58] sm:$0xff]   ;;  %v1247_v0 = vld [vmem:[%s2163_s0 + $0x60] sm:$0xff]  }
   0x6   :  { %v1002_v31 = vunpack.c.l.bf16 %v1240_v18  ;;  %v1003_v32 = vunpack.c.h.bf16 %v1240_v18  ;;  %v1006_v34 = vunpack.c.l.bf16 %v1241_v23  ;;  %v1007_v35 = vunpack.c.h.bf16 %v1241_v23  ;;  %v1249_v7 = vld [vmem:[%s2163_s0 + $0x70] sm:$0xff]  }
   0x7   :  { %v279_v25 = vmul.f32 %v278_v13, %v278_v13  ;;  %v1394_v29 = vrot.slane %v278_v13, %v2168_v19  ;;  %v1010_v36 = vunpack.c.l.bf16 %v1242_v24  ;;  %v1011_v57 = vunpack.c.h.bf16 %v1242_v24 }
   0x8   :  { %v1014_v58 = vunpack.c.l.bf16 %v1243_v45  ;;  %v1015_v59 = vunpack.c.h.bf16 %v1243_v45  ;;  %v1018_v61 = vunpack.c.l.bf16 %v1244_v50  ;;  %v1019_v62 = vunpack.c.h.bf16 %v1244_v50  ;;  %v1254_v50 = vld [vmem:[%s2163_s0 + $0x98] sm:$0xff]  }
   0x9   :  { %2176 = vst [vmem:[#allocation5_spill] sm:$0xff] %v1394_v29  ;;  %v281_v33 = vrot.slane %v279_v25, 7  ;;  %v1400_v37 = vsub.f32 %v982_v5, %v1394_v29  ;;  %v1403_v38 = vsub.f32 %v983_v9, %v1394_v29  ;;  %v1406_v39 = vsub.f32 %v986_v14, %v1394_v29  ;;  %v1248_v5 = vld [vmem:[%s2163_s0 + $0x68] sm:$0xff]  }
   0xa   :  { %v1409_v40 = vsub.f32 %v987_v15, %v1394_v29  ;;  %v1412_v42 = vsub.f32 %v990_v16, %v1394_v29  ;;  %v1415_v43 = vsub.f32 %v991_v21, %v1394_v29  ;;  %v1418_v44 = vsub.f32 %v994_v22, %v1394_v29  ;;  %v1250_v16 = vld [vmem:[%s2163_s0 + $0x78] sm:$0xff]   ;;  %v1251_v22 = vld [vmem:[%s2163_s0 + $0x80] sm:$0xff]  }
   0xb   :  { %v283_v41 = vsub.f32 %v278_v13, %v281_v33  ;;  %v1424_v46 = vsub.f32 %v995_v26, %v1394_v29  ;;  %v1427_v47 = vsub.f32 %v998_v27, %v1394_v29  ;;  %v1430_v48 = vsub.f32 %v999_v28, %v1394_v29  ;;  %v1252_v27 = vld [vmem:[%s2163_s0 + $0x88] sm:$0xff]   ;;  %v1253_v28 = vld [vmem:[%s2163_s0 + $0x90] sm:$0xff]  }
   0xc   :  { %v1433_v49 = vsub.f32 %v1002_v31, %v1394_v29  ;;  %v1442_v53 = vsub.f32 %v1003_v32, %v1394_v29  ;;  %v1445_v54 = vsub.f32 %v1006_v34, %v1394_v29  ;;  %v1448_v55 = vsub.f32 %v1007_v35, %v1394_v29 }
   0xd   :  { %v417_v52 = vadd.f32 1e-05, %v283_v41  ;;  %v1451_v56 = vsub.f32 %v1010_v36, %v1394_v29  ;;  %v1022_v63 = vunpack.c.l.bf16 %v1245_v51  ;;  %v1460_v1 = vsub.f32 %v1011_v57, %v1394_v29 }
   0xe   :  { %v1463_v2 = vsub.f32 %v1014_v58, %v1394_v29  ;;  %v1466_v3 = vsub.f32 %v1015_v59, %v1394_v29  ;;  %v1023_v4 = vunpack.c.h.bf16 %v1245_v51  ;;  %v1475_v8 = vsub.f32 %v1018_v61, %v1394_v29  ;;  %v1255_v59 = vld [vmem:[%s2163_s0 + $0xa0] sm:$0xff]  }
   0xf   :  { %1303 = vrsqrt.f32 %v417_v52  ;;  %v1478_v9 = vsub.f32 %v1019_v62, %v1394_v29  ;;  %v1481_v10 = vsub.f32 %v1022_v63, %v1394_v29  ;;  %v1026_v11 = vunpack.c.l.bf16 %v1246_v60 }
  0x10   :  { %v1484_v12 = vsub.f32 %v1023_v4, %v1394_v29  ;;  %v1027_v13 = vunpack.c.h.bf16 %v1246_v60  ;;  %v1030_v14 = vunpack.c.l.bf16 %v1247_v0  ;;  %v1031_v15 = vunpack.c.h.bf16 %v1247_v0  ;;  %v1256_v0 = vld [vmem:[%s2163_s0 + $0xa8] sm:$0xff]  }
  0x11   :  { %v1490_v17 = vsub.f32 %v1026_v11, %v1394_v29  ;;  %v1034_v18 = vunpack.c.l.bf16 %v1248_v5  ;;  %v1035_v20 = vunpack.c.h.bf16 %v1248_v5  ;;  %v1038_v21 = vunpack.c.l.bf16 %v1249_v7 }
  0x12   :  { %v1496_v23 = vsub.f32 %v1027_v13, %v1394_v29  ;;  %v1499_v24 = vsub.f32 %v1030_v14, %v1394_v29  ;;  %v1502_v25 = vsub.f32 %v1031_v15, %v1394_v29  ;;  %v1039_v26 = vunpack.c.h.bf16 %v1249_v7 }
  0x13   :  { %v1511_v31 = vsub.f32 %v1034_v18, %v1394_v29  ;;  %v1514_v32 = vsub.f32 %v1035_v20, %v1394_v29  ;;  %v1517_v33 = vsub.f32 %v1038_v21, %v1394_v29  ;;  %v1042_v34 = vunpack.c.l.bf16 %v1250_v16 }
  0x14   :  { %v1520_v35 = vsub.f32 %v1039_v26, %v1394_v29  ;;  %v1043_v36 = vunpack.c.h.bf16 %v1250_v16  ;;  %v1046_v41 = vunpack.c.l.bf16 %v1251_v22  ;;  %v1047_v45 = vunpack.c.h.bf16 %v1251_v22 }
  0x15   :  { %v1526_v51 = vsub.f32 %v1042_v34, %v1394_v29  ;;  %v1050_v52 = vunpack.c.l.bf16 %v1252_v27  ;;  %v1051_v57 = vunpack.c.h.bf16 %v1252_v27  ;;  %v1054_v58 = vunpack.c.l.bf16 %v1253_v28 }
  0x16   :  { %v1532_v60 = vsub.f32 %v1043_v36, %v1394_v29  ;;  %v1535_v61 = vsub.f32 %v1046_v41, %v1394_v29  ;;  %v1538_v62 = vsub.f32 %v1047_v45, %v1394_v29  ;;  %v1055_v63 = vunpack.c.h.bf16 %v1253_v28 }
  0x17   :  { %9 = vsyncpa [#allocation3], 0  ;;  %v1544_v5 = vsub.f32 %v1050_v52, %v1394_v29  ;;  %v1547_v7 = vsub.f32 %v1051_v57, %v1394_v29  ;;  %v1550_v11 = vsub.f32 %v1054_v58, %v1394_v29  ;;  %v1058_v13 = vunpack.c.l.bf16 %v1254_v50  ;;  %v1257_v14 = vld [vmem:[%s2163_s0 + $0xb0] sm:$0xff]   ;;  %v1258_v28 = vld [vmem:[%s2163_s0 + $0xb8] sm:$0xff]  }
  0x18   :  { %v1557_v16 = vsub.f32 %v1055_v63, %v1394_v29  ;;  %v1059_v18 = vunpack.c.h.bf16 %v1254_v50  ;;  %v1062_v20 = vunpack.c.l.bf16 %v1255_v59  ;;  %v1063_v22 = vunpack.c.h.bf16 %v1255_v59  ;;  %v1259_v50 = vld [vmem:[%s2163_s0 + $0xc0] sm:$0xff]   ;;  %v1260_v52 = vld [vmem:[%s2163_s0 + $0xc8] sm:$0xff]  }
  0x19   :  { %v1304_v4 = vpop.eup %1303  ;;  %v1560_v21 = vsub.f32 %v1058_v13, %v1394_v29  ;;  %v1066_v26 = vunpack.c.l.bf16 %v1256_v0  ;;  %v1067_v27 = vunpack.c.h.bf16 %v1256_v0  ;;  %v1070_v45 = vunpack.c.l.bf16 %v1257_v14  ;;  %v416_v57 = vld [vmem:[%s2165_s2] sm:$0x1] }
  0x1a   :  { %v426_v15 = vrot.slane %v1304_v4, %v1397_v30  ;;  %v1566_v36 = vsub.f32 %v1059_v18, %v1394_v29  ;;  %v1569_v41 = vsub.f32 %v1062_v20, %v1394_v29  ;;  %v1581_v58 = vsub.f32 %v1063_v22, %v1394_v29  ;;  %v1596_v20 = vld [vmem:[%s2163_s0 + $0xd0] sm:$0xff]  }
  0x1b   :  { %v1584_v59 = vsub.f32 %v1066_v26, %v1394_v29  ;;  %v1587_v63 = vsub.f32 %v1067_v27, %v1394_v29  ;;  %v1071_v0 = vunpack.c.h.bf16 %v1257_v14  ;;  %v1591_v13 = vsub.f32 %v1070_v45, %v1394_v29  ;;  %2177 = vst [vmem:[#allocation6_spill] sm:$0xff] %v1596_v20 }
  0x1c   :  { %v427_v34 = vcombine.high %v426_v15, %v426_v15  ;;  %v1074_v15 = vunpack.c.l.bf16 %v1258_v28  ;;  %v1075_v18 = vunpack.c.h.bf16 %v1258_v28  ;;  %v1078_v26 = vunpack.c.l.bf16 %v1259_v50 }
  0x1d   :  { %v1599_v22 = vsub.f32 %v1071_v0, %v1394_v29  ;;  %v1079_v19 = vunpack.c.h.bf16 %v1259_v50  ;;  %v1082_v27 = vunpack.c.l.bf16 %v1260_v52  ;;  %v1083_v45 = vunpack.c.h.bf16 %v1260_v52  ;;  %v1615_v0 = vld [vmem:[%s2163_s0 + $0xe0] sm:$0xff]  }
  0x1e   :  { %v434_v4 = vrot.slane %v427_v34, %v1397_v30  ;;  %v1604_v30 = vld [vmem:[%s2163_s0 + $0xd8] sm:$0xff]   ;;  %v1607_v34 = vsub.f32 %v1074_v15, %v1394_v29  ;;  %v1610_v28 = vsub.f32 %v1075_v18, %v1394_v29  ;;  %2181 = vst [vmem:[#allocation10_spill] sm:$0xff] %v1615_v0  ;;  %v1618_v50 = vsub.f32 %v1078_v26, %v1394_v29 }
  0x1f   :  { %2178 = vst [vmem:[#allocation7_spill] sm:$0xff] %v1599_v22  ;;  %2179 = vst [vmem:[#allocation8_spill] sm:$0xff] %v1604_v30  ;;  %v1621_v22 = vsub.f32 %v1079_v19, %v1394_v29  ;;  %v2183_v15 = vsub.s32 0, %v1368_v6  ;;  %v1632_v52 = vsub.f32 %v1083_v45, %v1394_v29  ;;  %v1639_v19 = vld [vmem:[%s2166_s3] ss:$0 sm:$0xff] }
  0x20   :  { %v436_v14 = vmul.f32 %v434_v4, %v416_v57  ;;  %2180 = vst [vmem:[#allocation9_spill] sm:$0xff] %v1610_v28  ;;  %v1624_v57 = vsub.f32 %v1082_v27, %v1394_v29  ;;  %v1086_v4 = vunpack.c.l.bf16 %v1596_v20 }
  0x21   :  { %2184 = vst [vmem:[#allocation12_spill] sm:$0xff] %v1632_v52 }
  0x22   :  { %2182 = vst [vmem:[#allocation11_spill] sm:$0xff] %v1624_v57  ;;  %v1629_v18 = vrot.slane %v436_v14, %v2183_v15  ;;  %v1642_v27 = vsub.f32 %v1086_v4, %v1394_v29 }
  0x24   :  { %2185 = vst [vmem:[#allocation13_spill] sm:$0xff] %v1642_v27  ;;  %v443_v45 = vmul.f32 %v1629_v18, %v1400_v37  ;;  %v444_v15 = vmul.f32 %v1629_v18, %v1403_v38  ;;  %v445_v26 = vmul.f32 %v1629_v18, %v1406_v39  ;;  %v446_v28 = vmul.f32 %v1629_v18, %v1409_v40 }
  0x25   :  { %v447_v4 = vmul.f32 %v1629_v18, %v1412_v42  ;;  %v448_v6 = vmul.f32 %v1629_v18, %v1415_v43  ;;  %v449_v14 = vmul.f32 %v1629_v18, %v1418_v44  ;;  %v450_v37 = vmul.f32 %v1629_v18, %v1424_v46 }
  0x26   :  { %v578_v38 = vadd.f32 %v1639_v19, %v443_v45  ;;  %v579_v57 = vadd.f32 %v1639_v19, %v444_v15  ;;  %v580_v39 = vadd.f32 %v1639_v19, %v445_v26  ;;  %v581_v40 = vadd.f32 %v1639_v19, %v446_v28 }
  0x27   :  { %v582_v0 = vadd.f32 %v1639_v19, %v447_v4  ;;  %v583_v42 = vadd.f32 %v1639_v19, %v448_v6  ;;  %v584_v43 = vadd.f32 %v1639_v19, %v449_v14  ;;  %v585_v30 = vadd.f32 %v1639_v19, %v450_v37 }
  0x28   :  { %v706_v44 = vmax.f32 %v578_v38, 0.0  ;;  %v707_v20 = vmax.f32 %v579_v57, 0.0  ;;  %v708_v29 = vmax.f32 %v580_v39, 0.0  ;;  %v709_v46 = vmax.f32 %v581_v40, 0.0 }
  0x29   :  { %v710_v27 = vmax.f32 %v582_v0, 0.0  ;;  %v711_v45 = vmax.f32 %v583_v42, 0.0  ;;  %v712_v52 = vmax.f32 %v584_v43, 0.0  ;;  %v713_v15 = vmax.f32 %v585_v30, 0.0 }
  0x2a   :  { %834 = vst [vmem:[#allocation2] sm:$0xff] %v706_v44  ;;  %835 = vst [vmem:[#allocation2 + $0x8] sm:$0xff] %v707_v20  ;;  %v451_v28 = vmul.f32 %v1629_v18, %v1427_v47  ;;  %v452_v26 = vmul.f32 %v1629_v18, %v1430_v48  ;;  %v453_v6 = vmul.f32 %v1629_v18, %v1433_v49 }
  0x2b   :  { %836 = vst [vmem:[#allocation2 + $0x10] sm:$0xff] %v708_v29  ;;  %837 = vst [vmem:[#allocation2 + $0x18] sm:$0xff] %v709_v46  ;;  %v454_v57 = vmul.f32 %v1629_v18, %v1442_v53  ;;  %v455_v29 = vmul.f32 %v1629_v18, %v1445_v54  ;;  %v456_v20 = vmul.f32 %v1629_v18, %v1448_v55 }
  0x2c   :  { %838 = vst [vmem:[#allocation2 + $0x20] sm:$0xff] %v710_v27  ;;  %839 = vst [vmem:[#allocation2 + $0x28] sm:$0xff] %v711_v45  ;;  %v457_v47 = vmul.f32 %v1629_v18, %v1451_v56  ;;  %v458_v48 = vmul.f32 %v1629_v18, %v1460_v1  ;;  %v586_v49 = vadd.f32 %v1639_v19, %v451_v28 }
  0x2d   :  { %840 = vst [vmem:[#allocation2 + $0x30] sm:$0xff] %v712_v52  ;;  %841 = vst [vmem:[#allocation2 + $0x38] sm:$0xff] %v713_v15  ;;  %v587_v53 = vadd.f32 %v1639_v19, %v452_v26  ;;  %v588_v30 = vadd.f32 %v1639_v19, %v453_v6  ;;  %v589_v0 = vadd.f32 %v1639_v19, %v454_v57 }
  0x2e   :  { %v590_v52 = vadd.f32 %v1639_v19, %v455_v29  ;;  %v591_v54 = vadd.f32 %v1639_v19, %v456_v20  ;;  %v592_v55 = vadd.f32 %v1639_v19, %v457_v47  ;;  %v593_v27 = vadd.f32 %v1639_v19, %v458_v48 }
  0x2f   :  { %v714_v56 = vmax.f32 %v586_v49, 0.0  ;;  %v715_v14 = vmax.f32 %v587_v53, 0.0  ;;  %v716_v4 = vmax.f32 %v588_v30, 0.0  ;;  %v717_v1 = vmax.f32 %v589_v0, 0.0 }
  0x30   :  { %v718_v37 = vmax.f32 %v590_v52, 0.0  ;;  %v719_v38 = vmax.f32 %v591_v54, 0.0  ;;  %v720_v39 = vmax.f32 %v592_v55, 0.0  ;;  %v721_v40 = vmax.f32 %v593_v27, 0.0 }
  0x31   :  { %842 = vst [vmem:[#allocation2 + $0x40] sm:$0xff] %v714_v56  ;;  %843 = vst [vmem:[#allocation2 + $0x48] sm:$0xff] %v715_v14  ;;  %v459_v42 = vmul.f32 %v1629_v18, %v1463_v2  ;;  %v460_v43 = vmul.f32 %v1629_v18, %v1466_v3  ;;  %v461_v44 = vmul.f32 %v1629_v18, %v1475_v8 }
  0x32   :  { %844 = vst [vmem:[#allocation2 + $0x50] sm:$0xff] %v716_v4  ;;  %845 = vst [vmem:[#allocation2 + $0x58] sm:$0xff] %v717_v1  ;;  %v462_v46 = vmul.f32 %v1629_v18, %v1478_v9  ;;  %v463_v45 = vmul.f32 %v1629_v18, %v1481_v10  ;;  %v464_v15 = vmul.f32 %v1629_v18, %v1484_v12 }
  0x33   :  { %846 = vst [vmem:[#allocation2 + $0x60] sm:$0xff] %v718_v37  ;;  %847 = vst [vmem:[#allocation2 + $0x68] sm:$0xff] %v719_v38  ;;  %v465_v2 = vmul.f32 %v1629_v18, %v1490_v17  ;;  %v466_v3 = vmul.f32 %v1629_v18, %v1496_v23  ;;  %v594_v8 = vadd.f32 %v1639_v19, %v459_v42 }
  0x34   :  { %848 = vst [vmem:[#allocation2 + $0x70] sm:$0xff] %v720_v39  ;;  %849 = vst [vmem:[#allocation2 + $0x78] sm:$0xff] %v721_v40  ;;  %v595_v9 = vadd.f32 %v1639_v19, %v460_v43  ;;  %v596_v28 = vadd.f32 %v1639_v19, %v461_v44  ;;  %v597_v26 = vadd.f32 %v1639_v19, %v462_v46 }
  0x35   :  { %v598_v6 = vadd.f32 %v1639_v19, %v463_v45  ;;  %v599_v10 = vadd.f32 %v1639_v19, %v464_v15  ;;  %v600_v12 = vadd.f32 %v1639_v19, %v465_v2  ;;  %v601_v57 = vadd.f32 %v1639_v19, %v466_v3 }
  0x36   :  { %v722_v17 = vmax.f32 %v594_v8, 0.0  ;;  %v723_v29 = vmax.f32 %v595_v9, 0.0  ;;  %v724_v20 = vmax.f32 %v596_v28, 0.0  ;;  %v725_v23 = vmax.f32 %v597_v26, 0.0 }
  0x37   :  { %v726_v47 = vmax.f32 %v598_v6, 0.0  ;;  %v727_v48 = vmax.f32 %v599_v10, 0.0  ;;  %v728_v49 = vmax.f32 %v600_v12, 0.0  ;;  %v729_v53 = vmax.f32 %v601_v57, 0.0 }
  0x38   :  { %850 = vst [vmem:[#allocation2 + $0x80] sm:$0xff] %v722_v17  ;;  %851 = vst [vmem:[#allocation2 + $0x88] sm:$0xff] %v723_v29  ;;  %v467_v30 = vmul.f32 %v1629_v18, %v1499_v24  ;;  %v468_v0 = vmul.f32 %v1629_v18, %v1502_v25  ;;  %v469_v52 = vmul.f32 %v1629_v18, %v1511_v31 }
  0x39   :  { %852 = vst [vmem:[#allocation2 + $0x90] sm:$0xff] %v724_v20  ;;  %853 = vst [vmem:[#allocation2 + $0x98] sm:$0xff] %v725_v23  ;;  %v470_v54 = vmul.f32 %v1629_v18, %v1514_v32  ;;  %v471_v55 = vmul.f32 %v1629_v18, %v1517_v33  ;;  %v472_v27 = vmul.f32 %v1629_v18, %v1520_v35 }
  0x3a   :  { %854 = vst [vmem:[#allocation2 + $0xa0] sm:$0xff] %v726_v47  ;;  %855 = vst [vmem:[#allocation2 + $0xa8] sm:$0xff] %v727_v48  ;;  %v473_v24 = vmul.f32 %v1629_v18, %v1526_v51  ;;  %v474_v25 = vmul.f32 %v1629_v18, %v1532_v60  ;;  %v602_v31 = vadd.f32 %v1639_v19, %v467_v30 }
  0x3b   :  { %856 = vst [vmem:[#allocation2 + $0xb0] sm:$0xff] %v728_v49  ;;  %857 = vst [vmem:[#allocation2 + $0xb8] sm:$0xff] %v729_v53  ;;  %v603_v32 = vadd.f32 %v1639_v19, %v468_v0  ;;  %v604_v56 = vadd.f32 %v1639_v19, %v469_v52  ;;  %v605_v14 = vadd.f32 %v1639_v19, %v470_v54  ;;  %v2186_v53 = vld [vmem:[#allocation7_spill] sm:$0xff] }
  0x3c   :  { %v606_v4 = vadd.f32 %v1639_v19, %v471_v55  ;;  %v607_v33 = vadd.f32 %v1639_v19, %v472_v27  ;;  %v608_v35 = vadd.f32 %v1639_v19, %v473_v24  ;;  %v609_v1 = vadd.f32 %v1639_v19, %v474_v25 }
  0x3d   :  { %v730_v51 = vmax.f32 %v602_v31, 0.0  ;;  %v731_v37 = vmax.f32 %v603_v32, 0.0  ;;  %v732_v38 = vmax.f32 %v604_v56, 0.0  ;;  %v733_v60 = vmax.f32 %v605_v14, 0.0 }
  0x3e   :  { %v734_v39 = vmax.f32 %v606_v4, 0.0  ;;  %v735_v40 = vmax.f32 %v607_v33, 0.0  ;;  %v736_v42 = vmax.f32 %v608_v35, 0.0  ;;  %v737_v43 = vmax.f32 %v609_v1, 0.0 }
  0x3f   :  { %858 = vst [vmem:[#allocation2 + $0xc0] sm:$0xff] %v730_v51  ;;  %859 = vst [vmem:[#allocation2 + $0xc8] sm:$0xff] %v731_v37  ;;  %v475_v44 = vmul.f32 %v1629_v18, %v1535_v61  ;;  %v476_v46 = vmul.f32 %v1629_v18, %v1538_v62  ;;  %v477_v45 = vmul.f32 %v1629_v18, %v1544_v5  ;;  %v2188_v51 = vld [vmem:[#allocation11_spill] sm:$0xff] }
  0x40   :  { %860 = vst [vmem:[#allocation2 + $0xd0] sm:$0xff] %v732_v38  ;;  %861 = vst [vmem:[#allocation2 + $0xd8] sm:$0xff] %v733_v60  ;;  %v478_v15 = vmul.f32 %v1629_v18, %v1547_v7  ;;  %v479_v2 = vmul.f32 %v1629_v18, %v1550_v11  ;;  %v480_v3 = vmul.f32 %v1629_v18, %v1557_v16  ;;  %v2189_v38 = vld [vmem:[#allocation12_spill] sm:$0xff] }
  0x41   :  { %862 = vst [vmem:[#allocation2 + $0xe0] sm:$0xff] %v734_v39  ;;  %863 = vst [vmem:[#allocation2 + $0xe8] sm:$0xff] %v735_v40  ;;  %v481_v61 = vmul.f32 %v1629_v18, %v1560_v21  ;;  %v482_v62 = vmul.f32 %v1629_v18, %v1566_v36  ;;  %v610_v5 = vadd.f32 %v1639_v19, %v475_v44  ;;  %v2190_v39 = vld [vmem:[#allocation13_spill] sm:$0xff] }
  0x42   :  { %864 = vst [vmem:[#allocation2 + $0xf0] sm:$0xff] %v736_v42  ;;  %865 = vst [vmem:[#allocation2 + $0xf8] sm:$0xff] %v737_v43  ;;  %v611_v7 = vadd.f32 %v1639_v19, %v476_v46  ;;  %v612_v8 = vadd.f32 %v1639_v19, %v477_v45  ;;  %v613_v9 = vadd.f32 %v1639_v19, %v478_v15  ;;  %v2191_v42 = vld [vmem:[#allocation5_spill] sm:$0xff]  ;;  %v2192_v43 = vld [vmem:[#allocation6_spill] sm:$0xff] }
  0x43   :  { %v614_v28 = vadd.f32 %v1639_v19, %v479_v2  ;;  %v615_v11 = vadd.f32 %v1639_v19, %v480_v3  ;;  %v616_v16 = vadd.f32 %v1639_v19, %v481_v61  ;;  %v617_v26 = vadd.f32 %v1639_v19, %v482_v62  ;;  %v2194_v46 = vld [vmem:[#allocation8_spill] sm:$0xff] }
  0x44   :  { %v738_v21 = vmax.f32 %v610_v5, 0.0  ;;  %v739_v6 = vmax.f32 %v611_v7, 0.0  ;;  %v740_v10 = vmax.f32 %v612_v8, 0.0  ;;  %v741_v36 = vmax.f32 %v613_v9, 0.0 }
  0x45   :  { %v742_v12 = vmax.f32 %v614_v28, 0.0  ;;  %v743_v57 = vmax.f32 %v615_v11, 0.0  ;;  %v744_v17 = vmax.f32 %v616_v16, 0.0  ;;  %v745_v29 = vmax.f32 %v617_v26, 0.0  ;;  %v1264_v11 = vld [vmem:[%s2163_s0 + $0xe8] sm:$0xff]  }
  0x46   :  { %866 = vst [vmem:[#allocation2 + $0x100] sm:$0xff] %v738_v21  ;;  %867 = vst [vmem:[#allocation2 + $0x108] sm:$0xff] %v739_v6  ;;  %v483_v20 = vmul.f32 %v1629_v18, %v1569_v41  ;;  %v484_v23 = vmul.f32 %v1629_v18, %v1581_v58  ;;  %v485_v47 = vmul.f32 %v1629_v18, %v1584_v59  ;;  %v2187_v58 = vld [vmem:[#allocation9_spill] sm:$0xff]  ;;  %v2193_v44 = vunpack.c.h.bf16 %v2192_v43 }
  0x47   :  { %868 = vst [vmem:[#allocation2 + $0x110] sm:$0xff] %v740_v10  ;;  %869 = vst [vmem:[#allocation2 + $0x118] sm:$0xff] %v741_v36  ;;  %v486_v48 = vmul.f32 %v1629_v18, %v1587_v63  ;;  %v487_v49 = vmul.f32 %v1629_v18, %v1591_v13  ;;  %v488_v30 = vmul.f32 %v1629_v18, %v2186_v53  ;;  %v2196_v15 = vunpack.c.h.bf16 %v2194_v46  ;;  %v1265_v10 = vld [vmem:[%s2163_s0 + $0xf0] sm:$0xff]  }
  0x48   :  { %870 = vst [vmem:[#allocation2 + $0x120] sm:$0xff] %v742_v12  ;;  %871 = vst [vmem:[#allocation2 + $0x128] sm:$0xff] %v743_v57  ;;  %v489_v41 = vmul.f32 %v1629_v18, %v1607_v34  ;;  %v490_v0 = vmul.f32 %v1629_v18, %v2187_v58  ;;  %v618_v59 = vadd.f32 %v1639_v19, %v483_v20  ;;  %v1099_v53 = vunpack.c.h.bf16 %v1264_v11 }
  0x49   :  { %872 = vst [vmem:[#allocation2 + $0x130] sm:$0xff] %v744_v17  ;;  %873 = vst [vmem:[#allocation2 + $0x138] sm:$0xff] %v745_v29  ;;  %v619_v63 = vadd.f32 %v1639_v19, %v484_v23  ;;  %v620_v52 = vadd.f32 %v1639_v19, %v485_v47  ;;  %v621_v54 = vadd.f32 %v1639_v19, %v486_v48  ;;  %v2197_v29 = vld [vmem:[#allocation10_spill] sm:$0xff] }
  0x4a   :  { %v622_v55 = vadd.f32 %v1639_v19, %v487_v49  ;;  %v623_v13 = vadd.f32 %v1639_v19, %v488_v30  ;;  %v624_v27 = vadd.f32 %v1639_v19, %v489_v41  ;;  %v625_v24 = vadd.f32 %v1639_v19, %v490_v0  ;;  %v1266_v30 = vld [vmem:[%s2163_s0 + $0xf8] sm:$0xff]  }
  0x4b   :  { %v746_v34 = vmax.f32 %v618_v59, 0.0  ;;  %v747_v25 = vmax.f32 %v619_v63, 0.0  ;;  %v748_v31 = vmax.f32 %v620_v52, 0.0  ;;  %v749_v32 = vmax.f32 %v621_v54, 0.0 }
  0x4c   :  { %v750_v56 = vmax.f32 %v622_v55, 0.0  ;;  %v751_v14 = vmax.f32 %v623_v13, 0.0  ;;  %v752_v4 = vmax.f32 %v624_v27, 0.0  ;;  %v753_v33 = vmax.f32 %v625_v24, 0.0 }
  0x4d   :  { %874 = vst [vmem:[#allocation2 + $0x140] sm:$0xff] %v746_v34  ;;  %875 = vst [vmem:[#allocation2 + $0x148] sm:$0xff] %v747_v25  ;;  %v491_v35 = vmul.f32 %v1629_v18, %v1618_v50  ;;  %v492_v1 = vmul.f32 %v1629_v18, %v1621_v22  ;;  %v493_v37 = vmul.f32 %v1629_v18, %v2188_v51  ;;  %v2195_v22 = vunpack.c.l.bf16 %v2194_v46 }
  0x4e   :  { %876 = vst [vmem:[#allocation2 + $0x150] sm:$0xff] %v748_v31  ;;  %877 = vst [vmem:[#allocation2 + $0x158] sm:$0xff] %v749_v32  ;;  %v494_v60 = vmul.f32 %v1629_v18, %v2189_v38  ;;  %v495_v40 = vmul.f32 %v1629_v18, %v2190_v39  ;;  %v341_v50 = vsub.f32 %v2193_v44, %v2191_v42  ;;  %v2198_v20 = vunpack.c.l.bf16 %v2197_v29 }
  0x4f   :  { %878 = vst [vmem:[#allocation2 + $0x160] sm:$0xff] %v750_v56  ;;  %879 = vst [vmem:[#allocation2 + $0x168] sm:$0xff] %v751_v14  ;;  %v342_v45 = vsub.f32 %v2195_v22, %v2191_v42  ;;  %v343_v2 = vsub.f32 %v2196_v15, %v2191_v42  ;;  %v626_v3 = vadd.f32 %v1639_v19, %v491_v35  ;;  %v2199_v47 = vunpack.c.h.bf16 %v2197_v29 }
  0x50   :  { %880 = vst [vmem:[#allocation2 + $0x170] sm:$0xff] %v752_v4  ;;  %881 = vst [vmem:[#allocation2 + $0x178] sm:$0xff] %v753_v33  ;;  %v627_v61 = vadd.f32 %v1639_v19, %v492_v1  ;;  %v628_v62 = vadd.f32 %v1639_v19, %v493_v37  ;;  %v629_v5 = vadd.f32 %v1639_v19, %v494_v60  ;;  %v1098_v49 = vunpack.c.l.bf16 %v1264_v11  ;;  %v1267_v1 = vld [vmem:[%s2163_s0 + $0x100] sm:$0xff]   ;;  %v1270_v11 = vld [vmem:[%s2163_s0 + $0x118] sm:$0xff]  }
  0x51   :  { %v630_v7 = vadd.f32 %v1639_v19, %v495_v40  ;;  %v496_v8 = vmul.f32 %v1629_v18, %v341_v50  ;;  %v497_v9 = vmul.f32 %v1629_v18, %v342_v45  ;;  %v498_v28 = vmul.f32 %v1629_v18, %v343_v2  ;;  %v1268_v50 = vld [vmem:[%s2163_s0 + $0x108] sm:$0xff]   ;;  %v1269_v2 = vld [vmem:[%s2163_s0 + $0x110] sm:$0xff]  }
  0x52   :  { %v754_v16 = vmax.f32 %v626_v3, 0.0  ;;  %v755_v26 = vmax.f32 %v627_v61, 0.0  ;;  %v756_v21 = vmax.f32 %v628_v62, 0.0  ;;  %v757_v6 = vmax.f32 %v629_v5, 0.0 }
  0x53   :  { %v758_v36 = vmax.f32 %v630_v7, 0.0  ;;  %v631_v12 = vadd.f32 %v1639_v19, %v496_v8  ;;  %v632_v57 = vadd.f32 %v1639_v19, %v497_v9  ;;  %v633_v17 = vadd.f32 %v1639_v19, %v498_v28 }
  0x54   :  { %882 = vst [vmem:[#allocation2 + $0x180] sm:$0xff] %v754_v16  ;;  %883 = vst [vmem:[#allocation2 + $0x188] sm:$0xff] %v755_v26  ;;  %v344_v23 = vsub.f32 %v2198_v20, %v2191_v42  ;;  %v345_v48 = vsub.f32 %v2199_v47, %v2191_v42  ;;  %v1102_v59 = vunpack.c.l.bf16 %v1265_v10  ;;  %v346_v54 = vsub.f32 %v1098_v49, %v2191_v42 }
  0x55   :  { %884 = vst [vmem:[#allocation2 + $0x190] sm:$0xff] %v756_v21  ;;  %885 = vst [vmem:[#allocation2 + $0x198] sm:$0xff] %v757_v6  ;;  %v759_v41 = vmax.f32 %v631_v12, 0.0  ;;  %v760_v58 = vmax.f32 %v632_v57, 0.0  ;;  %v761_v0 = vmax.f32 %v633_v17, 0.0  ;;  %v347_v55 = vsub.f32 %v1099_v53, %v2191_v42 }
  0x56   :  { %886 = vst [vmem:[#allocation2 + $0x1a0] sm:$0xff] %v758_v36  ;;  %v499_v63 = vmul.f32 %v1629_v18, %v344_v23  ;;  %v500_v52 = vmul.f32 %v1629_v18, %v345_v48  ;;  %v348_v13 = vsub.f32 %v1102_v59, %v2191_v42  ;;  %v1103_v27 = vunpack.c.h.bf16 %v1265_v10  ;;  %v1271_v59 = vld [vmem:[%s2163_s0 + $0x120] sm:$0xff]  }
  0x57   :  { %887 = vst [vmem:[#allocation2 + $0x1a8] sm:$0xff] %v759_v41  ;;  %888 = vst [vmem:[#allocation2 + $0x1b0] sm:$0xff] %v760_v58  ;;  %v1106_v24 = vunpack.c.l.bf16 %v1266_v30  ;;  %v1107_v34 = vunpack.c.h.bf16 %v1266_v30  ;;  %v501_v32 = vmul.f32 %v1629_v18, %v346_v54  ;;  %v502_v56 = vmul.f32 %v1629_v18, %v347_v55 }
  0x58   :  { %889 = vst [vmem:[#allocation2 + $0x1b8] sm:$0xff] %v761_v0  ;;  %v634_v25 = vadd.f32 %v1639_v19, %v499_v63  ;;  %v635_v31 = vadd.f32 %v1639_v19, %v500_v52  ;;  %v503_v14 = vmul.f32 %v1629_v18, %v348_v13  ;;  %v349_v4 = vsub.f32 %v1103_v27, %v2191_v42 }
  0x59   :  { %v350_v33 = vsub.f32 %v1106_v24, %v2191_v42  ;;  %v351_v35 = vsub.f32 %v1107_v34, %v2191_v42  ;;  %v636_v38 = vadd.f32 %v1639_v19, %v501_v32  ;;  %v637_v60 = vadd.f32 %v1639_v19, %v502_v56 }
  0x5a   :  { %v762_v51 = vmax.f32 %v634_v25, 0.0  ;;  %v763_v37 = vmax.f32 %v635_v31, 0.0  ;;  %v638_v39 = vadd.f32 %v1639_v19, %v503_v14  ;;  %v504_v40 = vmul.f32 %v1629_v18, %v349_v4  ;;  %v1272_v25 = vld [vmem:[%s2163_s0 + $0x128] sm:$0xff]   ;;  %v1273_v4 = vld [vmem:[%s2163_s0 + $0x130] sm:$0xff]  }
  0x5b   :  { %v505_v43 = vmul.f32 %v1629_v18, %v350_v33  ;;  %v506_v44 = vmul.f32 %v1629_v18, %v351_v35  ;;  %v764_v46 = vmax.f32 %v636_v38, 0.0  ;;  %v765_v22 = vmax.f32 %v637_v60, 0.0 }
  0x5c   :  { %890 = vst [vmem:[#allocation2 + $0x1c0] sm:$0xff] %v762_v51  ;;  %891 = vst [vmem:[#allocation2 + $0x1c8] sm:$0xff] %v763_v37  ;;  %v1110_v45 = vunpack.c.l.bf16 %v1267_v1  ;;  %v1111_v15 = vunpack.c.h.bf16 %v1267_v1  ;;  %v766_v3 = vmax.f32 %v638_v39, 0.0  ;;  %v639_v61 = vadd.f32 %v1639_v19, %v504_v40  ;;  %v1274_v40 = vld [vmem:[%s2163_s0 + $0x138] sm:$0xff]  }
  0x5d   :  { %v640_v62 = vadd.f32 %v1639_v19, %v505_v43  ;;  %v641_v5 = vadd.f32 %v1639_v19, %v506_v44  ;;  %892 = vst [vmem:[#allocation2 + $0x1d0] sm:$0xff] %v764_v46  ;;  %893 = vst [vmem:[#allocation2 + $0x1d8] sm:$0xff] %v765_v22  ;;  %v1114_v9 = vunpack.c.l.bf16 %v1268_v50  ;;  %v1115_v28 = vunpack.c.h.bf16 %v1268_v50 }
  0x5e   :  { %v352_v7 = vsub.f32 %v1110_v45, %v2191_v42  ;;  %v353_v8 = vsub.f32 %v1111_v15, %v2191_v42  ;;  %894 = vst [vmem:[#allocation2 + $0x1e0] sm:$0xff] %v766_v3  ;;  %v767_v16 = vmax.f32 %v639_v61, 0.0  ;;  %v1118_v6 = vunpack.c.l.bf16 %v1269_v2 }
  0x5f   :  { %v768_v26 = vmax.f32 %v640_v62, 0.0  ;;  %v769_v21 = vmax.f32 %v641_v5, 0.0  ;;  %v354_v12 = vsub.f32 %v1114_v9, %v2191_v42  ;;  %v355_v57 = vsub.f32 %v1115_v28, %v2191_v42 }
  0x60   :  { %v507_v10 = vmul.f32 %v1629_v18, %v352_v7  ;;  %v508_v36 = vmul.f32 %v1629_v18, %v353_v8  ;;  %895 = vst [vmem:[#allocation2 + $0x1e8] sm:$0xff] %v767_v16  ;;  %v356_v17 = vsub.f32 %v1118_v6, %v2191_v42  ;;  %v1119_v29 = vunpack.c.h.bf16 %v1269_v2  ;;  %v1275_v6 = vld [vmem:[%s2163_s0 + $0x140] sm:$0xff]  }
  0x61   :  { %896 = vst [vmem:[#allocation2 + $0x1f0] sm:$0xff] %v768_v26  ;;  %897 = vst [vmem:[#allocation2 + $0x1f8] sm:$0xff] %v769_v21  ;;  %v1122_v20 = vunpack.c.l.bf16 %v1270_v11  ;;  %v1123_v23 = vunpack.c.h.bf16 %v1270_v11  ;;  %v509_v49 = vmul.f32 %v1629_v18, %v354_v12  ;;  %v510_v53 = vmul.f32 %v1629_v18, %v355_v57 }
  0x62   :  { %v642_v47 = vadd.f32 %v1639_v19, %v507_v10  ;;  %v643_v48 = vadd.f32 %v1639_v19, %v508_v36  ;;  %v511_v30 = vmul.f32 %v1629_v18, %v356_v17  ;;  %v357_v41 = vsub.f32 %v1119_v29, %v2191_v42 }
  0x63   :  { %v358_v58 = vsub.f32 %v1122_v20, %v2191_v42  ;;  %v359_v0 = vsub.f32 %v1123_v23, %v2191_v42  ;;  %v644_v54 = vadd.f32 %v1639_v19, %v509_v49  ;;  %v645_v55 = vadd.f32 %v1639_v19, %v510_v53 }
  0x64   :  { %v770_v63 = vmax.f32 %v642_v47, 0.0  ;;  %v771_v52 = vmax.f32 %v643_v48, 0.0  ;;  %v646_v13 = vadd.f32 %v1639_v19, %v511_v30  ;;  %v512_v27 = vmul.f32 %v1629_v18, %v357_v41  ;;  %v1276_v47 = vld [vmem:[%s2163_s0 + $0x148] sm:$0xff]   ;;  %v1277_v41 = vld [vmem:[%s2163_s0 + $0x150] sm:$0xff]  }
  0x65   :  { %v513_v24 = vmul.f32 %v1629_v18, %v358_v58  ;;  %v514_v34 = vmul.f32 %v1629_v18, %v359_v0  ;;  %v772_v31 = vmax.f32 %v644_v54, 0.0  ;;  %v773_v32 = vmax.f32 %v645_v55, 0.0 }
  0x66   :  { %898 = vst [vmem:[#allocation2 + $0x200] sm:$0xff] %v770_v63  ;;  %899 = vst [vmem:[#allocation2 + $0x208] sm:$0xff] %v771_v52  ;;  %v1126_v56 = vunpack.c.l.bf16 %v1271_v59  ;;  %v1127_v14 = vunpack.c.h.bf16 %v1271_v59  ;;  %v774_v33 = vmax.f32 %v646_v13, 0.0  ;;  %v647_v35 = vadd.f32 %v1639_v19, %v512_v27  ;;  %v1278_v27 = vld [vmem:[%s2163_s0 + $0x158] sm:$0xff]  }
  0x67   :  { %v648_v1 = vadd.f32 %v1639_v19, %v513_v24  ;;  %v649_v51 = vadd.f32 %v1639_v19, %v514_v34  ;;  %900 = vst [vmem:[#allocation2 + $0x210] sm:$0xff] %v772_v31  ;;  %901 = vst [vmem:[#allocation2 + $0x218] sm:$0xff] %v773_v32  ;;  %v1130_v60 = vunpack.c.l.bf16 %v1272_v25  ;;  %v1131_v39 = vunpack.c.h.bf16 %v1272_v25 }
  0x68   :  { %v360_v37 = vsub.f32 %v1126_v56, %v2191_v42  ;;  %v361_v38 = vsub.f32 %v1127_v14, %v2191_v42  ;;  %902 = vst [vmem:[#allocation2 + $0x220] sm:$0xff] %v774_v33  ;;  %v775_v43 = vmax.f32 %v647_v35, 0.0  ;;  %v1134_v46 = vunpack.c.l.bf16 %v1273_v4 }
  0x69   :  { %v776_v44 = vmax.f32 %v648_v1, 0.0  ;;  %v777_v50 = vmax.f32 %v649_v51, 0.0  ;;  %v362_v15 = vsub.f32 %v1130_v60, %v2191_v42  ;;  %v363_v2 = vsub.f32 %v1131_v39, %v2191_v42 }
  0x6a   :  { %v515_v22 = vmul.f32 %v1629_v18, %v360_v37  ;;  %v516_v45 = vmul.f32 %v1629_v18, %v361_v38  ;;  %903 = vst [vmem:[#allocation2 + $0x228] sm:$0xff] %v775_v43  ;;  %v364_v3 = vsub.f32 %v1134_v46, %v2191_v42  ;;  %v1135_v61 = vunpack.c.h.bf16 %v1273_v4  ;;  %v1279_v46 = vld [vmem:[%s2163_s0 + $0x160] sm:$0xff]  }
  0x6b   :  { %904 = vst [vmem:[#allocation2 + $0x230] sm:$0xff] %v776_v44  ;;  %905 = vst [vmem:[#allocation2 + $0x238] sm:$0xff] %v777_v50  ;;  %v1138_v62 = vunpack.c.l.bf16 %v1274_v40  ;;  %v1139_v5 = vunpack.c.h.bf16 %v1274_v40  ;;  %v517_v9 = vmul.f32 %v1629_v18, %v362_v15  ;;  %v518_v28 = vmul.f32 %v1629_v18, %v363_v2 }
  0x6c   :  { %v650_v7 = vadd.f32 %v1639_v19, %v515_v22  ;;  %v651_v8 = vadd.f32 %v1639_v19, %v516_v45  ;;  %v519_v11 = vmul.f32 %v1629_v18, %v364_v3  ;;  %v365_v16 = vsub.f32 %v1135_v61, %v2191_v42 }
  0x6d   :  { %v366_v26 = vsub.f32 %v1138_v62, %v2191_v42  ;;  %v367_v21 = vsub.f32 %v1139_v5, %v2191_v42  ;;  %v652_v12 = vadd.f32 %v1639_v19, %v517_v9  ;;  %v653_v57 = vadd.f32 %v1639_v19, %v518_v28 }
  0x6e   :  { %v778_v10 = vmax.f32 %v650_v7, 0.0  ;;  %v779_v36 = vmax.f32 %v651_v8, 0.0  ;;  %v654_v17 = vadd.f32 %v1639_v19, %v519_v11  ;;  %v520_v29 = vmul.f32 %v1629_v18, %v365_v16  ;;  %v1280_v7 = vld [vmem:[%s2163_s0 + $0x168] sm:$0xff]   ;;  %v1281_v16 = vld [vmem:[%s2163_s0 + $0x170] sm:$0xff]  }
  0x6f   :  { %v521_v20 = vmul.f32 %v1629_v18, %v366_v26  ;;  %v522_v23 = vmul.f32 %v1629_v18, %v367_v21  ;;  %v780_v48 = vmax.f32 %v652_v12, 0.0  ;;  %v781_v49 = vmax.f32 %v653_v57, 0.0 }
  0x70   :  { %906 = vst [vmem:[#allocation2 + $0x240] sm:$0xff] %v778_v10  ;;  %907 = vst [vmem:[#allocation2 + $0x248] sm:$0xff] %v779_v36  ;;  %v1142_v53 = vunpack.c.l.bf16 %v1275_v6  ;;  %v1143_v30 = vunpack.c.h.bf16 %v1275_v6  ;;  %v782_v58 = vmax.f32 %v654_v17, 0.0  ;;  %v655_v0 = vadd.f32 %v1639_v19, %v520_v29  ;;  %v1282_v29 = vld [vmem:[%s2163_s0 + $0x178] sm:$0xff]  }
  0x71   :  { %v656_v59 = vadd.f32 %v1639_v19, %v521_v20  ;;  %v657_v63 = vadd.f32 %v1639_v19, %v522_v23  ;;  %908 = vst [vmem:[#allocation2 + $0x250] sm:$0xff] %v780_v48  ;;  %909 = vst [vmem:[#allocation2 + $0x258] sm:$0xff] %v781_v49  ;;  %v1146_v55 = vunpack.c.l.bf16 %v1276_v47  ;;  %v1147_v13 = vunpack.c.h.bf16 %v1276_v47 }
  0x72   :  { %v368_v52 = vsub.f32 %v1142_v53, %v2191_v42  ;;  %v369_v54 = vsub.f32 %v1143_v30, %v2191_v42  ;;  %910 = vst [vmem:[#allocation2 + $0x260] sm:$0xff] %v782_v58  ;;  %v783_v24 = vmax.f32 %v655_v0, 0.0  ;;  %v1150_v31 = vunpack.c.l.bf16 %v1277_v41 }
  0x73   :  { %v784_v34 = vmax.f32 %v656_v59, 0.0  ;;  %v785_v25 = vmax.f32 %v657_v63, 0.0  ;;  %v370_v14 = vsub.f32 %v1146_v55, %v2191_v42  ;;  %v371_v4 = vsub.f32 %v1147_v13, %v2191_v42 }
  0x74   :  { %v523_v32 = vmul.f32 %v1629_v18, %v368_v52  ;;  %v524_v56 = vmul.f32 %v1629_v18, %v369_v54  ;;  %911 = vst [vmem:[#allocation2 + $0x268] sm:$0xff] %v783_v24  ;;  %v372_v33 = vsub.f32 %v1150_v31, %v2191_v42  ;;  %v1151_v35 = vunpack.c.h.bf16 %v1277_v41  ;;  %v1283_v31 = vld [vmem:[%s2163_s0 + $0x180] sm:$0xff]  }
  0x75   :  { %912 = vst [vmem:[#allocation2 + $0x270] sm:$0xff] %v784_v34  ;;  %913 = vst [vmem:[#allocation2 + $0x278] sm:$0xff] %v785_v25  ;;  %v1154_v1 = vunpack.c.l.bf16 %v1278_v27  ;;  %v1155_v51 = vunpack.c.h.bf16 %v1278_v27  ;;  %v525_v60 = vmul.f32 %v1629_v18, %v370_v14  ;;  %v526_v39 = vmul.f32 %v1629_v18, %v371_v4 }
  0x76   :  { %v658_v37 = vadd.f32 %v1639_v19, %v523_v32  ;;  %v659_v38 = vadd.f32 %v1639_v19, %v524_v56  ;;  %v527_v40 = vmul.f32 %v1629_v18, %v372_v33  ;;  %v373_v43 = vsub.f32 %v1151_v35, %v2191_v42 }
  0x77   :  { %v374_v44 = vsub.f32 %v1154_v1, %v2191_v42  ;;  %v375_v50 = vsub.f32 %v1155_v51, %v2191_v42  ;;  %v660_v15 = vadd.f32 %v1639_v19, %v525_v60  ;;  %v661_v2 = vadd.f32 %v1639_v19, %v526_v39 }
  0x78   :  { %v786_v22 = vmax.f32 %v658_v37, 0.0  ;;  %v787_v45 = vmax.f32 %v659_v38, 0.0  ;;  %v662_v3 = vadd.f32 %v1639_v19, %v527_v40  ;;  %v528_v61 = vmul.f32 %v1629_v18, %v373_v43  ;;  %v1284_v37 = vld [vmem:[%s2163_s0 + $0x188] sm:$0xff]   ;;  %v1285_v43 = vld [vmem:[%s2163_s0 + $0x190] sm:$0xff]  }
  0x79   :  { %v529_v62 = vmul.f32 %v1629_v18, %v374_v44  ;;  %v530_v5 = vmul.f32 %v1629_v18, %v375_v50  ;;  %v788_v8 = vmax.f32 %v660_v15, 0.0  ;;  %v789_v9 = vmax.f32 %v661_v2, 0.0 }
  0x7a   :  { %914 = vst [vmem:[#allocation2 + $0x280] sm:$0xff] %v786_v22  ;;  %915 = vst [vmem:[#allocation2 + $0x288] sm:$0xff] %v787_v45  ;;  %v1158_v28 = vunpack.c.l.bf16 %v1279_v46  ;;  %v1159_v11 = vunpack.c.h.bf16 %v1279_v46  ;;  %v790_v26 = vmax.f32 %v662_v3, 0.0  ;;  %v663_v21 = vadd.f32 %v1639_v19, %v528_v61  ;;  %v1286_v61 = vld [vmem:[%s2163_s0 + $0x198] sm:$0xff]  }
  0x7b   :  { %v664_v6 = vadd.f32 %v1639_v19, %v529_v62  ;;  %v665_v10 = vadd.f32 %v1639_v19, %v530_v5  ;;  %916 = vst [vmem:[#allocation2 + $0x290] sm:$0xff] %v788_v8  ;;  %917 = vst [vmem:[#allocation2 + $0x298] sm:$0xff] %v789_v9  ;;  %v1162_v57 = vunpack.c.l.bf16 %v1280_v7  ;;  %v1163_v17 = vunpack.c.h.bf16 %v1280_v7 }
  0x7c   :  { %v376_v36 = vsub.f32 %v1158_v28, %v2191_v42  ;;  %v377_v12 = vsub.f32 %v1159_v11, %v2191_v42  ;;  %918 = vst [vmem:[#allocation2 + $0x2a0] sm:$0xff] %v790_v26  ;;  %v791_v20 = vmax.f32 %v663_v21, 0.0  ;;  %v1166_v48 = vunpack.c.l.bf16 %v1281_v16 }
  0x7d   :  { %v792_v23 = vmax.f32 %v664_v6, 0.0  ;;  %v793_v47 = vmax.f32 %v665_v10, 0.0  ;;  %v378_v30 = vsub.f32 %v1162_v57, %v2191_v42  ;;  %v379_v41 = vsub.f32 %v1163_v17, %v2191_v42 }
  0x7e   :  { %v531_v49 = vmul.f32 %v1629_v18, %v376_v36  ;;  %v532_v53 = vmul.f32 %v1629_v18, %v377_v12  ;;  %919 = vst [vmem:[#allocation2 + $0x2a8] sm:$0xff] %v791_v20  ;;  %v380_v58 = vsub.f32 %v1166_v48, %v2191_v42  ;;  %v1167_v0 = vunpack.c.h.bf16 %v1281_v16  ;;  %v1287_v48 = vld [vmem:[%s2163_s0 + $0x1a0] sm:$0xff]  }
  0x7f   :  { %920 = vst [vmem:[#allocation2 + $0x2b0] sm:$0xff] %v792_v23  ;;  %921 = vst [vmem:[#allocation2 + $0x2b8] sm:$0xff] %v793_v47  ;;  %v1170_v59 = vunpack.c.l.bf16 %v1282_v29  ;;  %v1171_v63 = vunpack.c.h.bf16 %v1282_v29  ;;  %v533_v55 = vmul.f32 %v1629_v18, %v378_v30  ;;  %v534_v13 = vmul.f32 %v1629_v18, %v379_v41 }
  0x80   :  { %v666_v52 = vadd.f32 %v1639_v19, %v531_v49  ;;  %v667_v54 = vadd.f32 %v1639_v19, %v532_v53  ;;  %v535_v27 = vmul.f32 %v1629_v18, %v380_v58  ;;  %v381_v24 = vsub.f32 %v1167_v0, %v2191_v42 }
  0x81   :  { %v382_v34 = vsub.f32 %v1170_v59, %v2191_v42  ;;  %v383_v25 = vsub.f32 %v1171_v63, %v2191_v42  ;;  %v668_v14 = vadd.f32 %v1639_v19, %v533_v55  ;;  %v669_v4 = vadd.f32 %v1639_v19, %v534_v13 }
  0x82   :  { %v794_v32 = vmax.f32 %v666_v52, 0.0  ;;  %v795_v56 = vmax.f32 %v667_v54, 0.0  ;;  %v670_v33 = vadd.f32 %v1639_v19, %v535_v27  ;;  %v536_v35 = vmul.f32 %v1629_v18, %v381_v24  ;;  %v1288_v52 = vld [vmem:[%s2163_s0 + $0x1a8] sm:$0xff]   ;;  %v1289_v24 = vld [vmem:[%s2163_s0 + $0x1b0] sm:$0xff]  }
  0x83   :  { %v537_v1 = vmul.f32 %v1629_v18, %v382_v34  ;;  %v538_v51 = vmul.f32 %v1629_v18, %v383_v25  ;;  %v796_v38 = vmax.f32 %v668_v14, 0.0  ;;  %v797_v60 = vmax.f32 %v669_v4, 0.0 }
  0x84   :  { %922 = vst [vmem:[#allocation2 + $0x2c0] sm:$0xff] %v794_v32  ;;  %923 = vst [vmem:[#allocation2 + $0x2c8] sm:$0xff] %v795_v56  ;;  %v1174_v39 = vunpack.c.l.bf16 %v1283_v31  ;;  %v1175_v40 = vunpack.c.h.bf16 %v1283_v31  ;;  %v798_v44 = vmax.f32 %v670_v33, 0.0  ;;  %v671_v50 = vadd.f32 %v1639_v19, %v536_v35  ;;  %v1290_v35 = vld [vmem:[%s2163_s0 + $0x1b8] sm:$0xff]  }
  0x85   :  { %v672_v46 = vadd.f32 %v1639_v19, %v537_v1  ;;  %v673_v22 = vadd.f32 %v1639_v19, %v538_v51  ;;  %924 = vst [vmem:[#allocation2 + $0x2d0] sm:$0xff] %v796_v38  ;;  %925 = vst [vmem:[#allocation2 + $0x2d8] sm:$0xff] %v797_v60  ;;  %v1178_v2 = vunpack.c.l.bf16 %v1284_v37  ;;  %v1179_v3 = vunpack.c.h.bf16 %v1284_v37 }
  0x86   :  { %v384_v45 = vsub.f32 %v1174_v39, %v2191_v42  ;;  %v385_v15 = vsub.f32 %v1175_v40, %v2191_v42  ;;  %926 = vst [vmem:[#allocation2 + $0x2e0] sm:$0xff] %v798_v44  ;;  %v799_v62 = vmax.f32 %v671_v50, 0.0  ;;  %v1182_v8 = vunpack.c.l.bf16 %v1285_v43 }
  0x87   :  { %v800_v5 = vmax.f32 %v672_v46, 0.0  ;;  %v801_v7 = vmax.f32 %v673_v22, 0.0  ;;  %v386_v11 = vsub.f32 %v1178_v2, %v2191_v42  ;;  %v387_v16 = vsub.f32 %v1179_v3, %v2191_v42 }
  0x88   :  { %v539_v9 = vmul.f32 %v1629_v18, %v384_v45  ;;  %v540_v28 = vmul.f32 %v1629_v18, %v385_v15  ;;  %927 = vst [vmem:[#allocation2 + $0x2e8] sm:$0xff] %v799_v62  ;;  %v388_v26 = vsub.f32 %v1182_v8, %v2191_v42  ;;  %v1183_v21 = vunpack.c.h.bf16 %v1285_v43  ;;  %v1291_v8 = vld [vmem:[%s2163_s0 + $0x1c0] sm:$0xff]  }
  0x89   :  { %928 = vst [vmem:[#allocation2 + $0x2f0] sm:$0xff] %v800_v5  ;;  %929 = vst [vmem:[#allocation2 + $0x2f8] sm:$0xff] %v801_v7  ;;  %v1186_v6 = vunpack.c.l.bf16 %v1286_v61  ;;  %v1187_v10 = vunpack.c.h.bf16 %v1286_v61  ;;  %v541_v57 = vmul.f32 %v1629_v18, %v386_v11  ;;  %v542_v17 = vmul.f32 %v1629_v18, %v387_v16 }
  0x8a   :  { %v674_v36 = vadd.f32 %v1639_v19, %v539_v9  ;;  %v675_v12 = vadd.f32 %v1639_v19, %v540_v28  ;;  %v543_v29 = vmul.f32 %v1629_v18, %v388_v26  ;;  %v389_v20 = vsub.f32 %v1183_v21, %v2191_v42  ;;  %v2035_v19 = vld [vmem:[%s2166_s3] ss:$0 sm:$0xff] }
  0x8b   :  { %v390_v23 = vsub.f32 %v1186_v6, %v2191_v42  ;;  %v391_v47 = vsub.f32 %v1187_v10, %v2191_v42  ;;  %v676_v30 = vadd.f32 %v2035_v19, %v541_v57  ;;  %v677_v41 = vadd.f32 %v2035_v19, %v542_v17 }
  0x8c   :  { %v802_v49 = vmax.f32 %v674_v36, 0.0  ;;  %v803_v53 = vmax.f32 %v675_v12, 0.0  ;;  %v678_v58 = vadd.f32 %v2035_v19, %v543_v29  ;;  %v544_v0 = vmul.f32 %v1629_v18, %v389_v20  ;;  %v1292_v36 = vld [vmem:[%s2163_s0 + $0x1c8] sm:$0xff]   ;;  %v1293_v20 = vld [vmem:[%s2163_s0 + $0x1d0] sm:$0xff]  }
  0x8d   :  { %v545_v59 = vmul.f32 %v1629_v18, %v390_v23  ;;  %v546_v63 = vmul.f32 %v1629_v18, %v391_v47  ;;  %v804_v54 = vmax.f32 %v676_v30, 0.0  ;;  %v805_v55 = vmax.f32 %v677_v41, 0.0 }
  0x8e   :  { %930 = vst [vmem:[#allocation2 + $0x300] sm:$0xff] %v802_v49  ;;  %931 = vst [vmem:[#allocation2 + $0x308] sm:$0xff] %v803_v53  ;;  %v1190_v13 = vunpack.c.l.bf16 %v1287_v48  ;;  %v1191_v27 = vunpack.c.h.bf16 %v1287_v48  ;;  %v806_v34 = vmax.f32 %v678_v58, 0.0  ;;  %v679_v25 = vadd.f32 %v2035_v19, %v544_v0  ;;  %v1294_v0 = vld [vmem:[%s2163_s0 + $0x1d8] sm:$0xff]  }
  0x8f   :  { %v680_v31 = vadd.f32 %v2035_v19, %v545_v59  ;;  %v681_v32 = vadd.f32 %v2035_v19, %v546_v63  ;;  %932 = vst [vmem:[#allocation2 + $0x310] sm:$0xff] %v804_v54  ;;  %933 = vst [vmem:[#allocation2 + $0x318] sm:$0xff] %v805_v55  ;;  %v1194_v4 = vunpack.c.l.bf16 %v1288_v52  ;;  %v1195_v33 = vunpack.c.h.bf16 %v1288_v52 }
  0x90   :  { %v392_v56 = vsub.f32 %v1190_v13, %v2191_v42  ;;  %v393_v14 = vsub.f32 %v1191_v27, %v2191_v42  ;;  %934 = vst [vmem:[#allocation2 + $0x320] sm:$0xff] %v806_v34  ;;  %v807_v1 = vmax.f32 %v679_v25, 0.0  ;;  %v1198_v38 = vunpack.c.l.bf16 %v1289_v24 }
  0x91   :  { %v808_v51 = vmax.f32 %v680_v31, 0.0  ;;  %v809_v37 = vmax.f32 %v681_v32, 0.0  ;;  %v394_v40 = vsub.f32 %v1194_v4, %v2191_v42  ;;  %v395_v43 = vsub.f32 %v1195_v33, %v2191_v42 }
  0x92   :  { %v547_v60 = vmul.f32 %v1629_v18, %v392_v56  ;;  %v548_v39 = vmul.f32 %v1629_v18, %v393_v14  ;;  %935 = vst [vmem:[#allocation2 + $0x328] sm:$0xff] %v807_v1  ;;  %v396_v44 = vsub.f32 %v1198_v38, %v2191_v42  ;;  %v1199_v50 = vunpack.c.h.bf16 %v1289_v24  ;;  %v1295_v38 = vld [vmem:[%s2163_s0 + $0x1e0] sm:$0xff]  }
  0x93   :  { %936 = vst [vmem:[#allocation2 + $0x330] sm:$0xff] %v808_v51  ;;  %937 = vst [vmem:[#allocation2 + $0x338] sm:$0xff] %v809_v37  ;;  %v1202_v46 = vunpack.c.l.bf16 %v1290_v35  ;;  %v1203_v22 = vunpack.c.h.bf16 %v1290_v35  ;;  %v549_v2 = vmul.f32 %v1629_v18, %v394_v40  ;;  %v550_v3 = vmul.f32 %v1629_v18, %v395_v43 }
  0x94   :  { %v682_v45 = vadd.f32 %v2035_v19, %v547_v60  ;;  %v683_v15 = vadd.f32 %v2035_v19, %v548_v39  ;;  %v551_v61 = vmul.f32 %v1629_v18, %v396_v44  ;;  %v397_v62 = vsub.f32 %v1199_v50, %v2191_v42 }
  0x95   :  { %v398_v5 = vsub.f32 %v1202_v46, %v2191_v42  ;;  %v399_v7 = vsub.f32 %v1203_v22, %v2191_v42  ;;  %v684_v11 = vadd.f32 %v2035_v19, %v549_v2  ;;  %v685_v16 = vadd.f32 %v2035_v19, %v550_v3 }
  0x96   :  { %v810_v9 = vmax.f32 %v682_v45, 0.0  ;;  %v811_v28 = vmax.f32 %v683_v15, 0.0  ;;  %v686_v26 = vadd.f32 %v2035_v19, %v551_v61  ;;  %v552_v21 = vmul.f32 %v1629_v18, %v397_v62  ;;  %v1296_v45 = vld [vmem:[%s2163_s0 + $0x1e8] sm:$0xff]   ;;  %v1297_v62 = vld [vmem:[%s2163_s0 + $0x1f0] sm:$0xff]  }
  0x97   :  { %v553_v6 = vmul.f32 %v1629_v18, %v398_v5  ;;  %v554_v10 = vmul.f32 %v1629_v18, %v399_v7  ;;  %v812_v12 = vmax.f32 %v684_v11, 0.0  ;;  %v813_v57 = vmax.f32 %v685_v16, 0.0 }
  0x98   :  { %938 = vst [vmem:[#allocation2 + $0x340] sm:$0xff] %v810_v9  ;;  %939 = vst [vmem:[#allocation2 + $0x348] sm:$0xff] %v811_v28  ;;  %v1206_v17 = vunpack.c.l.bf16 %v1291_v8  ;;  %v1207_v29 = vunpack.c.h.bf16 %v1291_v8  ;;  %v814_v23 = vmax.f32 %v686_v26, 0.0  ;;  %v687_v47 = vadd.f32 %v2035_v19, %v552_v21  ;;  %v1298_v21 = vld [vmem:[%s2163_s0 + $0x1f8] sm:$0xff]   ;;  %s1331_s0 = smov [#allocation2]  }
  0x99   :  { %v688_v48 = vadd.f32 %v2035_v19, %v553_v6  ;;  %v689_v49 = vadd.f32 %v2035_v19, %v554_v10  ;;  %940 = vst [vmem:[#allocation2 + $0x350] sm:$0xff] %v812_v12  ;;  %941 = vst [vmem:[#allocation2 + $0x358] sm:$0xff] %v813_v57  ;;  %v1210_v41 = vunpack.c.l.bf16 %v1292_v36  ;;  %v1211_v58 = vunpack.c.h.bf16 %v1292_v36  ;;  %s967_s14 = sshll.u32 %s1331_s0, 4  ;;  %s968_s14 = int_to_ptr.vmem [resolvable:$true] %s967_s14 }
  0x9a   :  { %v400_v53 = vsub.f32 %v1206_v17, %v2191_v42  ;;  %v401_v30 = vsub.f32 %v1207_v29, %v2191_v42  ;;  %942 = vst [vmem:[#allocation2 + $0x360] sm:$0xff] %v814_v23  ;;  %v815_v59 = vmax.f32 %v687_v47, 0.0  ;;  %v1214_v54 = vunpack.c.l.bf16 %v1293_v20  ;;  %s1306_s15 = scalar_lea.vmem %s968_s14, 16384  ;;  %p1311_p1 = scmp.lt.s32.totalorder %s968_s14, %s968_s14 }
  0x9b   :  { %v816_v63 = vmax.f32 %v688_v48, 0.0  ;;  %v817_v52 = vmax.f32 %v689_v49, 0.0  ;;  %v402_v27 = vsub.f32 %v1210_v41, %v2191_v42  ;;  %v403_v24 = vsub.f32 %v1211_v58, %v2191_v42  ;;  %p1307_p0 = scmp.ne.s32.totalorder %s968_s14, %s1306_s15  ;;  %p1312_p2 = scmp.lt.s32.totalorder %s1306_s15, %s1306_s15 }
  0x9c   :  { %v555_v55 = vmul.f32 %v1629_v18, %v400_v53  ;;  %v556_v13 = vmul.f32 %v1629_v18, %v401_v30  ;;  %943 = vst [vmem:[#allocation2 + $0x368] sm:$0xff] %v815_v59  ;;  %v404_v34 = vsub.f32 %v1214_v54, %v2191_v42  ;;  %v1215_v25 = vunpack.c.h.bf16 %v1293_v20 }
  0x9d   :  { %944 = vst [vmem:[#allocation2 + $0x370] sm:$0xff] %v816_v63  ;;  %945 = vst [vmem:[#allocation2 + $0x378] sm:$0xff] %v817_v52  ;;  %v1218_v31 = vunpack.c.l.bf16 %v1294_v0  ;;  %v1219_v32 = vunpack.c.h.bf16 %v1294_v0  ;;  %v557_v4 = vmul.f32 %v1629_v18, %v402_v27  ;;  %v558_v33 = vmul.f32 %v1629_v18, %v403_v24  ;;  %p1313_p3 = por %p1312_p2, %p1311_p1 }
  0x9e   :  { %v690_v56 = vadd.f32 %v2035_v19, %v555_v55  ;;  %v691_v14 = vadd.f32 %v2035_v19, %v556_v13  ;;  %v559_v35 = vmul.f32 %v1629_v18, %v404_v34  ;;  %v405_v1 = vsub.f32 %v1215_v25, %v2191_v42 }
  0x9f   :  { %v406_v51 = vsub.f32 %v1218_v31, %v2191_v42  ;;  %v407_v37 = vsub.f32 %v1219_v32, %v2191_v42  ;;  %v692_v40 = vadd.f32 %v2035_v19, %v557_v4  ;;  %v693_v43 = vadd.f32 %v2035_v19, %v558_v33  ;;  %p1314_p4 = pnand %p1313_p3, %p1307_p0 }
  0xa0   :  { %v818_v60 = vmax.f32 %v690_v56, 0.0  ;;  %v819_v39 = vmax.f32 %v691_v14, 0.0  ;;  %v694_v44 = vadd.f32 %v2035_v19, %v559_v35  ;;  %v560_v50 = vmul.f32 %v1629_v18, %v405_v1 }
  0xa1   :  { %v561_v46 = vmul.f32 %v1629_v18, %v406_v51  ;;  %v562_v22 = vmul.f32 %v1629_v18, %v407_v37  ;;  %v820_v15 = vmax.f32 %v692_v40, 0.0  ;;  %v821_v2 = vmax.f32 %v693_v43, 0.0 }
  0xa2   :  { %946 = vst [vmem:[#allocation2 + $0x380] sm:$0xff] %v818_v60  ;;  %947 = vst [vmem:[#allocation2 + $0x388] sm:$0xff] %v819_v39  ;;  %v1222_v3 = vunpack.c.l.bf16 %v1295_v38  ;;  %v1223_v61 = vunpack.c.h.bf16 %v1295_v38  ;;  %v822_v5 = vmax.f32 %v694_v44, 0.0  ;;  %v695_v7 = vadd.f32 %v2035_v19, %v560_v50 }
  0xa3   :  { %v696_v8 = vadd.f32 %v2035_v19, %v561_v46  ;;  %v697_v9 = vadd.f32 %v2035_v19, %v562_v22  ;;  %948 = vst [vmem:[#allocation2 + $0x390] sm:$0xff] %v820_v15  ;;  %949 = vst [vmem:[#allocation2 + $0x398] sm:$0xff] %v821_v2  ;;  %v1226_v16 = vunpack.c.l.bf16 %v1296_v45  ;;  %v1227_v26 = vunpack.c.h.bf16 %v1296_v45 }
  0xa4   :  { %v408_v28 = vsub.f32 %v1222_v3, %v2191_v42  ;;  %v409_v11 = vsub.f32 %v1223_v61, %v2191_v42  ;;  %950 = vst [vmem:[#allocation2 + $0x3a0] sm:$0xff] %v822_v5  ;;  %v823_v6 = vmax.f32 %v695_v7, 0.0  ;;  %v1230_v12 = vunpack.c.l.bf16 %v1297_v62 }
  0xa5   :  { %v824_v10 = vmax.f32 %v696_v8, 0.0  ;;  %v825_v36 = vmax.f32 %v697_v9, 0.0  ;;  %v410_v29 = vsub.f32 %v1226_v16, %v2191_v42  ;;  %v411_v20 = vsub.f32 %v1227_v26, %v2191_v42 }
  0xa6   :  { %v563_v57 = vmul.f32 %v1629_v18, %v408_v28  ;;  %v564_v17 = vmul.f32 %v1629_v18, %v409_v11  ;;  %951 = vst [vmem:[#allocation2 + $0x3a8] sm:$0xff] %v823_v6  ;;  %v412_v23 = vsub.f32 %v1230_v12, %v2191_v42  ;;  %v1231_v47 = vunpack.c.h.bf16 %v1297_v62 }
  0xa7   :  { %952 = vst [vmem:[#allocation2 + $0x3b0] sm:$0xff] %v824_v10  ;;  %953 = vst [vmem:[#allocation2 + $0x3b8] sm:$0xff] %v825_v36  ;;  %v1234_v48 = vunpack.c.l.bf16 %v1298_v21  ;;  %v1235_v49 = vunpack.c.h.bf16 %v1298_v21  ;;  %v565_v41 = vmul.f32 %v1629_v18, %v410_v29  ;;  %v566_v58 = vmul.f32 %v1629_v18, %v411_v20 }
  0xa8   :  { %v698_v53 = vadd.f32 %v2035_v19, %v563_v57  ;;  %v699_v30 = vadd.f32 %v2035_v19, %v564_v17  ;;  %v567_v0 = vmul.f32 %v1629_v18, %v412_v23  ;;  %v413_v59 = vsub.f32 %v1231_v47, %v2191_v42 }
  0xa9   :  { %v414_v63 = vsub.f32 %v1234_v48, %v2191_v42  ;;  %v415_v52 = vsub.f32 %v1235_v49, %v2191_v42  ;;  %v700_v13 = vadd.f32 %v2035_v19, %v565_v41  ;;  %v701_v27 = vadd.f32 %v2035_v19, %v566_v58 }
  0xaa   :  { %v826_v54 = vmax.f32 %v698_v53, 0.0  ;;  %v827_v55 = vmax.f32 %v699_v30, 0.0  ;;  %v702_v24 = vadd.f32 %v2035_v19, %v567_v0  ;;  %v568_v34 = vmul.f32 %v1629_v18, %v413_v59 }
  0xab   :  { %v569_v25 = vmul.f32 %v1629_v18, %v414_v63  ;;  %v570_v31 = vmul.f32 %v1629_v18, %v415_v52  ;;  %v828_v32 = vmax.f32 %v700_v13, 0.0  ;;  %v829_v42 = vmax.f32 %v701_v27, 0.0 }
  0xac   :  { %954 = vst [vmem:[#allocation2 + $0x3c0] sm:$0xff] %v826_v54  ;;  %955 = vst [vmem:[#allocation2 + $0x3c8] sm:$0xff] %v827_v55  ;;  %v830_v56 = vmax.f32 %v702_v24, 0.0  ;;  %v703_v14 = vadd.f32 %v2035_v19, %v568_v34 }
  0xad   :  { %v704_v4 = vadd.f32 %v2035_v19, %v569_v25  ;;  %v705_v33 = vadd.f32 %v2035_v19, %v570_v31  ;;  %956 = vst [vmem:[#allocation2 + $0x3d0] sm:$0xff] %v828_v32  ;;  %957 = vst [vmem:[#allocation2 + $0x3d8] sm:$0xff] %v829_v42 }
  0xae   :  { %958 = vst [vmem:[#allocation2 + $0x3e0] sm:$0xff] %v830_v56  ;;  %v831_v35 = vmax.f32 %v703_v14, 0.0 }
  0xaf   :  { %v832_v1 = vmax.f32 %v704_v4, 0.0  ;;  %v833_v18 = vmax.f32 %v705_v33, 0.0 }
  0xb0   :  { %959 = vst [vmem:[#allocation2 + $0x3e8] sm:$0xff] %v831_v35 }
  0xb1   :  { %960 = vst [vmem:[#allocation2 + $0x3f0] sm:$0xff] %v832_v1  ;;  %961 = vst [vmem:[#allocation2 + $0x3f8] sm:$0xff] %v833_v18 }
  0xb2   :  { %1317 = shalt.err (!%p1314_p4)
}
  0xb3   :  { %s1318_s18 = scalar_lea.hbm %s2167_s4, 16384 }
  0xb4   :  { %p1319_p5 = scmp.ne.s32.totalorder %s2167_s4, %s1318_s18  ;;  %p1322_p6 = scmp.lt.u32.totalorder %s1318_s18, %s2167_s4 }
  0xb6   :  { %p1324_p7 = pnand %p1322_p6, %p1319_p5 }
  0xb8   :  { %1327 = shalt.err (!%p1324_p7)
}
  0xb9   :  { %s1332_s3 = smov 128   ;;  %s1333_s22 = smov 8  }
  0xba   :  { %973 = dma.vmem_to_hbm [thread:$0]  %s968_s14, 16384, %s2167_s4, [#allocation3], %s1332_s3, %s1332_s3, %s1333_s22  }
  0xbb   :  { %1328 = dma.done.wait [#allocation3], 16384  }
  0xbc   :  { %1329 = vsyncadd [#allocation3], 4294950912 }
  0xbd   :  { %977 = vsyncpa [#allocation3], 1 }

// kernel: baseoc_context_forward.5
= control target key start
LH: loop header
LB: loop body
LE: loop exit
PB: predicated region body
PF: predicated region fallthrough
CT: control target
= control target key end

     0   :  { %s3407_s21 = smov 0   ;;  %s3409_s22 = smov 0   ;;  %s4456_s0 = inlined_call_operand.vmem [shape: bf16[4,256,256], index: 0, kind: input, shape index: {}, may-alias: {0,1,2}]   ;;  %s4457_s1 = inlined_call_operand.vmem [shape: bf16[4,256,256], index: 1, kind: input, shape index: {}, may-alias: {0,1,2}]   ;;  %s4458_s2 = inlined_call_operand.vmem [shape: bf16[4,256,256], index: 2, kind: input, shape index: {}, may-alias: {0,1,2}]   ;;  %s4459_s3 = inlined_call_operand.vmem [shape: f32[2,128], index: 3, kind: input, shape index: {}]   ;;  %s4460_s4 = inlined_call_operand.vmem [shape: f32[1,128], index: 4, kind: input, shape index: {}]   ;;  %s4461_s5 = inlined_call_operand.vmem [shape: f32[1,128], index: 5, kind: input, shape index: {}]   ;;  %s4462_s6 = inlined_call_operand.vmem [shape: bf16[4,256,128], index: 6, kind: output, shape index: {}]  }
   0x1   :  { %s3411_s23 = smov 0   ;;  %s3413_s24 = smov 0  }
   0x2   :  { %s3415_s25 = smov 0  }
   0x3 LB: > { %s28_s26 = sadd.s32 1, %s3365_s24  ;;  %p44_p1 = scmp.ne.s32.totalorder %s3357_s22, %s3353_s21  ;;  %s3369_s25 = sphi %s3415_s25, %s16_s25   ;;  %s3365_s24 = sphi %s3413_s24, %s4521_s24   ;;  %s3361_s23 = sphi %s3411_s23, %s4520_s23   ;;  %s3357_s22 = sphi %s3409_s22, %s4519_s22   ;;  %s3353_s21 = sphi %s3407_s21, %s4518_s21  }
   0x4   : > { %p30_p0 = scmp.ge.s32.totalorder %s28_s26, 4  ;;  %p45_p2 = scmp.eq.s32.totalorder %s3369_s25, 0 }
   0x5   : > { %s37_s29 = sadd.s32 1, %s3357_s22  ;;  %p2533_p5 = scmp.ge.s32.totalorder %s3369_s25, 4 }
   0x6   : > { %s4523_s26 = smov (%p30_p0, %s28_s26), 0  ;;  %p3438_p3 = por %p45_p2, %p44_p1 }
   0x7   : > { %s32_s28 = ssub.s32 %s3365_s24, %s4523_s26  ;;  %222 = sbr.rel (%p2533_p5) target bundleno = 89 (0x59), region = 28 }
   0x8   : > { %p35_p4 = scmp.eq.s32.totalorder %s32_s28, 0 }
   0xa   : > { %s3446_s30 = scalar_select %p35_p4, %s3357_s22, %s37_s29  }
   0xe   : > { %225 = sbr.rel (!%p3438_p3) target bundleno = 39 (0x27), region = 32  ;;  %s227_s7 = sand.u32 (%p3438_p3), 1, %s3357_s22  }
   0xf   : > { %s2631_s8 = sshll.u32 (%p3438_p3), %s3365_s24, 8  ;;  %s2534_s9 = sshll.u32 (%p3438_p3), %s227_s7, 7 }
  0x10   : > { %s3456_s12 = scalar_lea.vmem (%p3438_p3), %s4456_s0, %s2631_s8  ;;  %s3460_s13 = scalar_lea.vmem (%p3438_p3), [#allocation2], %s2534_s9 }
  0x11   : > { %v251_v0 = vld [vmem:[%s3456_s12] sm:$0xf] (%p3438_p3)  ;;  %v253_v1 = vld [vmem:[%s3456_s12 + $0x8] sm:$0xf] (%p3438_p3)  ;;  %v255_v2 = vld [vmem:[%s3456_s12 + $0x10] sm:$0xf] (%p3438_p3) }
  0x12   : > { %252 = vst [vmem:[%s3460_s13] sm:$0xf] (%p3438_p3), %v251_v0  ;;  %254 = vst [vmem:[%s3460_s13 + $0x4] sm:$0xf] (%p3438_p3), %v253_v1  ;;  %v257_v3 = vld [vmem:[%s3456_s12 + $0x18] sm:$0xf] (%p3438_p3) }
  0x13   : > { %v259_v4 = vld [vmem:[%s3456_s12 + $0x20] sm:$0xf] (%p3438_p3)  ;;  %256 = vst [vmem:[%s3460_s13 + $0x8] sm:$0xf] (%p3438_p3), %v255_v2  ;;  %258 = vst [vmem:[%s3460_s13 + $0xc] sm:$0xf] (%p3438_p3), %v257_v3 }
  0x14   : > { %260 = vst [vmem:[%s3460_s13 + $0x10] sm:$0xf] (%p3438_p3), %v259_v4  ;;  %v261_v5 = vld [vmem:[%s3456_s12 + $0x28] sm:$0xf] (%p3438_p3)  ;;  %v263_v6 = vld [vmem:[%s3456_s12 + $0x30] sm:$0xf] (%p3438_p3) }
  0x15   : > { %v265_v7 = vld [vmem:[%s3456_s12 + $0x38] sm:$0xf]  ;;  %262 = vst [vmem:[%s3460_s13 + $0x14] sm:$0xf] %v261_v5  ;;  %264 = vst [vmem:[%s3460_s13 + $0x18] sm:$0xf] %v263_v6 }
  0x16   : > { %266 = vst [vmem:[%s3460_s13 + $0x1c] sm:$0xf] %v265_v7  ;;  %v267_v8 = vld [vmem:[%s3456_s12 + $0x40] sm:$0xf]  ;;  %v269_v9 = vld [vmem:[%s3456_s12 + $0x48] sm:$0xf] }
  0x17   : > { %v271_v10 = vld [vmem:[%s3456_s12 + $0x50] sm:$0xf]  ;;  %268 = vst [vmem:[%s3460_s13 + $0x20] sm:$0xf] %v267_v8  ;;  %270 = vst [vmem:[%s3460_s13 + $0x24] sm:$0xf] %v269_v9 }
  0x18   : > { %272 = vst [vmem:[%s3460_s13 + $0x28] sm:$0xf] %v271_v10  ;;  %v273_v11 = vld [vmem:[%s3456_s12 + $0x58] sm:$0xf]  ;;  %v275_v12 = vld [vmem:[%s3456_s12 + $0x60] sm:$0xf] }
  0x19   : > { %v277_v13 = vld [vmem:[%s3456_s12 + $0x68] sm:$0xf]  ;;  %274 = vst [vmem:[%s3460_s13 + $0x2c] sm:$0xf] %v273_v11  ;;  %276 = vst [vmem:[%s3460_s13 + $0x30] sm:$0xf] %v275_v12 }
  0x1a   : > { %278 = vst [vmem:[%s3460_s13 + $0x34] sm:$0xf] %v277_v13  ;;  %v279_v14 = vld [vmem:[%s3456_s12 + $0x70] sm:$0xf]  ;;  %v281_v15 = vld [vmem:[%s3456_s12 + $0x78] sm:$0xf] }
  0x1b   : > { %v283_v16 = vld [vmem:[%s3456_s12 + $0x80] sm:$0xf]  ;;  %280 = vst [vmem:[%s3460_s13 + $0x38] sm:$0xf] %v279_v14  ;;  %282 = vst [vmem:[%s3460_s13 + $0x3c] sm:$0xf] %v281_v15 }
  0x1c   : > { %284 = vst [vmem:[%s3460_s13 + $0x40] sm:$0xf] %v283_v16  ;;  %v285_v17 = vld [vmem:[%s3456_s12 + $0x88] sm:$0xf]  ;;  %v287_v18 = vld [vmem:[%s3456_s12 + $0x90] sm:$0xf] }
  0x1d   : > { %v289_v19 = vld [vmem:[%s3456_s12 + $0x98] sm:$0xf]  ;;  %286 = vst [vmem:[%s3460_s13 + $0x44] sm:$0xf] %v285_v17  ;;  %288 = vst [vmem:[%s3460_s13 + $0x48] sm:$0xf] %v287_v18 }
  0x1e   : > { %290 = vst [vmem:[%s3460_s13 + $0x4c] sm:$0xf] %v289_v19  ;;  %v291_v20 = vld [vmem:[%s3456_s12 + $0xa0] sm:$0xf]  ;;  %v293_v21 = vld [vmem:[%s3456_s12 + $0xa8] sm:$0xf] }
  0x1f   : > { %v295_v22 = vld [vmem:[%s3456_s12 + $0xb0] sm:$0xf]  ;;  %292 = vst [vmem:[%s3460_s13 + $0x50] sm:$0xf] %v291_v20  ;;  %294 = vst [vmem:[%s3460_s13 + $0x54] sm:$0xf] %v293_v21 }
  0x20   : > { %296 = vst [vmem:[%s3460_s13 + $0x58] sm:$0xf] %v295_v22  ;;  %v297_v23 = vld [vmem:[%s3456_s12 + $0xb8] sm:$0xf]  ;;  %v299_v24 = vld [vmem:[%s3456_s12 + $0xc0] sm:$0xf] }
  0x21   : > { %v301_v25 = vld [vmem:[%s3456_s12 + $0xc8] sm:$0xf]  ;;  %298 = vst [vmem:[%s3460_s13 + $0x5c] sm:$0xf] %v297_v23  ;;  %300 = vst [vmem:[%s3460_s13 + $0x60] sm:$0xf] %v299_v24 }
  0x22   : > { %302 = vst [vmem:[%s3460_s13 + $0x64] sm:$0xf] %v301_v25  ;;  %v303_v26 = vld [vmem:[%s3456_s12 + $0xd0] sm:$0xf]  ;;  %v305_v27 = vld [vmem:[%s3456_s12 + $0xd8] sm:$0xf] }
  0x23   : > { %v307_v28 = vld [vmem:[%s3456_s12 + $0xe0] sm:$0xf]  ;;  %304 = vst [vmem:[%s3460_s13 + $0x68] sm:$0xf] %v303_v26  ;;  %306 = vst [vmem:[%s3460_s13 + $0x6c] sm:$0xf] %v305_v27 }
  0x24   : > { %308 = vst [vmem:[%s3460_s13 + $0x70] sm:$0xf] %v307_v28  ;;  %v309_v29 = vld [vmem:[%s3456_s12 + $0xe8] sm:$0xf]  ;;  %v311_v30 = vld [vmem:[%s3456_s12 + $0xf0] sm:$0xf] }
  0x25   : > { %v313_v31 = vld [vmem:[%s3456_s12 + $0xf8] sm:$0xf]  ;;  %310 = vst [vmem:[%s3460_s13 + $0x74] sm:$0xf] %v309_v29  ;;  %312 = vst [vmem:[%s3460_s13 + $0x78] sm:$0xf] %v311_v30 }
  0x26   : > { %314 = vst [vmem:[%s3460_s13 + $0x7c] sm:$0xf] %v313_v31 }
  0x27 PF: > { %401 = sbr.rel (!%p3438_p3) target bundleno = 64 (0x40), region = 73  ;;  %s403_s14 = sand.u32 (%p3438_p3), 1, %s3357_s22  }
  0x28   : > { %s2632_s15 = sshll.u32 (%p3438_p3), %s3365_s24, 8  ;;  %s2537_s16 = sshll.u32 (%p3438_p3), %s403_s14, 7 }
  0x29   : > { %s3531_s19 = scalar_lea.vmem (%p3438_p3), %s4457_s1, %s2632_s15  ;;  %s3535_s20 = scalar_lea.vmem (%p3438_p3), [#allocation3], %s2537_s16 }
  0x2a   : > { %v424_v32 = vld [vmem:[%s3531_s19] sm:$0xf] (%p3438_p3)  ;;  %v426_v33 = vld [vmem:[%s3531_s19 + $0x8] sm:$0xf] (%p3438_p3)  ;;  %v428_v34 = vld [vmem:[%s3531_s19 + $0x10] sm:$0xf] (%p3438_p3) }
  0x2b   : > { %425 = vst [vmem:[%s3535_s20] sm:$0xf] (%p3438_p3), %v424_v32  ;;  %427 = vst [vmem:[%s3535_s20 + $0x4] sm:$0xf] (%p3438_p3), %v426_v33  ;;  %v430_v35 = vld [vmem:[%s3531_s19 + $0x18] sm:$0xf] (%p3438_p3) }
  0x2c   : > { %v432_v36 = vld [vmem:[%s3531_s19 + $0x20] sm:$0xf] (%p3438_p3)  ;;  %429 = vst [vmem:[%s3535_s20 + $0x8] sm:$0xf] (%p3438_p3), %v428_v34  ;;  %431 = vst [vmem:[%s3535_s20 + $0xc] sm:$0xf] (%p3438_p3), %v430_v35 }
  0x2d   : > { %433 = vst [vmem:[%s3535_s20 + $0x10] sm:$0xf] (%p3438_p3), %v432_v36  ;;  %v434_v37 = vld [vmem:[%s3531_s19 + $0x28] sm:$0xf] (%p3438_p3)  ;;  %v436_v38 = vld [vmem:[%s3531_s19 + $0x30] sm:$0xf] (%p3438_p3) }
  0x2e   : > { %v438_v39 = vld [vmem:[%s3531_s19 + $0x38] sm:$0xf]  ;;  %435 = vst [vmem:[%s3535_s20 + $0x14] sm:$0xf] %v434_v37  ;;  %437 = vst [vmem:[%s3535_s20 + $0x18] sm:$0xf] %v436_v38 }
  0x2f   : > { %439 = vst [vmem:[%s3535_s20 + $0x1c] sm:$0xf] %v438_v39  ;;  %v440_v40 = vld [vmem:[%s3531_s19 + $0x40] sm:$0xf]  ;;  %v442_v41 = vld [vmem:[%s3531_s19 + $0x48] sm:$0xf] }
  0x30   : > { %v444_v42 = vld [vmem:[%s3531_s19 + $0x50] sm:$0xf]  ;;  %441 = vst [vmem:[%s3535_s20 + $0x20] sm:$0xf] %v440_v40  ;;  %443 = vst [vmem:[%s3535_s20 + $0x24] sm:$0xf] %v442_v41 }
  0x31   : > { %445 = vst [vmem:[%s3535_s20 + $0x28] sm:$0xf] %v444_v42  ;;  %v446_v43 = vld [vmem:[%s3531_s19 + $0x58] sm:$0xf]  ;;  %v448_v44 = vld [vmem:[%s3531_s19 + $0x60] sm:$0xf] }
  0x32   : > { %v450_v45 = vld [vmem:[%s3531_s19 + $0x68] sm:$0xf]  ;;  %447 = vst [vmem:[%s3535_s20 + $0x2c] sm:$0xf] %v446_v43  ;;  %449 = vst [vmem:[%s3535_s20 + $0x30] sm:$0xf] %v448_v44 }
  0x33   : > { %451 = vst [vmem:[%s3535_s20 + $0x34] sm:$0xf] %v450_v45  ;;  %v452_v46 = vld [vmem:[%s3531_s19 + $0x70] sm:$0xf]  ;;  %v454_v47 = vld [vmem:[%s3531_s19 + $0x78] sm:$0xf] }
  0x34   : > { %v456_v48 = vld [vmem:[%s3531_s19 + $0x80] sm:$0xf]  ;;  %453 = vst [vmem:[%s3535_s20 + $0x38] sm:$0xf] %v452_v46  ;;  %455 = vst [vmem:[%s3535_s20 + $0x3c] sm:$0xf] %v454_v47 }
  0x35   : > { %457 = vst [vmem:[%s3535_s20 + $0x40] sm:$0xf] %v456_v48  ;;  %v458_v49 = vld [vmem:[%s3531_s19 + $0x88] sm:$0xf]  ;;  %v460_v50 = vld [vmem:[%s3531_s19 + $0x90] sm:$0xf] }
  0x36   : > { %v462_v51 = vld [vmem:[%s3531_s19 + $0x98] sm:$0xf]  ;;  %459 = vst [vmem:[%s3535_s20 + $0x44] sm:$0xf] %v458_v49  ;;  %461 = vst [vmem:[%s3535_s20 + $0x48] sm:$0xf] %v460_v50 }
  0x37   : > { %463 = vst [vmem:[%s3535_s20 + $0x4c] sm:$0xf] %v462_v51  ;;  %v464_v52 = vld [vmem:[%s3531_s19 + $0xa0] sm:$0xf]  ;;  %v466_v53 = vld [vmem:[%s3531_s19 + $0xa8] sm:$0xf] }
  0x38   : > { %v468_v54 = vld [vmem:[%s3531_s19 + $0xb0] sm:$0xf]  ;;  %465 = vst [vmem:[%s3535_s20 + $0x50] sm:$0xf] %v464_v52  ;;  %467 = vst [vmem:[%s3535_s20 + $0x54] sm:$0xf] %v466_v53 }
  0x39   : > { %469 = vst [vmem:[%s3535_s20 + $0x58] sm:$0xf] %v468_v54  ;;  %v470_v55 = vld [vmem:[%s3531_s19 + $0xb8] sm:$0xf]  ;;  %v472_v56 = vld [vmem:[%s3531_s19 + $0xc0] sm:$0xf] }
  0x3a   : > { %v474_v57 = vld [vmem:[%s3531_s19 + $0xc8] sm:$0xf]  ;;  %471 = vst [vmem:[%s3535_s20 + $0x5c] sm:$0xf] %v470_v55  ;;  %473 = vst [vmem:[%s3535_s20 + $0x60] sm:$0xf] %v472_v56 }
  0x3b   : > { %475 = vst [vmem:[%s3535_s20 + $0x64] sm:$0xf] %v474_v57  ;;  %v476_v58 = vld [vmem:[%s3531_s19 + $0xd0] sm:$0xf]  ;;  %v478_v59 = vld [vmem:[%s3531_s19 + $0xd8] sm:$0xf] }
  0x3c   : > { %v480_v60 = vld [vmem:[%s3531_s19 + $0xe0] sm:$0xf]  ;;  %477 = vst [vmem:[%s3535_s20 + $0x68] sm:$0xf] %v476_v58  ;;  %479 = vst [vmem:[%s3535_s20 + $0x6c] sm:$0xf] %v478_v59 }
  0x3d   : > { %481 = vst [vmem:[%s3535_s20 + $0x70] sm:$0xf] %v480_v60  ;;  %v482_v61 = vld [vmem:[%s3531_s19 + $0xe8] sm:$0xf]  ;;  %v484_v62 = vld [vmem:[%s3531_s19 + $0xf0] sm:$0xf] }
  0x3e   : > { %v486_v63 = vld [vmem:[%s3531_s19 + $0xf8] sm:$0xf]  ;;  %483 = vst [vmem:[%s3535_s20 + $0x74] sm:$0xf] %v482_v61  ;;  %485 = vst [vmem:[%s3535_s20 + $0x78] sm:$0xf] %v484_v62 }
  0x3f   : > { %487 = vst [vmem:[%s3535_s20 + $0x7c] sm:$0xf] %v486_v63 }
  0x40 PF: > { %574 = sbr.rel (!%p3438_p3) target bundleno = 89 (0x59), region = 114  ;;  %s576_s28 = sand.u32 (%p3438_p3), 1, %s3357_s22  }
  0x41   : > { %s2633_s29 = sshll.u32 (%p3438_p3), %s3365_s24, 8  ;;  %s2540_s7 = sshll.u32 (%p3438_p3), %s576_s28, 7 }
  0x42   : > { %s3606_s10 = scalar_lea.vmem (%p3438_p3), %s4458_s2, %s2633_s29  ;;  %s3610_s27 = scalar_lea.vmem (%p3438_p3), [#allocation4], %s2540_s7 }
  0x43   : > { %v2543_v0 = vld [vmem:[%s3606_s10 + $0x4] sm:$0xf] (%p3438_p3)  ;;  %v2544_v1 = vld [vmem:[%s3606_s10 + $0xc] sm:$0xf] (%p3438_p3)  ;;  %v2545_v2 = vld [vmem:[%s3606_s10 + $0x14] sm:$0xf] (%p3438_p3) }
  0x44   : > { %599 = vst [vmem:[%s3610_s27] sm:$0xf] (%p3438_p3), %v2543_v0  ;;  %601 = vst [vmem:[%s3610_s27 + $0x4] sm:$0xf] (%p3438_p3), %v2544_v1  ;;  %v2546_v3 = vld [vmem:[%s3606_s10 + $0x1c] sm:$0xf] (%p3438_p3) }
  0x45   : > { %v2547_v4 = vld [vmem:[%s3606_s10 + $0x24] sm:$0xf] (%p3438_p3)  ;;  %603 = vst [vmem:[%s3610_s27 + $0x8] sm:$0xf] (%p3438_p3), %v2545_v2  ;;  %605 = vst [vmem:[%s3610_s27 + $0xc] sm:$0xf] (%p3438_p3), %v2546_v3 }
  0x46   : > { %607 = vst [vmem:[%s3610_s27 + $0x10] sm:$0xf] (%p3438_p3), %v2547_v4  ;;  %v2548_v5 = vld [vmem:[%s3606_s10 + $0x2c] sm:$0xf] (%p3438_p3)  ;;  %v2549_v6 = vld [vmem:[%s3606_s10 + $0x34] sm:$0xf] (%p3438_p3) }
  0x47   : > { %v2550_v7 = vld [vmem:[%s3606_s10 + $0x3c] sm:$0xf]  ;;  %609 = vst [vmem:[%s3610_s27 + $0x14] sm:$0xf] %v2548_v5  ;;  %611 = vst [vmem:[%s3610_s27 + $0x18] sm:$0xf] %v2549_v6 }
  0x48   : > { %613 = vst [vmem:[%s3610_s27 + $0x1c] sm:$0xf] %v2550_v7  ;;  %v2551_v8 = vld [vmem:[%s3606_s10 + $0x44] sm:$0xf]  ;;  %v2552_v9 = vld [vmem:[%s3606_s10 + $0x4c] sm:$0xf] }
  0x49   : > { %v2553_v10 = vld [vmem:[%s3606_s10 + $0x54] sm:$0xf]  ;;  %615 = vst [vmem:[%s3610_s27 + $0x20] sm:$0xf] %v2551_v8  ;;  %617 = vst [vmem:[%s3610_s27 + $0x24] sm:$0xf] %v2552_v9 }
  0x4a   : > { %619 = vst [vmem:[%s3610_s27 + $0x28] sm:$0xf] %v2553_v10  ;;  %v2554_v11 = vld [vmem:[%s3606_s10 + $0x5c] sm:$0xf]  ;;  %v2555_v12 = vld [vmem:[%s3606_s10 + $0x64] sm:$0xf] }
  0x4b   : > { %v2556_v13 = vld [vmem:[%s3606_s10 + $0x6c] sm:$0xf]  ;;  %621 = vst [vmem:[%s3610_s27 + $0x2c] sm:$0xf] %v2554_v11  ;;  %623 = vst [vmem:[%s3610_s27 + $0x30] sm:$0xf] %v2555_v12 }
  0x4c   : > { %625 = vst [vmem:[%s3610_s27 + $0x34] sm:$0xf] %v2556_v13  ;;  %v2557_v14 = vld [vmem:[%s3606_s10 + $0x74] sm:$0xf]  ;;  %v2558_v15 = vld [vmem:[%s3606_s10 + $0x7c] sm:$0xf] }
  0x4d   : > { %v2559_v16 = vld [vmem:[%s3606_s10 + $0x84] sm:$0xf]  ;;  %627 = vst [vmem:[%s3610_s27 + $0x38] sm:$0xf] %v2557_v14  ;;  %629 = vst [vmem:[%s3610_s27 + $0x3c] sm:$0xf] %v2558_v15 }
  0x4e   : > { %631 = vst [vmem:[%s3610_s27 + $0x40] sm:$0xf] %v2559_v16  ;;  %v2560_v17 = vld [vmem:[%s3606_s10 + $0x8c] sm:$0xf]  ;;  %v2561_v18 = vld [vmem:[%s3606_s10 + $0x94] sm:$0xf] }
  0x4f   : > { %v2562_v19 = vld [vmem:[%s3606_s10 + $0x9c] sm:$0xf]  ;;  %633 = vst [vmem:[%s3610_s27 + $0x44] sm:$0xf] %v2560_v17  ;;  %635 = vst [vmem:[%s3610_s27 + $0x48] sm:$0xf] %v2561_v18 }
  0x50   : > { %637 = vst [vmem:[%s3610_s27 + $0x4c] sm:$0xf] %v2562_v19  ;;  %v2563_v20 = vld [vmem:[%s3606_s10 + $0xa4] sm:$0xf]  ;;  %v2564_v21 = vld [vmem:[%s3606_s10 + $0xac] sm:$0xf] }
  0x51   : > { %v2565_v22 = vld [vmem:[%s3606_s10 + $0xb4] sm:$0xf]  ;;  %639 = vst [vmem:[%s3610_s27 + $0x50] sm:$0xf] %v2563_v20  ;;  %641 = vst [vmem:[%s3610_s27 + $0x54] sm:$0xf] %v2564_v21 }
  0x52   : > { %643 = vst [vmem:[%s3610_s27 + $0x58] sm:$0xf] %v2565_v22  ;;  %v2566_v23 = vld [vmem:[%s3606_s10 + $0xbc] sm:$0xf]  ;;  %v2567_v24 = vld [vmem:[%s3606_s10 + $0xc4] sm:$0xf] }
  0x53   : > { %v2568_v25 = vld [vmem:[%s3606_s10 + $0xcc] sm:$0xf]  ;;  %645 = vst [vmem:[%s3610_s27 + $0x5c] sm:$0xf] %v2566_v23  ;;  %647 = vst [vmem:[%s3610_s27 + $0x60] sm:$0xf] %v2567_v24 }
  0x54   : > { %649 = vst [vmem:[%s3610_s27 + $0x64] sm:$0xf] %v2568_v25  ;;  %v2569_v26 = vld [vmem:[%s3606_s10 + $0xd4] sm:$0xf]  ;;  %v2570_v27 = vld [vmem:[%s3606_s10 + $0xdc] sm:$0xf] }
  0x55   : > { %v2571_v28 = vld [vmem:[%s3606_s10 + $0xe4] sm:$0xf]  ;;  %651 = vst [vmem:[%s3610_s27 + $0x68] sm:$0xf] %v2569_v26  ;;  %653 = vst [vmem:[%s3610_s27 + $0x6c] sm:$0xf] %v2570_v27 }
  0x56   : > { %655 = vst [vmem:[%s3610_s27 + $0x70] sm:$0xf] %v2571_v28  ;;  %v2572_v29 = vld [vmem:[%s3606_s10 + $0xec] sm:$0xf]  ;;  %v2573_v30 = vld [vmem:[%s3606_s10 + $0xf4] sm:$0xf] }
  0x57   : > { %v2574_v31 = vld [vmem:[%s3606_s10 + $0xfc] sm:$0xf]  ;;  %657 = vst [vmem:[%s3610_s27 + $0x74] sm:$0xf] %v2572_v29  ;;  %659 = vst [vmem:[%s3610_s27 + $0x78] sm:$0xf] %v2573_v30 }
  0x58   : > { %661 = vst [vmem:[%s3610_s27 + $0x7c] sm:$0xf] %v2574_v31 }
  0x59 PF: > { %p2575_p6 = scmp.ge.s32.totalorder %s3369_s25, 1  ;;  %p747_p7 = scmp.lt.s32.totalorder %s3369_s25, 5 }
  0x5b   : > { %p748_p8 = pnand %p2575_p6, %p747_p7 }
  0x5d   : > { %751 = sbr.rel (%p748_p8) target bundleno = 930 (0x3a2), region = 155 }
  0x64   : > { %v821_v32 = vld [vmem:[%s4459_s3] sm:$0x3]  ;;  %s754_s13 = sand.u32 1, %s3353_s21   ;;  %v868_v36 = vlaneseq  ;;  %v3371_v39 = vmov 1966171168   ;;  %p811_p9 = scmp.lt.s32.totalorder %s3361_s23, 3 }
  0x65   : > { %v3679_v33 = vmul.f32 0.0009765625, %v821_v32  ;;  %s3684_s14 = sshll.u32 %s754_s13, 7  ;;  %v866_v40 = vunpack.c.l.s4 %v3371_v39  ;;  %v854_v21 = vld [vmem:[%s4460_s4] sm:$0x1] }
  0x66   : > { %v3687_v41 = vshrl.u32 %v868_v36, 7  ;;  %s3690_s15 = scalar_lea.vmem [#allocation4], %s3684_s14  ;;  %s3694_s21 = scalar_lea.vmem [#allocation3], %s3684_s14  ;;  %v855_v36 = vld [vmem:[%s4461_s5] sm:$0x1] }
  0x67   : > { %v857_v34 = vmul.f32 %v3679_v33, %v3679_v33  ;;  %v867_v42 = vunpack.c.0.s8 %v866_v40  ;;  %v3697_v44 = vld [vmem:[%s3694_s21 + $0x40] sm:$0xff]   ;;  %v3703_v46 = vld [vmem:[%s3694_s21 + $0x48] sm:$0xff]   ;;  %v3709_v48 = vld [vmem:[%s3694_s21 + $0x50] sm:$0xff]   ;;  %s3774_s18 = scalar_lea.vmem [#allocation2], %s3684_s14  ;;  %s4525_s23 = smov (!%p811_p9, %s3361_s23), 3 }
  0x68   : > { %v919_v43 = vsub.s32 0, %v3687_v41  ;;  %v3700_v45 = vld [vmem:[%s3694_s21] sm:$0xff]   ;;  %v3706_v47 = vld [vmem:[%s3694_s21 + $0x8] sm:$0xff]   ;;  %v3712_v49 = vld [vmem:[%s3694_s21 + $0x10] sm:$0xff]   ;;  %v2765_v54 = vunpack.c.l.bf16 %v3697_v44  ;;  %v2766_v55 = vunpack.c.h.bf16 %v3697_v44  ;;  %v2769_v58 = vunpack.c.l.bf16 %v3703_v46  ;;  %s2634_s28 = sshll.u32 %s4525_s23, 7 }
  0x69   : > { %v859_v35 = vrot.slane %v857_v34, 7  ;;  %v3715_v50 = vld [vmem:[%s3694_s21 + $0x58] sm:$0xff]   ;;  %v870_v51 = vsub.s32 %v867_v42, %v3687_v41  ;;  %v3722_v53 = vld [vmem:[%s3694_s21 + $0x60] sm:$0xff]   ;;  %v2733_v56 = vunpack.c.l.bf16 %v3700_v45  ;;  %v2734_v57 = vunpack.c.h.bf16 %v3700_v45  ;;  %v3739_v3 = vld [vmem:[%s3694_s21 + $0x68] sm:$0xff]   ;;  %s4423_s8 = scalar_lea.vmem %s4462_s6, %s2634_s28 }
  0x6a   : > { %v3719_v52 = vld [vmem:[%s3694_s21 + $0x18] sm:$0xff]   ;;  %v2770_v59 = vunpack.c.h.bf16 %v3703_v46  ;;  %v2737_v60 = vunpack.c.l.bf16 %v3706_v47  ;;  %v2738_v62 = vunpack.c.h.bf16 %v3706_v47  ;;  %v2773_v63 = vunpack.c.l.bf16 %v3709_v48  ;;  %v3736_v2 = vld [vmem:[%s3694_s21 + $0x20] sm:$0xff]   ;;  %v3745_v8 = vld [vmem:[%s3694_s21 + $0x28] sm:$0xff]  }
  0x6b   : > { %v861_v37 = vsub.f32 %v3679_v33, %v859_v35  ;;  %v2774_v0 = vunpack.c.h.bf16 %v3709_v48  ;;  %v2741_v1 = vunpack.c.l.bf16 %v3712_v49  ;;  %v2742_v5 = vunpack.c.h.bf16 %v3712_v49  ;;  %v3748_v9 = vld [vmem:[%s3694_s21 + $0x70] sm:$0xff]   ;;  %v3761_v19 = vld [vmem:[%s3694_s21 + $0x78] sm:$0xff]   ;;  %v3777_v26 = vld [vmem:[%s3774_s18] sm:$0xff]  }
  0x6c   : > { %v2777_v6 = vunpack.c.l.bf16 %v3715_v50  ;;  %v2778_v7 = vunpack.c.h.bf16 %v3715_v50  ;;  %v2745_v10 = vunpack.c.l.bf16 %v3719_v52  ;;  %v2746_v11 = vunpack.c.h.bf16 %v3719_v52  ;;  %v3755_v14 = vld [vmem:[%s3694_s21 + $0x30] sm:$0xff]   ;;  %v3764_v20 = vld [vmem:[%s3694_s21 + $0x38] sm:$0xff]   ;;  %v3780_v27 = vld [vmem:[%s3774_s18 + $0x8] sm:$0xff]  }
  0x6d   : > { %v862_v38 = vadd.f32 1e-05, %v861_v37  ;;  %v2781_v12 = vunpack.c.l.bf16 %v3722_v53  ;;  %v2782_v13 = vunpack.c.h.bf16 %v3722_v53  ;;  %v2749_v16 = vunpack.c.l.bf16 %v3736_v2  ;;  %v3786_v32 = vld [vmem:[%s3774_s18 + $0x10] sm:$0xff]   ;;  %v3789_v34 = vld [vmem:[%s3774_s18 + $0x18] sm:$0xff]   ;;  %v3796_v39 = vld [vmem:[%s3774_s18 + $0x20] sm:$0xff]  }
  0x6e   : > { %v2750_v17 = vunpack.c.h.bf16 %v3736_v2  ;;  %v2785_v18 = vunpack.c.l.bf16 %v3739_v3  ;;  %v2786_v22 = vunpack.c.h.bf16 %v3739_v3  ;;  %v2753_v23 = vunpack.c.l.bf16 %v3745_v8 }
  0x6f   : > { %3137 = vrsqrt.f32 %v862_v38  ;;  %v2754_v24 = vunpack.c.h.bf16 %v3745_v8  ;;  %v2789_v25 = vunpack.c.l.bf16 %v3748_v9  ;;  %v2790_v29 = vunpack.c.h.bf16 %v3748_v9 }
  0x70   : > { %v2682_v42 = vunpack.c.h.bf16 %v3789_v34  ;;  %v2686_v31 = vunpack.c.h.bf16 %v3796_v39 }
  0x79   : > { %v3138_v61 = vpop.eup %3137 }
  0x7a   : > { %v871_v4 = vrot.slane %v3138_v61, %v870_v51 }
  0x7c   : > { %v872_v15 = vcombine.high %v871_v4, %v871_v4  ;;  %v3802_v4 = vld [vmem:[%s3774_s18 + $0x28] sm:$0xff]  }
  0x7d   : > { %v2690_v38 = vunpack.c.h.bf16 %v3802_v4 }
  0x7e   : > { %v879_v28 = vrot.slane %v872_v15, %v870_v51  ;;  %v3805_v15 = vld [vmem:[%s3774_s18 + $0x30] sm:$0xff]  }
  0x80   : > { %v881_v40 = vmul.f32 %v879_v28, %v854_v21  ;;  %v2681_v28 = vunpack.c.l.bf16 %v3789_v34 }
  0x82   : > { %v882_v51 = vmul.f32 %v881_v40, %v3679_v33  ;;  %v3817_v61 = vrot.slane %v881_v40, %v919_v43 }
  0x84   : > { %v883_v30 = vsub.f32 %v855_v36, %v882_v51  ;;  %v1104_v33 = vmul.f32 %v2765_v54, %v3817_v61  ;;  %v1105_v40 = vmul.f32 %v2766_v55, %v3817_v61  ;;  %v1088_v35 = vmul.f32 %v2733_v56, %v3817_v61 }
  0x85   : > { %v1089_v37 = vmul.f32 %v2734_v57, %v3817_v61  ;;  %v1106_v36 = vmul.f32 %v2769_v58, %v3817_v61  ;;  %v1107_v54 = vmul.f32 %v2770_v59, %v3817_v61  ;;  %v1090_v44 = vmul.f32 %v2737_v60, %v3817_v61 }
  0x86   : > { %v3848_v55 = vrot.slane %v883_v30, %v919_v43  ;;  %v1091_v45 = vmul.f32 %v2738_v62, %v3817_v61  ;;  %v1108_v56 = vmul.f32 %v2773_v63, %v3817_v61  ;;  %v1109_v46 = vmul.f32 %v2774_v0, %v3817_v61 }
  0x87   : > { %v1092_v57 = vmul.f32 %v2741_v1, %v3817_v61  ;;  %v1093_v41 = vmul.f32 %v2742_v5, %v3817_v61  ;;  %v1110_v43 = vmul.f32 %v2777_v6, %v3817_v61  ;;  %v1111_v47 = vmul.f32 %v2778_v7, %v3817_v61 }
  0x88   : > { %v1136_v58 = vadd.f32 %v1104_v33, %v3848_v55  ;;  %v1137_v48 = vadd.f32 %v1105_v40, %v3848_v55  ;;  %v1120_v59 = vadd.f32 %v1088_v35, %v3848_v55  ;;  %v1121_v60 = vadd.f32 %v1089_v37, %v3848_v55  ;;  %v3880_v40 = vld [vmem:[%s3774_s18 + $0x38] sm:$0xff]   ;;  %v3883_v35 = vld [vmem:[%s3774_s18 + $0x40] sm:$0xff]  }
  0x89   : > { %v1138_v49 = vadd.f32 %v1106_v36, %v3848_v55  ;;  %v1139_v62 = vadd.f32 %v1107_v54, %v3848_v55  ;;  %v1122_v63 = vadd.f32 %v1090_v44, %v3848_v55  ;;  %v1123_v0 = vadd.f32 %v1091_v45, %v3848_v55 }
  0x8a   : > { %v1168_v50 = vmax.f32 %v1136_v58, 0.0  ;;  %v1169_v1 = vmax.f32 %v1137_v48, 0.0  ;;  %v1152_v5 = vmax.f32 %v1120_v59, 0.0  ;;  %v1153_v6 = vmax.f32 %v1121_v60, 0.0 }
  0x8b   : > { %v1170_v7 = vmax.f32 %v1138_v49, 0.0  ;;  %v1171_v30 = vmax.f32 %v1139_v62, 0.0  ;;  %v1154_v51 = vmax.f32 %v1122_v63, 0.0  ;;  %v1155_v33 = vmax.f32 %v1123_v0, 0.0 }
  0x8c   : > { %v1208_v37 = vpack.c.bf16 %v1169_v1, %v1168_v50  ;;  %v1200_v36 = vpack.c.bf16 %v1153_v6, %v1152_v5  ;;  %v1140_v54 = vadd.f32 %v1108_v56, %v3848_v55  ;;  %v1141_v44 = vadd.f32 %v1109_v46, %v3848_v55 }
  0x8d   : > { %v1209_v21 = vpack.c.bf16 %v1171_v30, %v1170_v7  ;;  %v1124_v45 = vadd.f32 %v1092_v57, %v3848_v55  ;;  %v1125_v58 = vadd.f32 %v1093_v41, %v3848_v55  ;;  %v2694_v48 = vunpack.c.h.bf16 %v3805_v15 }
  0x8e   : > { %2920 = vmatprep.subr.bf16.mxu0 %v1208_v37  ;;  %v1172_v59 = vmax.f32 %v1140_v54, 0.0  ;;  %v2697_v60 = vunpack.c.l.bf16 %v3880_v40  ;;  %v2698_v49 = vunpack.c.h.bf16 %v3880_v40  ;;  %v2701_v62 = vunpack.c.l.bf16 %v3883_v35 }
  0x8f   : > { %2921 = vmatpush3.bf16.xpose.msra.mxu0 %v1200_v36  ;;  %v1173_v63 = vmax.f32 %v1141_v44, 0.0  ;;  %v1142_v56 = vadd.f32 %v1110_v43, %v3848_v55  ;;  %v1094_v46 = vmul.f32 %v2745_v10, %v3817_v61  ;;  %v1095_v57 = vmul.f32 %v2746_v11, %v3817_v61 }
  0x90   : > { %2922 = vmatprep.subr.bf16.mxu0 %v1209_v21  ;;  %v1201_v41 = vpack.c.bf16 %v1155_v33, %v1154_v51  ;;  %v1143_v0 = vadd.f32 %v1111_v47, %v3848_v55  ;;  %v1112_v50 = vmul.f32 %v2781_v12, %v3817_v61  ;;  %v2702_v1 = vunpack.c.h.bf16 %v3883_v35 }
  0x91   : > { %v1156_v5 = vmax.f32 %v1124_v45, 0.0  ;;  %v1157_v43 = vmax.f32 %v1125_v58, 0.0  ;;  %v1126_v6 = vadd.f32 %v1094_v46, %v3848_v55  ;;  %v1113_v10 = vmul.f32 %v2782_v13, %v3817_v61 }
  0x92   : > { %v1127_v52 = vadd.f32 %v1095_v57, %v3848_v55  ;;  %v1144_v11 = vadd.f32 %v1112_v50, %v3848_v55  ;;  %v1096_v21 = vmul.f32 %v2749_v16, %v3817_v61  ;;  %v1097_v12 = vmul.f32 %v2750_v17, %v3817_v61 }
  0x93   : > { %v1210_v47 = vpack.c.bf16 %v1173_v63, %v1172_v59  ;;  %v1174_v7 = vmax.f32 %v1142_v56, 0.0  ;;  %v1145_v30 = vadd.f32 %v1113_v10, %v3848_v55  ;;  %v1114_v53 = vmul.f32 %v2785_v18, %v3817_v61 }
  0x94   : > { %v1175_v13 = vmax.f32 %v1143_v0, 0.0  ;;  %v1128_v51 = vadd.f32 %v1096_v21, %v3848_v55  ;;  %v1129_v33 = vadd.f32 %v1097_v12, %v3848_v55  ;;  %v1115_v16 = vmul.f32 %v2786_v22, %v3817_v61 }
  0x95   : > { %v1202_v37 = vpack.c.bf16 %v1157_v43, %v1156_v5  ;;  %v1158_v2 = vmax.f32 %v1126_v6, 0.0  ;;  %v1146_v17 = vadd.f32 %v1114_v53, %v3848_v55  ;;  %v1098_v36 = vmul.f32 %v2753_v23, %v3817_v61 }
  0x96   : > { %v1159_v54 = vmax.f32 %v1127_v52, 0.0  ;;  %v1176_v44 = vmax.f32 %v1144_v11, 0.0  ;;  %v1147_v18 = vadd.f32 %v1115_v16, %v3848_v55  ;;  %v1099_v45 = vmul.f32 %v2754_v24, %v3817_v61 }
  0x97   : > { %2923 = vmatpush3.bf16.xpose.msra.mxu0 %v1201_v41  ;;  %v1177_v58 = vmax.f32 %v1145_v30, 0.0  ;;  %v1160_v3 = vmax.f32 %v1128_v51, 0.0  ;;  %v1130_v22 = vadd.f32 %v1098_v36, %v3848_v55  ;;  %v1116_v59 = vmul.f32 %v2789_v25, %v3817_v61 }
  0x98   : > { %2924 = vmatprep.subr.bf16.mxu0 %v1210_v47  ;;  %v1161_v63 = vmax.f32 %v1129_v33, 0.0  ;;  %v1178_v23 = vmax.f32 %v1146_v17, 0.0  ;;  %v1131_v56 = vadd.f32 %v1099_v45, %v3848_v55  ;;  %v1117_v46 = vmul.f32 %v2790_v29, %v3817_v61 }
  0x99   : > { %v1179_v8 = vmax.f32 %v1147_v18, 0.0  ;;  %v1148_v24 = vadd.f32 %v1116_v59, %v3848_v55  ;;  %v4477_v57 = vunpack.c.l.bf16 %v3755_v14  ;;  %v4478_v0 = vunpack.c.h.bf16 %v3755_v14 }
  0x9a   : > { %v1162_v50 = vmax.f32 %v1130_v22, 0.0  ;;  %v1163_v5 = vmax.f32 %v1131_v56, 0.0  ;;  %v1149_v43 = vadd.f32 %v1117_v46, %v3848_v55  ;;  %v4479_v6 = vunpack.c.l.bf16 %v3761_v19 }
  0x9b   : > { %v1100_v41 = vmul.f32 %v4477_v57, %v3817_v61  ;;  %v1101_v25 = vmul.f32 %v4478_v0, %v3817_v61  ;;  %v1180_v29 = vmax.f32 %v1148_v24, 0.0  ;;  %v4480_v11 = vunpack.c.h.bf16 %v3761_v19 }
  0x9c   : > { %v1118_v9 = vmul.f32 %v4479_v6, %v3817_v61  ;;  %v1211_v12 = vpack.c.bf16 %v1175_v13, %v1174_v7  ;;  %v1203_v14 = vpack.c.bf16 %v1159_v54, %v1158_v2  ;;  %v1181_v47 = vmax.f32 %v1149_v43, 0.0 }
  0x9d   : > { %v1132_v10 = vadd.f32 %v1100_v41, %v3848_v55  ;;  %v1133_v52 = vadd.f32 %v1101_v25, %v3848_v55  ;;  %v1119_v21 = vmul.f32 %v4480_v11, %v3817_v61  ;;  %v1212_v53 = vpack.c.bf16 %v1177_v58, %v1176_v44 }
  0x9e   : > { %v3959_v30 = vadd.f32 %v1118_v9, %v3848_v55  ;;  %v4481_v16 = vunpack.c.l.bf16 %v3764_v20  ;;  %v3964_v36 = vpack.c.bf16 %v1161_v63, %v1160_v3  ;;  %v3966_v18 = vpack.c.bf16 %v1179_v8, %v1178_v23 }
  0x9f   : > { %v1164_v51 = vmax.f32 %v1132_v10, 0.0  ;;  %v1165_v33 = vmax.f32 %v1133_v52, 0.0  ;;  %v3968_v45 = vpack.c.bf16 %v1163_v5, %v1162_v50  ;;  %v4482_v19 = vunpack.c.l.bf16 %v3777_v26  ;;  %2925 = vmatpush3.bf16.xpose.msra.mxu0 %v1202_v37 }
  0xa0   : > { %v1102_v17 = vmul.f32 %v4481_v16, %v3817_v61  ;;  %v3973_v13 = vpack.c.bf16 %v1181_v47, %v1180_v29  ;;  %v3976_v2 = vadd.f32 %v1119_v21, %v3848_v55  ;;  %v4483_v54 = vunpack.c.h.bf16 %v3764_v20  ;;  %2926 = vmatprep.subr.bf16.mxu0 %v1211_v12 }
  0xa1   : > { %v922_v7 = vmul.f32 %v4482_v19, %v3817_v61  ;;  %v4484_v58 = vunpack.c.h.bf16 %v3777_v26  ;;  %v1182_v22 = vmax.f32 %v3959_v30, 0.0  ;;  %v4485_v37 = vunpack.c.l.bf16 %v3780_v27 }
  0xa2   : > { %v3981_v44 = vmul.f32 %v4483_v54, %v3817_v61  ;;  %v4486_v23 = vunpack.c.h.bf16 %v3780_v27  ;;  %v3994_v20 = vpack.c.bf16 %v1165_v33, %v1164_v51  ;;  %v3997_v46 = vadd.f32 %v1102_v17, %v3848_v55 }
  0xa3   : > { %v923_v3 = vmul.f32 %v4484_v58, %v3817_v61  ;;  %v960_v59 = vadd.f32 %v3848_v55, %v922_v7  ;;  %v924_v63 = vmul.f32 %v4485_v37, %v3817_v61  ;;  %v4487_v8 = vunpack.c.l.bf16 %v3786_v32 }
  0xa4   : > { %v925_v56 = vmul.f32 %v4486_v23, %v3817_v61  ;;  %v4488_v27 = vunpack.c.h.bf16 %v3786_v32  ;;  %v1183_v50 = vmax.f32 %v3976_v2, 0.0  ;;  %v928_v6 = vmul.f32 %v2681_v28, %v3817_v61 }
  0xa5   : > { %v961_v26 = vadd.f32 %v3848_v55, %v923_v3  ;;  %v926_v24 = vmul.f32 %v4487_v8, %v3817_v61  ;;  %v992_v57 = vmax.f32 %v960_v59, 0.0  ;;  %v962_v41 = vadd.f32 %v3848_v55, %v924_v63 }
  0xa6   : > { %v963_v0 = vadd.f32 %v3848_v55, %v925_v56  ;;  %v927_v25 = vmul.f32 %v4488_v27, %v3817_v61  ;;  %v929_v52 = vmul.f32 %v2682_v42, %v3817_v61  ;;  %v966_v21 = vadd.f32 %v3848_v55, %v928_v6 }
  0xa7   : > { %v993_v5 = vmax.f32 %v961_v26, 0.0  ;;  %v964_v43 = vadd.f32 %v3848_v55, %v926_v24  ;;  %v994_v9 = vmax.f32 %v962_v41, 0.0  ;;  %v4489_v12 = vunpack.c.l.bf16 %v3796_v39  ;;  %2927 = vmatpush3.bf16.xpose.msra.mxu0 %v1203_v14 }
  0xa8   : > { %v995_v29 = vmax.f32 %v963_v0, 0.0  ;;  %v965_v10 = vadd.f32 %v3848_v55, %v927_v25  ;;  %v967_v33 = vadd.f32 %v3848_v55, %v929_v52  ;;  %v931_v16 = vmul.f32 %v2686_v31, %v3817_v61  ;;  %2928 = vmatprep.subr.bf16.mxu0 %v1212_v53 }
  0xa9   : > { %v4017_v11 = vpack.c.bf16 %v993_v5, %v992_v57  ;;  %v996_v32 = vmax.f32 %v964_v43, 0.0  ;;  %v930_v47 = vmul.f32 %v4489_v12, %v3817_v61  ;;  %v998_v34 = vmax.f32 %v966_v21, 0.0 }
  0xaa   : > { %v4023_v51 = vpack.c.bf16 %v995_v29, %v994_v9  ;;  %v997_v28 = vmax.f32 %v965_v10, 0.0  ;;  %v4490_v17 = vunpack.c.l.bf16 %v3802_v4  ;;  %v933_v7 = vmul.f32 %v2690_v38, %v3817_v61  ;;  %v2885_v29 = vld [vmem:[%s3774_s18 + $0x58] sm:$0xff]  }
  0xab   : > { %2936 = vmatprep.mubr.bf16.mxu0 %v4017_v11  ;;  %v968_v42 = vadd.f32 %v3848_v55, %v930_v47  ;;  %v999_v39 = vmax.f32 %v967_v33, 0.0  ;;  %v969_v31 = vadd.f32 %v3848_v55, %v931_v16  ;;  %v4491_v14 = vunpack.c.l.bf16 %v3805_v15  ;;  %v2883_v15 = vld [vmem:[%s3774_s18 + $0x48] sm:$0xff]   ;;  %v2886_v47 = vld [vmem:[%s3774_s18 + $0x60] sm:$0xff]  }
  0xac   : > { %v932_v19 = vmul.f32 %v4490_v17, %v3817_v61  ;;  %v4037_v54 = vpack.c.bf16 %v997_v28, %v996_v32  ;;  %v971_v37 = vadd.f32 %v3848_v55, %v933_v7  ;;  %v935_v38 = vmul.f32 %v2694_v48, %v3817_v61 }
  0xad   : > { %v934_v58 = vmul.f32 %v4491_v14, %v3817_v61  ;;  %v1000_v3 = vmax.f32 %v968_v42, 0.0  ;;  %v4048_v4 = vpack.c.bf16 %v999_v39, %v998_v34  ;;  %v1001_v53 = vmax.f32 %v969_v31, 0.0  ;;  %v2887_v14 = vld [vmem:[%s3774_s18 + $0x68] sm:$0xff]  }
  0xae   : > { %v970_v59 = vadd.f32 %v3848_v55, %v932_v19  ;;  %v936_v23 = vmul.f32 %v2697_v60, %v3817_v61  ;;  %v1003_v26 = vmax.f32 %v971_v37, 0.0  ;;  %v973_v8 = vadd.f32 %v3848_v55, %v935_v38  ;;  %v2884_v60 = vld [vmem:[%s3774_s18 + $0x50] sm:$0xff]  }
  0xaf   : > { %v972_v63 = vadd.f32 %v3848_v55, %v934_v58  ;;  %v937_v24 = vmul.f32 %v2698_v49, %v3817_v61  ;;  %v4059_v48 = vpack.c.bf16 %v1001_v53, %v1000_v3  ;;  %v938_v0 = vmul.f32 %v2701_v62, %v3817_v61  ;;  %2929 = vmatpush3.bf16.xpose.msra.mxu0 %v3964_v36 }
  0xb0   : > { %v1002_v56 = vmax.f32 %v970_v59, 0.0  ;;  %v974_v41 = vadd.f32 %v3848_v55, %v936_v23  ;;  %v1005_v25 = vmax.f32 %v973_v8, 0.0  ;;  %v939_v40 = vmul.f32 %v2702_v1, %v3817_v61  ;;  %2930 = vmatprep.subr.bf16.mxu0 %v3966_v18 }
  0xb1   : > { %v1004_v57 = vmax.f32 %v972_v63, 0.0  ;;  %v975_v5 = vadd.f32 %v3848_v55, %v937_v24  ;;  %v976_v43 = vadd.f32 %v3848_v55, %v938_v0  ;;  %v2705_v6 = vunpack.c.l.bf16 %v2883_v15 }
  0xb2   : > { %v4066_v27 = vpack.c.bf16 %v1003_v26, %v1002_v56  ;;  %v1006_v49 = vmax.f32 %v974_v41, 0.0  ;;  %v2706_v9 = vunpack.c.h.bf16 %v2883_v15  ;;  %v977_v52 = vadd.f32 %v3848_v55, %v939_v40  ;;  %v2888_v56 = vld [vmem:[%s3774_s18 + $0x70] sm:$0xff]  }
  0xb3   : > { %v4075_v62 = vpack.c.bf16 %v1005_v25, %v1004_v57  ;;  %v1007_v10 = vmax.f32 %v975_v5, 0.0  ;;  %v2709_v32 = vunpack.c.l.bf16 %v2884_v60  ;;  %v1008_v21 = vmax.f32 %v976_v43, 0.0 }
  0xb4   : > { %v940_v35 = vmul.f32 %v2705_v6, %v3817_v61  ;;  %v941_v1 = vmul.f32 %v2706_v9, %v3817_v61  ;;  %v2710_v12 = vunpack.c.h.bf16 %v2884_v60  ;;  %v1009_v33 = vmax.f32 %v977_v52, 0.0 }
  0xb5   : > { %v4082_v28 = vpack.c.bf16 %v1007_v10, %v1006_v49  ;;  %v942_v36 = vmul.f32 %v2709_v32, %v3817_v61  ;;  %v2713_v16 = vunpack.c.l.bf16 %v2885_v29  ;;  %v2714_v17 = vunpack.c.h.bf16 %v2885_v29 }
  0xb6   : > { %v978_v34 = vadd.f32 %v3848_v55, %v940_v35  ;;  %v979_v42 = vadd.f32 %v3848_v55, %v941_v1  ;;  %v943_v18 = vmul.f32 %v2710_v12, %v3817_v61  ;;  %v4088_v19 = vpack.c.bf16 %v1009_v33, %v1008_v21 }
  0xb7   : > { %v980_v7 = vadd.f32 %v3848_v55, %v942_v36  ;;  %v944_v39 = vmul.f32 %v2713_v16, %v3817_v61  ;;  %v2717_v31 = vunpack.c.l.bf16 %v2886_v47  ;;  %v945_v37 = vmul.f32 %v2714_v17, %v3817_v61  ;;  %2931 = vmatpush3.bf16.xpose.msra.mxu0 %v3968_v45 }
  0xb8   : > { %v1010_v58 = vmax.f32 %v978_v34, 0.0  ;;  %v1011_v3 = vmax.f32 %v979_v42, 0.0  ;;  %v981_v59 = vadd.f32 %v3848_v55, %v943_v18  ;;  %v2718_v63 = vunpack.c.h.bf16 %v2886_v47  ;;  %2932 = vmatprep.subr.bf16.mxu0 %v3973_v13  ;;  %v2889_v13 = vld [vmem:[%s3774_s18 + $0x78] sm:$0xff]  }
  0xb9   : > { %v1012_v38 = vmax.f32 %v980_v7, 0.0  ;;  %v982_v53 = vadd.f32 %v3848_v55, %v944_v39  ;;  %v946_v23 = vmul.f32 %v2717_v31, %v3817_v61  ;;  %v983_v24 = vadd.f32 %v3848_v55, %v945_v37 }
  0xba   : > { %v4098_v26 = vpack.c.bf16 %v1011_v3, %v1010_v58  ;;  %v1013_v8 = vmax.f32 %v981_v59, 0.0  ;;  %v2721_v15 = vunpack.c.l.bf16 %v2887_v14  ;;  %v947_v41 = vmul.f32 %v2718_v63, %v3817_v61 }
  0xbb   : > { %v1014_v57 = vmax.f32 %v982_v53, 0.0  ;;  %v984_v0 = vadd.f32 %v3848_v55, %v946_v23  ;;  %v2722_v60 = vunpack.c.h.bf16 %v2887_v14  ;;  %v1015_v5 = vmax.f32 %v983_v24, 0.0  ;;  %v3126_v53 = vld [vmem:[%s3690_s15 + $0x10] sm:$0xff]  }
  0xbc   : > { %v1194_v25 = vpack.c.bf16 %v1013_v8, %v1012_v38  ;;  %v948_v40 = vmul.f32 %v2721_v15, %v3817_v61  ;;  %v2725_v49 = vunpack.c.l.bf16 %v2888_v56  ;;  %v985_v43 = vadd.f32 %v3848_v55, %v947_v41  ;;  %v3125_v38 = vld [vmem:[%s3690_s15 + $0x50] sm:$0xff]  }
  0xbd   : > { %v1016_v6 = vmax.f32 %v984_v0, 0.0  ;;  %v949_v9 = vmul.f32 %v2722_v60, %v3817_v61  ;;  %v2726_v45 = vunpack.c.h.bf16 %v2888_v56  ;;  %v1135_v29 = vadd.f32 %v3981_v44, %v3848_v55 }
  0xbe   : > { %v1195_v10 = vpack.c.bf16 %v1015_v5, %v1014_v57  ;;  %v986_v52 = vadd.f32 %v3848_v55, %v948_v40  ;;  %v950_v32 = vmul.f32 %v2725_v49, %v3817_v61  ;;  %v1017_v21 = vmax.f32 %v985_v43, 0.0 }
  0xbf   : > { %v987_v35 = vadd.f32 %v3848_v55, %v949_v9  ;;  %v951_v1 = vmul.f32 %v2726_v45, %v3817_v61  ;;  %v2729_v12 = vunpack.c.l.bf16 %v2889_v13  ;;  %v1215_v47 = vpack.c.bf16 %v1183_v50, %v1182_v22  ;;  %2933 = vmatpush3.bf16.xpose.msra.mxu0 %v3994_v20  ;;  %v3122_v20 = vld [vmem:[%s3690_s15] sm:$0xff]  }
  0xc0   : > { %v1018_v33 = vmax.f32 %v986_v52, 0.0  ;;  %v988_v44 = vadd.f32 %v3848_v55, %v950_v32  ;;  %v2730_v36 = vunpack.c.h.bf16 %v2889_v13  ;;  %v1196_v16 = vpack.c.bf16 %v1017_v21, %v1016_v6  ;;  %v3128_v32 = vld [vmem:[%s3690_s15 + $0x18] sm:$0xff]  }
  0xc1   : > { %v1019_v34 = vmax.f32 %v987_v35, 0.0  ;;  %v989_v42 = vadd.f32 %v3848_v55, %v951_v1  ;;  %v952_v18 = vmul.f32 %v2729_v12, %v3817_v61  ;;  %v1166_v17 = vmax.f32 %v3997_v46, 0.0  ;;  %2934 = vmatprep.subr.bf16.mxu0 %v1215_v47  ;;  %v3123_v46 = vld [vmem:[%s3690_s15 + $0x48] sm:$0xff]   ;;  %v3129_v1 = vld [vmem:[%s3690_s15 + $0x60] sm:$0xff]  }
  0xc2   : > { %v1020_v7 = vmax.f32 %v988_v44, 0.0  ;;  %v953_v39 = vmul.f32 %v2730_v36, %v3817_v61  ;;  %v1167_v30 = vmax.f32 %v1135_v29, 0.0 }
  0xc3   : > { %v1197_v2 = vpack.c.bf16 %v1019_v34, %v1018_v33  ;;  %v1021_v22 = vmax.f32 %v989_v42, 0.0  ;;  %v990_v50 = vadd.f32 %v3848_v55, %v952_v18  ;;  %v3130_v33 = vld [vmem:[%s3690_s15 + $0x20] sm:$0xff]   ;;  %v3131_v42 = vld [vmem:[%s3690_s15 + $0x68] sm:$0xff]  }
  0xc4   : > { %v991_v31 = vadd.f32 %v3848_v55, %v953_v39  ;;  %v1207_v59 = vpack.c.bf16 %v1167_v30, %v1166_v17  ;;  %v3121_v55 = vld [vmem:[%s3690_s15 + $0x40] sm:$0xff]   ;;  %v3132_v17 = vld [vmem:[%s3690_s15 + $0x28] sm:$0xff]  }
  0xc5   : > { %v1198_v14 = vpack.c.bf16 %v1021_v22, %v1020_v7  ;;  %v1022_v58 = vmax.f32 %v990_v50, 0.0  ;;  %2968 = vmatprep.subr.bf16.mxu1 %v3121_v55  ;;  %v3136_v55 = vld [vmem:[%s3690_s15 + $0x38] sm:$0xff]  }
  0xc6   : > { %v1023_v3 = vmax.f32 %v991_v31, 0.0  ;;  %2969 = vmatpush3.bf16.msra.mxu1 %v3122_v20  ;;  %v3134_v31 = vld [vmem:[%s3690_s15 + $0x30] sm:$0xff]  }
  0xc7   : > { %2935 = vmatpush3.bf16.xpose.msra.mxu0 %v1207_v59  ;;  %2970 = vmatprep.subr.bf16.mxu1 %v3123_v46 }
  0xc8   : > { %v1199_v37 = vpack.c.bf16 %v1023_v3, %v1022_v58 }
  0xce   : > { %2937 = vmatmul.mubr.bf16.vlgmr.msra.gmra.mrb[0].mxu0 %v4017_v11 }
  0xcf   : > { %2938 = vmatprep.mubr.bf16.mxu0 %v4023_v51 }
  0xd6   : > { %2939 = vmatmul.mubr.bf16.gmra.mrb[4].mxu0 %v4023_v51 }
  0xd7   : > { %2940 = vmatprep.mubr.bf16.mxu0 %v4037_v54 }
  0xde   : > { %2941 = vmatmul.mubr.bf16.gmra.mrb[8].mxu0 %v4037_v54 }
  0xdf   : > { %2942 = vmatprep.mubr.bf16.mxu0 %v4048_v4 }
  0xe6   : > { %2943 = vmatmul.mubr.bf16.gmra.mrb[12].mxu0 %v4048_v4 }
  0xe7   : > { %2944 = vmatprep.mubr.bf16.mxu0 %v4059_v48 }
  0xee   : > { %2945 = vmatmul.mubr.bf16.gmra.mrb[16].mxu0 %v4059_v48 }
  0xef   : > { %2946 = vmatprep.mubr.bf16.mxu0 %v4066_v27 }
  0xf6   : > { %2947 = vmatmul.mubr.bf16.gmra.mrb[20].mxu0 %v4066_v27  ;;  %v3124_v27 = vld [vmem:[%s3690_s15 + $0x8] sm:$0xff]  }
  0xf7   : > { %2948 = vmatprep.mubr.bf16.mxu0 %v4075_v62  ;;  %2971 = vmatpush3.bf16.msra.mxu1 %v3124_v27 }
  0xf8   : > { %2972 = vmatprep.subr.bf16.mxu1 %v3125_v38 }
  0xfb   : > { %2973 = vmatpush3.bf16.msra.mxu1 %v3126_v53 }
  0xfe   : > { %2949 = vmatmul.mubr.bf16.gmra.mrb[24].mxu0 %v4075_v62 }
  0xff   : > { %2950 = vmatprep.mubr.bf16.mxu0 %v4082_v28 }
 0x106   : > { %2951 = vmatmul.mubr.bf16.gmra.mrb[28].mxu0 %v4082_v28 }
 0x107   : > { %2952 = vmatprep.mubr.bf16.mxu0 %v4088_v19 }
 0x10e   : > { %2953 = vmatmul.mubr.bf16.gmra.mrb[32].mxu0 %v4088_v19 }
 0x10f   : > { %2954 = vmatprep.mubr.bf16.mxu0 %v4098_v26 }
 0x116   : > { %2955 = vmatmul.mubr.bf16.gmra.mrb[36].mxu0 %v4098_v26 }
 0x117   : > { %2956 = vmatprep.mubr.bf16.mxu0 %v1194_v25 }
 0x11e   : > { %2957 = vmatmul.mubr.bf16.gmra.mrb[40].mxu0 %v1194_v25 }
 0x11f   : > { %2958 = vmatprep.mubr.bf16.mxu0 %v1195_v10 }
 0x126   : > { %2959 = vmatmul.mubr.bf16.gmra.mrb[44].mxu0 %v1195_v10  ;;  %v3127_v10 = vld [vmem:[%s3690_s15 + $0x58] sm:$0xff]  }
 0x127   : > { %2960 = vmatprep.mubr.bf16.mxu0 %v1196_v16  ;;  %2974 = vmatprep.subr.bf16.mxu1 %v3127_v10 }
 0x128   : > { %2975 = vmatpush3.bf16.msra.mxu1 %v3128_v32 }
 0x129   : > { %2976 = vmatprep.subr.bf16.mxu1 %v3129_v1 }
 0x12c   : > { %2977 = vmatpush3.bf16.msra.mxu1 %v3130_v33 }
 0x12d   : > { %2978 = vmatprep.subr.bf16.mxu1 %v3131_v42 }
 0x12e   : > { %2961 = vmatmul.mubr.bf16.gmra.mrb[48].mxu0 %v1196_v16 }
 0x12f   : > { %2962 = vmatprep.mubr.bf16.mxu0 %v1197_v2 }
 0x130   : > { %2979 = vmatpush3.bf16.msra.mxu1 %v3132_v17 }
 0x136   : > { %2963 = vmatmul.mubr.bf16.gmra.mrb[52].mxu0 %v1197_v2  ;;  %v3133_v2 = vld [vmem:[%s3690_s15 + $0x70] sm:$0xff]  }
 0x137   : > { %2964 = vmatprep.mubr.bf16.mxu0 %v1198_v14  ;;  %2980 = vmatprep.subr.bf16.mxu1 %v3133_v2 }
 0x138   : > { %2981 = vmatpush3.bf16.msra.mxu1 %v3134_v31 }
 0x13e   : > { %2965 = vmatmul.mubr.bf16.gmra.mrb[56].mxu0 %v1198_v14 }
 0x13f   : > { %2966 = vmatprep.mubr.bf16.mxu0 %v1199_v37 }
 0x146   : > { %2967 = vmatmul.mubr.bf16.gmra.mrb[60].mxu0 %v1199_v37  ;;  %v3135_v37 = vld [vmem:[%s3690_s15 + $0x78] sm:$0xff]  }
 0x147   : > { %2982 = vmatprep.subr.bf16.mxu1 %v3135_v37 }
 0x148   : > { %2983 = vmatpush3.bf16.msra.mxu1 %v3136_v55 }
 0x1a1   : > { %v1250_v61 = vpop.f32.mrb[0].mxu0 }
 0x1a2   : > { %v4149_v11 = vmul.f32 0.17677669, %v1250_v61  ;;  %v1252_v51 = vpop.f32.mrb[1].mxu0 }
 0x1a3   : > { %v4151_v54 = vmul.f32 0.17677669, %v1252_v51  ;;  %v1254_v4 = vpop.f32.mrb[2].mxu0 }
 0x1a4   : > { %v1256_v48 = vpop.f32.mrb[3].mxu0  ;;  %v4154_v62 = vmul.f32 0.17677669, %v1254_v4 }
 0x1a5   : > { %v4156_v28 = vmul.f32 0.17677669, %v1256_v48  ;;  %v1473_v19 = vmax.f32 %v4149_v11, %v4151_v54 }
 0x1a7   : > { %1474 = vmax.xlane.f32.xlu0 %v1473_v19  ;;  %v1476_v23 = vmax.f32 %v4154_v62, %v4156_v28 }
 0x1a9   : > { %v1260_v63 = vpop.f32.mrb[4].mxu0 }
 0x1aa   : > { %v4164_v56 = vmul.f32 0.17677669, %v1260_v63  ;;  %v1262_v26 = vpop.f32.mrb[5].mxu0 }
 0x1ab   : > { %v4166_v8 = vmul.f32 0.17677669, %v1262_v26  ;;  %1477 = vmax.xlane.f32.xlu0 %v1476_v23  ;;  %v1264_v24 = vpop.f32.mrb[6].mxu0 }
 0x1ac   : > { %v1266_v15 = vpop.f32.mrb[7].mxu0  ;;  %v4168_v57 = vmul.f32 0.17677669, %v1264_v24 }
 0x1ad   : > { %v4170_v41 = vmul.f32 0.17677669, %v1266_v15  ;;  %v1479_v0 = vmax.f32 %v4164_v56, %v4166_v8 }
 0x1af   : > { %1480 = vmax.xlane.f32.xlu1 %v1479_v0  ;;  %v1482_v25 = vmax.f32 %v4168_v57, %v4170_v41 }
 0x1b1   : > { %v1270_v60 = vpop.f32.mrb[8].mxu0 }
 0x1b2   : > { %v4176_v5 = vmul.f32 0.17677669, %v1270_v60  ;;  %v1272_v40 = vpop.f32.mrb[9].mxu0 }
 0x1b3   : > { %v4178_v49 = vmul.f32 0.17677669, %v1272_v40  ;;  %1483 = vmax.xlane.f32.xlu1 %v1482_v25  ;;  %v1274_v43 = vpop.f32.mrb[10].mxu0 }
 0x1b4   : > { %v4180_v6 = vmul.f32 0.17677669, %v1274_v43  ;;  %v1276_v9 = vpop.f32.mrb[11].mxu0 }
 0x1b5   : > { %v4182_v45 = vmul.f32 0.17677669, %v1276_v9  ;;  %v1485_v29 = vmax.f32 %v4176_v5, %v4178_v49 }
 0x1b7   : > { %1486 = vmax.xlane.f32.xlu0 %v1485_v29  ;;  %v1488_v52 = vmax.f32 %v4180_v6, %v4182_v45 }
 0x1b9   : > { %1489 = vmax.xlane.f32.xlu1 %v1488_v52  ;;  %v1280_v13 = vpop.f32.mrb[12].mxu0 }
 0x1ba   : > { %v4190_v21 = vmul.f32 0.17677669, %v1280_v13  ;;  %v1282_v35 = vpop.f32.mrb[13].mxu0 }
 0x1bb   : > { %v4193_v12 = vmul.f32 0.17677669, %v1282_v35  ;;  %v1284_v47 = vpop.f32.mrb[14].mxu0 }
 0x1bc   : > { %v4196_v44 = vmul.f32 0.17677669, %v1284_v47  ;;  %v1286_v36 = vpop.f32.mrb[15].mxu0 }
 0x1bd   : > { %v4198_v16 = vmul.f32 0.17677669, %v1286_v36  ;;  %v1491_v34 = vmax.f32 %v4190_v21, %v4193_v12 }
 0x1bf   : > { %1492 = vmax.xlane.f32.xlu0 %v1491_v34  ;;  %v1494_v18 = vmax.f32 %v4196_v44, %v4198_v16 }
 0x1c1   : > { %1495 = vmax.xlane.f32.xlu1 %v1494_v18  ;;  %v1290_v7 = vpop.f32.mrb[16].mxu0 }
 0x1c2   : > { %v4206_v39 = vmul.f32 0.17677669, %v1290_v7  ;;  %v1292_v30 = vpop.f32.mrb[17].mxu0 }
 0x1c3   : > { %v4209_v22 = vmul.f32 0.17677669, %v1292_v30  ;;  %v1294_v50 = vpop.f32.mrb[18].mxu0 }
 0x1c4   : > { %v4212_v14 = vmul.f32 0.17677669, %v1294_v50  ;;  %v1296_v58 = vpop.f32.mrb[19].mxu0 }
 0x1c5   : > { %v4214_v3 = vmul.f32 0.17677669, %v1296_v58  ;;  %v1497_v59 = vmax.f32 %v4206_v39, %v4209_v22 }
 0x1c7   : > { %1498 = vmax.xlane.f32.xlu0 %v1497_v59  ;;  %v1500_v61 = vmax.f32 %v4212_v14, %v4214_v3 }
 0x1c9   : > { %1501 = vmax.xlane.f32.xlu1 %v1500_v61  ;;  %v1300_v20 = vpop.f32.mrb[20].mxu0 }
 0x1ca   : > { %v4222_v46 = vmul.f32 0.17677669, %v1300_v20  ;;  %v1302_v51 = vpop.f32.mrb[21].mxu0 }
 0x1cb   : > { %v4224_v4 = vmul.f32 0.17677669, %v1302_v51  ;;  %v1304_v48 = vpop.f32.mrb[22].mxu0 }
 0x1cc   : > { %v4226_v27 = vmul.f32 0.17677669, %v1304_v48  ;;  %v1306_v19 = vpop.f32.mrb[23].mxu0 }
 0x1cd   : > { %v4228_v38 = vmul.f32 0.17677669, %v1306_v19  ;;  %v1503_v53 = vmax.f32 %v4222_v46, %v4224_v4 }
 0x1cf   : > { %1504 = vmax.xlane.f32.xlu0 %v1503_v53  ;;  %v1506_v63 = vmax.f32 %v4226_v27, %v4228_v38 }
 0x1d1   : > { %1507 = vmax.xlane.f32.xlu1 %v1506_v63  ;;  %v1310_v23 = vpop.f32.mrb[24].mxu0 }
 0x1d2   : > { %v4234_v26 = vmul.f32 0.17677669, %v1310_v23  ;;  %v1312_v24 = vpop.f32.mrb[25].mxu0 }
 0x1d3   : > { %v4236_v15 = vmul.f32 0.17677669, %v1312_v24  ;;  %v1314_v0 = vpop.f32.mrb[26].mxu0 }
 0x1d4   : > { %v4238_v60 = vmul.f32 0.17677669, %v1314_v0  ;;  %v1316_v25 = vpop.f32.mrb[27].mxu0 }
 0x1d5   : > { %v4240_v40 = vmul.f32 0.17677669, %v1316_v25  ;;  %v1509_v43 = vmax.f32 %v4234_v26, %v4236_v15 }
 0x1d7   : > { %1510 = vmax.xlane.f32.xlu0 %v1509_v43  ;;  %v1512_v9 = vmax.f32 %v4238_v60, %v4240_v40 }
 0x1d9   : > { %1513 = vmax.xlane.f32.xlu1 %v1512_v9  ;;  %v1320_v29 = vpop.f32.mrb[28].mxu0 }
 0x1da   : > { %v4246_v10 = vmul.f32 0.17677669, %v1320_v29  ;;  %v1322_v52 = vpop.f32.mrb[29].mxu0 }
 0x1db   : > { %v4248_v32 = vmul.f32 0.17677669, %v1322_v52  ;;  %v1324_v13 = vpop.f32.mrb[30].mxu0 }
 0x1dc   : > { %v4250_v35 = vmul.f32 0.17677669, %v1324_v13  ;;  %v1326_v1 = vpop.f32.mrb[31].mxu0 }
 0x1dd   : > { %v4252_v47 = vmul.f32 0.17677669, %v1326_v1  ;;  %v1515_v33 = vmax.f32 %v4246_v10, %v4248_v32 }
 0x1df   : > { %1516 = vmax.xlane.f32.xlu0 %v1515_v33  ;;  %v1518_v36 = vmax.f32 %v4250_v35, %v4252_v47 }
 0x1e1   : > { %1519 = vmax.xlane.f32.xlu1 %v1518_v36  ;;  %v1330_v34 = vpop.f32.mrb[32].mxu0 }
 0x1e2   : > { %v4258_v42 = vmul.f32 0.17677669, %v1330_v34  ;;  %v1332_v18 = vpop.f32.mrb[33].mxu0 }
 0x1e3   : > { %v4260_v17 = vmul.f32 0.17677669, %v1332_v18  ;;  %v1334_v7 = vpop.f32.mrb[34].mxu0 }
 0x1e4   : > { %v4262_v30 = vmul.f32 0.17677669, %v1334_v7  ;;  %v1336_v2 = vpop.f32.mrb[35].mxu0 }
 0x1e5   : > { %v4264_v50 = vmul.f32 0.17677669, %v1336_v2  ;;  %v1521_v31 = vmax.f32 %v4258_v42, %v4260_v17 }
 0x1e7   : > { %1522 = vmax.xlane.f32.xlu0 %v1521_v31  ;;  %v1524_v58 = vmax.f32 %v4262_v30, %v4264_v50 }
 0x1e9   : > { %1525 = vmax.xlane.f32.xlu1 %v1524_v58  ;;  %v1340_v59 = vpop.f32.mrb[36].mxu0 }
 0x1ea   : > { %v4270_v37 = vmul.f32 0.17677669, %v1340_v59  ;;  %v1342_v61 = vpop.f32.mrb[37].mxu0 }
 0x1eb   : > { %v4272_v55 = vmul.f32 0.17677669, %v1342_v61  ;;  %v1344_v20 = vpop.f32.mrb[38].mxu0 }
 0x1ec   : > { %v4274_v51 = vmul.f32 0.17677669, %v1344_v20  ;;  %v1346_v48 = vpop.f32.mrb[39].mxu0 }
 0x1ed   : > { %v4276_v19 = vmul.f32 0.17677669, %v1346_v48  ;;  %v1527_v53 = vmax.f32 %v4270_v37, %v4272_v55 }
 0x1ef   : > { %1528 = vmax.xlane.f32.xlu0 %v1527_v53  ;;  %v1530_v63 = vmax.f32 %v4274_v51, %v4276_v19 }
 0x1f1   : > { %1531 = vmax.xlane.f32.xlu1 %v1530_v63  ;;  %v1350_v23 = vpop.f32.mrb[40].mxu0 }
 0x1f2   : > { %v4282_v24 = vmul.f32 0.17677669, %v1350_v23  ;;  %v1352_v0 = vpop.f32.mrb[41].mxu0 }
 0x1f3   : > { %v4284_v25 = vmul.f32 0.17677669, %v1352_v0  ;;  %v1354_v43 = vpop.f32.mrb[42].mxu0 }
 0x1f4   : > { %v4286_v9 = vmul.f32 0.17677669, %v1354_v43  ;;  %v1356_v29 = vpop.f32.mrb[43].mxu0 }
 0x1f5   : > { %v4288_v52 = vmul.f32 0.17677669, %v1356_v29  ;;  %v1533_v13 = vmax.f32 %v4282_v24, %v4284_v25 }
 0x1f7   : > { %1534 = vmax.xlane.f32.xlu0 %v1533_v13  ;;  %v1536_v1 = vmax.f32 %v4286_v9, %v4288_v52 }
 0x1f9   : > { %1537 = vmax.xlane.f32.xlu1 %v1536_v1  ;;  %v1360_v33 = vpop.f32.mrb[44].mxu0 }
 0x1fa   : > { %v4294_v36 = vmul.f32 0.17677669, %v1360_v33  ;;  %v1362_v34 = vpop.f32.mrb[45].mxu0 }
 0x1fb   : > { %v4296_v18 = vmul.f32 0.17677669, %v1362_v34  ;;  %v1364_v7 = vpop.f32.mrb[46].mxu0 }
 0x1fc   : > { %v4298_v2 = vmul.f32 0.17677669, %v1364_v7  ;;  %v1366_v31 = vpop.f32.mrb[47].mxu0 }
 0x1fd   : > { %v4300_v58 = vmul.f32 0.17677669, %v1366_v31  ;;  %v1539_v59 = vmax.f32 %v4294_v36, %v4296_v18 }
 0x1ff   : > { %1540 = vmax.xlane.f32.xlu0 %v1539_v59  ;;  %v1542_v61 = vmax.f32 %v4298_v2, %v4300_v58 }
 0x201   : > { %1543 = vmax.xlane.f32.xlu1 %v1542_v61  ;;  %v1370_v20 = vpop.f32.mrb[48].mxu0 }
 0x202   : > { %v4306_v48 = vmul.f32 0.17677669, %v1370_v20  ;;  %v1372_v53 = vpop.f32.mrb[49].mxu0 }
 0x203   : > { %v4308_v63 = vmul.f32 0.17677669, %v1372_v53  ;;  %v1374_v23 = vpop.f32.mrb[50].mxu0 }
 0x204   : > { %v4310_v0 = vmul.f32 0.17677669, %v1374_v23  ;;  %v1376_v43 = vpop.f32.mrb[51].mxu0 }
 0x205   : > { %v4312_v29 = vmul.f32 0.17677669, %v1376_v43  ;;  %v1545_v13 = vmax.f32 %v4306_v48, %v4308_v63 }
 0x206   : > { %4492 = vst [vmem:[#allocation5_spill] sm:$0xff] %v4310_v0 }
 0x207   : > { %4493 = vst [vmem:[#allocation6_spill] sm:$0xff] %v4312_v29  ;;  %1546 = vmax.xlane.f32.xlu0 %v1545_v13  ;;  %v1548_v1 = vmax.f32 %v4310_v0, %v4312_v29 }
 0x209   : > { %1549 = vmax.xlane.f32.xlu1 %v1548_v1  ;;  %v1380_v33 = vpop.f32.mrb[52].mxu0 }
 0x20a   : > { %v4318_v34 = vmul.f32 0.17677669, %v1380_v33  ;;  %v1382_v7 = vpop.f32.mrb[53].mxu0 }
 0x20b   : > { %v4320_v31 = vmul.f32 0.17677669, %v1382_v7  ;;  %v1384_v59 = vpop.f32.mrb[54].mxu0 }
 0x20c   : > { %4494 = vst [vmem:[#allocation7_spill] sm:$0xff] %v4318_v34  ;;  %v4322_v61 = vmul.f32 0.17677669, %v1384_v59  ;;  %v1386_v20 = vpop.f32.mrb[55].mxu0 }
 0x20d   : > { %4495 = vst [vmem:[#allocation8_spill] sm:$0xff] %v4320_v31  ;;  %v4324_v53 = vmul.f32 0.17677669, %v1386_v20  ;;  %v1551_v23 = vmax.f32 %v4318_v34, %v4320_v31 }
 0x20e   : > { %4496 = vst [vmem:[#allocation9_spill] sm:$0xff] %v4322_v61 }
 0x20f   : > { %4497 = vst [vmem:[#allocation10_spill] sm:$0xff] %v4324_v53  ;;  %1552 = vmax.xlane.f32.xlu0 %v1551_v23  ;;  %v1554_v43 = vmax.f32 %v4322_v61, %v4324_v53 }
 0x211   : > { %1555 = vmax.xlane.f32.xlu1 %v1554_v43  ;;  %v1390_v13 = vpop.f32.mrb[56].mxu0 }
 0x212   : > { %v4330_v1 = vmul.f32 0.17677669, %v1390_v13  ;;  %v1392_v33 = vpop.f32.mrb[57].mxu0 }
 0x213   : > { %v4332_v7 = vmul.f32 0.17677669, %v1392_v33  ;;  %v1394_v29 = vpop.f32.mrb[58].mxu0 }
 0x214   : > { %4498 = vst [vmem:[#allocation11_spill] sm:$0xff] %v4330_v1  ;;  %v4334_v59 = vmul.f32 0.17677669, %v1394_v29  ;;  %v1396_v0 = vpop.f32.mrb[59].mxu0 }
 0x215   : > { %4499 = vst [vmem:[#allocation12_spill] sm:$0xff] %v4332_v7  ;;  %v4336_v20 = vmul.f32 0.17677669, %v1396_v0  ;;  %v1557_v31 = vmax.f32 %v4330_v1, %v4332_v7 }
 0x216   : > { %4500 = vst [vmem:[#allocation13_spill] sm:$0xff] %v4334_v59 }
 0x217   : > { %4501 = vst [vmem:[#allocation14_spill] sm:$0xff] %v4336_v20  ;;  %1558 = vmax.xlane.f32.xlu0 %v1557_v31  ;;  %v1560_v23 = vmax.f32 %v4334_v59, %v4336_v20 }
 0x219   : > { %1561 = vmax.xlane.f32.xlu1 %v1560_v23  ;;  %v1400_v43 = vpop.f32.mrb[60].mxu0 }
 0x21a   : > { %v4342_v13 = vmul.f32 0.17677669, %v1400_v43  ;;  %v1402_v53 = vpop.f32.mrb[61].mxu0 }
 0x21b   : > { %v4344_v33 = vmul.f32 0.17677669, %v1402_v53  ;;  %v1404_v61 = vpop.f32.mrb[62].mxu0 }
 0x21c   : > { %4502 = vst [vmem:[#allocation15_spill] sm:$0xff] %v4342_v13  ;;  %v4346_v29 = vmul.f32 0.17677669, %v1404_v61  ;;  %v1406_v34 = vpop.f32.mrb[63].mxu0 }
 0x21d   : > { %4503 = vst [vmem:[#allocation16_spill] sm:$0xff] %v4344_v33  ;;  %v4348_v0 = vmul.f32 0.17677669, %v1406_v34  ;;  %v1563_v7 = vmax.f32 %v4342_v13, %v4344_v33 }
 0x21f   : > { %4504 = vst [vmem:[#allocation17_spill] sm:$0xff] %v4348_v0  ;;  %1564 = vmax.xlane.f32.xlu0 %v1563_v7  ;;  %v1566_v31 = vmax.f32 %v4346_v29, %v4348_v0 }
 0x221   : > { %1567 = vmax.xlane.f32.xlu1 %v1566_v31 }
 0x234   : > { %v1475_v23 = vpop.xlane.xlu0 %1474 }
 0x235   : > { %v1569_v43 = vsub.f32 %v4149_v11, %v1475_v23  ;;  %v1570_v53 = vsub.f32 %v4151_v54, %v1475_v23 }
 0x237   : > { %v1633_v20 = vmul.f32 1.442695, %v1569_v43  ;;  %v1635_v59 = vmul.f32 1.442695, %v1570_v53 }
 0x238   : > { %v1478_v61 = vpop.xlane.xlu0 %1477 }
 0x239   : > { %3139 = vpow2.f32 %v1633_v20  ;;  %v1571_v34 = vsub.f32 %v4154_v62, %v1478_v61  ;;  %v1572_v1 = vsub.f32 %v4156_v28, %v1478_v61 }
 0x23a   : > { %3141 = vpow2.f32 %v1635_v59 }
 0x23b   : > { %v1637_v33 = vmul.f32 1.442695, %v1571_v34  ;;  %v1639_v7 = vmul.f32 1.442695, %v1572_v1 }
 0x23c   : > { %v1481_v13 = vpop.xlane.xlu1 %1480 }
 0x23d   : > { %3143 = vpow2.f32 %v1637_v33  ;;  %v1573_v31 = vsub.f32 %v4164_v56, %v1481_v13  ;;  %v1574_v0 = vsub.f32 %v4166_v8, %v1481_v13 }
 0x23e   : > { %3145 = vpow2.f32 %v1639_v7 }
 0x23f   : > { %v1641_v11 = vmul.f32 1.442695, %v1573_v31  ;;  %v1643_v54 = vmul.f32 1.442695, %v1574_v0 }
 0x240   : > { %v1484_v23 = vpop.xlane.xlu1 %1483 }
 0x241   : > { %3147 = vpow2.f32 %v1641_v11  ;;  %v1575_v20 = vsub.f32 %v4168_v57, %v1484_v23  ;;  %v1576_v62 = vsub.f32 %v4170_v41, %v1484_v23 }
 0x242   : > { %3149 = vpow2.f32 %v1643_v54 }
 0x243   : > { %v3140_v28 = vpop.eup %3139  ;;  %v1645_v59 = vmul.f32 1.442695, %v1575_v20  ;;  %v1647_v43 = vmul.f32 1.442695, %v1576_v62 }
 0x244   : > { %v3142_v1 = vpop.eup %3141  ;;  %v1487_v53 = vpop.xlane.xlu0 %1486 }
 0x245   : > { %3151 = vpow2.f32 %v1645_v59  ;;  %v1577_v56 = vsub.f32 %v4176_v5, %v1487_v53  ;;  %v1578_v8 = vsub.f32 %v4178_v49, %v1487_v53  ;;  %v1761_v13 = vadd.f32 %v3142_v1, %v3140_v28 }
 0x246   : > { %3153 = vpow2.f32 %v1647_v43  ;;  %v1490_v33 = vpop.xlane.xlu1 %1489 }
 0x247   : > { %v3144_v0 = vpop.eup %3143  ;;  %v1649_v61 = vmul.f32 1.442695, %v1577_v56  ;;  %v1651_v34 = vmul.f32 1.442695, %v1578_v8  ;;  %v1579_v57 = vsub.f32 %v4180_v6, %v1490_v33  ;;  %v1580_v41 = vsub.f32 %v4182_v45, %v1490_v33  ;;  %1762 = vadd.xlane.f32.xlu0 %v1761_v13 }
 0x248   : > { %v3146_v7 = vpop.eup %3145  ;;  %v1857_v31 = vpack.c.bf16 %v3144_v0, %v3140_v28 }
 0x249   : > { %3155 = vpow2.f32 %v1649_v61  ;;  %v1653_v11 = vmul.f32 1.442695, %v1579_v57  ;;  %v1655_v54 = vmul.f32 1.442695, %v1580_v41  ;;  %v1858_v23 = vpack.c.bf16 %v3146_v7, %v3142_v1 }
 0x24a   : > { %3157 = vpow2.f32 %v1651_v34  ;;  %v1764_v5 = vadd.f32 %v3146_v7, %v3144_v0 }
 0x24b   : > { %v3148_v49 = vpop.eup %3147  ;;  %3159 = vpow2.f32 %v1653_v11  ;;  %2049 = vmatprep.mubr.bf16.mxu1 %v1858_v23 }
 0x24c   : > { %v3150_v20 = vpop.eup %3149  ;;  %3161 = vpow2.f32 %v1655_v54  ;;  %1765 = vadd.xlane.f32.xlu1 %v1764_v5  ;;  %2050 = vmatmul.mubr.bf16.vlgmr.msra.gmra.mrb[0].mxu1 %v1857_v31  ;;  %v1493_v62 = vpop.xlane.xlu0 %1492 }
 0x24d   : > { %v1581_v6 = vsub.f32 %v4190_v21, %v1493_v62  ;;  %v1582_v45 = vsub.f32 %v4193_v12, %v1493_v62  ;;  %v1767_v59 = vadd.f32 %v3150_v20, %v3148_v49 }
 0x24e   : > { %v1496_v28 = vpop.xlane.xlu1 %1495 }
 0x24f   : > { %v3152_v43 = vpop.eup %3151  ;;  %v1657_v53 = vmul.f32 1.442695, %v1581_v6  ;;  %v1659_v56 = vmul.f32 1.442695, %v1582_v45  ;;  %v1583_v1 = vsub.f32 %v4196_v44, %v1496_v28  ;;  %v1584_v8 = vsub.f32 %v4198_v16, %v1496_v28  ;;  %1768 = vadd.xlane.f32.xlu0 %v1767_v59 }
 0x250   : > { %v3154_v13 = vpop.eup %3153  ;;  %v1859_v33 = vpack.c.bf16 %v3152_v43, %v3148_v49 }
 0x251   : > { %3163 = vpow2.f32 %v1657_v53  ;;  %v1661_v0 = vmul.f32 1.442695, %v1583_v1  ;;  %v1663_v61 = vmul.f32 1.442695, %v1584_v8  ;;  %v1860_v34 = vpack.c.bf16 %v3154_v13, %v3150_v20 }
 0x252   : > { %3165 = vpow2.f32 %v1659_v56  ;;  %v1770_v21 = vadd.f32 %v3154_v13, %v3152_v43 }
 0x253   : > { %v3156_v57 = vpop.eup %3155  ;;  %3167 = vpow2.f32 %v1661_v0  ;;  %2057 = vmatprep.mubr.bf16.mxu1 %v1860_v34 }
 0x254   : > { %v3158_v12 = vpop.eup %3157  ;;  %3169 = vpow2.f32 %v1663_v61  ;;  %1771 = vadd.xlane.f32.xlu1 %v1770_v21  ;;  %2058 = vmatmul.mubr.bf16.gmra.mrb[4].mxu1 %v1859_v33  ;;  %v1499_v41 = vpop.xlane.xlu0 %1498 }
 0x255   : > { %v3160_v44 = vpop.eup %3159  ;;  %v1585_v16 = vsub.f32 %v4206_v39, %v1499_v41  ;;  %v1586_v7 = vsub.f32 %v4209_v22, %v1499_v41  ;;  %v1773_v31 = vadd.f32 %v3158_v12, %v3156_v57 }
 0x256   : > { %v3162_v11 = vpop.eup %3161  ;;  %v1502_v54 = vpop.xlane.xlu1 %1501  ;;  %v1861_v39 = vpack.c.bf16 %v3160_v44, %v3156_v57 }
 0x257   : > { %v1665_v23 = vmul.f32 1.442695, %v1585_v16  ;;  %v1667_v5 = vmul.f32 1.442695, %v1586_v7  ;;  %v1587_v49 = vsub.f32 %v4212_v14, %v1502_v54  ;;  %v1588_v20 = vsub.f32 %v4214_v3, %v1502_v54  ;;  %1774 = vadd.xlane.f32.xlu0 %v1773_v31 }
 0x258   : > { %v1862_v62 = vpack.c.bf16 %v3162_v11, %v3158_v12  ;;  %v1776_v6 = vadd.f32 %v3162_v11, %v3160_v44 }
 0x259   : > { %3171 = vpow2.f32 %v1665_v23  ;;  %v1669_v45 = vmul.f32 1.442695, %v1587_v49  ;;  %v1671_v59 = vmul.f32 1.442695, %v1588_v20 }
 0x25a   : > { %3173 = vpow2.f32 %v1667_v5  ;;  %2065 = vmatprep.mubr.bf16.mxu1 %v1862_v62  ;;  %1777 = vadd.xlane.f32.xlu1 %v1776_v6 }
 0x25b   : > { %v3164_v22 = vpop.eup %3163  ;;  %3175 = vpow2.f32 %v1669_v45 }
 0x25c   : > { %v3166_v28 = vpop.eup %3165  ;;  %3177 = vpow2.f32 %v1671_v59  ;;  %2066 = vmatmul.mubr.bf16.gmra.mrb[8].mxu1 %v1861_v39  ;;  %v1505_v43 = vpop.xlane.xlu0 %1504 }
 0x25d   : > { %v3168_v53 = vpop.eup %3167  ;;  %v1589_v14 = vsub.f32 %v4222_v46, %v1505_v43  ;;  %v1590_v3 = vsub.f32 %v4224_v4, %v1505_v43  ;;  %v1779_v56 = vadd.f32 %v3166_v28, %v3164_v22 }
 0x25e   : > { %v3170_v1 = vpop.eup %3169  ;;  %v1508_v8 = vpop.xlane.xlu1 %1507  ;;  %v1863_v46 = vpack.c.bf16 %v3168_v53, %v3164_v22 }
 0x25f   : > { %v1673_v13 = vmul.f32 1.442695, %v1589_v14  ;;  %v1675_v33 = vmul.f32 1.442695, %v1590_v3  ;;  %v1591_v0 = vsub.f32 %v4226_v27, %v1508_v8  ;;  %v1592_v61 = vsub.f32 %v4228_v38, %v1508_v8  ;;  %1780 = vadd.xlane.f32.xlu0 %v1779_v56 }
 0x260   : > { %v1864_v34 = vpack.c.bf16 %v3170_v1, %v3166_v28  ;;  %v1782_v21 = vadd.f32 %v3170_v1, %v3168_v53 }
 0x261   : > { %3179 = vpow2.f32 %v1673_v13  ;;  %v1677_v57 = vmul.f32 1.442695, %v1591_v0  ;;  %v1679_v12 = vmul.f32 1.442695, %v1592_v61 }
 0x262   : > { %3181 = vpow2.f32 %v1675_v33  ;;  %2073 = vmatprep.mubr.bf16.mxu1 %v1864_v34  ;;  %1783 = vadd.xlane.f32.xlu1 %v1782_v21 }
 0x263   : > { %v3172_v4 = vpop.eup %3171  ;;  %3183 = vpow2.f32 %v1677_v57 }
 0x264   : > { %v3174_v41 = vpop.eup %3173  ;;  %3185 = vpow2.f32 %v1679_v12  ;;  %2074 = vmatmul.mubr.bf16.gmra.mrb[12].mxu1 %v1863_v46  ;;  %v1511_v44 = vpop.xlane.xlu0 %1510 }
 0x265   : > { %v3176_v16 = vpop.eup %3175  ;;  %v1593_v27 = vsub.f32 %v4234_v26, %v1511_v44  ;;  %v1594_v38 = vsub.f32 %v4236_v15, %v1511_v44  ;;  %v1785_v7 = vadd.f32 %v3174_v41, %v3172_v4 }
 0x266   : > { %v3178_v31 = vpop.eup %3177  ;;  %v1514_v11 = vpop.xlane.xlu1 %1513  ;;  %v1865_v26 = vpack.c.bf16 %v3176_v16, %v3172_v4 }
 0x267   : > { %v1681_v54 = vmul.f32 1.442695, %v1593_v27  ;;  %v1683_v23 = vmul.f32 1.442695, %v1594_v38  ;;  %v1595_v5 = vsub.f32 %v4238_v60, %v1514_v11  ;;  %v1596_v49 = vsub.f32 %v4240_v40, %v1514_v11  ;;  %1786 = vadd.xlane.f32.xlu0 %v1785_v7 }
 0x268   : > { %v1866_v20 = vpack.c.bf16 %v3178_v31, %v3174_v41  ;;  %v1788_v62 = vadd.f32 %v3178_v31, %v3176_v16 }
 0x269   : > { %3187 = vpow2.f32 %v1681_v54  ;;  %v1685_v6 = vmul.f32 1.442695, %v1595_v5  ;;  %v1687_v45 = vmul.f32 1.442695, %v1596_v49 }
 0x26a   : > { %3189 = vpow2.f32 %v1683_v23  ;;  %2081 = vmatprep.mubr.bf16.mxu1 %v1866_v20  ;;  %1789 = vadd.xlane.f32.xlu1 %v1788_v62 }
 0x26b   : > { %v3180_v15 = vpop.eup %3179  ;;  %3191 = vpow2.f32 %v1685_v6 }
 0x26c   : > { %v3182_v59 = vpop.eup %3181  ;;  %3193 = vpow2.f32 %v1687_v45  ;;  %2082 = vmatmul.mubr.bf16.gmra.mrb[16].mxu1 %v1865_v26  ;;  %v1517_v39 = vpop.xlane.xlu0 %1516 }
 0x26d   : > { %v3184_v22 = vpop.eup %3183  ;;  %v1597_v60 = vsub.f32 %v4246_v10, %v1517_v39  ;;  %v1598_v40 = vsub.f32 %v4248_v32, %v1517_v39  ;;  %v1791_v28 = vadd.f32 %v3182_v59, %v3180_v15 }
 0x26e   : > { %v3186_v43 = vpop.eup %3185  ;;  %v1520_v53 = vpop.xlane.xlu1 %1519  ;;  %v1867_v10 = vpack.c.bf16 %v3184_v22, %v3180_v15 }
 0x26f   : > { %v1689_v14 = vmul.f32 1.442695, %v1597_v60  ;;  %v1691_v3 = vmul.f32 1.442695, %v1598_v40  ;;  %v1599_v56 = vsub.f32 %v4250_v35, %v1520_v53  ;;  %v1600_v1 = vsub.f32 %v4252_v47, %v1520_v53  ;;  %1792 = vadd.xlane.f32.xlu0 %v1791_v28 }
 0x270   : > { %v1868_v8 = vpack.c.bf16 %v3186_v43, %v3182_v59  ;;  %v1794_v13 = vadd.f32 %v3186_v43, %v3184_v22 }
 0x271   : > { %3195 = vpow2.f32 %v1689_v14  ;;  %v1693_v33 = vmul.f32 1.442695, %v1599_v56  ;;  %v1695_v0 = vmul.f32 1.442695, %v1600_v1 }
 0x272   : > { %3197 = vpow2.f32 %v1691_v3  ;;  %2089 = vmatprep.mubr.bf16.mxu1 %v1868_v8  ;;  %1795 = vadd.xlane.f32.xlu1 %v1794_v13 }
 0x273   : > { %v3188_v32 = vpop.eup %3187  ;;  %3199 = vpow2.f32 %v1693_v33 }
 0x274   : > { %v3190_v61 = vpop.eup %3189  ;;  %3201 = vpow2.f32 %v1695_v0  ;;  %2090 = vmatmul.mubr.bf16.gmra.mrb[20].mxu1 %v1867_v10  ;;  %v1523_v34 = vpop.xlane.xlu0 %1522 }
 0x275   : > { %v3192_v21 = vpop.eup %3191  ;;  %v1601_v35 = vsub.f32 %v4258_v42, %v1523_v34  ;;  %v1602_v47 = vsub.f32 %v4260_v17, %v1523_v34  ;;  %v1797_v57 = vadd.f32 %v3190_v61, %v3188_v32 }
 0x276   : > { %v3194_v12 = vpop.eup %3193  ;;  %v1526_v46 = vpop.xlane.xlu1 %1525  ;;  %v1869_v42 = vpack.c.bf16 %v3192_v21, %v3188_v32 }
 0x277   : > { %v1697_v4 = vmul.f32 1.442695, %v1601_v35  ;;  %v1699_v41 = vmul.f32 1.442695, %v1602_v47  ;;  %v1603_v44 = vsub.f32 %v4262_v30, %v1526_v46  ;;  %v1604_v16 = vsub.f32 %v4264_v50, %v1526_v46  ;;  %1798 = vadd.xlane.f32.xlu0 %v1797_v57 }
 0x278   : > { %v1870_v27 = vpack.c.bf16 %v3194_v12, %v3190_v61  ;;  %v1800_v38 = vadd.f32 %v3194_v12, %v3192_v21 }
 0x279   : > { %3203 = vpow2.f32 %v1697_v4  ;;  %v1701_v7 = vmul.f32 1.442695, %v1603_v44  ;;  %v1703_v31 = vmul.f32 1.442695, %v1604_v16 }
 0x27a   : > { %3205 = vpow2.f32 %v1699_v41  ;;  %2097 = vmatprep.mubr.bf16.mxu1 %v1870_v27  ;;  %1801 = vadd.xlane.f32.xlu1 %v1800_v38 }
 0x27b   : > { %v3196_v17 = vpop.eup %3195  ;;  %3207 = vpow2.f32 %v1701_v7 }
 0x27c   : > { %v3198_v11 = vpop.eup %3197  ;;  %3209 = vpow2.f32 %v1703_v31  ;;  %2098 = vmatmul.mubr.bf16.gmra.mrb[24].mxu1 %v1869_v42  ;;  %v1529_v54 = vpop.xlane.xlu0 %1528 }
 0x27d   : > { %v3200_v23 = vpop.eup %3199  ;;  %v1605_v30 = vsub.f32 %v4270_v37, %v1529_v54  ;;  %v1606_v50 = vsub.f32 %v4272_v55, %v1529_v54  ;;  %v1803_v5 = vadd.f32 %v3198_v11, %v3196_v17 }
 0x27e   : > { %v3202_v49 = vpop.eup %3201  ;;  %v1532_v20 = vpop.xlane.xlu1 %1531  ;;  %v1871_v37 = vpack.c.bf16 %v3200_v23, %v3196_v17 }
 0x27f   : > { %v1705_v62 = vmul.f32 1.442695, %v1605_v30  ;;  %v1707_v6 = vmul.f32 1.442695, %v1606_v50  ;;  %v1607_v45 = vsub.f32 %v4274_v51, %v1532_v20  ;;  %v1608_v26 = vsub.f32 %v4276_v19, %v1532_v20  ;;  %1804 = vadd.xlane.f32.xlu0 %v1803_v5  ;;  %v4505_v30 = vld [vmem:[#allocation5_spill] sm:$0xff]  ;;  %v4506_v5 = vld [vmem:[#allocation6_spill] sm:$0xff] }
 0x280   : > { %v1872_v15 = vpack.c.bf16 %v3202_v49, %v3198_v11  ;;  %v1806_v59 = vadd.f32 %v3202_v49, %v3200_v23 }
 0x281   : > { %3211 = vpow2.f32 %v1705_v62  ;;  %v1709_v39 = vmul.f32 1.442695, %v1607_v45  ;;  %v1711_v22 = vmul.f32 1.442695, %v1608_v26 }
 0x282   : > { %3213 = vpow2.f32 %v1707_v6  ;;  %2105 = vmatprep.mubr.bf16.mxu1 %v1872_v15  ;;  %1807 = vadd.xlane.f32.xlu1 %v1806_v59 }
 0x283   : > { %v3204_v55 = vpop.eup %3203  ;;  %3215 = vpow2.f32 %v1709_v39  ;;  %v4507_v39 = vld [vmem:[#allocation7_spill] sm:$0xff] }
 0x284   : > { %v3206_v60 = vpop.eup %3205  ;;  %3217 = vpow2.f32 %v1711_v22  ;;  %2106 = vmatmul.mubr.bf16.gmra.mrb[28].mxu1 %v1871_v37  ;;  %v1535_v40 = vpop.xlane.xlu0 %1534  ;;  %v4508_v37 = vld [vmem:[#allocation8_spill] sm:$0xff] }
 0x285   : > { %v3208_v28 = vpop.eup %3207  ;;  %v1609_v51 = vsub.f32 %v4282_v24, %v1535_v40  ;;  %v1610_v19 = vsub.f32 %v4284_v25, %v1535_v40  ;;  %v1809_v43 = vadd.f32 %v3206_v60, %v3204_v55 }
 0x286   : > { %v3210_v53 = vpop.eup %3209  ;;  %v1538_v14 = vpop.xlane.xlu1 %1537  ;;  %v1873_v24 = vpack.c.bf16 %v3208_v28, %v3204_v55 }
 0x287   : > { %v1713_v3 = vmul.f32 1.442695, %v1609_v51  ;;  %v1715_v56 = vmul.f32 1.442695, %v1610_v19  ;;  %v1611_v1 = vsub.f32 %v4286_v9, %v1538_v14  ;;  %v1612_v8 = vsub.f32 %v4288_v52, %v1538_v14  ;;  %1810 = vadd.xlane.f32.xlu0 %v1809_v43  ;;  %v4509_v43 = vld [vmem:[#allocation9_spill] sm:$0xff]  ;;  %v4510_v14 = vld [vmem:[#allocation10_spill] sm:$0xff] }
 0x288   : > { %v1874_v13 = vpack.c.bf16 %v3210_v53, %v3206_v60  ;;  %v1812_v33 = vadd.f32 %v3210_v53, %v3208_v28 }
 0x289   : > { %3219 = vpow2.f32 %v1713_v3  ;;  %v1717_v0 = vmul.f32 1.442695, %v1611_v1  ;;  %v1719_v10 = vmul.f32 1.442695, %v1612_v8 }
 0x28a   : > { %3221 = vpow2.f32 %v1715_v56  ;;  %2113 = vmatprep.mubr.bf16.mxu1 %v1874_v13  ;;  %1813 = vadd.xlane.f32.xlu1 %v1812_v33 }
 0x28b   : > { %v3212_v25 = vpop.eup %3211  ;;  %3223 = vpow2.f32 %v1717_v0 }
 0x28c   : > { %v3214_v32 = vpop.eup %3213  ;;  %3225 = vpow2.f32 %v1719_v10  ;;  %2114 = vmatmul.mubr.bf16.gmra.mrb[32].mxu1 %v1873_v24  ;;  %v1541_v61 = vpop.xlane.xlu0 %1540 }
 0x28d   : > { %v3216_v34 = vpop.eup %3215  ;;  %v1613_v9 = vsub.f32 %v4294_v36, %v1541_v61  ;;  %v1614_v52 = vsub.f32 %v4296_v18, %v1541_v61  ;;  %v1815_v21 = vadd.f32 %v3214_v32, %v3212_v25 }
 0x28e   : > { %v3218_v35 = vpop.eup %3217  ;;  %v1544_v47 = vpop.xlane.xlu1 %1543  ;;  %v1875_v36 = vpack.c.bf16 %v3216_v34, %v3212_v25 }
 0x28f   : > { %v1721_v57 = vmul.f32 1.442695, %v1613_v9  ;;  %v1723_v12 = vmul.f32 1.442695, %v1614_v52  ;;  %v1615_v46 = vsub.f32 %v4298_v2, %v1544_v47  ;;  %v1616_v4 = vsub.f32 %v4300_v58, %v1544_v47  ;;  %1816 = vadd.xlane.f32.xlu0 %v1815_v21 }
 0x290   : > { %v1876_v41 = vpack.c.bf16 %v3218_v35, %v3214_v32  ;;  %v1818_v44 = vadd.f32 %v3218_v35, %v3216_v34  ;;  %v4511_v32 = vld [vmem:[#allocation11_spill] sm:$0xff]  ;;  %v4512_v34 = vld [vmem:[#allocation12_spill] sm:$0xff] }
 0x291   : > { %3227 = vpow2.f32 %v1721_v57  ;;  %v1725_v16 = vmul.f32 1.442695, %v1615_v46  ;;  %v1727_v27 = vmul.f32 1.442695, %v1616_v4  ;;  %v4514_v4 = vld [vmem:[#allocation14_spill] sm:$0xff] }
 0x292   : > { %3229 = vpow2.f32 %v1723_v12  ;;  %2121 = vmatprep.mubr.bf16.mxu1 %v1876_v41  ;;  %1819 = vadd.xlane.f32.xlu1 %v1818_v44  ;;  %v4513_v12 = vld [vmem:[#allocation13_spill] sm:$0xff] }
 0x293   : > { %v3220_v18 = vpop.eup %3219  ;;  %3231 = vpow2.f32 %v1725_v16 }
 0x294   : > { %v3222_v38 = vpop.eup %3221  ;;  %3233 = vpow2.f32 %v1727_v27  ;;  %2122 = vmatmul.mubr.bf16.gmra.mrb[36].mxu1 %v1875_v36  ;;  %v1547_v7 = vpop.xlane.xlu0 %1546 }
 0x295   : > { %v3224_v31 = vpop.eup %3223  ;;  %v1617_v2 = vsub.f32 %v4306_v48, %v1547_v7  ;;  %v1618_v58 = vsub.f32 %v4308_v63, %v1547_v7  ;;  %v1821_v42 = vadd.f32 %v3222_v38, %v3220_v18 }
 0x296   : > { %v3226_v17 = vpop.eup %3225  ;;  %v1550_v11 = vpop.xlane.xlu1 %1549  ;;  %v1877_v48 = vpack.c.bf16 %v3224_v31, %v3220_v18 }
 0x297   : > { %v1729_v54 = vmul.f32 1.442695, %v1617_v2  ;;  %v1731_v23 = vmul.f32 1.442695, %v1618_v58  ;;  %v1619_v50 = vsub.f32 %v4505_v30, %v1550_v11  ;;  %v1620_v49 = vsub.f32 %v4506_v5, %v1550_v11  ;;  %1822 = vadd.xlane.f32.xlu0 %v1821_v42  ;;  %v4515_v58 = vld [vmem:[#allocation15_spill] sm:$0xff] }
 0x298   : > { %v1878_v20 = vpack.c.bf16 %v3226_v17, %v3222_v38  ;;  %v1824_v62 = vadd.f32 %v3226_v17, %v3224_v31  ;;  %v4516_v17 = vld [vmem:[#allocation16_spill] sm:$0xff] }
 0x299   : > { %3235 = vpow2.f32 %v1729_v54  ;;  %v1733_v6 = vmul.f32 1.442695, %v1619_v50  ;;  %v1735_v45 = vmul.f32 1.442695, %v1620_v49 }
 0x29a   : > { %3237 = vpow2.f32 %v1731_v23  ;;  %2129 = vmatprep.mubr.bf16.mxu1 %v1878_v20  ;;  %1825 = vadd.xlane.f32.xlu1 %v1824_v62  ;;  %v4517_v20 = vld [vmem:[#allocation17_spill] sm:$0xff] }
 0x29b   : > { %v3228_v63 = vpop.eup %3227  ;;  %3239 = vpow2.f32 %v1733_v6 }
 0x29c   : > { %v3230_v26 = vpop.eup %3229  ;;  %3241 = vpow2.f32 %v1735_v45  ;;  %2130 = vmatmul.mubr.bf16.gmra.mrb[40].mxu1 %v1877_v48  ;;  %v1553_v15 = vpop.xlane.xlu0 %1552 }
 0x29d   : > { %v3232_v59 = vpop.eup %3231  ;;  %v1621_v22 = vsub.f32 %v4507_v39, %v1553_v15  ;;  %v1622_v55 = vsub.f32 %v4508_v37, %v1553_v15  ;;  %v1827_v60 = vadd.f32 %v3230_v26, %v3228_v63 }
 0x29e   : > { %v3234_v40 = vpop.eup %3233  ;;  %v1556_v28 = vpop.xlane.xlu1 %1555  ;;  %v1879_v33 = vpack.c.bf16 %v3232_v59, %v3228_v63 }
 0x29f   : > { %v1737_v51 = vmul.f32 1.442695, %v1621_v22  ;;  %v1739_v19 = vmul.f32 1.442695, %v1622_v55  ;;  %v1623_v53 = vsub.f32 %v4509_v43, %v1556_v28  ;;  %v1624_v3 = vsub.f32 %v4510_v14, %v1556_v28  ;;  %1828 = vadd.xlane.f32.xlu0 %v1827_v60 }
 0x2a0   : > { %v1880_v56 = vpack.c.bf16 %v3234_v40, %v3230_v26  ;;  %v1830_v1 = vadd.f32 %v3234_v40, %v3232_v59 }
 0x2a1   : > { %3243 = vpow2.f32 %v1737_v51  ;;  %v1741_v8 = vmul.f32 1.442695, %v1623_v53  ;;  %v1743_v13 = vmul.f32 1.442695, %v1624_v3 }
 0x2a2   : > { %3245 = vpow2.f32 %v1739_v19  ;;  %2137 = vmatprep.mubr.bf16.mxu1 %v1880_v56  ;;  %1831 = vadd.xlane.f32.xlu1 %v1830_v1 }
 0x2a3   : > { %v3236_v0 = vpop.eup %3235  ;;  %3247 = vpow2.f32 %v1741_v8 }
 0x2a4   : > { %v3238_v10 = vpop.eup %3237  ;;  %3249 = vpow2.f32 %v1743_v13  ;;  %2138 = vmatmul.mubr.bf16.gmra.mrb[44].mxu1 %v1879_v33  ;;  %v1559_v24 = vpop.xlane.xlu0 %1558 }
 0x2a5   : > { %v3240_v25 = vpop.eup %3239  ;;  %v1625_v61 = vsub.f32 %v4511_v32, %v1559_v24  ;;  %v1626_v9 = vsub.f32 %v4512_v34, %v1559_v24  ;;  %v1833_v52 = vadd.f32 %v3238_v10, %v3236_v0 }
 0x2a6   : > { %v3242_v21 = vpop.eup %3241  ;;  %v1562_v35 = vpop.xlane.xlu1 %1561  ;;  %v1881_v18 = vpack.c.bf16 %v3240_v25, %v3236_v0 }
 0x2a7   : > { %v1745_v47 = vmul.f32 1.442695, %v1625_v61  ;;  %v1747_v57 = vmul.f32 1.442695, %v1626_v9  ;;  %v1627_v46 = vsub.f32 %v4513_v12, %v1562_v35  ;;  %v1628_v41 = vsub.f32 %v4514_v4, %v1562_v35  ;;  %1834 = vadd.xlane.f32.xlu0 %v1833_v52 }
 0x2a8   : > { %v1882_v44 = vpack.c.bf16 %v3242_v21, %v3238_v10  ;;  %v1836_v16 = vadd.f32 %v3242_v21, %v3240_v25 }
 0x2a9   : > { %3251 = vpow2.f32 %v1745_v47  ;;  %v1749_v27 = vmul.f32 1.442695, %v1627_v46  ;;  %v1751_v36 = vmul.f32 1.442695, %v1628_v41 }
 0x2aa   : > { %3253 = vpow2.f32 %v1747_v57  ;;  %2145 = vmatprep.mubr.bf16.mxu1 %v1882_v44  ;;  %1837 = vadd.xlane.f32.xlu1 %v1836_v16 }
 0x2ab   : > { %v3244_v38 = vpop.eup %3243  ;;  %3255 = vpow2.f32 %v1749_v27 }
 0x2ac   : > { %v3246_v7 = vpop.eup %3245  ;;  %3257 = vpow2.f32 %v1751_v36  ;;  %2146 = vmatmul.mubr.bf16.gmra.mrb[48].mxu1 %v1881_v18  ;;  %v1565_v31 = vpop.xlane.xlu0 %1564 }
 0x2ad   : > { %v3248_v2 = vpop.eup %3247  ;;  %v1629_v42 = vsub.f32 %v4515_v58, %v1565_v31  ;;  %v1630_v11 = vsub.f32 %v4516_v17, %v1565_v31  ;;  %v1839_v54 = vadd.f32 %v3246_v7, %v3244_v38 }
 0x2ae   : > { %v3250_v23 = vpop.eup %3249  ;;  %v1568_v30 = vpop.xlane.xlu1 %1567  ;;  %v1883_v26 = vpack.c.bf16 %v3248_v2, %v3244_v38 }
 0x2af   : > { %v1753_v50 = vmul.f32 1.442695, %v1629_v42  ;;  %v1755_v5 = vmul.f32 1.442695, %v1630_v11  ;;  %1840 = vadd.xlane.f32.xlu0 %v1839_v54  ;;  %v1631_v49 = vsub.f32 %v4346_v29, %v1568_v30  ;;  %v1632_v62 = vsub.f32 %v4517_v20, %v1568_v30 }
 0x2b0   : > { %v1884_v6 = vpack.c.bf16 %v3250_v23, %v3246_v7  ;;  %v1842_v45 = vadd.f32 %v3250_v23, %v3248_v2 }
 0x2b1   : > { %3259 = vpow2.f32 %v1753_v50  ;;  %v1757_v48 = vmul.f32 1.442695, %v1631_v49  ;;  %v1759_v63 = vmul.f32 1.442695, %v1632_v62 }
 0x2b2   : > { %3261 = vpow2.f32 %v1755_v5  ;;  %2153 = vmatprep.mubr.bf16.mxu1 %v1884_v6  ;;  %1843 = vadd.xlane.f32.xlu1 %v1842_v45 }
 0x2b3   : > { %v3252_v15 = vpop.eup %3251  ;;  %3263 = vpow2.f32 %v1757_v48 }
 0x2b4   : > { %v3254_v59 = vpop.eup %3253  ;;  %3265 = vpow2.f32 %v1759_v63  ;;  %2154 = vmatmul.mubr.bf16.gmra.mrb[52].mxu1 %v1883_v26 }
 0x2b5   : > { %v3256_v39 = vpop.eup %3255  ;;  %v1845_v22 = vadd.f32 %v3254_v59, %v3252_v15 }
 0x2b6   : > { %v3258_v37 = vpop.eup %3257  ;;  %v1885_v60 = vpack.c.bf16 %v3256_v39, %v3252_v15 }
 0x2b7   : > { %1846 = vadd.xlane.f32.xlu0 %v1845_v22  ;;  %v1886_v29 = vpack.c.bf16 %v3258_v37, %v3254_v59  ;;  %v1848_v55 = vadd.f32 %v3258_v37, %v3256_v39 }
 0x2b9   : > { %2161 = vmatprep.mubr.bf16.mxu1 %v1886_v29  ;;  %1849 = vadd.xlane.f32.xlu1 %v1848_v55 }
 0x2bb   : > { %v3260_v40 = vpop.eup %3259 }
 0x2bc   : > { %v3262_v28 = vpop.eup %3261  ;;  %2162 = vmatmul.mubr.bf16.gmra.mrb[56].mxu1 %v1885_v60 }
 0x2bd   : > { %v3264_v51 = vpop.eup %3263  ;;  %v1851_v19 = vadd.f32 %v3262_v28, %v3260_v40 }
 0x2be   : > { %v3266_v43 = vpop.eup %3265  ;;  %v1887_v3 = vpack.c.bf16 %v3264_v51, %v3260_v40 }
 0x2bf   : > { %1852 = vadd.xlane.f32.xlu0 %v1851_v19  ;;  %v1888_v53 = vpack.c.bf16 %v3266_v43, %v3262_v28  ;;  %v1854_v14 = vadd.f32 %v3266_v43, %v3264_v51 }
 0x2c1   : > { %2169 = vmatprep.mubr.bf16.mxu1 %v1888_v53  ;;  %1855 = vadd.xlane.f32.xlu1 %v1854_v14 }
 0x2c4   : > { %2170 = vmatmul.mubr.bf16.gmra.mrb[60].mxu1 %v1887_v3 }
 0x2d4   : > { %v1763_v56 = vpop.xlane.xlu0 %1762 }
 0x2d5   : > { %3267 = vrcp.f32 %v1763_v56 }
 0x2d9   : > { %v1766_v1 = vpop.xlane.xlu1 %1765 }
 0x2da   : > { %3269 = vrcp.f32 %v1766_v1 }
 0x2dc   : > { %v1769_v8 = vpop.xlane.xlu0 %1768 }
 0x2dd   : > { %3271 = vrcp.f32 %v1769_v8 }
 0x2df   : > { %v3268_v32 = vpop.eup %3267 }
 0x2e1   : > { %v1772_v13 = vpop.xlane.xlu1 %1771 }
 0x2e2   : > { %3273 = vrcp.f32 %v1772_v13 }
 0x2e4   : > { %v3270_v34 = vpop.eup %3269  ;;  %v1775_v21 = vpop.xlane.xlu0 %1774 }
 0x2e5   : > { %3275 = vrcp.f32 %v1775_v21 }
 0x2e7   : > { %v1778_v35 = vpop.xlane.xlu1 %1777  ;;  %v3272_v44 = vpop.eup %3271 }
 0x2e8   : > { %3277 = vrcp.f32 %v1778_v35 }
 0x2ec   : > { %v3274_v27 = vpop.eup %3273  ;;  %v1781_v38 = vpop.xlane.xlu0 %1780 }
 0x2ed   : > { %3279 = vrcp.f32 %v1781_v38 }
 0x2ef   : > { %v1784_v7 = vpop.xlane.xlu1 %1783  ;;  %v3276_v54 = vpop.eup %3275 }
 0x2f0   : > { %3281 = vrcp.f32 %v1784_v7 }
 0x2f2   : > { %v3278_v30 = vpop.eup %3277 }
 0x2f4   : > { %v1787_v49 = vpop.xlane.xlu0 %1786 }
 0x2f5   : > { %3283 = vrcp.f32 %v1787_v49 }
 0x2f7   : > { %v1790_v20 = vpop.xlane.xlu1 %1789  ;;  %v3280_v15 = vpop.eup %3279 }
 0x2f8   : > { %3285 = vrcp.f32 %v1790_v20 }
 0x2fa   : > { %v3282_v39 = vpop.eup %3281 }
 0x2fc   : > { %v1793_v29 = vpop.xlane.xlu0 %1792 }
 0x2fd   : > { %3287 = vrcp.f32 %v1793_v29 }
 0x2ff   : > { %v1796_v55 = vpop.xlane.xlu1 %1795  ;;  %v3284_v53 = vpop.eup %3283 }
 0x300   : > { %3289 = vrcp.f32 %v1796_v55 }
 0x302   : > { %v3286_v3 = vpop.eup %3285 }
 0x304   : > { %v1799_v8 = vpop.xlane.xlu0 %1798 }
 0x305   : > { %3291 = vrcp.f32 %v1799_v8 }
 0x307   : > { %v1802_v13 = vpop.xlane.xlu1 %1801 }
 0x308   : > { %3293 = vrcp.f32 %v1802_v13 }
 0x30c   : > { %v1805_v35 = vpop.xlane.xlu0 %1804 }
 0x30d   : > { %3295 = vrcp.f32 %v1805_v35 }
 0x314   : > { %v1811_v7 = vpop.xlane.xlu0 %1810 }
 0x31c   : > { %v1817_v20 = vpop.xlane.xlu0 %1816 }
 0x31f   : > { %v2984_v33 = vpop.f32.mrb[0].mxu1 }
 0x320   : > { %v2985_v0 = vpop.f32.mrb[1].mxu1 }
 0x321   : > { %v2986_v10 = vadd.f32 %v2985_v0, %v2984_v33  ;;  %v2987_v24 = vpop.f32.mrb[2].mxu1 }
 0x322   : > { %v2988_v25 = vpop.f32.mrb[3].mxu1 }
 0x323   : > { %v2989_v61 = vadd.f32 %v2988_v25, %v2987_v24  ;;  %v2210_v9 = vmul.f32 %v3268_v32, %v2986_v10 }
 0x324   : > { %v1823_v55 = vpop.xlane.xlu0 %1822 }
 0x325   : > { %v2211_v52 = vmul.f32 %v3270_v34, %v2989_v61  ;;  %v3288_v61 = vpop.eup %3287 }
 0x327   : > { %v2798_v47 = vpack.c.bf16 %v2211_v52, %v2210_v9  ;;  %v2990_v57 = vpop.f32.mrb[4].mxu1  ;;  %v3290_v9 = vpop.eup %3289 }
 0x328   : > { %v2991_v12 = vpop.f32.mrb[5].mxu1 }
 0x329   : > { %2799 = vst [vmem:[%s4423_s8] sm:$0xff] %v2798_v47   ;;  %v2992_v46 = vadd.f32 %v2991_v12, %v2990_v57  ;;  %v2993_v4 = vpop.f32.mrb[6].mxu1  ;;  %v1808_v47 = vpop.xlane.xlu1 %1807 }
 0x32a   : > { %v2994_v41 = vpop.f32.mrb[7].mxu1  ;;  %3297 = vrcp.f32 %v1808_v47 }
 0x32b   : > { %v2995_v16 = vadd.f32 %v2994_v41, %v2993_v4  ;;  %v2212_v36 = vmul.f32 %v3272_v44, %v2992_v46  ;;  %3299 = vrcp.f32 %v1811_v7 }
 0x32c   : > { %v1829_v13 = vpop.xlane.xlu0 %1828 }
 0x32d   : > { %v2213_v18 = vmul.f32 %v3274_v27, %v2995_v16  ;;  %v3292_v16 = vpop.eup %3291 }
 0x32f   : > { %v2803_v31 = vpack.c.bf16 %v2213_v18, %v2212_v36  ;;  %v2996_v2 = vpop.f32.mrb[8].mxu1  ;;  %v3294_v36 = vpop.eup %3293 }
 0x330   : > { %v2997_v58 = vpop.f32.mrb[9].mxu1 }
 0x331   : > { %2905 = vst [vmem:[%s4423_s8 + $0x8] sm:$0xff] %v2803_v31   ;;  %v2998_v42 = vadd.f32 %v2997_v58, %v2996_v2  ;;  %v2999_v17 = vpop.f32.mrb[10].mxu1  ;;  %v1814_v31 = vpop.xlane.xlu1 %1813 }
 0x332   : > { %v3000_v11 = vpop.f32.mrb[11].mxu1  ;;  %3301 = vrcp.f32 %v1814_v31 }
 0x333   : > { %v3001_v23 = vadd.f32 %v3000_v11, %v2999_v17  ;;  %v2214_v50 = vmul.f32 %v3276_v54, %v2998_v42  ;;  %3303 = vrcp.f32 %v1817_v20 }
 0x334   : > { %v1835_v47 = vpop.xlane.xlu0 %1834 }
 0x335   : > { %v2215_v5 = vmul.f32 %v3278_v30, %v3001_v23  ;;  %v3296_v23 = vpop.eup %3295 }
 0x337   : > { %v2808_v62 = vpack.c.bf16 %v2215_v5, %v2214_v50  ;;  %v3002_v6 = vpop.f32.mrb[12].mxu1  ;;  %v3298_v50 = vpop.eup %3297 }
 0x338   : > { %v3003_v45 = vpop.f32.mrb[13].mxu1 }
 0x339   : > { %2906 = vst [vmem:[%s4423_s8 + $0x10] sm:$0xff] %v2808_v62   ;;  %v3004_v48 = vadd.f32 %v3003_v45, %v3002_v6  ;;  %v3005_v63 = vpop.f32.mrb[14].mxu1  ;;  %v1820_v62 = vpop.xlane.xlu1 %1819 }
 0x33a   : > { %v3006_v26 = vpop.f32.mrb[15].mxu1  ;;  %3305 = vrcp.f32 %v1820_v62 }
 0x33b   : > { %v3007_v59 = vadd.f32 %v3006_v26, %v3005_v63  ;;  %v2216_v22 = vmul.f32 %v3280_v15, %v3004_v48  ;;  %3307 = vrcp.f32 %v1823_v55 }
 0x33c   : > { %v1841_v31 = vpop.xlane.xlu0 %1840 }
 0x33d   : > { %v2217_v37 = vmul.f32 %v3282_v39, %v3007_v59  ;;  %v3300_v59 = vpop.eup %3299 }
 0x33f   : > { %v2813_v60 = vpack.c.bf16 %v2217_v37, %v2216_v22  ;;  %v3008_v40 = vpop.f32.mrb[16].mxu1  ;;  %v3302_v22 = vpop.eup %3301 }
 0x340   : > { %v3009_v28 = vpop.f32.mrb[17].mxu1 }
 0x341   : > { %2907 = vst [vmem:[%s4423_s8 + $0x18] sm:$0xff] %v2813_v60   ;;  %v3010_v51 = vadd.f32 %v3009_v28, %v3008_v40  ;;  %v3011_v19 = vpop.f32.mrb[18].mxu1  ;;  %v1826_v60 = vpop.xlane.xlu1 %1825 }
 0x342   : > { %v3012_v43 = vpop.f32.mrb[19].mxu1  ;;  %3309 = vrcp.f32 %v1826_v60 }
 0x343   : > { %v3013_v14 = vadd.f32 %v3012_v43, %v3011_v19  ;;  %v2218_v56 = vmul.f32 %v3284_v53, %v3010_v51  ;;  %3311 = vrcp.f32 %v1829_v13 }
 0x344   : > { %v1847_v62 = vpop.xlane.xlu0 %1846 }
 0x345   : > { %v2219_v1 = vmul.f32 %v3286_v3, %v3013_v14  ;;  %v3304_v14 = vpop.eup %3303 }
 0x347   : > { %v2818_v33 = vpack.c.bf16 %v2219_v1, %v2218_v56  ;;  %v3014_v0 = vpop.f32.mrb[20].mxu1  ;;  %v3306_v56 = vpop.eup %3305 }
 0x348   : > { %v3015_v10 = vpop.f32.mrb[21].mxu1 }
 0x349   : > { %2908 = vst [vmem:[%s4423_s8 + $0x20] sm:$0xff] %v2818_v33   ;;  %v3016_v24 = vadd.f32 %v3015_v10, %v3014_v0  ;;  %v3017_v25 = vpop.f32.mrb[22].mxu1  ;;  %v1832_v33 = vpop.xlane.xlu1 %1831 }
 0x34a   : > { %v3018_v32 = vpop.f32.mrb[23].mxu1  ;;  %3313 = vrcp.f32 %v1832_v33 }
 0x34b   : > { %v3019_v34 = vadd.f32 %v3018_v32, %v3017_v25  ;;  %v2220_v52 = vmul.f32 %v3288_v61, %v3016_v24  ;;  %3315 = vrcp.f32 %v1835_v47 }
 0x34c   : > { %v1853_v60 = vpop.xlane.xlu0 %1852 }
 0x34d   : > { %v2221_v21 = vmul.f32 %v3290_v9, %v3019_v34  ;;  %v3308_v34 = vpop.eup %3307 }
 0x34f   : > { %v2823_v57 = vpack.c.bf16 %v2221_v21, %v2220_v52  ;;  %v3020_v12 = vpop.f32.mrb[24].mxu1  ;;  %v3310_v52 = vpop.eup %3309 }
 0x350   : > { %v3021_v46 = vpop.f32.mrb[25].mxu1 }
 0x351   : > { %2909 = vst [vmem:[%s4423_s8 + $0x28] sm:$0xff] %v2823_v57   ;;  %v3022_v4 = vadd.f32 %v3021_v46, %v3020_v12  ;;  %v3023_v41 = vpop.f32.mrb[26].mxu1  ;;  %v1838_v57 = vpop.xlane.xlu1 %1837 }
 0x352   : > { %v3024_v44 = vpop.f32.mrb[27].mxu1  ;;  %3317 = vrcp.f32 %v1838_v57 }
 0x353   : > { %v3025_v27 = vadd.f32 %v3024_v44, %v3023_v41  ;;  %v2222_v18 = vmul.f32 %v3292_v16, %v3022_v4  ;;  %3319 = vrcp.f32 %v1841_v31 }
 0x355   : > { %v2223_v38 = vmul.f32 %v3294_v36, %v3025_v27  ;;  %v3312_v27 = vpop.eup %3311 }
 0x357   : > { %v2828_v2 = vpack.c.bf16 %v2223_v38, %v2222_v18  ;;  %v3026_v58 = vpop.f32.mrb[28].mxu1  ;;  %v3314_v18 = vpop.eup %3313 }
 0x358   : > { %v3027_v42 = vpop.f32.mrb[29].mxu1 }
 0x359   : > { %2910 = vst [vmem:[%s4423_s8 + $0x30] sm:$0xff] %v2828_v2   ;;  %v3028_v17 = vadd.f32 %v3027_v42, %v3026_v58  ;;  %v3029_v11 = vpop.f32.mrb[30].mxu1  ;;  %v1844_v2 = vpop.xlane.xlu1 %1843 }
 0x35a   : > { %v3030_v54 = vpop.f32.mrb[31].mxu1  ;;  %3321 = vrcp.f32 %v1844_v2 }
 0x35b   : > { %v3031_v30 = vadd.f32 %v3030_v54, %v3029_v11  ;;  %v2224_v5 = vmul.f32 %v3296_v23, %v3028_v17  ;;  %3323 = vrcp.f32 %v1847_v62 }
 0x35d   : > { %v2225_v49 = vmul.f32 %v3298_v50, %v3031_v30  ;;  %v3316_v30 = vpop.eup %3315 }
 0x35f   : > { %v2833_v6 = vpack.c.bf16 %v2225_v49, %v2224_v5  ;;  %v3032_v45 = vpop.f32.mrb[32].mxu1  ;;  %v3318_v5 = vpop.eup %3317 }
 0x360   : > { %v3033_v48 = vpop.f32.mrb[33].mxu1 }
 0x361   : > { %2911 = vst [vmem:[%s4423_s8 + $0x38] sm:$0xff] %v2833_v6   ;;  %v3034_v63 = vadd.f32 %v3033_v48, %v3032_v45  ;;  %v3035_v26 = vpop.f32.mrb[34].mxu1  ;;  %v1850_v6 = vpop.xlane.xlu1 %1849 }
 0x362   : > { %v3036_v15 = vpop.f32.mrb[35].mxu1  ;;  %3325 = vrcp.f32 %v1850_v6 }
 0x363   : > { %v3037_v39 = vadd.f32 %v3036_v15, %v3035_v26  ;;  %v2226_v37 = vmul.f32 %v3300_v59, %v3034_v63  ;;  %3327 = vrcp.f32 %v1853_v60 }
 0x365   : > { %v2227_v29 = vmul.f32 %v3302_v22, %v3037_v39  ;;  %v3320_v39 = vpop.eup %3319 }
 0x367   : > { %v2838_v40 = vpack.c.bf16 %v2227_v29, %v2226_v37  ;;  %v3038_v28 = vpop.f32.mrb[36].mxu1  ;;  %v3322_v37 = vpop.eup %3321 }
 0x368   : > { %v3039_v51 = vpop.f32.mrb[37].mxu1 }
 0x369   : > { %2912 = vst [vmem:[%s4423_s8 + $0x40] sm:$0xff] %v2838_v40   ;;  %v3040_v19 = vadd.f32 %v3039_v51, %v3038_v28  ;;  %v3041_v43 = vpop.f32.mrb[38].mxu1  ;;  %v1856_v40 = vpop.xlane.xlu1 %1855 }
 0x36a   : > { %v3042_v53 = vpop.f32.mrb[39].mxu1  ;;  %3329 = vrcp.f32 %v1856_v40 }
 0x36b   : > { %v3043_v3 = vadd.f32 %v3042_v53, %v3041_v43  ;;  %v2228_v1 = vmul.f32 %v3304_v14, %v3040_v19 }
 0x36d   : > { %v2229_v8 = vmul.f32 %v3306_v56, %v3043_v3  ;;  %v3324_v3 = vpop.eup %3323 }
 0x36f   : > { %v2843_v0 = vpack.c.bf16 %v2229_v8, %v2228_v1  ;;  %v3044_v10 = vpop.f32.mrb[40].mxu1  ;;  %v3326_v1 = vpop.eup %3325 }
 0x370   : > { %v3045_v24 = vpop.f32.mrb[41].mxu1 }
 0x371   : > { %2913 = vst [vmem:[%s4423_s8 + $0x48] sm:$0xff] %v2843_v0   ;;  %v3046_v25 = vadd.f32 %v3045_v24, %v3044_v10  ;;  %v3047_v32 = vpop.f32.mrb[42].mxu1 }
 0x372   : > { %v3048_v61 = vpop.f32.mrb[43].mxu1 }
 0x373   : > { %v3049_v9 = vadd.f32 %v3048_v61, %v3047_v32  ;;  %v2230_v21 = vmul.f32 %v3308_v34, %v3046_v25  ;;  %v3328_v61 = vpop.eup %3327 }
 0x375   : > { %v2231_v35 = vmul.f32 %v3310_v52, %v3049_v9  ;;  %v3330_v9 = vpop.eup %3329 }
 0x377   : > { %v2848_v12 = vpack.c.bf16 %v2231_v35, %v2230_v21  ;;  %v3050_v46 = vpop.f32.mrb[44].mxu1 }
 0x378   : > { %v3051_v4 = vpop.f32.mrb[45].mxu1 }
 0x379   : > { %2914 = vst [vmem:[%s4423_s8 + $0x50] sm:$0xff] %v2848_v12   ;;  %v3052_v41 = vadd.f32 %v3051_v4, %v3050_v46  ;;  %v3053_v44 = vpop.f32.mrb[46].mxu1 }
 0x37a   : > { %v3054_v16 = vpop.f32.mrb[47].mxu1 }
 0x37b   : > { %v3055_v36 = vadd.f32 %v3054_v16, %v3053_v44  ;;  %v2232_v38 = vmul.f32 %v3312_v27, %v3052_v41 }
 0x37d   : > { %v2233_v7 = vmul.f32 %v3314_v18, %v3055_v36 }
 0x37f   : > { %v2853_v58 = vpack.c.bf16 %v2233_v7, %v2232_v38  ;;  %v3056_v42 = vpop.f32.mrb[48].mxu1 }
 0x380   : > { %v3057_v17 = vpop.f32.mrb[49].mxu1 }
 0x381   : > { %2915 = vst [vmem:[%s4423_s8 + $0x58] sm:$0xff] %v2853_v58   ;;  %v3058_v11 = vadd.f32 %v3057_v17, %v3056_v42  ;;  %v3059_v54 = vpop.f32.mrb[50].mxu1 }
 0x382   : > { %v3060_v23 = vpop.f32.mrb[51].mxu1 }
 0x383   : > { %v3061_v50 = vadd.f32 %v3060_v23, %v3059_v54  ;;  %v2234_v49 = vmul.f32 %v3316_v30, %v3058_v11 }
 0x385   : > { %v2235_v20 = vmul.f32 %v3318_v5, %v3061_v50 }
 0x387   : > { %v2858_v45 = vpack.c.bf16 %v2235_v20, %v2234_v49  ;;  %v3062_v48 = vpop.f32.mrb[52].mxu1 }
 0x388   : > { %v3063_v63 = vpop.f32.mrb[53].mxu1 }
 0x389   : > { %2916 = vst [vmem:[%s4423_s8 + $0x60] sm:$0xff] %v2858_v45   ;;  %v3064_v26 = vadd.f32 %v3063_v63, %v3062_v48  ;;  %v3065_v15 = vpop.f32.mrb[54].mxu1 }
 0x38a   : > { %v3066_v59 = vpop.f32.mrb[55].mxu1 }
 0x38b   : > { %v3067_v22 = vadd.f32 %v3066_v59, %v3065_v15  ;;  %v2236_v29 = vmul.f32 %v3320_v39, %v3064_v26 }
 0x38d   : > { %v2237_v55 = vmul.f32 %v3322_v37, %v3067_v22 }
 0x38f   : > { %v2863_v28 = vpack.c.bf16 %v2237_v55, %v2236_v29  ;;  %v3068_v51 = vpop.f32.mrb[56].mxu1 }
 0x390   : > { %v3069_v19 = vpop.f32.mrb[57].mxu1 }
 0x391   : > { %2917 = vst [vmem:[%s4423_s8 + $0x68] sm:$0xff] %v2863_v28   ;;  %v3070_v43 = vadd.f32 %v3069_v19, %v3068_v51  ;;  %v3071_v53 = vpop.f32.mrb[58].mxu1 }
 0x392   : > { %v3072_v14 = vpop.f32.mrb[59].mxu1 }
 0x393   : > { %v3073_v56 = vadd.f32 %v3072_v14, %v3071_v53  ;;  %v2238_v8 = vmul.f32 %v3324_v3, %v3070_v43 }
 0x395   : > { %v2239_v13 = vmul.f32 %v3326_v1, %v3073_v56 }
 0x397   : > { %v2868_v33 = vpack.c.bf16 %v2239_v13, %v2238_v8  ;;  %v3074_v0 = vpop.f32.mrb[60].mxu1 }
 0x398   : > { %v3075_v10 = vpop.f32.mrb[61].mxu1 }
 0x399   : > { %2918 = vst [vmem:[%s4423_s8 + $0x70] sm:$0xff] %v2868_v33   ;;  %v3076_v24 = vadd.f32 %v3075_v10, %v3074_v0  ;;  %v3077_v25 = vpop.f32.mrb[62].mxu1 }
 0x39a   : > { %v3078_v32 = vpop.f32.mrb[63].mxu1 }
 0x39b   : > { %v3079_v34 = vadd.f32 %v3078_v32, %v3077_v25  ;;  %v2240_v52 = vmul.f32 %v3328_v61, %v3076_v24 }
 0x39d   : > { %v2241_v21 = vmul.f32 %v3330_v9, %v3079_v34 }
 0x39f   : > { %v2873_v35 = vpack.c.bf16 %v2241_v21, %v2240_v52 }
 0x3a1   : > { %2919 = vst [vmem:[%s4423_s8 + $0x78] sm:$0xff] %v2873_v35  }
 0x3a2 PF: > { %s16_s25 = sadd.s32 1, %s3369_s25   ;;  %s4518_s21 = smov %s3357_s22 }
 0x3a3   : > { %p13_p10 = scmp.ge.s32.totalorder %s16_s25, 6   ;;  %s4519_s22 = smov %s3446_s30 }
 0x3a4   : > { %s4520_s23 = smov %s3365_s24  ;;  %s4521_s24 = smov %s4523_s26 }
 0x3a5   :  { %15 = sbr.rel (!%p13_p10) target bundleno = 3 (0x3), region = 218 }

// kernel: baseoc_context_forward.6
= control target key start
LH: loop header
LB: loop body
LE: loop exit
PB: predicated region body
PF: predicated region fallthrough
CT: control target
= control target key end

     0   :  { %s2685_s21 = smov 0   ;;  %s2687_s22 = smov 0   ;;  %s2994_s0 = inlined_call_operand.vmem [shape: bf16[1024,128], index: 0, kind: input, shape index: {}]   ;;  %s2995_s1 = inlined_call_operand.vmem [shape: bf16[128,128], index: 1, kind: input, shape index: {}]   ;;  %s2996_s2 = inlined_call_operand.vmem [shape: f32[1,128], index: 2, kind: input, shape index: {}]   ;;  %s2997_s3 = inlined_call_operand.vmem [shape: bf16[128,128], index: 3, kind: input, shape index: {}]   ;;  %s2998_s4 = inlined_call_operand.vmem [shape: f32[1,128], index: 4, kind: input, shape index: {}]   ;;  %s2999_s5 = inlined_call_operand.vmem [shape: bf16[1024,128], index: 5, kind: output, shape index: {0}]   ;;  %s3000_s6 = inlined_call_operand.vmem [shape: f32[2,2,128], index: 6, kind: output, shape index: {1}]  }
   0x1   :  { %s2689_s23 = smov 0  }
   0x2 LB: > { %s29_s24 = sadd.s32 1, %s2643_s22  ;;  %p1935_p0 = scmp.ge.s32.totalorder %s2647_s23, 1  ;;  %s2647_s23 = sphi %s2689_s23, %s17_s23   ;;  %s2643_s22 = sphi %s2687_s22, %s3002_s22   ;;  %s2639_s21 = sphi %s2685_s21, %s3001_s21  }
   0x3   : > { %p31_p1 = scmp.ge.s32.totalorder %s29_s24, 2  ;;  %p234_p2 = scmp.lt.s32.totalorder %s2647_s23, 3 }
   0x5   : > { %s3004_s24 = smov (%p31_p1, %s29_s24), 0  ;;  %p235_p3 = pnand %p1935_p0, %p234_p2 }
   0x6   : > { %v2577_v0 = vld [vmem:[%s2995_s1] sm:$0xff] (!%p235_p3)   ;;  %s1936_s27 = sshll.u32 (!%p235_p3), %s2639_s21, 6  ;;  %v2578_v1 = vld [vmem:[%s2995_s1 + $0x8] sm:$0xff] (!%p235_p3)   ;;  %v2579_v2 = vld [vmem:[%s2995_s1 + $0x10] sm:$0xff] (!%p235_p3)   ;;  %p286_p5 = scmp.lt.s32.totalorder (!%p235_p3), %s2639_s21, 1 }
   0x7   : > { %238 = sbr.rel (%p235_p3) target bundleno = 619 (0x26b), region = 40  ;;  %p272_p4 = scmp.lt.s32.totalorder (!%p235_p3), %s1936_s27, 127  ;;  %2392 = vmatprep.subr.bf16.mxu0 (!%p235_p3), %v2577_v0  ;;  %v2580_v3 = vld [vmem:[%s2995_s1 + $0x18] sm:$0xff] (!%p235_p3)   ;;  %v2581_v5 = vld [vmem:[%s2995_s1 + $0x20] sm:$0xff] (!%p235_p3)   ;;  %v2582_v6 = vld [vmem:[%s2995_s1 + $0x28] sm:$0xff] (!%p235_p3)  }
   0x8   : > { %2393 = vmatpush3.bf16.msra.mxu0 (!%p235_p3), %v2577_v0  ;;  %v2583_v7 = vld [vmem:[%s2995_s1 + $0x30] sm:$0xff] (!%p235_p3)   ;;  %v2584_v8 = vld [vmem:[%s2995_s1 + $0x38] sm:$0xff] (!%p235_p3)   ;;  %v2617_v13 = vld [vmem:[%s2997_s3] sm:$0xff] (!%p235_p3)  }
   0x9   : > { %2394 = vmatprep.subr.bf16.mxu0 (!%p235_p3), %v2578_v1  ;;  %v2618_v14 = vld [vmem:[%s2997_s3 + $0x8] sm:$0xff] (!%p235_p3)   ;;  %2472 = vmatprep.subr.bf16.mxu1 (!%p235_p3), %v2617_v13  ;;  %v2619_v15 = vld [vmem:[%s2997_s3 + $0x10] sm:$0xff] (!%p235_p3)   ;;  %v2620_v18 = vld [vmem:[%s2997_s3 + $0x18] sm:$0xff] (!%p235_p3)  }
   0xa   : > { %2473 = vmatpush3.bf16.msra.mxu1 (!%p235_p3), %v2617_v13  ;;  %v2621_v19 = vld [vmem:[%s2997_s3 + $0x20] sm:$0xff] (!%p235_p3)   ;;  %v2622_v22 = vld [vmem:[%s2997_s3 + $0x28] sm:$0xff] (!%p235_p3)   ;;  %v2623_v37 = vld [vmem:[%s2997_s3 + $0x30] sm:$0xff] (!%p235_p3)  }
   0xb   : > { %2474 = vmatprep.subr.bf16.mxu1 (!%p235_p3), %v2618_v14  ;;  %v2624_v40 = vld [vmem:[%s2997_s3 + $0x38] sm:$0xff] (!%p235_p3)   ;;  %v2799_v49 = vld [vmem:[%s2996_s2] ss:$0 sm:$0xff] (!%p235_p3) }
   0xc   : > { %2395 = vmatpush3.bf16.msra.mxu0 (!%p235_p3), %v2578_v1 }
   0xd   : > { %2396 = vmatprep.subr.bf16.mxu0 (!%p235_p3), %v2579_v2 }
   0xe   : > { %s3006_s27 = smov (!%p272_p4, %s1936_s27), 127  ;;  %2475 = vmatpush3.bf16.msra.mxu1 %v2618_v14  ;;  %s3008_s21 = smov (!%p286_p5, %s2639_s21), 1 }
   0xf   : > { %s1937_s8 = sshll.u32 %s3006_s27, 2  ;;  %2476 = vmatprep.subr.bf16.mxu1 %v2619_v15  ;;  %s1940_s29 = sshll.u32 %s3008_s21, 1 }
  0x10   : > { %s2723_s11 = scalar_lea.vmem %s2994_s0, %s1937_s8  ;;  %2397 = vmatpush3.bf16.msra.mxu0 %v2579_v2  ;;  %s2880_s9 = scalar_lea.vmem %s2999_s5, %s1937_s8 }
  0x11   : > { %v2585_v4 = vld [vmem:[%s2723_s11] sm:$0xff]   ;;  %2398 = vmatprep.subr.bf16.mxu0 %v2580_v3  ;;  %v2586_v9 = vld [vmem:[%s2723_s11 + $0x8] sm:$0xff]   ;;  %v2587_v10 = vld [vmem:[%s2723_s11 + $0x10] sm:$0xff]   ;;  %s2886_s13 = scalar_lea.vmem %s3000_s6, %s1940_s29 }
  0x12   : > { %2408 = vmatprep.mubr.bf16.mxu0 %v2585_v4  ;;  %v2588_v11 = vld [vmem:[%s2723_s11 + $0x18] sm:$0xff]   ;;  %v2589_v12 = vld [vmem:[%s2723_s11 + $0x20] sm:$0xff]   ;;  %v2590_v16 = vld [vmem:[%s2723_s11 + $0x28] sm:$0xff]   ;;  %2477 = vmatpush3.bf16.msra.mxu1 %v2619_v15 }
  0x13   : > { %v2591_v17 = vld [vmem:[%s2723_s11 + $0x30] sm:$0xff]   ;;  %2478 = vmatprep.subr.bf16.mxu1 %v2620_v18  ;;  %v2592_v20 = vld [vmem:[%s2723_s11 + $0x38] sm:$0xff]   ;;  %v2593_v21 = vld [vmem:[%s2723_s11 + $0x40] sm:$0xff]  }
  0x14   : > { %2399 = vmatpush3.bf16.msra.mxu0 %v2580_v3  ;;  %v2594_v23 = vld [vmem:[%s2723_s11 + $0x48] sm:$0xff]   ;;  %v2595_v24 = vld [vmem:[%s2723_s11 + $0x50] sm:$0xff]   ;;  %v2596_v25 = vld [vmem:[%s2723_s11 + $0x58] sm:$0xff]  }
  0x15   : > { %2400 = vmatprep.subr.bf16.mxu0 %v2581_v5  ;;  %v2597_v26 = vld [vmem:[%s2723_s11 + $0x60] sm:$0xff]   ;;  %v2598_v27 = vld [vmem:[%s2723_s11 + $0x68] sm:$0xff]   ;;  %v2599_v28 = vld [vmem:[%s2723_s11 + $0x70] sm:$0xff]  }
  0x16   : > { %2479 = vmatpush3.bf16.msra.mxu1 %v2620_v18  ;;  %v2600_v29 = vld [vmem:[%s2723_s11 + $0x78] sm:$0xff]   ;;  %v2601_v30 = vld [vmem:[%s2723_s11 + $0x80] sm:$0xff]   ;;  %v2602_v31 = vld [vmem:[%s2723_s11 + $0x88] sm:$0xff]  }
  0x17   : > { %2480 = vmatprep.subr.bf16.mxu1 %v2621_v19  ;;  %v2603_v32 = vld [vmem:[%s2723_s11 + $0x90] sm:$0xff]   ;;  %v2604_v33 = vld [vmem:[%s2723_s11 + $0x98] sm:$0xff]   ;;  %v2605_v34 = vld [vmem:[%s2723_s11 + $0xa0] sm:$0xff]  }
  0x18   : > { %2401 = vmatpush3.bf16.msra.mxu0 %v2581_v5  ;;  %v2606_v35 = vld [vmem:[%s2723_s11 + $0xa8] sm:$0xff]   ;;  %v2607_v36 = vld [vmem:[%s2723_s11 + $0xb0] sm:$0xff]   ;;  %v2608_v38 = vld [vmem:[%s2723_s11 + $0xb8] sm:$0xff]  }
  0x19   : > { %2402 = vmatprep.subr.bf16.mxu0 %v2582_v6  ;;  %v2609_v39 = vld [vmem:[%s2723_s11 + $0xc0] sm:$0xff]   ;;  %v2610_v41 = vld [vmem:[%s2723_s11 + $0xc8] sm:$0xff]   ;;  %v2611_v42 = vld [vmem:[%s2723_s11 + $0xd0] sm:$0xff]  }
  0x1a   : > { %2481 = vmatpush3.bf16.msra.mxu1 %v2621_v19  ;;  %v2612_v43 = vld [vmem:[%s2723_s11 + $0xd8] sm:$0xff]   ;;  %v2613_v44 = vld [vmem:[%s2723_s11 + $0xe0] sm:$0xff]   ;;  %v2614_v45 = vld [vmem:[%s2723_s11 + $0xe8] sm:$0xff]  }
  0x1b   : > { %2482 = vmatprep.subr.bf16.mxu1 %v2622_v22  ;;  %v2615_v46 = vld [vmem:[%s2723_s11 + $0xf0] sm:$0xff]   ;;  %v2616_v47 = vld [vmem:[%s2723_s11 + $0xf8] sm:$0xff]  }
  0x1c   : > { %2403 = vmatpush3.bf16.msra.mxu0 %v2582_v6 }
  0x1d   : > { %2404 = vmatprep.subr.bf16.mxu0 %v2583_v7 }
  0x1e   : > { %2483 = vmatpush3.bf16.msra.mxu1 %v2622_v22 }
  0x1f   : > { %2484 = vmatprep.subr.bf16.mxu1 %v2623_v37 }
  0x20   : > { %2405 = vmatpush3.bf16.msra.mxu0 %v2583_v7 }
  0x21   : > { %2406 = vmatprep.subr.bf16.mxu0 %v2584_v8 }
  0x22   : > { %2485 = vmatpush3.bf16.msra.mxu1 %v2623_v37 }
  0x23   : > { %2486 = vmatprep.subr.bf16.mxu1 %v2624_v40 }
  0x24   : > { %2407 = vmatpush3.bf16.msra.mxu0 %v2584_v8 }
  0x26   : > { %2487 = vmatpush3.bf16.msra.mxu1 %v2624_v40 }
  0x27   : > { %2409 = vmatmul.mubr.bf16.vlgmr.msra.gmra.mrb[0].mxu0 %v2586_v9 }
  0x28   : > { %2412 = vmatprep.mubr.bf16.mxu0 %v2587_v10 }
  0x2f   : > { %2413 = vmatmul.mubr.bf16.gmra.mrb[4].mxu0 %v2588_v11 }
  0x30   : > { %2416 = vmatprep.mubr.bf16.mxu0 %v2589_v12 }
  0x37   : > { %2417 = vmatmul.mubr.bf16.gmra.mrb[8].mxu0 %v2590_v16 }
  0x38   : > { %2420 = vmatprep.mubr.bf16.mxu0 %v2591_v17 }
  0x3f   : > { %2421 = vmatmul.mubr.bf16.gmra.mrb[12].mxu0 %v2592_v20 }
  0x40   : > { %2424 = vmatprep.mubr.bf16.mxu0 %v2593_v21 }
  0x47   : > { %2425 = vmatmul.mubr.bf16.gmra.mrb[16].mxu0 %v2594_v23 }
  0x48   : > { %2428 = vmatprep.mubr.bf16.mxu0 %v2595_v24 }
  0x4f   : > { %2429 = vmatmul.mubr.bf16.gmra.mrb[20].mxu0 %v2596_v25 }
  0x50   : > { %2432 = vmatprep.mubr.bf16.mxu0 %v2597_v26 }
  0x57   : > { %2433 = vmatmul.mubr.bf16.gmra.mrb[24].mxu0 %v2598_v27 }
  0x58   : > { %2436 = vmatprep.mubr.bf16.mxu0 %v2599_v28 }
  0x5f   : > { %2437 = vmatmul.mubr.bf16.gmra.mrb[28].mxu0 %v2600_v29 }
  0x60   : > { %2440 = vmatprep.mubr.bf16.mxu0 %v2601_v30 }
  0x67   : > { %2441 = vmatmul.mubr.bf16.gmra.mrb[32].mxu0 %v2602_v31 }
  0x68   : > { %2444 = vmatprep.mubr.bf16.mxu0 %v2603_v32 }
  0x6f   : > { %2445 = vmatmul.mubr.bf16.gmra.mrb[36].mxu0 %v2604_v33 }
  0x70   : > { %2448 = vmatprep.mubr.bf16.mxu0 %v2605_v34 }
  0x77   : > { %2449 = vmatmul.mubr.bf16.gmra.mrb[40].mxu0 %v2606_v35 }
  0x78   : > { %2452 = vmatprep.mubr.bf16.mxu0 %v2607_v36 }
  0x7f   : > { %2453 = vmatmul.mubr.bf16.gmra.mrb[44].mxu0 %v2608_v38 }
  0x80   : > { %2456 = vmatprep.mubr.bf16.mxu0 %v2609_v39 }
  0x87   : > { %2457 = vmatmul.mubr.bf16.gmra.mrb[48].mxu0 %v2610_v41 }
  0x88   : > { %2460 = vmatprep.mubr.bf16.mxu0 %v2611_v42 }
  0x8f   : > { %2461 = vmatmul.mubr.bf16.gmra.mrb[52].mxu0 %v2612_v43 }
  0x90   : > { %2464 = vmatprep.mubr.bf16.mxu0 %v2613_v44 }
  0x97   : > { %2465 = vmatmul.mubr.bf16.gmra.mrb[56].mxu0 %v2614_v45 }
  0x98   : > { %2468 = vmatprep.mubr.bf16.mxu0 %v2615_v46 }
  0x9f   : > { %2469 = vmatmul.mubr.bf16.gmra.mrb[60].mxu0 %v2616_v47 }
  0xfa   : > { %v2410_v48 = vpop.f32.mrb[0].mxu0 }
  0xfb   : > { %v657_v50 = vpop.f32.mrb[1].mxu0  ;;  %v666_v52 = vadd.f32 %v2410_v48, %v2799_v49 }
  0xfc   : > { %v2411_v51 = vpop.f32.mrb[2].mxu0  ;;  %v658_v55 = vadd.f32 %v2799_v49, %v657_v50 }
  0xfd   : > { %v669_v53 = vadd.f32 %v2411_v51, %v2799_v49  ;;  %v660_v54 = vpop.f32.mrb[3].mxu0 }
  0xfe   : > { %v661_v56 = vadd.f32 %v2799_v49, %v660_v54 }
  0xff   : > { %v913_v57 = vpack.c.bf16 %v669_v53, %v666_v52 }
 0x100   : > { %v912_v58 = vpack.c.bf16 %v661_v56, %v658_v55 }
 0x102   : > { %v2414_v59 = vpop.f32.mrb[4].mxu0  ;;  %2488 = vmatprep.mubr.bf16.mxu1 %v912_v58 }
 0x103   : > { %v673_v60 = vpop.f32.mrb[5].mxu0  ;;  %2489 = vmatmul.mubr.bf16.vlgmr.msra.gmra.mrb[0].mxu1 %v913_v57  ;;  %v682_v62 = vadd.f32 %v2414_v59, %v2799_v49 }
 0x104   : > { %v2415_v61 = vpop.f32.mrb[6].mxu0  ;;  %v674_v1 = vadd.f32 %v2799_v49, %v673_v60 }
 0x105   : > { %v685_v63 = vadd.f32 %v2415_v61, %v2799_v49  ;;  %v676_v0 = vpop.f32.mrb[7].mxu0 }
 0x106   : > { %v677_v2 = vadd.f32 %v2799_v49, %v676_v0 }
 0x107   : > { %v915_v3 = vpack.c.bf16 %v685_v63, %v682_v62 }
 0x108   : > { %v914_v4 = vpack.c.bf16 %v677_v2, %v674_v1 }
 0x10a   : > { %v2418_v5 = vpop.f32.mrb[8].mxu0  ;;  %2492 = vmatprep.mubr.bf16.mxu1 %v914_v4 }
 0x10b   : > { %v689_v6 = vpop.f32.mrb[9].mxu0  ;;  %2493 = vmatmul.mubr.bf16.gmra.mrb[4].mxu1 %v915_v3  ;;  %v698_v8 = vadd.f32 %v2418_v5, %v2799_v49 }
 0x10c   : > { %v2419_v7 = vpop.f32.mrb[10].mxu0  ;;  %v690_v11 = vadd.f32 %v2799_v49, %v689_v6 }
 0x10d   : > { %v701_v9 = vadd.f32 %v2419_v7, %v2799_v49  ;;  %v692_v10 = vpop.f32.mrb[11].mxu0 }
 0x10e   : > { %v693_v12 = vadd.f32 %v2799_v49, %v692_v10 }
 0x10f   : > { %v917_v13 = vpack.c.bf16 %v701_v9, %v698_v8 }
 0x110   : > { %v916_v14 = vpack.c.bf16 %v693_v12, %v690_v11 }
 0x112   : > { %v2422_v15 = vpop.f32.mrb[12].mxu0  ;;  %2496 = vmatprep.mubr.bf16.mxu1 %v916_v14 }
 0x113   : > { %v705_v16 = vpop.f32.mrb[13].mxu0  ;;  %2497 = vmatmul.mubr.bf16.gmra.mrb[8].mxu1 %v917_v13  ;;  %v714_v18 = vadd.f32 %v2422_v15, %v2799_v49 }
 0x114   : > { %v2423_v17 = vpop.f32.mrb[14].mxu0  ;;  %v706_v21 = vadd.f32 %v2799_v49, %v705_v16 }
 0x115   : > { %v717_v19 = vadd.f32 %v2423_v17, %v2799_v49  ;;  %v708_v20 = vpop.f32.mrb[15].mxu0 }
 0x116   : > { %v709_v22 = vadd.f32 %v2799_v49, %v708_v20 }
 0x117   : > { %v919_v23 = vpack.c.bf16 %v717_v19, %v714_v18 }
 0x118   : > { %v918_v24 = vpack.c.bf16 %v709_v22, %v706_v21 }
 0x11a   : > { %v2426_v25 = vpop.f32.mrb[16].mxu0  ;;  %2500 = vmatprep.mubr.bf16.mxu1 %v918_v24 }
 0x11b   : > { %v721_v26 = vpop.f32.mrb[17].mxu0  ;;  %2501 = vmatmul.mubr.bf16.gmra.mrb[12].mxu1 %v919_v23  ;;  %v730_v28 = vadd.f32 %v2426_v25, %v2799_v49 }
 0x11c   : > { %v2427_v27 = vpop.f32.mrb[18].mxu0  ;;  %v722_v31 = vadd.f32 %v2799_v49, %v721_v26 }
 0x11d   : > { %v733_v29 = vadd.f32 %v2427_v27, %v2799_v49  ;;  %v724_v30 = vpop.f32.mrb[19].mxu0 }
 0x11e   : > { %v725_v32 = vadd.f32 %v2799_v49, %v724_v30 }
 0x11f   : > { %v921_v33 = vpack.c.bf16 %v733_v29, %v730_v28 }
 0x120   : > { %v920_v34 = vpack.c.bf16 %v725_v32, %v722_v31 }
 0x122   : > { %v2430_v35 = vpop.f32.mrb[20].mxu0  ;;  %2504 = vmatprep.mubr.bf16.mxu1 %v920_v34 }
 0x123   : > { %v737_v36 = vpop.f32.mrb[21].mxu0  ;;  %2505 = vmatmul.mubr.bf16.gmra.mrb[16].mxu1 %v921_v33  ;;  %v746_v38 = vadd.f32 %v2430_v35, %v2799_v49 }
 0x124   : > { %v2431_v37 = vpop.f32.mrb[22].mxu0  ;;  %v738_v41 = vadd.f32 %v2799_v49, %v737_v36 }
 0x125   : > { %v749_v39 = vadd.f32 %v2431_v37, %v2799_v49  ;;  %v740_v40 = vpop.f32.mrb[23].mxu0 }
 0x126   : > { %v741_v42 = vadd.f32 %v2799_v49, %v740_v40 }
 0x127   : > { %v923_v43 = vpack.c.bf16 %v749_v39, %v746_v38 }
 0x128   : > { %v922_v44 = vpack.c.bf16 %v741_v42, %v738_v41 }
 0x12a   : > { %v2434_v45 = vpop.f32.mrb[24].mxu0  ;;  %2508 = vmatprep.mubr.bf16.mxu1 %v922_v44 }
 0x12b   : > { %v753_v46 = vpop.f32.mrb[25].mxu0  ;;  %2509 = vmatmul.mubr.bf16.gmra.mrb[20].mxu1 %v923_v43  ;;  %v762_v48 = vadd.f32 %v2434_v45, %v2799_v49 }
 0x12c   : > { %v2435_v47 = vpop.f32.mrb[26].mxu0  ;;  %v754_v52 = vadd.f32 %v2799_v49, %v753_v46 }
 0x12d   : > { %v765_v50 = vadd.f32 %v2435_v47, %v2799_v49  ;;  %v756_v51 = vpop.f32.mrb[27].mxu0 }
 0x12e   : > { %v757_v53 = vadd.f32 %v2799_v49, %v756_v51 }
 0x12f   : > { %v925_v54 = vpack.c.bf16 %v765_v50, %v762_v48 }
 0x130   : > { %v924_v55 = vpack.c.bf16 %v757_v53, %v754_v52 }
 0x132   : > { %v2438_v56 = vpop.f32.mrb[28].mxu0  ;;  %2512 = vmatprep.mubr.bf16.mxu1 %v924_v55 }
 0x133   : > { %v769_v57 = vpop.f32.mrb[29].mxu0  ;;  %2513 = vmatmul.mubr.bf16.gmra.mrb[24].mxu1 %v925_v54  ;;  %v778_v59 = vadd.f32 %v2438_v56, %v2799_v49 }
 0x134   : > { %v2439_v58 = vpop.f32.mrb[30].mxu0  ;;  %v770_v62 = vadd.f32 %v2799_v49, %v769_v57 }
 0x135   : > { %v781_v60 = vadd.f32 %v2439_v58, %v2799_v49  ;;  %v772_v61 = vpop.f32.mrb[31].mxu0 }
 0x136   : > { %v773_v63 = vadd.f32 %v2799_v49, %v772_v61 }
 0x137   : > { %v927_v0 = vpack.c.bf16 %v781_v60, %v778_v59 }
 0x138   : > { %v926_v1 = vpack.c.bf16 %v773_v63, %v770_v62 }
 0x13a   : > { %v2442_v2 = vpop.f32.mrb[32].mxu0  ;;  %2516 = vmatprep.mubr.bf16.mxu1 %v926_v1 }
 0x13b   : > { %v785_v3 = vpop.f32.mrb[33].mxu0  ;;  %2517 = vmatmul.mubr.bf16.gmra.mrb[28].mxu1 %v927_v0  ;;  %v794_v5 = vadd.f32 %v2442_v2, %v2799_v49 }
 0x13c   : > { %v2443_v4 = vpop.f32.mrb[34].mxu0  ;;  %v786_v8 = vadd.f32 %v2799_v49, %v785_v3 }
 0x13d   : > { %v797_v6 = vadd.f32 %v2443_v4, %v2799_v49  ;;  %v788_v7 = vpop.f32.mrb[35].mxu0 }
 0x13e   : > { %v789_v9 = vadd.f32 %v2799_v49, %v788_v7 }
 0x13f   : > { %v929_v10 = vpack.c.bf16 %v797_v6, %v794_v5 }
 0x140   : > { %v928_v11 = vpack.c.bf16 %v789_v9, %v786_v8 }
 0x142   : > { %v2446_v12 = vpop.f32.mrb[36].mxu0  ;;  %2520 = vmatprep.mubr.bf16.mxu1 %v928_v11 }
 0x143   : > { %v801_v13 = vpop.f32.mrb[37].mxu0  ;;  %2521 = vmatmul.mubr.bf16.gmra.mrb[32].mxu1 %v929_v10  ;;  %v810_v15 = vadd.f32 %v2446_v12, %v2799_v49 }
 0x144   : > { %v2447_v14 = vpop.f32.mrb[38].mxu0  ;;  %v802_v18 = vadd.f32 %v2799_v49, %v801_v13 }
 0x145   : > { %v813_v16 = vadd.f32 %v2447_v14, %v2799_v49  ;;  %v804_v17 = vpop.f32.mrb[39].mxu0 }
 0x146   : > { %v805_v19 = vadd.f32 %v2799_v49, %v804_v17 }
 0x147   : > { %v931_v20 = vpack.c.bf16 %v813_v16, %v810_v15 }
 0x148   : > { %v930_v21 = vpack.c.bf16 %v805_v19, %v802_v18  ;;  %v2868_v19 = vld [vmem:[%s2998_s4] ss:$0 sm:$0xff] }
 0x14a   : > { %v2450_v22 = vpop.f32.mrb[40].mxu0  ;;  %2524 = vmatprep.mubr.bf16.mxu1 %v930_v21 }
 0x14b   : > { %v817_v23 = vpop.f32.mrb[41].mxu0  ;;  %2525 = vmatmul.mubr.bf16.gmra.mrb[36].mxu1 %v931_v20  ;;  %v826_v25 = vadd.f32 %v2450_v22, %v2799_v49 }
 0x14c   : > { %v2451_v24 = vpop.f32.mrb[42].mxu0  ;;  %v818_v28 = vadd.f32 %v2799_v49, %v817_v23 }
 0x14d   : > { %v829_v26 = vadd.f32 %v2451_v24, %v2799_v49  ;;  %v820_v27 = vpop.f32.mrb[43].mxu0 }
 0x14e   : > { %v821_v29 = vadd.f32 %v2799_v49, %v820_v27 }
 0x14f   : > { %v933_v30 = vpack.c.bf16 %v829_v26, %v826_v25 }
 0x150   : > { %v932_v31 = vpack.c.bf16 %v821_v29, %v818_v28  ;;  %v2649_v28 = vmov 0.0  }
 0x151   : > { %295 = vst [vmem:[%s2886_s13] sm:$0x3] %v2649_v28 }
 0x152   : > { %v2454_v32 = vpop.f32.mrb[44].mxu0  ;;  %2528 = vmatprep.mubr.bf16.mxu1 %v932_v31 }
 0x153   : > { %v833_v33 = vpop.f32.mrb[45].mxu0  ;;  %2529 = vmatmul.mubr.bf16.gmra.mrb[40].mxu1 %v933_v30  ;;  %v842_v35 = vadd.f32 %v2454_v32, %v2799_v49 }
 0x154   : > { %v2455_v34 = vpop.f32.mrb[46].mxu0  ;;  %v834_v38 = vadd.f32 %v2799_v49, %v833_v33 }
 0x155   : > { %v845_v36 = vadd.f32 %v2455_v34, %v2799_v49  ;;  %v836_v37 = vpop.f32.mrb[47].mxu0 }
 0x156   : > { %v837_v39 = vadd.f32 %v2799_v49, %v836_v37 }
 0x157   : > { %v935_v40 = vpack.c.bf16 %v845_v36, %v842_v35 }
 0x158   : > { %v934_v41 = vpack.c.bf16 %v837_v39, %v834_v38 }
 0x15a   : > { %v2458_v42 = vpop.f32.mrb[48].mxu0  ;;  %2532 = vmatprep.mubr.bf16.mxu1 %v934_v41 }
 0x15b   : > { %v849_v43 = vpop.f32.mrb[49].mxu0  ;;  %2533 = vmatmul.mubr.bf16.gmra.mrb[44].mxu1 %v935_v40  ;;  %v858_v45 = vadd.f32 %v2458_v42, %v2799_v49 }
 0x15c   : > { %v2459_v44 = vpop.f32.mrb[50].mxu0  ;;  %v850_v48 = vadd.f32 %v2799_v49, %v849_v43 }
 0x15d   : > { %v861_v46 = vadd.f32 %v2459_v44, %v2799_v49  ;;  %v852_v47 = vpop.f32.mrb[51].mxu0 }
 0x15e   : > { %v853_v50 = vadd.f32 %v2799_v49, %v852_v47 }
 0x15f   : > { %v937_v51 = vpack.c.bf16 %v861_v46, %v858_v45 }
 0x160   : > { %v936_v52 = vpack.c.bf16 %v853_v50, %v850_v48 }
 0x162   : > { %v2462_v53 = vpop.f32.mrb[52].mxu0  ;;  %2536 = vmatprep.mubr.bf16.mxu1 %v936_v52 }
 0x163   : > { %v865_v54 = vpop.f32.mrb[53].mxu0  ;;  %2537 = vmatmul.mubr.bf16.gmra.mrb[48].mxu1 %v937_v51  ;;  %v874_v56 = vadd.f32 %v2462_v53, %v2799_v49 }
 0x164   : > { %v2463_v55 = vpop.f32.mrb[54].mxu0  ;;  %v866_v59 = vadd.f32 %v2799_v49, %v865_v54 }
 0x165   : > { %v877_v57 = vadd.f32 %v2463_v55, %v2799_v49  ;;  %v868_v58 = vpop.f32.mrb[55].mxu0 }
 0x166   : > { %v869_v60 = vadd.f32 %v2799_v49, %v868_v58 }
 0x167   : > { %v939_v61 = vpack.c.bf16 %v877_v57, %v874_v56 }
 0x168   : > { %v938_v62 = vpack.c.bf16 %v869_v60, %v866_v59 }
 0x16a   : > { %v2466_v63 = vpop.f32.mrb[56].mxu0  ;;  %2540 = vmatprep.mubr.bf16.mxu1 %v938_v62 }
 0x16b   : > { %v881_v0 = vpop.f32.mrb[57].mxu0  ;;  %2541 = vmatmul.mubr.bf16.gmra.mrb[52].mxu1 %v939_v61  ;;  %v890_v2 = vadd.f32 %v2466_v63, %v2799_v49 }
 0x16c   : > { %v2467_v1 = vpop.f32.mrb[58].mxu0  ;;  %v882_v5 = vadd.f32 %v2799_v49, %v881_v0 }
 0x16d   : > { %v893_v3 = vadd.f32 %v2467_v1, %v2799_v49  ;;  %v884_v4 = vpop.f32.mrb[59].mxu0 }
 0x16e   : > { %v885_v6 = vadd.f32 %v2799_v49, %v884_v4 }
 0x16f   : > { %v941_v7 = vpack.c.bf16 %v893_v3, %v890_v2 }
 0x170   : > { %v940_v8 = vpack.c.bf16 %v885_v6, %v882_v5 }
 0x172   : > { %v2470_v9 = vpop.f32.mrb[60].mxu0  ;;  %2544 = vmatprep.mubr.bf16.mxu1 %v940_v8 }
 0x173   : > { %v897_v10 = vpop.f32.mrb[61].mxu0  ;;  %2545 = vmatmul.mubr.bf16.gmra.mrb[56].mxu1 %v941_v7  ;;  %v906_v12 = vadd.f32 %v2470_v9, %v2799_v49 }
 0x174   : > { %v2471_v11 = vpop.f32.mrb[62].mxu0  ;;  %v898_v15 = vadd.f32 %v2799_v49, %v897_v10 }
 0x175   : > { %v909_v13 = vadd.f32 %v2471_v11, %v2799_v49  ;;  %v900_v14 = vpop.f32.mrb[63].mxu0 }
 0x176   : > { %v901_v16 = vadd.f32 %v2799_v49, %v900_v14 }
 0x177   : > { %v943_v17 = vpack.c.bf16 %v909_v13, %v906_v12 }
 0x178   : > { %v942_v18 = vpack.c.bf16 %v901_v16, %v898_v15 }
 0x17a   : > { %2548 = vmatprep.mubr.bf16.mxu1 %v942_v18 }
 0x17b   : > { %2549 = vmatmul.mubr.bf16.gmra.mrb[60].mxu1 %v943_v17 }
 0x1d6   : > { %v2490_v20 = vpop.f32.mrb[0].mxu1 }
 0x1d7   : > { %v1049_v21 = vpop.f32.mrb[1].mxu1  ;;  %v1058_v24 = vadd.f32 %v2490_v20, %v2868_v19 }
 0x1d8   : > { %v1050_v22 = vadd.f32 %v2868_v19, %v1049_v21  ;;  %v2491_v23 = vpop.f32.mrb[2].mxu1 }
 0x1d9   : > { %v1061_v49 = vadd.f32 %v2491_v23, %v2868_v19  ;;  %v1052_v25 = vpop.f32.mrb[3].mxu1  ;;  %v1699_v33 = vmul.f32 %v1058_v24, %v1058_v24 }
 0x1da   : > { %v1053_v26 = vadd.f32 %v2868_v19, %v1052_v25  ;;  %v1697_v29 = vmul.f32 %v1050_v22, %v1050_v22 }
 0x1db   : > { %v2129_v27 = vpack.c.bf16 %v1061_v49, %v1058_v24  ;;  %v1700_v38 = vmul.f32 %v1061_v49, %v1061_v49 }
 0x1dc   : > { %v2124_v30 = vpack.c.bf16 %v1053_v26, %v1050_v22  ;;  %v1625_v31 = vadd.f32 %v1053_v26, %v1050_v22  ;;  %v1698_v32 = vmul.f32 %v1053_v26, %v1053_v26 }
 0x1dd   : > { %2281 = vst [vmem:[%s2880_s9 + $0x8] sm:$0xff] %v2129_v27  }
 0x1de   : > { %2125 = vst [vmem:[%s2880_s9] sm:$0xff] %v2124_v30   ;;  %v1626_v34 = vadd.f32 %v1625_v31, %v1058_v24  ;;  %v1761_v35 = vadd.f32 %v1698_v32, %v1697_v29  ;;  %v2494_v36 = vpop.f32.mrb[4].mxu1 }
 0x1df   : > { %v1065_v37 = vpop.f32.mrb[5].mxu1  ;;  %v1074_v43 = vadd.f32 %v2494_v36, %v2868_v19 }
 0x1e0   : > { %v1762_v39 = vadd.f32 %v1761_v35, %v1699_v33  ;;  %v1066_v40 = vadd.f32 %v2868_v19, %v1065_v37  ;;  %v1627_v41 = vadd.f32 %v1626_v34, %v1061_v49  ;;  %v2495_v42 = vpop.f32.mrb[6].mxu1 }
 0x1e1   : > { %v1077_v44 = vadd.f32 %v2495_v42, %v2868_v19  ;;  %v1068_v45 = vpop.f32.mrb[7].mxu1  ;;  %v1703_v56 = vmul.f32 %v1074_v43, %v1074_v43 }
 0x1e2   : > { %v1628_v46 = vadd.f32 %v1627_v41, %v1066_v40  ;;  %v1701_v47 = vmul.f32 %v1066_v40, %v1066_v40  ;;  %v1763_v48 = vadd.f32 %v1762_v39, %v1700_v38  ;;  %v1069_v50 = vadd.f32 %v2868_v19, %v1068_v45 }
 0x1e3   : > { %v2139_v51 = vpack.c.bf16 %v1077_v44, %v1074_v43  ;;  %v1704_v61 = vmul.f32 %v1077_v44, %v1077_v44 }
 0x1e4   : > { %v1764_v52 = vadd.f32 %v1763_v48, %v1701_v47  ;;  %v2134_v53 = vpack.c.bf16 %v1069_v50, %v1066_v40  ;;  %v1629_v54 = vadd.f32 %v1628_v46, %v1069_v50  ;;  %v1702_v55 = vmul.f32 %v1069_v50, %v1069_v50 }
 0x1e5   : > { %2283 = vst [vmem:[%s2880_s9 + $0x18] sm:$0xff] %v2139_v51  }
 0x1e6   : > { %2282 = vst [vmem:[%s2880_s9 + $0x10] sm:$0xff] %v2134_v53   ;;  %v1630_v57 = vadd.f32 %v1629_v54, %v1074_v43  ;;  %v1765_v58 = vadd.f32 %v1764_v52, %v1702_v55  ;;  %v2498_v59 = vpop.f32.mrb[8].mxu1 }
 0x1e7   : > { %v1081_v60 = vpop.f32.mrb[9].mxu1  ;;  %v1090_v2 = vadd.f32 %v2498_v59, %v2868_v19 }
 0x1e8   : > { %v1766_v62 = vadd.f32 %v1765_v58, %v1703_v56  ;;  %v1082_v63 = vadd.f32 %v2868_v19, %v1081_v60  ;;  %v1631_v0 = vadd.f32 %v1630_v57, %v1077_v44  ;;  %v2499_v1 = vpop.f32.mrb[10].mxu1 }
 0x1e9   : > { %v1093_v3 = vadd.f32 %v2499_v1, %v2868_v19  ;;  %v1084_v4 = vpop.f32.mrb[11].mxu1  ;;  %v1707_v14 = vmul.f32 %v1090_v2, %v1090_v2 }
 0x1ea   : > { %v1632_v5 = vadd.f32 %v1631_v0, %v1082_v63  ;;  %v1705_v6 = vmul.f32 %v1082_v63, %v1082_v63  ;;  %v1767_v7 = vadd.f32 %v1766_v62, %v1704_v61  ;;  %v1085_v8 = vadd.f32 %v2868_v19, %v1084_v4 }
 0x1eb   : > { %v2149_v9 = vpack.c.bf16 %v1093_v3, %v1090_v2  ;;  %v1708_v20 = vmul.f32 %v1093_v3, %v1093_v3 }
 0x1ec   : > { %v1768_v10 = vadd.f32 %v1767_v7, %v1705_v6  ;;  %v2144_v11 = vpack.c.bf16 %v1085_v8, %v1082_v63  ;;  %v1633_v12 = vadd.f32 %v1632_v5, %v1085_v8  ;;  %v1706_v13 = vmul.f32 %v1085_v8, %v1085_v8 }
 0x1ed   : > { %2285 = vst [vmem:[%s2880_s9 + $0x28] sm:$0xff] %v2149_v9  }
 0x1ee   : > { %2284 = vst [vmem:[%s2880_s9 + $0x20] sm:$0xff] %v2144_v11   ;;  %v1634_v15 = vadd.f32 %v1633_v12, %v1090_v2  ;;  %v1769_v16 = vadd.f32 %v1768_v10, %v1706_v13  ;;  %v2502_v17 = vpop.f32.mrb[12].mxu1 }
 0x1ef   : > { %v1097_v18 = vpop.f32.mrb[13].mxu1  ;;  %v1106_v49 = vadd.f32 %v2502_v17, %v2868_v19 }
 0x1f0   : > { %v1770_v21 = vadd.f32 %v1769_v16, %v1707_v14  ;;  %v1098_v22 = vadd.f32 %v2868_v19, %v1097_v18  ;;  %v1635_v23 = vadd.f32 %v1634_v15, %v1093_v3  ;;  %v2503_v24 = vpop.f32.mrb[14].mxu1 }
 0x1f1   : > { %v1109_v25 = vadd.f32 %v2503_v24, %v2868_v19  ;;  %v1100_v26 = vpop.f32.mrb[15].mxu1  ;;  %v1711_v36 = vmul.f32 %v1106_v49, %v1106_v49 }
 0x1f2   : > { %v1636_v27 = vadd.f32 %v1635_v23, %v1098_v22  ;;  %v1709_v28 = vmul.f32 %v1098_v22, %v1098_v22  ;;  %v1771_v29 = vadd.f32 %v1770_v21, %v1708_v20  ;;  %v1101_v30 = vadd.f32 %v2868_v19, %v1100_v26 }
 0x1f3   : > { %v2159_v31 = vpack.c.bf16 %v1109_v25, %v1106_v49  ;;  %v1712_v41 = vmul.f32 %v1109_v25, %v1109_v25 }
 0x1f4   : > { %v1772_v32 = vadd.f32 %v1771_v29, %v1709_v28  ;;  %v2154_v33 = vpack.c.bf16 %v1101_v30, %v1098_v22  ;;  %v1637_v34 = vadd.f32 %v1636_v27, %v1101_v30  ;;  %v1710_v35 = vmul.f32 %v1101_v30, %v1101_v30 }
 0x1f5   : > { %2287 = vst [vmem:[%s2880_s9 + $0x38] sm:$0xff] %v2159_v31  }
 0x1f6   : > { %2286 = vst [vmem:[%s2880_s9 + $0x30] sm:$0xff] %v2154_v33   ;;  %v1638_v37 = vadd.f32 %v1637_v34, %v1106_v49  ;;  %v1773_v38 = vadd.f32 %v1772_v32, %v1710_v35  ;;  %v2506_v39 = vpop.f32.mrb[16].mxu1 }
 0x1f7   : > { %v1113_v40 = vpop.f32.mrb[17].mxu1  ;;  %v1122_v46 = vadd.f32 %v2506_v39, %v2868_v19 }
 0x1f8   : > { %v1774_v42 = vadd.f32 %v1773_v38, %v1711_v36  ;;  %v1114_v43 = vadd.f32 %v2868_v19, %v1113_v40  ;;  %v1639_v44 = vadd.f32 %v1638_v37, %v1109_v25  ;;  %v2507_v45 = vpop.f32.mrb[18].mxu1 }
 0x1f9   : > { %v1125_v47 = vadd.f32 %v2507_v45, %v2868_v19  ;;  %v1116_v48 = vpop.f32.mrb[19].mxu1  ;;  %v1715_v59 = vmul.f32 %v1122_v46, %v1122_v46 }
 0x1fa   : > { %v1640_v50 = vadd.f32 %v1639_v44, %v1114_v43  ;;  %v1713_v51 = vmul.f32 %v1114_v43, %v1114_v43  ;;  %v1775_v52 = vadd.f32 %v1774_v42, %v1712_v41  ;;  %v1117_v53 = vadd.f32 %v2868_v19, %v1116_v48 }
 0x1fb   : > { %v2169_v54 = vpack.c.bf16 %v1125_v47, %v1122_v46  ;;  %v1716_v0 = vmul.f32 %v1125_v47, %v1125_v47 }
 0x1fc   : > { %v1776_v55 = vadd.f32 %v1775_v52, %v1713_v51  ;;  %v2164_v56 = vpack.c.bf16 %v1117_v53, %v1114_v43  ;;  %v1641_v57 = vadd.f32 %v1640_v50, %v1117_v53  ;;  %v1714_v58 = vmul.f32 %v1117_v53, %v1117_v53 }
 0x1fd   : > { %2289 = vst [vmem:[%s2880_s9 + $0x48] sm:$0xff] %v2169_v54  }
 0x1fe   : > { %2288 = vst [vmem:[%s2880_s9 + $0x40] sm:$0xff] %v2164_v56   ;;  %v1642_v60 = vadd.f32 %v1641_v57, %v1122_v46  ;;  %v1777_v61 = vadd.f32 %v1776_v55, %v1714_v58  ;;  %v2510_v62 = vpop.f32.mrb[20].mxu1 }
 0x1ff   : > { %v1129_v63 = vpop.f32.mrb[21].mxu1  ;;  %v1138_v5 = vadd.f32 %v2510_v62, %v2868_v19 }
 0x200   : > { %v1778_v1 = vadd.f32 %v1777_v61, %v1715_v59  ;;  %v1130_v2 = vadd.f32 %v2868_v19, %v1129_v63  ;;  %v1643_v3 = vadd.f32 %v1642_v60, %v1125_v47  ;;  %v2511_v4 = vpop.f32.mrb[22].mxu1 }
 0x201   : > { %v1141_v6 = vadd.f32 %v2511_v4, %v2868_v19  ;;  %v1132_v7 = vpop.f32.mrb[23].mxu1  ;;  %v1719_v17 = vmul.f32 %v1138_v5, %v1138_v5 }
 0x202   : > { %v1644_v8 = vadd.f32 %v1643_v3, %v1130_v2  ;;  %v1717_v9 = vmul.f32 %v1130_v2, %v1130_v2  ;;  %v1779_v10 = vadd.f32 %v1778_v1, %v1716_v0  ;;  %v1133_v11 = vadd.f32 %v2868_v19, %v1132_v7 }
 0x203   : > { %v2179_v12 = vpack.c.bf16 %v1141_v6, %v1138_v5  ;;  %v1720_v23 = vmul.f32 %v1141_v6, %v1141_v6 }
 0x204   : > { %v1780_v13 = vadd.f32 %v1779_v10, %v1717_v9  ;;  %v2174_v14 = vpack.c.bf16 %v1133_v11, %v1130_v2  ;;  %v1645_v15 = vadd.f32 %v1644_v8, %v1133_v11  ;;  %v1718_v16 = vmul.f32 %v1133_v11, %v1133_v11 }
 0x205   : > { %2291 = vst [vmem:[%s2880_s9 + $0x58] sm:$0xff] %v2179_v12  }
 0x206   : > { %2290 = vst [vmem:[%s2880_s9 + $0x50] sm:$0xff] %v2174_v14   ;;  %v1646_v18 = vadd.f32 %v1645_v15, %v1138_v5  ;;  %v1781_v20 = vadd.f32 %v1780_v13, %v1718_v16  ;;  %v2514_v21 = vpop.f32.mrb[24].mxu1 }
 0x207   : > { %v1145_v22 = vpop.f32.mrb[25].mxu1  ;;  %v1154_v27 = vadd.f32 %v2514_v21, %v2868_v19 }
 0x208   : > { %v1782_v24 = vadd.f32 %v1781_v20, %v1719_v17  ;;  %v1146_v49 = vadd.f32 %v2868_v19, %v1145_v22  ;;  %v1647_v25 = vadd.f32 %v1646_v18, %v1141_v6  ;;  %v2515_v26 = vpop.f32.mrb[26].mxu1 }
 0x209   : > { %v1157_v28 = vadd.f32 %v2515_v26, %v2868_v19  ;;  %v1148_v29 = vpop.f32.mrb[27].mxu1  ;;  %v1723_v39 = vmul.f32 %v1154_v27, %v1154_v27 }
 0x20a   : > { %v1648_v30 = vadd.f32 %v1647_v25, %v1146_v49  ;;  %v1721_v31 = vmul.f32 %v1146_v49, %v1146_v49  ;;  %v1783_v32 = vadd.f32 %v1782_v24, %v1720_v23  ;;  %v1149_v33 = vadd.f32 %v2868_v19, %v1148_v29 }
 0x20b   : > { %v2189_v34 = vpack.c.bf16 %v1157_v28, %v1154_v27  ;;  %v1724_v44 = vmul.f32 %v1157_v28, %v1157_v28 }
 0x20c   : > { %v1784_v35 = vadd.f32 %v1783_v32, %v1721_v31  ;;  %v2184_v36 = vpack.c.bf16 %v1149_v33, %v1146_v49  ;;  %v1649_v37 = vadd.f32 %v1648_v30, %v1149_v33  ;;  %v1722_v38 = vmul.f32 %v1149_v33, %v1149_v33 }
 0x20d   : > { %2293 = vst [vmem:[%s2880_s9 + $0x68] sm:$0xff] %v2189_v34  }
 0x20e   : > { %2292 = vst [vmem:[%s2880_s9 + $0x60] sm:$0xff] %v2184_v36   ;;  %v1650_v40 = vadd.f32 %v1649_v37, %v1154_v27  ;;  %v1785_v41 = vadd.f32 %v1784_v35, %v1722_v38  ;;  %v2518_v42 = vpop.f32.mrb[28].mxu1 }
 0x20f   : > { %v1161_v43 = vpop.f32.mrb[29].mxu1  ;;  %v1170_v50 = vadd.f32 %v2518_v42, %v2868_v19 }
 0x210   : > { %v1786_v45 = vadd.f32 %v1785_v41, %v1723_v39  ;;  %v1162_v46 = vadd.f32 %v2868_v19, %v1161_v43  ;;  %v1651_v47 = vadd.f32 %v1650_v40, %v1157_v28  ;;  %v2519_v48 = vpop.f32.mrb[30].mxu1 }
 0x211   : > { %v1173_v51 = vadd.f32 %v2519_v48, %v2868_v19  ;;  %v1164_v52 = vpop.f32.mrb[31].mxu1  ;;  %v1727_v62 = vmul.f32 %v1170_v50, %v1170_v50 }
 0x212   : > { %v1652_v53 = vadd.f32 %v1651_v47, %v1162_v46  ;;  %v1725_v54 = vmul.f32 %v1162_v46, %v1162_v46  ;;  %v1787_v55 = vadd.f32 %v1786_v45, %v1724_v44  ;;  %v1165_v56 = vadd.f32 %v2868_v19, %v1164_v52 }
 0x213   : > { %v2199_v57 = vpack.c.bf16 %v1173_v51, %v1170_v50  ;;  %v1728_v3 = vmul.f32 %v1173_v51, %v1173_v51 }
 0x214   : > { %v1788_v58 = vadd.f32 %v1787_v55, %v1725_v54  ;;  %v2194_v59 = vpack.c.bf16 %v1165_v56, %v1162_v46  ;;  %v1653_v60 = vadd.f32 %v1652_v53, %v1165_v56  ;;  %v1726_v61 = vmul.f32 %v1165_v56, %v1165_v56 }
 0x215   : > { %2295 = vst [vmem:[%s2880_s9 + $0x78] sm:$0xff] %v2199_v57  }
 0x216   : > { %2294 = vst [vmem:[%s2880_s9 + $0x70] sm:$0xff] %v2194_v59   ;;  %v1654_v63 = vadd.f32 %v1653_v60, %v1170_v50  ;;  %v1789_v0 = vadd.f32 %v1788_v58, %v1726_v61  ;;  %v2522_v1 = vpop.f32.mrb[32].mxu1 }
 0x217   : > { %v1177_v2 = vpop.f32.mrb[33].mxu1  ;;  %v1186_v8 = vadd.f32 %v2522_v1, %v2868_v19 }
 0x218   : > { %v1790_v4 = vadd.f32 %v1789_v0, %v1727_v62  ;;  %v1178_v5 = vadd.f32 %v2868_v19, %v1177_v2  ;;  %v1655_v6 = vadd.f32 %v1654_v63, %v1173_v51  ;;  %v2523_v7 = vpop.f32.mrb[34].mxu1 }
 0x219   : > { %v1189_v9 = vadd.f32 %v2523_v7, %v2868_v19  ;;  %v1180_v10 = vpop.f32.mrb[35].mxu1  ;;  %v1731_v21 = vmul.f32 %v1186_v8, %v1186_v8 }
 0x21a   : > { %v1656_v11 = vadd.f32 %v1655_v6, %v1178_v5  ;;  %v1729_v12 = vmul.f32 %v1178_v5, %v1178_v5  ;;  %v1791_v13 = vadd.f32 %v1790_v4, %v1728_v3  ;;  %v1181_v14 = vadd.f32 %v2868_v19, %v1180_v10 }
 0x21b   : > { %v2209_v15 = vpack.c.bf16 %v1189_v9, %v1186_v8  ;;  %v1732_v25 = vmul.f32 %v1189_v9, %v1189_v9 }
 0x21c   : > { %v1792_v16 = vadd.f32 %v1791_v13, %v1729_v12  ;;  %v2204_v17 = vpack.c.bf16 %v1181_v14, %v1178_v5  ;;  %v1657_v18 = vadd.f32 %v1656_v11, %v1181_v14  ;;  %v1730_v20 = vmul.f32 %v1181_v14, %v1181_v14 }
 0x21d   : > { %2297 = vst [vmem:[%s2880_s9 + $0x88] sm:$0xff] %v2209_v15  }
 0x21e   : > { %2296 = vst [vmem:[%s2880_s9 + $0x80] sm:$0xff] %v2204_v17   ;;  %v1658_v22 = vadd.f32 %v1657_v18, %v1186_v8  ;;  %v1793_v23 = vadd.f32 %v1792_v16, %v1730_v20  ;;  %v2526_v24 = vpop.f32.mrb[36].mxu1 }
 0x21f   : > { %v1193_v49 = vpop.f32.mrb[37].mxu1  ;;  %v1202_v30 = vadd.f32 %v2526_v24, %v2868_v19 }
 0x220   : > { %v1794_v26 = vadd.f32 %v1793_v23, %v1731_v21  ;;  %v1194_v27 = vadd.f32 %v2868_v19, %v1193_v49  ;;  %v1659_v28 = vadd.f32 %v1658_v22, %v1189_v9  ;;  %v2527_v29 = vpop.f32.mrb[38].mxu1 }
 0x221   : > { %v1205_v31 = vadd.f32 %v2527_v29, %v2868_v19  ;;  %v1196_v32 = vpop.f32.mrb[39].mxu1  ;;  %v1735_v42 = vmul.f32 %v1202_v30, %v1202_v30 }
 0x222   : > { %v1660_v33 = vadd.f32 %v1659_v28, %v1194_v27  ;;  %v1733_v34 = vmul.f32 %v1194_v27, %v1194_v27  ;;  %v1795_v35 = vadd.f32 %v1794_v26, %v1732_v25  ;;  %v1197_v36 = vadd.f32 %v2868_v19, %v1196_v32 }
 0x223   : > { %v2219_v37 = vpack.c.bf16 %v1205_v31, %v1202_v30  ;;  %v1736_v47 = vmul.f32 %v1205_v31, %v1205_v31 }
 0x224   : > { %v1796_v38 = vadd.f32 %v1795_v35, %v1733_v34  ;;  %v2214_v39 = vpack.c.bf16 %v1197_v36, %v1194_v27  ;;  %v1661_v40 = vadd.f32 %v1660_v33, %v1197_v36  ;;  %v1734_v41 = vmul.f32 %v1197_v36, %v1197_v36 }
 0x225   : > { %2299 = vst [vmem:[%s2880_s9 + $0x98] sm:$0xff] %v2219_v37  }
 0x226   : > { %2298 = vst [vmem:[%s2880_s9 + $0x90] sm:$0xff] %v2214_v39   ;;  %v1662_v43 = vadd.f32 %v1661_v40, %v1202_v30  ;;  %v1797_v44 = vadd.f32 %v1796_v38, %v1734_v41  ;;  %v2530_v45 = vpop.f32.mrb[40].mxu1 }
 0x227   : > { %v1209_v46 = vpop.f32.mrb[41].mxu1  ;;  %v1218_v53 = vadd.f32 %v2530_v45, %v2868_v19 }
 0x228   : > { %v1798_v48 = vadd.f32 %v1797_v44, %v1735_v42  ;;  %v1210_v50 = vadd.f32 %v2868_v19, %v1209_v46  ;;  %v1663_v51 = vadd.f32 %v1662_v43, %v1205_v31  ;;  %v2531_v52 = vpop.f32.mrb[42].mxu1 }
 0x229   : > { %v1221_v54 = vadd.f32 %v2531_v52, %v2868_v19  ;;  %v1212_v55 = vpop.f32.mrb[43].mxu1  ;;  %v1739_v1 = vmul.f32 %v1218_v53, %v1218_v53 }
 0x22a   : > { %v1664_v56 = vadd.f32 %v1663_v51, %v1210_v50  ;;  %v1737_v57 = vmul.f32 %v1210_v50, %v1210_v50  ;;  %v1799_v58 = vadd.f32 %v1798_v48, %v1736_v47  ;;  %v1213_v59 = vadd.f32 %v2868_v19, %v1212_v55 }
 0x22b   : > { %v2229_v60 = vpack.c.bf16 %v1221_v54, %v1218_v53  ;;  %v1740_v6 = vmul.f32 %v1221_v54, %v1221_v54 }
 0x22c   : > { %v1800_v61 = vadd.f32 %v1799_v58, %v1737_v57  ;;  %v2224_v62 = vpack.c.bf16 %v1213_v59, %v1210_v50  ;;  %v1665_v63 = vadd.f32 %v1664_v56, %v1213_v59  ;;  %v1738_v0 = vmul.f32 %v1213_v59, %v1213_v59 }
 0x22d   : > { %2301 = vst [vmem:[%s2880_s9 + $0xa8] sm:$0xff] %v2229_v60  }
 0x22e   : > { %2300 = vst [vmem:[%s2880_s9 + $0xa0] sm:$0xff] %v2224_v62   ;;  %v1666_v2 = vadd.f32 %v1665_v63, %v1218_v53  ;;  %v1801_v3 = vadd.f32 %v1800_v61, %v1738_v0  ;;  %v2534_v4 = vpop.f32.mrb[44].mxu1 }
 0x22f   : > { %v1225_v5 = vpop.f32.mrb[45].mxu1  ;;  %v1234_v11 = vadd.f32 %v2534_v4, %v2868_v19 }
 0x230   : > { %v1802_v7 = vadd.f32 %v1801_v3, %v1739_v1  ;;  %v1226_v8 = vadd.f32 %v2868_v19, %v1225_v5  ;;  %v1667_v9 = vadd.f32 %v1666_v2, %v1221_v54  ;;  %v2535_v10 = vpop.f32.mrb[46].mxu1 }
 0x231   : > { %v1237_v12 = vadd.f32 %v2535_v10, %v2868_v19  ;;  %v1228_v13 = vpop.f32.mrb[47].mxu1  ;;  %v1743_v24 = vmul.f32 %v1234_v11, %v1234_v11 }
 0x232   : > { %v1668_v14 = vadd.f32 %v1667_v9, %v1226_v8  ;;  %v1741_v15 = vmul.f32 %v1226_v8, %v1226_v8  ;;  %v1803_v16 = vadd.f32 %v1802_v7, %v1740_v6  ;;  %v1229_v17 = vadd.f32 %v2868_v19, %v1228_v13 }
 0x233   : > { %v2239_v18 = vpack.c.bf16 %v1237_v12, %v1234_v11  ;;  %v1744_v28 = vmul.f32 %v1237_v12, %v1237_v12 }
 0x234   : > { %v1804_v20 = vadd.f32 %v1803_v16, %v1741_v15  ;;  %v2234_v21 = vpack.c.bf16 %v1229_v17, %v1226_v8  ;;  %v1669_v22 = vadd.f32 %v1668_v14, %v1229_v17  ;;  %v1742_v23 = vmul.f32 %v1229_v17, %v1229_v17 }
 0x235   : > { %2303 = vst [vmem:[%s2880_s9 + $0xb8] sm:$0xff] %v2239_v18  }
 0x236   : > { %2302 = vst [vmem:[%s2880_s9 + $0xb0] sm:$0xff] %v2234_v21   ;;  %v1670_v49 = vadd.f32 %v1669_v22, %v1234_v11  ;;  %v1805_v25 = vadd.f32 %v1804_v20, %v1742_v23  ;;  %v2538_v26 = vpop.f32.mrb[48].mxu1 }
 0x237   : > { %v1241_v27 = vpop.f32.mrb[49].mxu1  ;;  %v1250_v33 = vadd.f32 %v2538_v26, %v2868_v19 }
 0x238   : > { %v1806_v29 = vadd.f32 %v1805_v25, %v1743_v24  ;;  %v1242_v30 = vadd.f32 %v2868_v19, %v1241_v27  ;;  %v1671_v31 = vadd.f32 %v1670_v49, %v1237_v12  ;;  %v2539_v32 = vpop.f32.mrb[50].mxu1 }
 0x239   : > { %v1253_v34 = vadd.f32 %v2539_v32, %v2868_v19  ;;  %v1244_v35 = vpop.f32.mrb[51].mxu1  ;;  %v1747_v45 = vmul.f32 %v1250_v33, %v1250_v33 }
 0x23a   : > { %v1672_v36 = vadd.f32 %v1671_v31, %v1242_v30  ;;  %v1745_v37 = vmul.f32 %v1242_v30, %v1242_v30  ;;  %v1807_v38 = vadd.f32 %v1806_v29, %v1744_v28  ;;  %v1245_v39 = vadd.f32 %v2868_v19, %v1244_v35 }
 0x23b   : > { %v2249_v40 = vpack.c.bf16 %v1253_v34, %v1250_v33  ;;  %v1748_v51 = vmul.f32 %v1253_v34, %v1253_v34 }
 0x23c   : > { %v1808_v41 = vadd.f32 %v1807_v38, %v1745_v37  ;;  %v2244_v42 = vpack.c.bf16 %v1245_v39, %v1242_v30  ;;  %v1673_v43 = vadd.f32 %v1672_v36, %v1245_v39  ;;  %v1746_v44 = vmul.f32 %v1245_v39, %v1245_v39 }
 0x23d   : > { %2305 = vst [vmem:[%s2880_s9 + $0xc8] sm:$0xff] %v2249_v40  }
 0x23e   : > { %2304 = vst [vmem:[%s2880_s9 + $0xc0] sm:$0xff] %v2244_v42   ;;  %v1674_v46 = vadd.f32 %v1673_v43, %v1250_v33  ;;  %v1809_v47 = vadd.f32 %v1808_v41, %v1746_v44  ;;  %v2542_v48 = vpop.f32.mrb[52].mxu1 }
 0x23f   : > { %v1257_v50 = vpop.f32.mrb[53].mxu1  ;;  %v1266_v56 = vadd.f32 %v2542_v48, %v2868_v19 }
 0x240   : > { %v1810_v52 = vadd.f32 %v1809_v47, %v1747_v45  ;;  %v1258_v53 = vadd.f32 %v2868_v19, %v1257_v50  ;;  %v1675_v54 = vadd.f32 %v1674_v46, %v1253_v34  ;;  %v2543_v55 = vpop.f32.mrb[54].mxu1 }
 0x241   : > { %v1269_v57 = vadd.f32 %v2543_v55, %v2868_v19  ;;  %v1260_v58 = vpop.f32.mrb[55].mxu1  ;;  %v1751_v4 = vmul.f32 %v1266_v56, %v1266_v56 }
 0x242   : > { %v1676_v59 = vadd.f32 %v1675_v54, %v1258_v53  ;;  %v1749_v60 = vmul.f32 %v1258_v53, %v1258_v53  ;;  %v1811_v61 = vadd.f32 %v1810_v52, %v1748_v51  ;;  %v1261_v62 = vadd.f32 %v2868_v19, %v1260_v58 }
 0x243   : > { %v2259_v63 = vpack.c.bf16 %v1269_v57, %v1266_v56  ;;  %v1752_v9 = vmul.f32 %v1269_v57, %v1269_v57 }
 0x244   : > { %v1812_v0 = vadd.f32 %v1811_v61, %v1749_v60  ;;  %v2254_v1 = vpack.c.bf16 %v1261_v62, %v1258_v53  ;;  %v1677_v2 = vadd.f32 %v1676_v59, %v1261_v62  ;;  %v1750_v3 = vmul.f32 %v1261_v62, %v1261_v62 }
 0x245   : > { %2307 = vst [vmem:[%s2880_s9 + $0xd8] sm:$0xff] %v2259_v63  }
 0x246   : > { %2306 = vst [vmem:[%s2880_s9 + $0xd0] sm:$0xff] %v2254_v1   ;;  %v1678_v5 = vadd.f32 %v1677_v2, %v1266_v56  ;;  %v1813_v6 = vadd.f32 %v1812_v0, %v1750_v3  ;;  %v2546_v7 = vpop.f32.mrb[56].mxu1  ;;  %v1624_v0 = vld [vmem:[%s2886_s13] sm:$0x1]  ;;  %v1696_v3 = vld [vmem:[%s2886_s13 + $0x1] sm:$0x1] }
 0x247   : > { %v1273_v8 = vpop.f32.mrb[57].mxu1  ;;  %v1282_v14 = vadd.f32 %v2546_v7, %v2868_v19 }
 0x248   : > { %v1814_v10 = vadd.f32 %v1813_v6, %v1751_v4  ;;  %v1274_v11 = vadd.f32 %v2868_v19, %v1273_v8  ;;  %v1679_v12 = vadd.f32 %v1678_v5, %v1269_v57  ;;  %v2547_v13 = vpop.f32.mrb[58].mxu1 }
 0x249   : > { %v1285_v15 = vadd.f32 %v2547_v13, %v2868_v19  ;;  %v1276_v16 = vpop.f32.mrb[59].mxu1  ;;  %v1755_v26 = vmul.f32 %v1282_v14, %v1282_v14 }
 0x24a   : > { %v1680_v17 = vadd.f32 %v1679_v12, %v1274_v11  ;;  %v1753_v18 = vmul.f32 %v1274_v11, %v1274_v11  ;;  %v1815_v20 = vadd.f32 %v1814_v10, %v1752_v9  ;;  %v1277_v21 = vadd.f32 %v2868_v19, %v1276_v16 }
 0x24b   : > { %v2269_v22 = vpack.c.bf16 %v1285_v15, %v1282_v14  ;;  %v1756_v31 = vmul.f32 %v1285_v15, %v1285_v15 }
 0x24c   : > { %v1816_v23 = vadd.f32 %v1815_v20, %v1753_v18  ;;  %v2264_v24 = vpack.c.bf16 %v1277_v21, %v1274_v11  ;;  %v1681_v49 = vadd.f32 %v1680_v17, %v1277_v21  ;;  %v1754_v25 = vmul.f32 %v1277_v21, %v1277_v21 }
 0x24d   : > { %2309 = vst [vmem:[%s2880_s9 + $0xe8] sm:$0xff] %v2269_v22  }
 0x24e   : > { %2308 = vst [vmem:[%s2880_s9 + $0xe0] sm:$0xff] %v2264_v24   ;;  %v1682_v27 = vadd.f32 %v1681_v49, %v1282_v14  ;;  %v1817_v28 = vadd.f32 %v1816_v23, %v1754_v25  ;;  %v2550_v29 = vpop.f32.mrb[60].mxu1 }
 0x24f   : > { %v1289_v30 = vpop.f32.mrb[61].mxu1  ;;  %v1298_v36 = vadd.f32 %v2550_v29, %v2868_v19 }
 0x250   : > { %v1818_v32 = vadd.f32 %v1817_v28, %v1755_v26  ;;  %v1290_v33 = vadd.f32 %v2868_v19, %v1289_v30  ;;  %v1683_v34 = vadd.f32 %v1682_v27, %v1285_v15  ;;  %v2551_v35 = vpop.f32.mrb[62].mxu1 }
 0x251   : > { %v1301_v37 = vadd.f32 %v2551_v35, %v2868_v19  ;;  %v1292_v38 = vpop.f32.mrb[63].mxu1  ;;  %v1759_v48 = vmul.f32 %v1298_v36, %v1298_v36 }
 0x252   : > { %v1684_v39 = vadd.f32 %v1683_v34, %v1290_v33  ;;  %v1757_v40 = vmul.f32 %v1290_v33, %v1290_v33  ;;  %v1819_v41 = vadd.f32 %v1818_v32, %v1756_v31  ;;  %v1293_v42 = vadd.f32 %v2868_v19, %v1292_v38 }
 0x253   : > { %v2279_v43 = vpack.c.bf16 %v1301_v37, %v1298_v36  ;;  %v1760_v52 = vmul.f32 %v1301_v37, %v1301_v37 }
 0x254   : > { %v1820_v44 = vadd.f32 %v1819_v41, %v1757_v40  ;;  %v2274_v45 = vpack.c.bf16 %v1293_v42, %v1290_v33  ;;  %v1685_v46 = vadd.f32 %v1684_v39, %v1293_v42  ;;  %v1758_v47 = vmul.f32 %v1293_v42, %v1293_v42 }
 0x255   : > { %2311 = vst [vmem:[%s2880_s9 + $0xf8] sm:$0xff] %v2279_v43  }
 0x256   : > { %2310 = vst [vmem:[%s2880_s9 + $0xf0] sm:$0xff] %v2274_v45   ;;  %v1686_v50 = vadd.f32 %v1685_v46, %v1298_v36  ;;  %v1821_v51 = vadd.f32 %v1820_v44, %v1758_v47 }
 0x258   : > { %v1687_v53 = vadd.f32 %v1686_v50, %v1301_v37  ;;  %v1822_v54 = vadd.f32 %v1821_v51, %v1759_v48 }
 0x25a   : > { %v1688_v55 = vrot.slane %v1687_v53, 4  ;;  %v1823_v56 = vadd.f32 %v1822_v54, %v1760_v52 }
 0x25c   : > { %v1689_v57 = vadd.f32 %v1688_v55, %v1687_v53  ;;  %v1824_v19 = vrot.slane %v1823_v56, 4 }
 0x25e   : > { %v1690_v58 = vrot.slane %v1689_v57, 2  ;;  %v1825_v59 = vadd.f32 %v1824_v19, %v1823_v56 }
 0x260   : > { %v1691_v60 = vadd.f32 %v1690_v58, %v1689_v57  ;;  %v1826_v61 = vrot.slane %v1825_v59, 2 }
 0x262   : > { %v1692_v62 = vrot.slane %v1691_v60, 1  ;;  %v1827_v63 = vadd.f32 %v1826_v61, %v1825_v59 }
 0x264   : > { %v1693_v1 = vadd.f32 %v1692_v62, %v1691_v60  ;;  %v1828_v2 = vrot.slane %v1827_v63, 1 }
 0x266   : > { %v1694_v4 = vadd.f32 %v1693_v1, %v1624_v0  ;;  %v1829_v5 = vadd.f32 %v1828_v2, %v1827_v63 }
 0x268   : > { %1695 = vst [vmem:[%s2886_s13] sm:$0x1] %v1694_v4  ;;  %v1830_v6 = vadd.f32 %v1829_v5, %v1696_v3 }
 0x26a   : > { %1831 = vst [vmem:[%s2886_s13 + $0x1] sm:$0x1] %v1830_v6 }
 0x26b PF: > { %s17_s23 = sadd.s32 1, %s2647_s23   ;;  %s3001_s21 = smov %s2643_s22 }
 0x26c   : > { %p14_p6 = scmp.ge.s32.totalorder %s17_s23, 4   ;;  %s3002_s22 = smov %s3004_s24 }
 0x26e   :  { %16 = sbr.rel (!%p14_p6) target bundleno = 2 (0x2), region = 86 }

// kernel: baseoc_context_forward.4
= control target key start
LH: loop header
LB: loop body
LE: loop exit
PB: predicated region body
PF: predicated region fallthrough
CT: control target
= control target key end

     0   :  { %s2331_s15 = smov 0   ;;  %s2333_s16 = smov 0   ;;  %s3097_s0 = inlined_call_operand.vmem [shape: bf16[1024,64], index: 0, kind: input, shape index: {}]   ;;  %s3098_s1 = inlined_call_operand.vmem [shape: bf16[64,256], index: 1, kind: input, shape index: {}]   ;;  %s3099_s2 = inlined_call_operand.vmem [shape: f32[1,256], index: 2, kind: input, shape index: {}]   ;;  %s3100_s3 = inlined_call_operand.vmem [shape: bf16[1024,256], index: 3, kind: output, shape index: {0}]   ;;  %s3101_s4 = inlined_call_operand.vmem [shape: f32[2,2,256], index: 4, kind: output, shape index: {1}]  }
   0x1   :  { %s2335_s17 = smov 0  }
   0x2 LB: > { %s27_s18 = sadd.s32 1, %s2297_s16  ;;  %p1986_p0 = scmp.ge.s32.totalorder %s2301_s17, 1  ;;  %s2301_s17 = sphi %s2335_s17, %s15_s17   ;;  %s2297_s16 = sphi %s2333_s16, %s3204_s16   ;;  %s2293_s15 = sphi %s2331_s15, %s3203_s15  }
   0x3   : > { %p29_p1 = scmp.ge.s32.totalorder %s27_s18, 2  ;;  %p184_p2 = scmp.lt.s32.totalorder %s2301_s17, 3 }
   0x5   : > { %s3206_s18 = smov (%p29_p1, %s27_s18), 0  ;;  %p185_p3 = pnand %p1986_p0, %p184_p2 }
   0x7   : > { %188 = sbr.rel (%p185_p3) target bundleno = 458 (0x1ca), region = 32 }
   0xe   : > { %v2235_v0 = vld [vmem:[%s3098_s1 + $0x4] ss:$8 sps:$4 sm:$0xff]   ;;  %s1987_s21 = sshll.u32 %s2293_s15, 6  ;;  %v2237_v1 = vld [vmem:[%s3098_s1] ss:$8 sps:$4 sm:$0xff]   ;;  %v2303_v2 = vmov 0   ;;  %v3102_v41 = vlaneseq }
   0xf   : > { %659 = vmatprep.mubr.bf16.mxu0 %v2303_v2  ;;  %p220_p4 = scmp.lt.s32.totalorder %s1987_s21, 127  ;;  %819 = vmatprep.mubr.bf16.mxu1 %v2303_v2  ;;  %v2238_v3 = vld [vmem:[%s3098_s1 + $0x14] ss:$8 sps:$4 sm:$0xff]   ;;  %v2240_v4 = vld [vmem:[%s3098_s1 + $0x10] ss:$8 sps:$4 sm:$0xff]   ;;  %vm530_vm0 = vcmask 523264  }
  0x10   : > { %627 = vmatprep.subr.bf16.mxu0 %v2235_v0  ;;  %2200 = vmatprep.subr.bf16.mxu1 %v2235_v0  ;;  %v2241_v5 = vld [vmem:[%s3098_s1 + $0x24] ss:$8 sps:$4 sm:$0xff]   ;;  %v2243_v6 = vld [vmem:[%s3098_s1 + $0x20] ss:$8 sps:$4 sm:$0xff]   ;;  %v2244_v7 = vld [vmem:[%s3098_s1 + $0x34] ss:$8 sps:$4 sm:$0xff]  }
  0x11   : > { %628 = vmatpush1.bf16.msra.mxu0 %v2237_v1  ;;  %s3208_s21 = smov (!%p220_p4, %s1987_s21), 127  ;;  %2204 = vmatpush1.bf16.msra.mxu1 %v2237_v1  ;;  %v2246_v8 = vld [vmem:[%s3098_s1 + $0x30] ss:$8 sps:$4 sm:$0xff]   ;;  %v2481_v42 = vshrl.u32 %v3102_v41, 7  ;;  %v318_v44 = vld [vmem:[%s3099_s2] sm:$0x3] }
  0x12   : > { %629 = vmatprep.subr.bf16.mxu0 %v2238_v3  ;;  %2201 = vmatprep.subr.bf16.mxu1 %v2238_v3  ;;  %s1988_s30 = sshll.u32 %s3208_s21, 2  ;;  %s2134_s20 = sshll.u32 %s3208_s21, 3 }
  0x13   : > { %s2375_s7 = scalar_lea.vmem %s3097_s0, %s1988_s30  ;;  %3152 = vst [vmem:[#allocation2_spill] sm:$0xff] %v2481_v42  ;;  %v322_v43 = vsub.s32 0, %v2481_v42  ;;  %v326_v45 = vsub.s32 1, %v2481_v42  ;;  %s2504_s24 = scalar_lea.vmem %s3100_s3, %s2134_s20 }
  0x14   : > { %v2247_v9 = vld [vmem:[%s2375_s7] sm:$0xff]   ;;  %v2248_v11 = vld [vmem:[%s2375_s7 + $0x8] sm:$0xff]   ;;  %v2249_v13 = vld [vmem:[%s2375_s7 + $0x10] sm:$0xff]   ;;  %p235_p5 = scmp.lt.s32.totalorder %s2293_s15, 1 }
  0x15   : > { %630 = vmatpush1.bf16.msra.mxu0 %v2240_v4  ;;  %2205 = vmatpush1.bf16.msra.mxu1 %v2240_v4  ;;  %v2255_v10 = vld [vmem:[%s2375_s7 + $0x80] sm:$0xff]   ;;  %v2257_v12 = vld [vmem:[%s2375_s7 + $0x88] sm:$0xff]   ;;  %v2259_v14 = vld [vmem:[%s2375_s7 + $0x90] sm:$0xff]   ;;  %v2488_v46 = vrot.slane %v318_v44, %v322_v43  ;;  %v2490_v47 = vrot.slane %v318_v44, %v326_v45 }
  0x16   : > { %631 = vmatprep.subr.bf16.mxu0 %v2241_v5  ;;  %2202 = vmatprep.subr.bf16.mxu1 %v2241_v5  ;;  %v2250_v15 = vld [vmem:[%s2375_s7 + $0x18] sm:$0xff]   ;;  %v2251_v17 = vld [vmem:[%s2375_s7 + $0x20] sm:$0xff]   ;;  %v2252_v19 = vld [vmem:[%s2375_s7 + $0x28] sm:$0xff]   ;;  %s3210_s15 = smov (!%p235_p5, %s2293_s15), 1 }
  0x17   : > { %v2261_v16 = vld [vmem:[%s2375_s7 + $0x98] sm:$0xff]   ;;  %v2263_v18 = vld [vmem:[%s2375_s7 + $0xa0] sm:$0xff]   ;;  %v2265_v20 = vld [vmem:[%s2375_s7 + $0xa8] sm:$0xff]   ;;  %s2135_s21 = sshll.u32 %s3210_s15, 2 }
  0x18   : > { %v2253_v21 = vld [vmem:[%s2375_s7 + $0x30] sm:$0xff]   ;;  %v2254_v23 = vld [vmem:[%s2375_s7 + $0x38] sm:$0xff]   ;;  %v2256_v25 = vld [vmem:[%s2375_s7 + $0x40] sm:$0xff]   ;;  %s2720_s27 = scalar_lea.vmem %s3101_s4, %s2135_s21 }
  0x19   : > { %632 = vmatpush1.bf16.msra.mxu0 %v2243_v6  ;;  %2206 = vmatpush1.bf16.msra.mxu1 %v2243_v6  ;;  %v2267_v22 = vld [vmem:[%s2375_s7 + $0xb0] sm:$0xff]   ;;  %v2269_v24 = vld [vmem:[%s2375_s7 + $0xb8] sm:$0xff]   ;;  %v2271_v26 = vld [vmem:[%s2375_s7 + $0xc0] sm:$0xff]  }
  0x1a   : > { %633 = vmatprep.subr.bf16.mxu0 %v2244_v7  ;;  %2203 = vmatprep.subr.bf16.mxu1 %v2244_v7  ;;  %v2258_v27 = vld [vmem:[%s2375_s7 + $0x48] sm:$0xff]   ;;  %v2260_v29 = vld [vmem:[%s2375_s7 + $0x50] sm:$0xff]   ;;  %v2262_v31 = vld [vmem:[%s2375_s7 + $0x58] sm:$0xff]  }
  0x1b   : > { %v2272_v28 = vld [vmem:[%s2375_s7 + $0xc8] sm:$0xff]   ;;  %v2273_v30 = vld [vmem:[%s2375_s7 + $0xd0] sm:$0xff]   ;;  %v2274_v32 = vld [vmem:[%s2375_s7 + $0xd8] sm:$0xff]  }
  0x1c   : > { %v2264_v33 = vld [vmem:[%s2375_s7 + $0x60] sm:$0xff]   ;;  %v2266_v35 = vld [vmem:[%s2375_s7 + $0x68] sm:$0xff]   ;;  %v2268_v37 = vld [vmem:[%s2375_s7 + $0x70] sm:$0xff]  }
  0x1d   : > { %634 = vmatpush1.bf16.msra.mxu0 %v2246_v8  ;;  %2207 = vmatpush1.bf16.msra.mxu1 %v2246_v8  ;;  %v2275_v34 = vld [vmem:[%s2375_s7 + $0xe0] sm:$0xff]   ;;  %v2276_v36 = vld [vmem:[%s2375_s7 + $0xe8] sm:$0xff]   ;;  %v2277_v38 = vld [vmem:[%s2375_s7 + $0xf0] sm:$0xff]  }
  0x1e   : > { %v2270_v39 = vld [vmem:[%s2375_s7 + $0x78] sm:$0xff]  }
  0x1f   : > { %v2278_v40 = vld [vmem:[%s2375_s7 + $0xf8] sm:$0xff]  }
  0x20   : > { %2034 = vmatmul.mubr.msk.bf16.vlgmr.msra.gmra.mrb[0].mxu0 %vm530_vm0, %v2247_v9  ;;  %2050 = vmatmul.mubr.msk.bf16.vlgmr.msra.gmra.mrb[0].mxu1 %vm530_vm0, %v2255_v10 }
  0x21   : > { %669 = vmatprep.mubr.bf16.mxu0 %v2303_v2  ;;  %829 = vmatprep.mubr.bf16.mxu1 %v2303_v2 }
  0x28   : > { %2035 = vmatmul.mubr.msk.bf16.gmra.mrb[4].mxu0 %vm530_vm0, %v2248_v11  ;;  %2051 = vmatmul.mubr.msk.bf16.gmra.mrb[4].mxu1 %vm530_vm0, %v2257_v12 }
  0x29   : > { %679 = vmatprep.mubr.bf16.mxu0 %v2303_v2  ;;  %839 = vmatprep.mubr.bf16.mxu1 %v2303_v2 }
  0x30   : > { %2036 = vmatmul.mubr.msk.bf16.gmra.mrb[8].mxu0 %vm530_vm0, %v2249_v13  ;;  %2052 = vmatmul.mubr.msk.bf16.gmra.mrb[8].mxu1 %vm530_vm0, %v2259_v14 }
  0x31   : > { %689 = vmatprep.mubr.bf16.mxu0 %v2303_v2  ;;  %849 = vmatprep.mubr.bf16.mxu1 %v2303_v2 }
  0x38   : > { %2037 = vmatmul.mubr.msk.bf16.gmra.mrb[12].mxu0 %vm530_vm0, %v2250_v15  ;;  %2053 = vmatmul.mubr.msk.bf16.gmra.mrb[12].mxu1 %vm530_vm0, %v2261_v16 }
  0x39   : > { %699 = vmatprep.mubr.bf16.mxu0 %v2303_v2  ;;  %859 = vmatprep.mubr.bf16.mxu1 %v2303_v2 }
  0x40   : > { %2038 = vmatmul.mubr.msk.bf16.gmra.mrb[16].mxu0 %vm530_vm0, %v2251_v17  ;;  %2054 = vmatmul.mubr.msk.bf16.gmra.mrb[16].mxu1 %vm530_vm0, %v2263_v18 }
  0x41   : > { %709 = vmatprep.mubr.bf16.mxu0 %v2303_v2  ;;  %869 = vmatprep.mubr.bf16.mxu1 %v2303_v2 }
  0x48   : > { %2039 = vmatmul.mubr.msk.bf16.gmra.mrb[20].mxu0 %vm530_vm0, %v2252_v19  ;;  %2055 = vmatmul.mubr.msk.bf16.gmra.mrb[20].mxu1 %vm530_vm0, %v2265_v20 }
  0x49   : > { %719 = vmatprep.mubr.bf16.mxu0 %v2303_v2  ;;  %879 = vmatprep.mubr.bf16.mxu1 %v2303_v2 }
  0x50   : > { %2040 = vmatmul.mubr.msk.bf16.gmra.mrb[24].mxu0 %vm530_vm0, %v2253_v21  ;;  %2056 = vmatmul.mubr.msk.bf16.gmra.mrb[24].mxu1 %vm530_vm0, %v2267_v22 }
  0x51   : > { %729 = vmatprep.mubr.bf16.mxu0 %v2303_v2  ;;  %889 = vmatprep.mubr.bf16.mxu1 %v2303_v2 }
  0x58   : > { %2041 = vmatmul.mubr.msk.bf16.gmra.mrb[28].mxu0 %vm530_vm0, %v2254_v23  ;;  %2057 = vmatmul.mubr.msk.bf16.gmra.mrb[28].mxu1 %vm530_vm0, %v2269_v24 }
  0x59   : > { %739 = vmatprep.mubr.bf16.mxu0 %v2303_v2  ;;  %899 = vmatprep.mubr.bf16.mxu1 %v2303_v2 }
  0x60   : > { %2042 = vmatmul.mubr.msk.bf16.gmra.mrb[32].mxu0 %vm530_vm0, %v2256_v25  ;;  %2058 = vmatmul.mubr.msk.bf16.gmra.mrb[32].mxu1 %vm530_vm0, %v2271_v26 }
  0x61   : > { %749 = vmatprep.mubr.bf16.mxu0 %v2303_v2  ;;  %909 = vmatprep.mubr.bf16.mxu1 %v2303_v2 }
  0x68   : > { %2043 = vmatmul.mubr.msk.bf16.gmra.mrb[36].mxu0 %vm530_vm0, %v2258_v27  ;;  %2059 = vmatmul.mubr.msk.bf16.gmra.mrb[36].mxu1 %vm530_vm0, %v2272_v28 }
  0x69   : > { %759 = vmatprep.mubr.bf16.mxu0 %v2303_v2  ;;  %919 = vmatprep.mubr.bf16.mxu1 %v2303_v2 }
  0x70   : > { %2044 = vmatmul.mubr.msk.bf16.gmra.mrb[40].mxu0 %vm530_vm0, %v2260_v29  ;;  %2060 = vmatmul.mubr.msk.bf16.gmra.mrb[40].mxu1 %vm530_vm0, %v2273_v30 }
  0x71   : > { %769 = vmatprep.mubr.bf16.mxu0 %v2303_v2  ;;  %929 = vmatprep.mubr.bf16.mxu1 %v2303_v2 }
  0x78   : > { %2045 = vmatmul.mubr.msk.bf16.gmra.mrb[44].mxu0 %vm530_vm0, %v2262_v31  ;;  %2061 = vmatmul.mubr.msk.bf16.gmra.mrb[44].mxu1 %vm530_vm0, %v2274_v32 }
  0x79   : > { %779 = vmatprep.mubr.bf16.mxu0 %v2303_v2  ;;  %939 = vmatprep.mubr.bf16.mxu1 %v2303_v2 }
  0x80   : > { %2046 = vmatmul.mubr.msk.bf16.gmra.mrb[48].mxu0 %vm530_vm0, %v2264_v33  ;;  %2062 = vmatmul.mubr.msk.bf16.gmra.mrb[48].mxu1 %vm530_vm0, %v2275_v34 }
  0x81   : > { %789 = vmatprep.mubr.bf16.mxu0 %v2303_v2  ;;  %949 = vmatprep.mubr.bf16.mxu1 %v2303_v2 }
  0x88   : > { %2047 = vmatmul.mubr.msk.bf16.gmra.mrb[52].mxu0 %vm530_vm0, %v2266_v35  ;;  %2063 = vmatmul.mubr.msk.bf16.gmra.mrb[52].mxu1 %vm530_vm0, %v2276_v36 }
  0x89   : > { %799 = vmatprep.mubr.bf16.mxu0 %v2303_v2  ;;  %959 = vmatprep.mubr.bf16.mxu1 %v2303_v2 }
  0x90   : > { %2048 = vmatmul.mubr.msk.bf16.gmra.mrb[56].mxu0 %vm530_vm0, %v2268_v37  ;;  %2064 = vmatmul.mubr.msk.bf16.gmra.mrb[56].mxu1 %vm530_vm0, %v2277_v38 }
  0x91   : > { %809 = vmatprep.mubr.bf16.mxu0 %v2303_v2  ;;  %969 = vmatprep.mubr.bf16.mxu1 %v2303_v2 }
  0x98   : > { %2049 = vmatmul.mubr.msk.bf16.gmra.mrb[60].mxu0 %vm530_vm0, %v2270_v39  ;;  %2065 = vmatmul.mubr.msk.bf16.gmra.mrb[60].mxu1 %vm530_vm0, %v2278_v40 }
  0xf3   : > { %v661_v48 = vpop.f32.mrb[0].mxu0  ;;  %v821_v49 = vpop.f32.mrb[0].mxu1 }
  0xf4   : > { %v662_v50 = vadd.f32 %v661_v48, %v2488_v46  ;;  %v663_v51 = vpop.f32.mrb[1].mxu0  ;;  %v2495_v52 = vadd.f32 %v821_v49, %v2488_v46  ;;  %v823_v53 = vpop.f32.mrb[1].mxu1 }
  0xf5   : > { %v664_v54 = vadd.f32 %v663_v51, %v2490_v47  ;;  %v665_v55 = vpop.f32.mrb[2].mxu0  ;;  %v2499_v56 = vadd.f32 %v823_v53, %v2490_v47  ;;  %v825_v57 = vpop.f32.mrb[2].mxu1 }
  0xf6   : > { %v666_v58 = vadd.f32 %v665_v55, %v2488_v46  ;;  %v667_v59 = vpop.f32.mrb[3].mxu0  ;;  %v827_v60 = vpop.f32.mrb[3].mxu1  ;;  %v2511_v0 = vadd.f32 %v825_v57, %v2488_v46  ;;  %v1593_v1 = vmul.f32 %v662_v50, %v662_v50 }
  0xf7   : > { %v2136_v61 = vpack.c.bf16 %v664_v54, %v662_v50  ;;  %v668_v62 = vadd.f32 %v667_v59, %v2490_v47  ;;  %v2168_v63 = vpack.c.bf16 %v2499_v56, %v2495_v52  ;;  %v1594_v2 = vmul.f32 %v664_v54, %v664_v54 }
  0xf8   : > { %v1429_v3 = vadd.f32 %v666_v58, %v662_v50  ;;  %v1595_v4 = vmul.f32 %v666_v58, %v666_v58  ;;  %v2516_v8 = vadd.f32 %v827_v60, %v2490_v47 }
  0xf9   : > { %1364 = vst [vmem:[%s2504_s24] sm:$0xff] %v2136_v61  ;;  %v2137_v5 = vpack.c.bf16 %v668_v62, %v666_v58  ;;  %v1498_v6 = vadd.f32 %v668_v62, %v664_v54  ;;  %v1596_v7 = vmul.f32 %v668_v62, %v668_v62  ;;  %1396 = vst [vmem:[%s2504_s24 + $0x100] sm:$0xff] %v2168_v63 }
  0xfa   : > { %v1721_v9 = vadd.f32 %v1595_v4, %v1593_v1  ;;  %v2169_v12 = vpack.c.bf16 %v2516_v8, %v2511_v0 }
  0xfb   : > { %1365 = vst [vmem:[%s2504_s24 + $0x8] sm:$0xff] %v2137_v5  ;;  %v1790_v10 = vadd.f32 %v1596_v7, %v1594_v2  ;;  %v671_v11 = vpop.f32.mrb[4].mxu0  ;;  %v831_v13 = vpop.f32.mrb[4].mxu1 }
  0xfc   : > { %v672_v14 = vadd.f32 %v671_v11, %v2488_v46  ;;  %v673_v15 = vpop.f32.mrb[5].mxu0  ;;  %v2523_v16 = vadd.f32 %v831_v13, %v2488_v46  ;;  %v833_v17 = vpop.f32.mrb[5].mxu1  ;;  %1397 = vst [vmem:[%s2504_s24 + $0x108] sm:$0xff] %v2169_v12 }
  0xfd   : > { %v674_v18 = vadd.f32 %v673_v15, %v2490_v47  ;;  %v675_v19 = vpop.f32.mrb[6].mxu0  ;;  %v2528_v20 = vadd.f32 %v833_v17, %v2490_v47  ;;  %v835_v21 = vpop.f32.mrb[6].mxu1 }
  0xfe   : > { %v1430_v22 = vadd.f32 %v1429_v3, %v672_v14  ;;  %v1597_v23 = vmul.f32 %v672_v14, %v672_v14  ;;  %v676_v24 = vadd.f32 %v675_v19, %v2488_v46  ;;  %v677_v25 = vpop.f32.mrb[7].mxu0  ;;  %v837_v26 = vpop.f32.mrb[7].mxu1  ;;  %v2537_v40 = vadd.f32 %v835_v21, %v2488_v46 }
  0xff   : > { %v2138_v27 = vpack.c.bf16 %v674_v18, %v672_v14  ;;  %v1499_v28 = vadd.f32 %v1498_v6, %v674_v18  ;;  %v1598_v29 = vmul.f32 %v674_v18, %v674_v18  ;;  %v678_v30 = vadd.f32 %v677_v25, %v2490_v47 }
 0x100   : > { %v1722_v31 = vadd.f32 %v1721_v9, %v1597_v23  ;;  %v1431_v32 = vadd.f32 %v1430_v22, %v676_v24  ;;  %v1599_v33 = vmul.f32 %v676_v24, %v676_v24  ;;  %v2170_v34 = vpack.c.bf16 %v2528_v20, %v2523_v16 }
 0x101   : > { %1366 = vst [vmem:[%s2504_s24 + $0x10] sm:$0xff] %v2138_v27  ;;  %v1791_v35 = vadd.f32 %v1790_v10, %v1598_v29  ;;  %v2139_v36 = vpack.c.bf16 %v678_v30, %v676_v24  ;;  %v1500_v37 = vadd.f32 %v1499_v28, %v678_v30  ;;  %v1600_v38 = vmul.f32 %v678_v30, %v678_v30 }
 0x102   : > { %v1723_v39 = vadd.f32 %v1722_v31, %v1599_v33  ;;  %1398 = vst [vmem:[%s2504_s24 + $0x110] sm:$0xff] %v2170_v34  ;;  %v2540_v43 = vadd.f32 %v837_v26, %v2490_v47 }
 0x103   : > { %1367 = vst [vmem:[%s2504_s24 + $0x18] sm:$0xff] %v2139_v36  ;;  %v1792_v44 = vadd.f32 %v1791_v35, %v1600_v38  ;;  %v681_v45 = vpop.f32.mrb[8].mxu0  ;;  %v841_v48 = vpop.f32.mrb[8].mxu1 }
 0x104   : > { %v682_v49 = vadd.f32 %v681_v45, %v2488_v46  ;;  %v683_v50 = vpop.f32.mrb[9].mxu0  ;;  %v2171_v51 = vpack.c.bf16 %v2540_v43, %v2537_v40  ;;  %v843_v53 = vpop.f32.mrb[9].mxu1  ;;  %v2548_v57 = vadd.f32 %v841_v48, %v2488_v46 }
 0x105   : > { %v684_v54 = vadd.f32 %v683_v50, %v2490_v47  ;;  %v685_v55 = vpop.f32.mrb[10].mxu0  ;;  %v845_v58 = vpop.f32.mrb[10].mxu1  ;;  %v2553_v63 = vadd.f32 %v843_v53, %v2490_v47 }
 0x106   : > { %v1432_v59 = vadd.f32 %v1431_v32, %v682_v49  ;;  %v1601_v60 = vmul.f32 %v682_v49, %v682_v49  ;;  %v686_v61 = vadd.f32 %v685_v55, %v2488_v46  ;;  %v687_v62 = vpop.f32.mrb[11].mxu0  ;;  %1399 = vst [vmem:[%s2504_s24 + $0x118] sm:$0xff] %v2171_v51  ;;  %v847_v1 = vpop.f32.mrb[11].mxu1  ;;  %v2557_v10 = vadd.f32 %v845_v58, %v2488_v46 }
 0x107   : > { %v2140_v2 = vpack.c.bf16 %v684_v54, %v682_v49  ;;  %v1501_v3 = vadd.f32 %v1500_v37, %v684_v54  ;;  %v1602_v4 = vmul.f32 %v684_v54, %v684_v54  ;;  %v688_v5 = vadd.f32 %v687_v62, %v2490_v47 }
 0x108   : > { %v1724_v6 = vadd.f32 %v1723_v39, %v1601_v60  ;;  %v1433_v7 = vadd.f32 %v1432_v59, %v686_v61  ;;  %v1603_v9 = vmul.f32 %v686_v61, %v686_v61  ;;  %v2172_v17 = vpack.c.bf16 %v2553_v63, %v2548_v57 }
 0x109   : > { %1368 = vst [vmem:[%s2504_s24 + $0x20] sm:$0xff] %v2140_v2  ;;  %v1793_v11 = vadd.f32 %v1792_v44, %v1602_v4  ;;  %v2141_v12 = vpack.c.bf16 %v688_v5, %v686_v61  ;;  %v1502_v13 = vadd.f32 %v1501_v3, %v688_v5  ;;  %v1604_v14 = vmul.f32 %v688_v5, %v688_v5 }
 0x10a   : > { %v1725_v15 = vadd.f32 %v1724_v6, %v1603_v9  ;;  %v2564_v21 = vadd.f32 %v847_v1, %v2490_v47  ;;  %1400 = vst [vmem:[%s2504_s24 + $0x120] sm:$0xff] %v2172_v17 }
 0x10b   : > { %1369 = vst [vmem:[%s2504_s24 + $0x28] sm:$0xff] %v2141_v12  ;;  %v1794_v18 = vadd.f32 %v1793_v11, %v1604_v14  ;;  %v691_v19 = vpop.f32.mrb[12].mxu0  ;;  %v851_v22 = vpop.f32.mrb[12].mxu1 }
 0x10c   : > { %v692_v23 = vadd.f32 %v691_v19, %v2488_v46  ;;  %v693_v24 = vpop.f32.mrb[13].mxu0  ;;  %v2569_v25 = vadd.f32 %v851_v22, %v2488_v46  ;;  %v853_v26 = vpop.f32.mrb[13].mxu1  ;;  %v2173_v29 = vpack.c.bf16 %v2564_v21, %v2557_v10 }
 0x10d   : > { %v694_v27 = vadd.f32 %v693_v24, %v2490_v47  ;;  %v695_v28 = vpop.f32.mrb[14].mxu0  ;;  %v2575_v30 = vadd.f32 %v853_v26, %v2490_v47  ;;  %v855_v31 = vpop.f32.mrb[14].mxu1 }
 0x10e   : > { %v1434_v32 = vadd.f32 %v1433_v7, %v692_v23  ;;  %v1605_v33 = vmul.f32 %v692_v23, %v692_v23  ;;  %v696_v34 = vadd.f32 %v695_v28, %v2488_v46  ;;  %v697_v35 = vpop.f32.mrb[15].mxu0  ;;  %v857_v36 = vpop.f32.mrb[15].mxu1  ;;  %1401 = vst [vmem:[%s2504_s24 + $0x128] sm:$0xff] %v2173_v29  ;;  %v2585_v59 = vadd.f32 %v855_v31, %v2488_v46 }
 0x10f   : > { %v2142_v37 = vpack.c.bf16 %v694_v27, %v692_v23  ;;  %v1503_v38 = vadd.f32 %v1502_v13, %v694_v27  ;;  %v1606_v39 = vmul.f32 %v694_v27, %v694_v27  ;;  %v698_v44 = vadd.f32 %v697_v35, %v2490_v47 }
 0x110   : > { %v1726_v45 = vadd.f32 %v1725_v15, %v1605_v33  ;;  %v1435_v48 = vadd.f32 %v1434_v32, %v696_v34  ;;  %v1607_v49 = vmul.f32 %v696_v34, %v696_v34  ;;  %v2174_v50 = vpack.c.bf16 %v2575_v30, %v2569_v25 }
 0x111   : > { %1370 = vst [vmem:[%s2504_s24 + $0x30] sm:$0xff] %v2142_v37  ;;  %v1795_v51 = vadd.f32 %v1794_v18, %v1606_v39  ;;  %v2143_v53 = vpack.c.bf16 %v698_v44, %v696_v34  ;;  %v1504_v54 = vadd.f32 %v1503_v38, %v698_v44  ;;  %v1608_v55 = vmul.f32 %v698_v44, %v698_v44 }
 0x112   : > { %v1727_v58 = vadd.f32 %v1726_v45, %v1607_v49  ;;  %1402 = vst [vmem:[%s2504_s24 + $0x130] sm:$0xff] %v2174_v50  ;;  %v2588_v60 = vadd.f32 %v857_v36, %v2490_v47 }
 0x113   : > { %1371 = vst [vmem:[%s2504_s24 + $0x38] sm:$0xff] %v2143_v53  ;;  %v1796_v61 = vadd.f32 %v1795_v51, %v1608_v55  ;;  %v701_v62 = vpop.f32.mrb[16].mxu0  ;;  %v861_v1 = vpop.f32.mrb[16].mxu1 }
 0x114   : > { %v702_v2 = vadd.f32 %v701_v62, %v2488_v46  ;;  %v703_v3 = vpop.f32.mrb[17].mxu0  ;;  %v2175_v4 = vpack.c.bf16 %v2588_v60, %v2585_v59  ;;  %v863_v5 = vpop.f32.mrb[17].mxu1  ;;  %v2596_v9 = vadd.f32 %v861_v1, %v2488_v46 }
 0x115   : > { %v704_v6 = vadd.f32 %v703_v3, %v2490_v47  ;;  %v705_v7 = vpop.f32.mrb[18].mxu0  ;;  %v865_v11 = vpop.f32.mrb[18].mxu1  ;;  %v2601_v17 = vadd.f32 %v863_v5, %v2490_v47 }
 0x116   : > { %v1436_v12 = vadd.f32 %v1435_v48, %v702_v2  ;;  %v1609_v13 = vmul.f32 %v702_v2, %v702_v2  ;;  %v706_v14 = vadd.f32 %v705_v7, %v2488_v46  ;;  %v707_v15 = vpop.f32.mrb[19].mxu0  ;;  %1403 = vst [vmem:[%s2504_s24 + $0x138] sm:$0xff] %v2175_v4  ;;  %v867_v18 = vpop.f32.mrb[19].mxu1  ;;  %v2605_v29 = vadd.f32 %v865_v11, %v2488_v46 }
 0x117   : > { %v2144_v19 = vpack.c.bf16 %v704_v6, %v702_v2  ;;  %v1505_v22 = vadd.f32 %v1504_v54, %v704_v6  ;;  %v1610_v23 = vmul.f32 %v704_v6, %v704_v6  ;;  %v708_v24 = vadd.f32 %v707_v15, %v2490_v47 }
 0x118   : > { %v1728_v26 = vadd.f32 %v1727_v58, %v1609_v13  ;;  %v1437_v27 = vadd.f32 %v1436_v12, %v706_v14  ;;  %v1611_v28 = vmul.f32 %v706_v14, %v706_v14  ;;  %v2176_v36 = vpack.c.bf16 %v2601_v17, %v2596_v9 }
 0x119   : > { %1372 = vst [vmem:[%s2504_s24 + $0x40] sm:$0xff] %v2144_v19  ;;  %v1797_v31 = vadd.f32 %v1796_v61, %v1610_v23  ;;  %v2145_v32 = vpack.c.bf16 %v708_v24, %v706_v14  ;;  %v1506_v33 = vadd.f32 %v1505_v22, %v708_v24  ;;  %v1612_v34 = vmul.f32 %v708_v24, %v708_v24 }
 0x11a   : > { %v1729_v35 = vadd.f32 %v1728_v26, %v1611_v28  ;;  %v2612_v39 = vadd.f32 %v867_v18, %v2490_v47  ;;  %1404 = vst [vmem:[%s2504_s24 + $0x140] sm:$0xff] %v2176_v36 }
 0x11b   : > { %1373 = vst [vmem:[%s2504_s24 + $0x48] sm:$0xff] %v2145_v32  ;;  %v1798_v37 = vadd.f32 %v1797_v31, %v1612_v34  ;;  %v711_v38 = vpop.f32.mrb[20].mxu0  ;;  %v871_v44 = vpop.f32.mrb[20].mxu1 }
 0x11c   : > { %v712_v45 = vadd.f32 %v711_v38, %v2488_v46  ;;  %v713_v48 = vpop.f32.mrb[21].mxu0  ;;  %v2617_v49 = vadd.f32 %v871_v44, %v2488_v46  ;;  %v873_v50 = vpop.f32.mrb[21].mxu1  ;;  %v2177_v54 = vpack.c.bf16 %v2612_v39, %v2605_v29 }
 0x11d   : > { %v714_v51 = vadd.f32 %v713_v48, %v2490_v47  ;;  %v715_v53 = vpop.f32.mrb[22].mxu0  ;;  %v2623_v55 = vadd.f32 %v873_v50, %v2490_v47  ;;  %v875_v58 = vpop.f32.mrb[22].mxu1 }
 0x11e   : > { %v1438_v61 = vadd.f32 %v1437_v27, %v712_v45  ;;  %v1613_v62 = vmul.f32 %v712_v45, %v712_v45  ;;  %v716_v1 = vadd.f32 %v715_v53, %v2488_v46  ;;  %v717_v2 = vpop.f32.mrb[23].mxu0  ;;  %v877_v3 = vpop.f32.mrb[23].mxu1  ;;  %1405 = vst [vmem:[%s2504_s24 + $0x148] sm:$0xff] %v2177_v54  ;;  %v2633_v24 = vadd.f32 %v875_v58, %v2488_v46 }
 0x11f   : > { %v2146_v4 = vpack.c.bf16 %v714_v51, %v712_v45  ;;  %v1507_v5 = vadd.f32 %v1506_v33, %v714_v51  ;;  %v1614_v6 = vmul.f32 %v714_v51, %v714_v51  ;;  %v718_v7 = vadd.f32 %v717_v2, %v2490_v47 }
 0x120   : > { %v1730_v11 = vadd.f32 %v1729_v35, %v1613_v62  ;;  %v1439_v12 = vadd.f32 %v1438_v61, %v716_v1  ;;  %v1615_v13 = vmul.f32 %v716_v1, %v716_v1  ;;  %v2178_v14 = vpack.c.bf16 %v2623_v55, %v2617_v49 }
 0x121   : > { %1374 = vst [vmem:[%s2504_s24 + $0x50] sm:$0xff] %v2146_v4  ;;  %v1799_v15 = vadd.f32 %v1798_v37, %v1614_v6  ;;  %v2147_v18 = vpack.c.bf16 %v718_v7, %v716_v1  ;;  %v1508_v19 = vadd.f32 %v1507_v5, %v718_v7  ;;  %v1616_v22 = vmul.f32 %v718_v7, %v718_v7 }
 0x122   : > { %v1731_v23 = vadd.f32 %v1730_v11, %v1615_v13  ;;  %1406 = vst [vmem:[%s2504_s24 + $0x150] sm:$0xff] %v2178_v14  ;;  %v2636_v26 = vadd.f32 %v877_v3, %v2490_v47 }
 0x123   : > { %1375 = vst [vmem:[%s2504_s24 + $0x58] sm:$0xff] %v2147_v18  ;;  %v1800_v27 = vadd.f32 %v1799_v15, %v1616_v22  ;;  %v721_v28 = vpop.f32.mrb[24].mxu0  ;;  %v881_v31 = vpop.f32.mrb[24].mxu1 }
 0x124   : > { %v722_v32 = vadd.f32 %v721_v28, %v2488_v46  ;;  %v723_v33 = vpop.f32.mrb[25].mxu0  ;;  %v2179_v34 = vpack.c.bf16 %v2636_v26, %v2633_v24  ;;  %v883_v35 = vpop.f32.mrb[25].mxu1  ;;  %v2644_v38 = vadd.f32 %v881_v31, %v2488_v46 }
 0x125   : > { %v724_v36 = vadd.f32 %v723_v33, %v2490_v47  ;;  %v725_v37 = vpop.f32.mrb[26].mxu0  ;;  %v885_v44 = vpop.f32.mrb[26].mxu1  ;;  %v2649_v53 = vadd.f32 %v883_v35, %v2490_v47 }
 0x126   : > { %v1440_v45 = vadd.f32 %v1439_v12, %v722_v32  ;;  %v1617_v48 = vmul.f32 %v722_v32, %v722_v32  ;;  %v726_v50 = vadd.f32 %v725_v37, %v2488_v46  ;;  %v727_v51 = vpop.f32.mrb[27].mxu0  ;;  %1407 = vst [vmem:[%s2504_s24 + $0x158] sm:$0xff] %v2179_v34  ;;  %v887_v54 = vpop.f32.mrb[27].mxu1  ;;  %v2653_v5 = vadd.f32 %v885_v44, %v2488_v46 }
 0x127   : > { %v2148_v58 = vpack.c.bf16 %v724_v36, %v722_v32  ;;  %v1509_v61 = vadd.f32 %v1508_v19, %v724_v36  ;;  %v1618_v62 = vmul.f32 %v724_v36, %v724_v36  ;;  %v728_v1 = vadd.f32 %v727_v51, %v2490_v47 }
 0x128   : > { %v1732_v2 = vadd.f32 %v1731_v23, %v1617_v48  ;;  %v1441_v3 = vadd.f32 %v1440_v45, %v726_v50  ;;  %v1619_v4 = vmul.f32 %v726_v50, %v726_v50  ;;  %v2180_v14 = vpack.c.bf16 %v2649_v53, %v2644_v38 }
 0x129   : > { %1376 = vst [vmem:[%s2504_s24 + $0x60] sm:$0xff] %v2148_v58  ;;  %v1801_v6 = vadd.f32 %v1800_v27, %v1618_v62  ;;  %v2149_v7 = vpack.c.bf16 %v728_v1, %v726_v50  ;;  %v1510_v11 = vadd.f32 %v1509_v61, %v728_v1  ;;  %v1620_v12 = vmul.f32 %v728_v1, %v728_v1 }
 0x12a   : > { %v1733_v13 = vadd.f32 %v1732_v2, %v1619_v4  ;;  %v2660_v19 = vadd.f32 %v887_v54, %v2490_v47  ;;  %1408 = vst [vmem:[%s2504_s24 + $0x160] sm:$0xff] %v2180_v14 }
 0x12b   : > { %1377 = vst [vmem:[%s2504_s24 + $0x68] sm:$0xff] %v2149_v7  ;;  %v1802_v15 = vadd.f32 %v1801_v6, %v1620_v12  ;;  %v731_v18 = vpop.f32.mrb[28].mxu0  ;;  %v891_v22 = vpop.f32.mrb[28].mxu1 }
 0x12c   : > { %v732_v23 = vadd.f32 %v731_v18, %v2488_v46  ;;  %v733_v28 = vpop.f32.mrb[29].mxu0  ;;  %v2665_v27 = vadd.f32 %v891_v22, %v2488_v46  ;;  %v893_v31 = vpop.f32.mrb[29].mxu1  ;;  %v2181_v34 = vpack.c.bf16 %v2660_v19, %v2653_v5 }
 0x12d   : > { %v734_v32 = vadd.f32 %v733_v28, %v2490_v47  ;;  %v735_v33 = vpop.f32.mrb[30].mxu0  ;;  %v2671_v35 = vadd.f32 %v893_v31, %v2490_v47  ;;  %v895_v36 = vpop.f32.mrb[30].mxu1 }
 0x12e   : > { %v1442_v37 = vadd.f32 %v1441_v3, %v732_v23  ;;  %v1621_v44 = vmul.f32 %v732_v23, %v732_v23  ;;  %v736_v45 = vadd.f32 %v735_v33, %v2488_v46  ;;  %v737_v48 = vpop.f32.mrb[31].mxu0  ;;  %v897_v50 = vpop.f32.mrb[31].mxu1  ;;  %1409 = vst [vmem:[%s2504_s24 + $0x168] sm:$0xff] %v2181_v34 }
 0x12f   : > { %v2150_v51 = vpack.c.bf16 %v734_v32, %v732_v23  ;;  %v1511_v54 = vadd.f32 %v1510_v11, %v734_v32  ;;  %v1622_v58 = vmul.f32 %v734_v32, %v734_v32  ;;  %v738_v61 = vadd.f32 %v737_v48, %v2490_v47 }
 0x130   : > { %v1734_v62 = vadd.f32 %v1733_v13, %v1621_v44  ;;  %v1443_v1 = vadd.f32 %v1442_v37, %v736_v45  ;;  %v1623_v2 = vmul.f32 %v736_v45, %v736_v45  ;;  %v2182_v4 = vpack.c.bf16 %v2671_v35, %v2665_v27 }
 0x131   : > { %1378 = vst [vmem:[%s2504_s24 + $0x70] sm:$0xff] %v2150_v51  ;;  %v1803_v3 = vadd.f32 %v1802_v15, %v1622_v58  ;;  %v2151_v6 = vpack.c.bf16 %v738_v61, %v736_v45  ;;  %v1512_v7 = vadd.f32 %v1511_v54, %v738_v61  ;;  %v1624_v12 = vmul.f32 %v738_v61, %v738_v61 }
 0x132   : > { %v1735_v14 = vadd.f32 %v1734_v62, %v1623_v2  ;;  %1410 = vst [vmem:[%s2504_s24 + $0x170] sm:$0xff] %v2182_v4  ;;  %v2681_v11 = vadd.f32 %v895_v36, %v2488_v46  ;;  %v2684_v18 = vadd.f32 %v897_v50, %v2490_v47 }
 0x133   : > { %1379 = vst [vmem:[%s2504_s24 + $0x78] sm:$0xff] %v2151_v6  ;;  %v1804_v13 = vadd.f32 %v1803_v3, %v1624_v12  ;;  %v741_v22 = vpop.f32.mrb[32].mxu0  ;;  %v901_v23 = vpop.f32.mrb[32].mxu1 }
 0x134   : > { %v742_v28 = vadd.f32 %v741_v22, %v2488_v46  ;;  %v743_v31 = vpop.f32.mrb[33].mxu0  ;;  %v2183_v15 = vpack.c.bf16 %v2684_v18, %v2681_v11  ;;  %v903_v32 = vpop.f32.mrb[33].mxu1  ;;  %v2692_v36 = vadd.f32 %v901_v23, %v2488_v46 }
 0x135   : > { %v744_v33 = vadd.f32 %v743_v31, %v2490_v47  ;;  %v745_v34 = vpop.f32.mrb[34].mxu0  ;;  %v905_v37 = vpop.f32.mrb[34].mxu1  ;;  %v2697_v51 = vadd.f32 %v903_v32, %v2490_v47 }
 0x136   : > { %v1444_v44 = vadd.f32 %v1443_v1, %v742_v28  ;;  %v1625_v45 = vmul.f32 %v742_v28, %v742_v28  ;;  %v746_v48 = vadd.f32 %v745_v34, %v2488_v46  ;;  %v747_v50 = vpop.f32.mrb[35].mxu0  ;;  %1411 = vst [vmem:[%s2504_s24 + $0x178] sm:$0xff] %v2183_v15  ;;  %v907_v54 = vpop.f32.mrb[35].mxu1  ;;  %v2702_v6 = vadd.f32 %v905_v37, %v2488_v46 }
 0x137   : > { %v2152_v58 = vpack.c.bf16 %v744_v33, %v742_v28  ;;  %v1513_v61 = vadd.f32 %v1512_v7, %v744_v33  ;;  %v1626_v62 = vmul.f32 %v744_v33, %v744_v33  ;;  %v748_v2 = vadd.f32 %v747_v50, %v2490_v47 }
 0x138   : > { %v1736_v4 = vadd.f32 %v1735_v14, %v1625_v45  ;;  %v1445_v1 = vadd.f32 %v1444_v44, %v746_v48  ;;  %v1627_v3 = vmul.f32 %v746_v48, %v746_v48  ;;  %v2184_v7 = vpack.c.bf16 %v2697_v51, %v2692_v36 }
 0x139   : > { %1380 = vst [vmem:[%s2504_s24 + $0x80] sm:$0xff] %v2152_v58  ;;  %v1805_v12 = vadd.f32 %v1804_v13, %v1626_v62  ;;  %v2153_v22 = vpack.c.bf16 %v748_v2, %v746_v48  ;;  %v1514_v23 = vadd.f32 %v1513_v61, %v748_v2  ;;  %v1628_v31 = vmul.f32 %v748_v2, %v748_v2 }
 0x13a   : > { %v1737_v28 = vadd.f32 %v1736_v4, %v1627_v3  ;;  %v2710_v14 = vadd.f32 %v907_v54, %v2490_v47  ;;  %1412 = vst [vmem:[%s2504_s24 + $0x180] sm:$0xff] %v2184_v7  ;;  %v2304_v61 = vmov 0.0  }
 0x13b   : > { %1381 = vst [vmem:[%s2504_s24 + $0x88] sm:$0xff] %v2153_v22  ;;  %v1806_v15 = vadd.f32 %v1805_v12, %v1628_v31  ;;  %v751_v32 = vpop.f32.mrb[36].mxu0  ;;  %v911_v33 = vpop.f32.mrb[36].mxu1  ;;  %245 = vst [vmem:[%s2720_s27] sm:$0xf] %v2304_v61 }
 0x13c   : > { %3153 = vst [vmem:[#allocation3_spill] sm:$0xff] %v2710_v14  ;;  %v752_v34 = vadd.f32 %v751_v32, %v2488_v46  ;;  %v753_v37 = vpop.f32.mrb[37].mxu0  ;;  %v2715_v13 = vadd.f32 %v911_v33, %v2488_v46  ;;  %v913_v44 = vpop.f32.mrb[37].mxu1  ;;  %v2185_v50 = vpack.c.bf16 %v2710_v14, %v2702_v6 }
 0x13d   : > { %v754_v45 = vadd.f32 %v753_v37, %v2490_v47  ;;  %v755_v48 = vpop.f32.mrb[38].mxu0  ;;  %v2726_v54 = vadd.f32 %v913_v44, %v2490_v47  ;;  %v915_v58 = vpop.f32.mrb[38].mxu1 }
 0x13e   : > { %3154 = vst [vmem:[#allocation4_spill] sm:$0xff] %v2715_v13  ;;  %v1446_v62 = vadd.f32 %v1445_v1, %v752_v34  ;;  %v1629_v2 = vmul.f32 %v752_v34, %v752_v34  ;;  %v756_v4 = vadd.f32 %v755_v48, %v2488_v46  ;;  %v757_v3 = vpop.f32.mrb[39].mxu0  ;;  %v917_v12 = vpop.f32.mrb[39].mxu1  ;;  %1413 = vst [vmem:[%s2504_s24 + $0x188] sm:$0xff] %v2185_v50 }
 0x13f   : > { %3155 = vst [vmem:[#allocation5_spill] sm:$0xff] %v2726_v54  ;;  %v2154_v22 = vpack.c.bf16 %v754_v45, %v752_v34  ;;  %v1515_v31 = vadd.f32 %v1514_v23, %v754_v45  ;;  %v1630_v7 = vmul.f32 %v754_v45, %v754_v45  ;;  %v758_v32 = vadd.f32 %v757_v3, %v2490_v47 }
 0x140   : > { %v1738_v33 = vadd.f32 %v1737_v28, %v1629_v2  ;;  %v1447_v37 = vadd.f32 %v1446_v62, %v756_v4  ;;  %v1631_v44 = vmul.f32 %v756_v4, %v756_v4  ;;  %v2186_v61 = vpack.c.bf16 %v2726_v54, %v2715_v13 }
 0x141   : > { %1382 = vst [vmem:[%s2504_s24 + $0x90] sm:$0xff] %v2154_v22  ;;  %v1807_v1 = vadd.f32 %v1806_v15, %v1630_v7  ;;  %v2155_v41 = vpack.c.bf16 %v758_v32, %v756_v4  ;;  %v1516_v48 = vadd.f32 %v1515_v31, %v758_v32  ;;  %v1632_v42 = vmul.f32 %v758_v32, %v758_v32 }
 0x142   : > { %v1739_v14 = vadd.f32 %v1738_v33, %v1631_v44  ;;  %1414 = vst [vmem:[%s2504_s24 + $0x190] sm:$0xff] %v2186_v61  ;;  %v2737_v23 = vadd.f32 %v915_v58, %v2488_v46  ;;  %v2740_v34 = vadd.f32 %v917_v12, %v2490_v47 }
 0x143   : > { %1383 = vst [vmem:[%s2504_s24 + $0x98] sm:$0xff] %v2155_v41  ;;  %v1808_v28 = vadd.f32 %v1807_v1, %v1632_v42  ;;  %v761_v45 = vpop.f32.mrb[40].mxu0  ;;  %v921_v50 = vpop.f32.mrb[40].mxu1 }
 0x144   : > { %3156 = vst [vmem:[#allocation6_spill] sm:$0xff] %v2737_v23  ;;  %3157 = vst [vmem:[#allocation7_spill] sm:$0xff] %v2740_v34  ;;  %v762_v62 = vadd.f32 %v761_v45, %v2488_v46  ;;  %v763_v2 = vpop.f32.mrb[41].mxu0  ;;  %v2187_v15 = vpack.c.bf16 %v2740_v34, %v2737_v23  ;;  %v923_v4 = vpop.f32.mrb[41].mxu1  ;;  %v2748_v58 = vadd.f32 %v921_v50, %v2488_v46 }
 0x145   : > { %v764_v3 = vadd.f32 %v763_v2, %v2490_v47  ;;  %v765_v22 = vpop.f32.mrb[42].mxu0  ;;  %v925_v12 = vpop.f32.mrb[42].mxu1  ;;  %v2753_v32 = vadd.f32 %v923_v4, %v2490_v47 }
 0x146   : > { %3158 = vst [vmem:[#allocation8_spill] sm:$0xff] %v2748_v58  ;;  %v1448_v41 = vadd.f32 %v1447_v37, %v762_v62  ;;  %v1633_v31 = vmul.f32 %v762_v62, %v762_v62  ;;  %v766_v42 = vadd.f32 %v765_v22, %v2488_v46  ;;  %v767_v7 = vpop.f32.mrb[43].mxu0  ;;  %1415 = vst [vmem:[%s2504_s24 + $0x198] sm:$0xff] %v2187_v15  ;;  %v927_v33 = vpop.f32.mrb[43].mxu1 }
 0x147   : > { %3159 = vst [vmem:[#allocation9_spill] sm:$0xff] %v2753_v32  ;;  %v2156_v44 = vpack.c.bf16 %v764_v3, %v762_v62  ;;  %v1517_v61 = vadd.f32 %v1516_v48, %v764_v3  ;;  %v1634_v1 = vmul.f32 %v764_v3, %v764_v3  ;;  %v768_v45 = vadd.f32 %v767_v7, %v2490_v47 }
 0x148   : > { %v1740_v50 = vadd.f32 %v1739_v14, %v1633_v31  ;;  %v1449_v2 = vadd.f32 %v1448_v41, %v766_v42  ;;  %v1635_v34 = vmul.f32 %v766_v42, %v766_v42  ;;  %v2757_v37 = vadd.f32 %v925_v12, %v2488_v46 }
 0x149   : > { %1384 = vst [vmem:[%s2504_s24 + $0xa0] sm:$0xff] %v2156_v44  ;;  %v1809_v22 = vadd.f32 %v1808_v28, %v1634_v1  ;;  %v2157_v15 = vpack.c.bf16 %v768_v45, %v766_v42  ;;  %v1518_v23 = vadd.f32 %v1517_v61, %v768_v45  ;;  %v1636_v4 = vmul.f32 %v768_v45, %v768_v45 }
 0x14a   : > { %3160 = vst [vmem:[#allocation10_spill] sm:$0xff] %v2757_v37  ;;  %v1741_v54 = vadd.f32 %v1740_v50, %v1635_v34  ;;  %v2188_v62 = vpack.c.bf16 %v2753_v32, %v2748_v58  ;;  %v2764_v14 = vadd.f32 %v927_v33, %v2490_v47 }
 0x14b   : > { %1385 = vst [vmem:[%s2504_s24 + $0xa8] sm:$0xff] %v2157_v15  ;;  %v1810_v48 = vadd.f32 %v1809_v22, %v1636_v4  ;;  %v771_v3 = vpop.f32.mrb[44].mxu0  ;;  %v931_v41 = vpop.f32.mrb[44].mxu1 }
 0x14c   : > { %3161 = vst [vmem:[#allocation11_spill] sm:$0xff] %v2764_v14  ;;  %v772_v31 = vadd.f32 %v771_v3, %v2488_v46  ;;  %v773_v12 = vpop.f32.mrb[45].mxu0  ;;  %1416 = vst [vmem:[%s2504_s24 + $0x1a0] sm:$0xff] %v2188_v62  ;;  %v2769_v28 = vadd.f32 %v931_v41, %v2488_v46  ;;  %v933_v42 = vpop.f32.mrb[45].mxu1  ;;  %v2189_v44 = vpack.c.bf16 %v2764_v14, %v2757_v37 }
 0x14d   : > { %v774_v34 = vadd.f32 %v773_v12, %v2490_v47  ;;  %v775_v7 = vpop.f32.mrb[46].mxu0  ;;  %v2775_v61 = vadd.f32 %v933_v42, %v2490_v47  ;;  %v935_v33 = vpop.f32.mrb[46].mxu1 }
 0x14e   : > { %3162 = vst [vmem:[#allocation12_spill] sm:$0xff] %v2769_v28  ;;  %v1450_v1 = vadd.f32 %v1449_v2, %v772_v31  ;;  %v1637_v45 = vmul.f32 %v772_v31, %v772_v31  ;;  %v776_v50 = vadd.f32 %v775_v7, %v2488_v46  ;;  %v777_v22 = vpop.f32.mrb[47].mxu0  ;;  %v937_v15 = vpop.f32.mrb[47].mxu1  ;;  %1417 = vst [vmem:[%s2504_s24 + $0x1a8] sm:$0xff] %v2189_v44 }
 0x14f   : > { %3163 = vst [vmem:[#allocation13_spill] sm:$0xff] %v2775_v61  ;;  %v2158_v4 = vpack.c.bf16 %v774_v34, %v772_v31  ;;  %v1519_v62 = vadd.f32 %v1518_v23, %v774_v34  ;;  %v1638_v3 = vmul.f32 %v774_v34, %v774_v34  ;;  %v778_v41 = vadd.f32 %v777_v22, %v2490_v47 }
 0x150   : > { %v1742_v12 = vadd.f32 %v1741_v54, %v1637_v45  ;;  %v1451_v14 = vadd.f32 %v1450_v1, %v776_v50  ;;  %v1639_v42 = vmul.f32 %v776_v50, %v776_v50  ;;  %v2190_v37 = vpack.c.bf16 %v2775_v61, %v2769_v28 }
 0x151   : > { %1386 = vst [vmem:[%s2504_s24 + $0xb0] sm:$0xff] %v2158_v4  ;;  %v1811_v2 = vadd.f32 %v1810_v48, %v1638_v3  ;;  %v2159_v32 = vpack.c.bf16 %v778_v41, %v776_v50  ;;  %v1520_v7 = vadd.f32 %v1519_v62, %v778_v41  ;;  %v1640_v58 = vmul.f32 %v778_v41, %v778_v41 }
 0x152   : > { %v1743_v13 = vadd.f32 %v1742_v12, %v1639_v42  ;;  %1418 = vst [vmem:[%s2504_s24 + $0x1b0] sm:$0xff] %v2190_v37  ;;  %v2785_v23 = vadd.f32 %v935_v33, %v2488_v46  ;;  %v2788_v31 = vadd.f32 %v937_v15, %v2490_v47 }
 0x153   : > { %1387 = vst [vmem:[%s2504_s24 + $0xb8] sm:$0xff] %v2159_v32  ;;  %v1812_v54 = vadd.f32 %v1811_v2, %v1640_v58  ;;  %v781_v34 = vpop.f32.mrb[48].mxu0  ;;  %v941_v44 = vpop.f32.mrb[48].mxu1 }
 0x154   : > { %3164 = vst [vmem:[#allocation14_spill] sm:$0xff] %v2785_v23  ;;  %3165 = vst [vmem:[#allocation15_spill] sm:$0xff] %v2788_v31  ;;  %v782_v1 = vadd.f32 %v781_v34, %v2488_v46  ;;  %v783_v45 = vpop.f32.mrb[49].mxu0  ;;  %v2191_v48 = vpack.c.bf16 %v2788_v31, %v2785_v23  ;;  %v943_v50 = vpop.f32.mrb[49].mxu1  ;;  %v2796_v33 = vadd.f32 %v941_v44, %v2488_v46 }
 0x155   : > { %v784_v37 = vadd.f32 %v783_v45, %v2490_v47  ;;  %v785_v22 = vpop.f32.mrb[50].mxu0  ;;  %v945_v15 = vpop.f32.mrb[50].mxu1  ;;  %v2801_v3 = vadd.f32 %v943_v50, %v2490_v47 }
 0x156   : > { %3166 = vst [vmem:[#allocation16_spill] sm:$0xff] %v2796_v33  ;;  %v1452_v32 = vadd.f32 %v1451_v14, %v782_v1  ;;  %v1641_v4 = vmul.f32 %v782_v1, %v782_v1  ;;  %v786_v58 = vadd.f32 %v785_v22, %v2488_v46  ;;  %v787_v62 = vpop.f32.mrb[51].mxu0  ;;  %1419 = vst [vmem:[%s2504_s24 + $0x1b8] sm:$0xff] %v2191_v48  ;;  %v947_v41 = vpop.f32.mrb[51].mxu1 }
 0x157   : > { %3167 = vst [vmem:[#allocation17_spill] sm:$0xff] %v2801_v3  ;;  %v2160_v12 = vpack.c.bf16 %v784_v37, %v782_v1  ;;  %v1521_v42 = vadd.f32 %v1520_v7, %v784_v37  ;;  %v1642_v2 = vmul.f32 %v784_v37, %v784_v37  ;;  %v788_v34 = vadd.f32 %v787_v62, %v2490_v47 }
 0x158   : > { %v1744_v44 = vadd.f32 %v1743_v13, %v1641_v4  ;;  %v1453_v45 = vadd.f32 %v1452_v32, %v786_v58  ;;  %v1643_v31 = vmul.f32 %v786_v58, %v786_v58  ;;  %v2805_v14 = vadd.f32 %v945_v15, %v2488_v46 }
 0x159   : > { %1388 = vst [vmem:[%s2504_s24 + $0xc0] sm:$0xff] %v2160_v12  ;;  %v1813_v22 = vadd.f32 %v1812_v54, %v1642_v2  ;;  %v2161_v48 = vpack.c.bf16 %v788_v34, %v786_v58  ;;  %v1522_v23 = vadd.f32 %v1521_v42, %v788_v34  ;;  %v1644_v50 = vmul.f32 %v788_v34, %v788_v34 }
 0x15a   : > { %3168 = vst [vmem:[#allocation18_spill] sm:$0xff] %v2805_v14  ;;  %v1745_v61 = vadd.f32 %v1744_v44, %v1643_v31  ;;  %v2192_v1 = vpack.c.bf16 %v2801_v3, %v2796_v33  ;;  %v2812_v13 = vadd.f32 %v947_v41, %v2490_v47 }
 0x15b   : > { %1389 = vst [vmem:[%s2504_s24 + $0xc8] sm:$0xff] %v2161_v48  ;;  %v1814_v7 = vadd.f32 %v1813_v22, %v1644_v50  ;;  %v791_v37 = vpop.f32.mrb[52].mxu0  ;;  %v951_v32 = vpop.f32.mrb[52].mxu1 }
 0x15c   : > { %3169 = vst [vmem:[#allocation19_spill] sm:$0xff] %v2812_v13  ;;  %v792_v4 = vadd.f32 %v791_v37, %v2488_v46  ;;  %v793_v15 = vpop.f32.mrb[53].mxu0  ;;  %1420 = vst [vmem:[%s2504_s24 + $0x1c0] sm:$0xff] %v2192_v1  ;;  %v2817_v54 = vadd.f32 %v951_v32, %v2488_v46  ;;  %v953_v58 = vpop.f32.mrb[53].mxu1  ;;  %v2193_v12 = vpack.c.bf16 %v2812_v13, %v2805_v14 }
 0x15d   : > { %v794_v31 = vadd.f32 %v793_v15, %v2490_v47  ;;  %v795_v62 = vpop.f32.mrb[54].mxu0  ;;  %v2823_v42 = vadd.f32 %v953_v58, %v2490_v47  ;;  %v955_v41 = vpop.f32.mrb[54].mxu1 }
 0x15e   : > { %v1454_v2 = vadd.f32 %v1453_v45, %v792_v4  ;;  %v1645_v34 = vmul.f32 %v792_v4, %v792_v4  ;;  %v796_v44 = vadd.f32 %v795_v62, %v2488_v46  ;;  %v797_v22 = vpop.f32.mrb[55].mxu0  ;;  %v957_v48 = vpop.f32.mrb[55].mxu1  ;;  %1421 = vst [vmem:[%s2504_s24 + $0x1c8] sm:$0xff] %v2193_v12 }
 0x15f   : > { %3170 = vst [vmem:[#allocation20_spill] sm:$0xff] %v2823_v42  ;;  %v2162_v50 = vpack.c.bf16 %v794_v31, %v792_v4  ;;  %v1523_v1 = vadd.f32 %v1522_v23, %v794_v31  ;;  %v1646_v37 = vmul.f32 %v794_v31, %v794_v31  ;;  %v798_v32 = vadd.f32 %v797_v22, %v2490_v47 }
 0x160   : > { %v1746_v15 = vadd.f32 %v1745_v61, %v1645_v34  ;;  %v1455_v13 = vadd.f32 %v1454_v2, %v796_v44  ;;  %v1647_v58 = vmul.f32 %v796_v44, %v796_v44  ;;  %v2194_v14 = vpack.c.bf16 %v2823_v42, %v2817_v54 }
 0x161   : > { %1390 = vst [vmem:[%s2504_s24 + $0xd0] sm:$0xff] %v2162_v50  ;;  %v1815_v45 = vadd.f32 %v1814_v7, %v1646_v37  ;;  %v2163_v3 = vpack.c.bf16 %v798_v32, %v796_v44  ;;  %v1524_v62 = vadd.f32 %v1523_v1, %v798_v32  ;;  %v1648_v33 = vmul.f32 %v798_v32, %v798_v32 }
 0x162   : > { %v1747_v28 = vadd.f32 %v1746_v15, %v1647_v58  ;;  %1422 = vst [vmem:[%s2504_s24 + $0x1d0] sm:$0xff] %v2194_v14  ;;  %v2833_v23 = vadd.f32 %v955_v41, %v2488_v46  ;;  %v2836_v4 = vadd.f32 %v957_v48, %v2490_v47 }
 0x163   : > { %1391 = vst [vmem:[%s2504_s24 + $0xd8] sm:$0xff] %v2163_v3  ;;  %v1816_v61 = vadd.f32 %v1815_v45, %v1648_v33  ;;  %v801_v31 = vpop.f32.mrb[56].mxu0  ;;  %v961_v12 = vpop.f32.mrb[56].mxu1 }
 0x164   : > { %3171 = vst [vmem:[#allocation21_spill] sm:$0xff] %v2833_v23  ;;  %3172 = vst [vmem:[#allocation22_spill] sm:$0xff] %v2836_v4  ;;  %v802_v2 = vadd.f32 %v801_v31, %v2488_v46  ;;  %v803_v34 = vpop.f32.mrb[57].mxu0  ;;  %v2195_v7 = vpack.c.bf16 %v2836_v4, %v2833_v23  ;;  %v963_v44 = vpop.f32.mrb[57].mxu1  ;;  %v2844_v41 = vadd.f32 %v961_v12, %v2488_v46 }
 0x165   : > { %v804_v14 = vadd.f32 %v803_v34, %v2490_v47  ;;  %v805_v22 = vpop.f32.mrb[58].mxu0  ;;  %v965_v48 = vpop.f32.mrb[58].mxu1  ;;  %v2849_v37 = vadd.f32 %v963_v44, %v2490_v47 }
 0x166   : > { %3173 = vst [vmem:[#allocation23_spill] sm:$0xff] %v2844_v41  ;;  %v1456_v3 = vadd.f32 %v1455_v13, %v802_v2  ;;  %v1649_v50 = vmul.f32 %v802_v2, %v802_v2  ;;  %v806_v33 = vadd.f32 %v805_v22, %v2488_v46  ;;  %v807_v1 = vpop.f32.mrb[59].mxu0  ;;  %1423 = vst [vmem:[%s2504_s24 + $0x1d8] sm:$0xff] %v2195_v7  ;;  %v967_v32 = vpop.f32.mrb[59].mxu1 }
 0x167   : > { %3174 = vst [vmem:[#allocation24_spill] sm:$0xff] %v2849_v37  ;;  %v2164_v15 = vpack.c.bf16 %v804_v14, %v802_v2  ;;  %v1525_v58 = vadd.f32 %v1524_v62, %v804_v14  ;;  %v1650_v45 = vmul.f32 %v804_v14, %v804_v14  ;;  %v808_v31 = vadd.f32 %v807_v1, %v2490_v47 }
 0x168   : > { %v1748_v12 = vadd.f32 %v1747_v28, %v1649_v50  ;;  %v1457_v34 = vadd.f32 %v1456_v3, %v806_v33  ;;  %v1651_v4 = vmul.f32 %v806_v33, %v806_v33  ;;  %v2853_v13 = vadd.f32 %v965_v48, %v2488_v46 }
 0x169   : > { %1392 = vst [vmem:[%s2504_s24 + $0xe0] sm:$0xff] %v2164_v15  ;;  %v1817_v22 = vadd.f32 %v1816_v61, %v1650_v45  ;;  %v2165_v7 = vpack.c.bf16 %v808_v31, %v806_v33  ;;  %v1526_v23 = vadd.f32 %v1525_v58, %v808_v31  ;;  %v1652_v44 = vmul.f32 %v808_v31, %v808_v31 }
 0x16a   : > { %3175 = vst [vmem:[#allocation25_spill] sm:$0xff] %v2853_v13  ;;  %v1749_v42 = vadd.f32 %v1748_v12, %v1651_v4  ;;  %v2196_v2 = vpack.c.bf16 %v2849_v37, %v2844_v41  ;;  %v2860_v28 = vadd.f32 %v967_v32, %v2490_v47 }
 0x16b   : > { %1393 = vst [vmem:[%s2504_s24 + $0xe8] sm:$0xff] %v2165_v7  ;;  %v1818_v62 = vadd.f32 %v1817_v22, %v1652_v44  ;;  %v811_v14 = vpop.f32.mrb[60].mxu0  ;;  %v971_v3 = vpop.f32.mrb[60].mxu1 }
 0x16c   : > { %3176 = vst [vmem:[#allocation26_spill] sm:$0xff] %v2860_v28  ;;  %v812_v50 = vadd.f32 %v811_v14, %v2488_v46  ;;  %v813_v48 = vpop.f32.mrb[61].mxu0  ;;  %1424 = vst [vmem:[%s2504_s24 + $0x1e0] sm:$0xff] %v2196_v2  ;;  %v2865_v61 = vadd.f32 %v971_v3, %v2488_v46  ;;  %v973_v33 = vpop.f32.mrb[61].mxu1  ;;  %v2197_v15 = vpack.c.bf16 %v2860_v28, %v2853_v13 }
 0x16d   : > { %v814_v4 = vadd.f32 %v813_v48, %v2490_v47  ;;  %v815_v1 = vpop.f32.mrb[62].mxu0  ;;  %v2871_v58 = vadd.f32 %v973_v33, %v2490_v47  ;;  %v975_v32 = vpop.f32.mrb[62].mxu1 }
 0x16e   : > { %v1458_v45 = vadd.f32 %v1457_v34, %v812_v50  ;;  %v1653_v31 = vmul.f32 %v812_v50, %v812_v50  ;;  %v816_v12 = vadd.f32 %v815_v1, %v2488_v46  ;;  %v817_v22 = vpop.f32.mrb[63].mxu0  ;;  %v977_v7 = vpop.f32.mrb[63].mxu1  ;;  %1425 = vst [vmem:[%s2504_s24 + $0x1e8] sm:$0xff] %v2197_v15  ;;  %v2884_v15 = vadd.f32 %v975_v32, %v2488_v46 }
 0x16f   : > { %v2166_v44 = vpack.c.bf16 %v814_v4, %v812_v50  ;;  %v1527_v2 = vadd.f32 %v1526_v23, %v814_v4  ;;  %v1654_v14 = vmul.f32 %v814_v4, %v814_v4  ;;  %v818_v3 = vadd.f32 %v817_v22, %v2490_v47 }
 0x170   : > { %v1750_v48 = vadd.f32 %v1749_v42, %v1653_v31  ;;  %v1459_v28 = vadd.f32 %v1458_v45, %v816_v12  ;;  %v1655_v33 = vmul.f32 %v816_v12, %v816_v12  ;;  %v2198_v13 = vpack.c.bf16 %v2871_v58, %v2865_v61 }
 0x171   : > { %1394 = vst [vmem:[%s2504_s24 + $0xf0] sm:$0xff] %v2166_v44  ;;  %v1819_v34 = vadd.f32 %v1818_v62, %v1654_v14  ;;  %v2167_v37 = vpack.c.bf16 %v818_v3, %v816_v12  ;;  %v1528_v1 = vadd.f32 %v1527_v2, %v818_v3  ;;  %v1656_v41 = vmul.f32 %v818_v3, %v818_v3 }
 0x172   : > { %v1657_v23 = vmul.f32 %v2495_v52, %v2495_v52  ;;  %v1460_v50 = vadd.f32 %v1459_v28, %v2495_v52  ;;  %v1751_v4 = vadd.f32 %v1750_v48, %v1655_v33  ;;  %1426 = vst [vmem:[%s2504_s24 + $0x1f0] sm:$0xff] %v2198_v13  ;;  %v1658_v42 = vmul.f32 %v2499_v56, %v2499_v56 }
 0x173   : > { %1395 = vst [vmem:[%s2504_s24 + $0xf8] sm:$0xff] %v2167_v37  ;;  %v1529_v45 = vadd.f32 %v1528_v1, %v2499_v56  ;;  %v1820_v62 = vadd.f32 %v1819_v34, %v1656_v41  ;;  %v2891_v31 = vadd.f32 %v977_v7, %v2490_v47  ;;  %v1659_v12 = vmul.f32 %v2511_v0, %v2511_v0 }
 0x174   : > { %v1461_v52 = vadd.f32 %v1460_v50, %v2511_v0  ;;  %v1752_v13 = vadd.f32 %v1751_v4, %v1657_v23  ;;  %v1660_v46 = vmul.f32 %v2516_v8, %v2516_v8  ;;  %v1661_v41 = vmul.f32 %v2523_v16, %v2523_v16 }
 0x175   : > { %v1530_v28 = vadd.f32 %v1529_v45, %v2516_v8  ;;  %v1821_v32 = vadd.f32 %v1820_v62, %v1658_v42  ;;  %v2199_v56 = vpack.c.bf16 %v2891_v31, %v2884_v15  ;;  %v1662_v22 = vmul.f32 %v2528_v20, %v2528_v20 }
 0x176   : > { %v1462_v47 = vadd.f32 %v1461_v52, %v2523_v16  ;;  %v1753_v37 = vadd.f32 %v1752_v13, %v1659_v12  ;;  %v1663_v8 = vmul.f32 %v2537_v40, %v2537_v40  ;;  %v1664_v14 = vmul.f32 %v2540_v43, %v2540_v43 }
 0x177   : > { %v1531_v0 = vadd.f32 %v1530_v28, %v2528_v20  ;;  %v1822_v7 = vadd.f32 %v1821_v32, %v1660_v46  ;;  %1427 = vst [vmem:[%s2504_s24 + $0x1f8] sm:$0xff] %v2199_v56  ;;  %v1665_v48 = vmul.f32 %v2548_v57, %v2548_v57  ;;  %v1666_v34 = vmul.f32 %v2553_v63, %v2553_v63 }
 0x178   : > { %v1463_v44 = vadd.f32 %v1462_v47, %v2537_v40  ;;  %v1754_v2 = vadd.f32 %v1753_v37, %v1661_v41  ;;  %v1667_v40 = vmul.f32 %v2557_v10, %v2557_v10 }
 0x179   : > { %v1532_v3 = vadd.f32 %v1531_v0, %v2540_v43  ;;  %v1823_v16 = vadd.f32 %v1822_v7, %v1662_v22  ;;  %v1668_v43 = vmul.f32 %v2564_v21, %v2564_v21 }
 0x17a   : > { %v1464_v33 = vadd.f32 %v1463_v44, %v2548_v57  ;;  %v1755_v20 = vadd.f32 %v1754_v2, %v1663_v8  ;;  %v1669_v57 = vmul.f32 %v2569_v25, %v2569_v25 }
 0x17b   : > { %v1533_v1 = vadd.f32 %v1532_v3, %v2553_v63  ;;  %v1824_v23 = vadd.f32 %v1823_v16, %v1664_v14  ;;  %v1670_v63 = vmul.f32 %v2575_v30, %v2575_v30 }
 0x17c   : > { %v1465_v50 = vadd.f32 %v1464_v33, %v2557_v10  ;;  %v1756_v4 = vadd.f32 %v1755_v20, %v1665_v48  ;;  %v1671_v10 = vmul.f32 %v2585_v59, %v2585_v59 }
 0x17d   : > { %v1534_v42 = vadd.f32 %v1533_v1, %v2564_v21  ;;  %v1825_v45 = vadd.f32 %v1824_v23, %v1666_v34  ;;  %v1672_v21 = vmul.f32 %v2588_v60, %v2588_v60 }
 0x17e   : > { %v1466_v62 = vadd.f32 %v1465_v50, %v2569_v25  ;;  %v1757_v12 = vadd.f32 %v1756_v4, %v1667_v40  ;;  %v1673_v25 = vmul.f32 %v2596_v9, %v2596_v9 }
 0x17f   : > { %v1535_v52 = vadd.f32 %v1534_v42, %v2575_v30  ;;  %v1826_v13 = vadd.f32 %v1825_v45, %v1668_v43  ;;  %v1674_v30 = vmul.f32 %v2601_v17, %v2601_v17 }
 0x180   : > { %v1467_v46 = vadd.f32 %v1466_v62, %v2585_v59  ;;  %v1758_v28 = vadd.f32 %v1757_v12, %v1669_v57  ;;  %v1675_v59 = vmul.f32 %v2605_v29, %v2605_v29 }
 0x181   : > { %v1536_v32 = vadd.f32 %v1535_v52, %v2588_v60  ;;  %v1827_v56 = vadd.f32 %v1826_v13, %v1670_v63  ;;  %v1676_v60 = vmul.f32 %v2612_v39, %v2612_v39 }
 0x182   : > { %v1759_v41 = vadd.f32 %v1758_v28, %v1671_v10  ;;  %v1468_v47 = vadd.f32 %v1467_v46, %v2596_v9  ;;  %v1677_v9 = vmul.f32 %v2617_v49, %v2617_v49  ;;  %v1689_v28 = vmul.f32 %v2692_v36, %v2692_v36 }
 0x183   : > { %v1828_v37 = vadd.f32 %v1827_v56, %v1672_v21  ;;  %v1537_v22 = vadd.f32 %v1536_v32, %v2601_v17  ;;  %v1678_v17 = vmul.f32 %v2623_v55, %v2623_v55  ;;  %v1690_v32 = vmul.f32 %v2697_v51, %v2697_v51 }
 0x184   : > { %v1469_v0 = vadd.f32 %v1468_v47, %v2605_v29  ;;  %v1760_v7 = vadd.f32 %v1759_v41, %v1673_v25  ;;  %v1679_v29 = vmul.f32 %v2633_v24, %v2633_v24  ;;  %v1691_v41 = vmul.f32 %v2702_v6, %v2702_v6  ;;  %v3177_v47 = vld [vmem:[#allocation3_spill] sm:$0xff] }
 0x185   : > { %v1538_v8 = vadd.f32 %v1537_v22, %v2612_v39  ;;  %v1829_v44 = vadd.f32 %v1828_v37, %v1674_v30  ;;  %v1680_v39 = vmul.f32 %v2636_v26, %v2636_v26  ;;  %v1692_v37 = vmul.f32 %v3177_v47, %v3177_v47  ;;  %v3178_v22 = vld [vmem:[#allocation4_spill] sm:$0xff] }
 0x186   : > { %v1470_v2 = vadd.f32 %v1469_v0, %v2617_v49  ;;  %v1761_v14 = vadd.f32 %v1760_v7, %v1675_v59  ;;  %v1681_v49 = vmul.f32 %v2644_v38, %v2644_v38  ;;  %v1693_v0 = vmul.f32 %v3178_v22, %v3178_v22  ;;  %v3179_v7 = vld [vmem:[#allocation5_spill] sm:$0xff] }
 0x187   : > { %v1539_v3 = vadd.f32 %v1538_v8, %v2623_v55  ;;  %v1830_v16 = vadd.f32 %v1829_v44, %v1676_v60  ;;  %v1682_v55 = vmul.f32 %v2649_v53, %v2649_v53  ;;  %v1694_v8 = vmul.f32 %v3179_v7, %v3179_v7 }
 0x188   : > { %v1471_v48 = vadd.f32 %v1470_v2, %v2633_v24  ;;  %v1762_v33 = vadd.f32 %v1761_v14, %v1677_v9  ;;  %v1683_v24 = vmul.f32 %v2653_v5, %v2653_v5 }
 0x189   : > { %v1540_v20 = vadd.f32 %v1539_v3, %v2636_v26  ;;  %v1831_v34 = vadd.f32 %v1830_v16, %v1678_v17  ;;  %v1684_v26 = vmul.f32 %v2660_v19, %v2660_v19  ;;  %v3181_v17 = vld [vmem:[#allocation7_spill] sm:$0xff] }
 0x18a   : > { %v1472_v1 = vadd.f32 %v1471_v48, %v2644_v38  ;;  %v1763_v23 = vadd.f32 %v1762_v33, %v1679_v29  ;;  %v1685_v38 = vmul.f32 %v2665_v27, %v2665_v27  ;;  %v1696_v16 = vmul.f32 %v3181_v17, %v3181_v17  ;;  %v3182_v48 = vld [vmem:[#allocation8_spill] sm:$0xff] }
 0x18b   : > { %v1541_v40 = vadd.f32 %v1540_v20, %v2649_v53  ;;  %v1832_v50 = vadd.f32 %v1831_v34, %v1680_v39  ;;  %v1686_v53 = vmul.f32 %v2671_v35, %v2671_v35  ;;  %v1697_v39 = vmul.f32 %v3182_v48, %v3182_v48  ;;  %v3183_v34 = vld [vmem:[#allocation9_spill] sm:$0xff] }
 0x18c   : > { %v1473_v4 = vadd.f32 %v1472_v1, %v2653_v5  ;;  %v1764_v43 = vadd.f32 %v1763_v23, %v1681_v49  ;;  %v1687_v5 = vmul.f32 %v2681_v11, %v2681_v11  ;;  %v1698_v1 = vmul.f32 %v3183_v34, %v3183_v34 }
 0x18d   : > { %v1542_v42 = vadd.f32 %v1541_v40, %v2660_v19  ;;  %v1833_v45 = vadd.f32 %v1832_v50, %v1682_v55  ;;  %v1688_v19 = vmul.f32 %v2684_v18, %v2684_v18  ;;  %v3184_v55 = vld [vmem:[#allocation10_spill] sm:$0xff] }
 0x18e   : > { %v1474_v57 = vadd.f32 %v1473_v4, %v2665_v27  ;;  %v1765_v62 = vadd.f32 %v1764_v43, %v1683_v24  ;;  %v1699_v50 = vmul.f32 %v3184_v55, %v3184_v55  ;;  %v3185_v4 = vld [vmem:[#allocation11_spill] sm:$0xff] }
 0x18f   : > { %v1543_v12 = vadd.f32 %v1542_v42, %v2671_v35  ;;  %v1834_v63 = vadd.f32 %v1833_v45, %v1684_v26  ;;  %v1700_v26 = vmul.f32 %v3185_v4, %v3185_v4  ;;  %v3186_v45 = vld [vmem:[#allocation12_spill] sm:$0xff] }
 0x190   : > { %v1475_v52 = vadd.f32 %v1474_v57, %v2681_v11  ;;  %v1766_v13 = vadd.f32 %v1765_v62, %v1685_v38  ;;  %v1701_v57 = vmul.f32 %v3186_v45, %v3186_v45 }
 0x191   : > { %v1544_v10 = vadd.f32 %v1543_v12, %v2684_v18  ;;  %v1835_v46 = vadd.f32 %v1834_v63, %v1686_v53  ;;  %v3187_v53 = vld [vmem:[#allocation13_spill] sm:$0xff] }
 0x192   : > { %v1476_v27 = vadd.f32 %v1475_v52, %v2692_v36  ;;  %v1767_v21 = vadd.f32 %v1766_v13, %v1687_v5  ;;  %v1702_v63 = vmul.f32 %v3187_v53, %v3187_v53  ;;  %v3188_v52 = vld [vmem:[#allocation14_spill] sm:$0xff] }
 0x193   : > { %v1545_v35 = vadd.f32 %v1544_v10, %v2697_v51  ;;  %v1836_v56 = vadd.f32 %v1835_v46, %v1688_v19  ;;  %v1703_v19 = vmul.f32 %v3188_v52, %v3188_v52  ;;  %v3189_v46 = vld [vmem:[#allocation15_spill] sm:$0xff] }
 0x194   : > { %v1768_v11 = vadd.f32 %v1767_v21, %v1689_v28  ;;  %v1477_v25 = vadd.f32 %v1476_v27, %v2702_v6  ;;  %v3180_v6 = vld [vmem:[#allocation6_spill] sm:$0xff]  ;;  %v1704_v28 = vmul.f32 %v3189_v46, %v3189_v46 }
 0x195   : > { %v1837_v18 = vadd.f32 %v1836_v56, %v1690_v32  ;;  %v1546_v30 = vadd.f32 %v1545_v35, %v3177_v47  ;;  %v1695_v2 = vmul.f32 %v3180_v6, %v3180_v6  ;;  %v3190_v35 = vld [vmem:[#allocation16_spill] sm:$0xff] }
 0x196   : > { %v1769_v36 = vadd.f32 %v1768_v11, %v1691_v41  ;;  %v1478_v59 = vadd.f32 %v1477_v25, %v3178_v22  ;;  %v1705_v56 = vmul.f32 %v3190_v35, %v3190_v35  ;;  %v3191_v25 = vld [vmem:[#allocation17_spill] sm:$0xff] }
 0x197   : > { %v1838_v51 = vadd.f32 %v1837_v18, %v1692_v37  ;;  %v1547_v60 = vadd.f32 %v1546_v30, %v3179_v7  ;;  %v1706_v18 = vmul.f32 %v3191_v25, %v3191_v25  ;;  %v3192_v30 = vld [vmem:[#allocation18_spill] sm:$0xff] }
 0x198   : > { %v1770_v44 = vadd.f32 %v1769_v36, %v1693_v0  ;;  %v1479_v9 = vadd.f32 %v1478_v59, %v3180_v6  ;;  %v1707_v36 = vmul.f32 %v3192_v30, %v3192_v30  ;;  %v3193_v59 = vld [vmem:[#allocation19_spill] sm:$0xff]  ;;  %v3194_v6 = vld [vmem:[#allocation20_spill] sm:$0xff] }
 0x199   : > { %v1839_v14 = vadd.f32 %v1838_v51, %v1694_v8  ;;  %v1548_v3 = vadd.f32 %v1547_v60, %v3181_v17  ;;  %v1708_v51 = vmul.f32 %v3193_v59, %v3193_v59  ;;  %v1709_v8 = vmul.f32 %v2817_v54, %v2817_v54  ;;  %v3195_v17 = vld [vmem:[#allocation21_spill] sm:$0xff] }
 0x19a   : > { %v1771_v29 = vadd.f32 %v1770_v44, %v1695_v2  ;;  %v1480_v33 = vadd.f32 %v1479_v9, %v3182_v48  ;;  %v1710_v2 = vmul.f32 %v3194_v6, %v3194_v6  ;;  %v3196_v48 = vld [vmem:[#allocation22_spill] sm:$0xff] }
 0x19b   : > { %v1840_v20 = vadd.f32 %v1839_v14, %v1696_v16  ;;  %v1549_v49 = vadd.f32 %v1548_v3, %v3183_v34  ;;  %v1711_v16 = vmul.f32 %v3195_v17, %v3195_v17 }
 0x19c   : > { %v1772_v23 = vadd.f32 %v1771_v29, %v1697_v39  ;;  %v1481_v40 = vadd.f32 %v1480_v33, %v3184_v55  ;;  %v1712_v39 = vmul.f32 %v3196_v48, %v3196_v48 }
 0x19d   : > { %v1841_v24 = vadd.f32 %v1840_v20, %v1698_v1  ;;  %v1550_v43 = vadd.f32 %v1549_v49, %v3185_v4 }
 0x19e   : > { %v1773_v42 = vadd.f32 %v1772_v23, %v1699_v50  ;;  %v1482_v38 = vadd.f32 %v1481_v40, %v3186_v45  ;;  %v3198_v23 = vld [vmem:[#allocation24_spill] sm:$0xff]  ;;  %v3200_v45 = vld [vmem:[#allocation26_spill] sm:$0xff] }
 0x19f   : > { %v1842_v62 = vadd.f32 %v1841_v24, %v1700_v26  ;;  %v1551_v12 = vadd.f32 %v1550_v43, %v3187_v53  ;;  %v1714_v40 = vmul.f32 %v3198_v23, %v3198_v23  ;;  %v3199_v24 = vld [vmem:[#allocation25_spill] sm:$0xff]  ;;  %v1717_v26 = vmul.f32 %v2865_v61, %v2865_v61 }
 0x1a0   : > { %v1774_v5 = vadd.f32 %v1773_v42, %v1701_v57  ;;  %v1483_v13 = vadd.f32 %v1482_v38, %v3188_v52  ;;  %v1715_v43 = vmul.f32 %v3199_v24, %v3199_v24  ;;  %v1716_v57 = vmul.f32 %v3200_v45, %v3200_v45 }
 0x1a1   : > { %v1843_v10 = vadd.f32 %v1842_v62, %v1702_v63  ;;  %v1552_v27 = vadd.f32 %v1551_v12, %v3189_v46  ;;  %v1718_v62 = vmul.f32 %v2871_v58, %v2871_v58 }
 0x1a2   : > { %v1775_v21 = vadd.f32 %v1774_v5, %v1703_v19  ;;  %v1484_v32 = vadd.f32 %v1483_v13, %v3190_v35  ;;  %v1719_v19 = vmul.f32 %v2884_v15, %v2884_v15 }
 0x1a3   : > { %v1844_v11 = vadd.f32 %v1843_v10, %v1704_v28  ;;  %v1553_v41 = vadd.f32 %v1552_v27, %v3191_v25  ;;  %v1720_v27 = vmul.f32 %v2891_v31, %v2891_v31 }
 0x1a4   : > { %v1776_v47 = vadd.f32 %v1775_v21, %v1705_v56  ;;  %v1485_v37 = vadd.f32 %v1484_v32, %v3192_v30 }
 0x1a5   : > { %v1845_v22 = vadd.f32 %v1844_v11, %v1706_v18  ;;  %v1554_v0 = vadd.f32 %v1553_v41, %v3193_v59 }
 0x1a6   : > { %v1777_v7 = vadd.f32 %v1776_v47, %v1707_v36  ;;  %v1486_v60 = vadd.f32 %v1485_v37, %v2817_v54  ;;  %v3197_v54 = vld [vmem:[#allocation23_spill] sm:$0xff] }
 0x1a7   : > { %v1846_v44 = vadd.f32 %v1845_v22, %v1708_v51  ;;  %v1555_v9 = vadd.f32 %v1554_v0, %v3194_v6  ;;  %v1713_v49 = vmul.f32 %v3197_v54, %v3197_v54 }
 0x1a8   : > { %v1778_v14 = vadd.f32 %v1777_v7, %v1709_v8  ;;  %v1487_v3 = vadd.f32 %v1486_v60, %v3195_v17 }
 0x1a9   : > { %v1847_v29 = vadd.f32 %v1846_v44, %v1710_v2  ;;  %v1556_v33 = vadd.f32 %v1555_v9, %v3196_v48  ;;  %v3201_v9 = vld [vmem:[#allocation2_spill] sm:$0xff] }
 0x1aa   : > { %v1779_v20 = vadd.f32 %v1778_v14, %v1711_v16  ;;  %v1488_v34 = vadd.f32 %v1487_v3, %v3197_v54  ;;  %v3202_v54 = vlaneseq }
 0x1ab   : > { %v1848_v1 = vadd.f32 %v1847_v29, %v1712_v39  ;;  %v1557_v55 = vadd.f32 %v1556_v33, %v3198_v23  ;;  %v1428_v33 = vld [vmem:[%s2720_s27] ss:$2 sm:$0x3] }
 0x1ac   : > { %v1780_v50 = vadd.f32 %v1779_v20, %v1713_v49  ;;  %v1489_v4 = vadd.f32 %v1488_v34, %v3199_v24  ;;  %vm1588_vm1 = vcmp.lt.s32.totalorder %v3202_v54, 256  ;;  %v2130_v34 = vld [vmem:[%s2720_s27 + $0x1] ss:$2 sm:$0x3] }
 0x1ad   : > { %v1849_v42 = vadd.f32 %v1848_v1, %v1714_v40  ;;  %v1558_v38 = vadd.f32 %v1557_v55, %v3200_v45 }
 0x1ae   : > { %v1781_v53 = vadd.f32 %v1780_v50, %v1715_v43  ;;  %v1490_v12 = vadd.f32 %v1489_v4, %v2865_v61 }
 0x1af   : > { %v1850_v63 = vadd.f32 %v1849_v42, %v1716_v57  ;;  %v1559_v5 = vadd.f32 %v1558_v38, %v2871_v58  ;;  %v2305_v58 = vmov 1966171168  }
 0x1b0   : > { %v1782_v52 = vadd.f32 %v1781_v53, %v1717_v26  ;;  %v1491_v13 = vadd.f32 %v1490_v12, %v2884_v15  ;;  %v1571_v25 = vunpack.c.l.s4 %v2305_v58 }
 0x1b1   : > { %v1851_v10 = vadd.f32 %v1850_v63, %v1718_v62  ;;  %v1560_v46 = vadd.f32 %v1559_v5, %v2891_v31 }
 0x1b2   : > { %v1492_v28 = vrot.slane %v1491_v13, 4  ;;  %v1783_v21 = vadd.f32 %v1782_v52, %v1719_v19  ;;  %v1572_v59 = vunpack.c.0.s8 %v1571_v25 }
 0x1b3   : > { %v1561_v35 = vrot.slane %v1560_v46, 4  ;;  %v1852_v32 = vadd.f32 %v1851_v10, %v1720_v27 }
 0x1b4   : > { %v1493_v61 = vadd.f32 %v1492_v28, %v1491_v13  ;;  %v1784_v56 = vrot.slane %v1783_v21, 4  ;;  %v1575_v2 = vsub.s32 %v1572_v59, %v3201_v9 }
 0x1b5   : > { %v1562_v11 = vadd.f32 %v1561_v35, %v1560_v46  ;;  %v1853_v41 = vrot.slane %v1852_v32, 4 }
 0x1b6   : > { %v1494_v18 = vrot.slane %v1493_v61, 2  ;;  %v1785_v47 = vadd.f32 %v1784_v56, %v1783_v21 }
 0x1b7   : > { %v1563_v30 = vrot.slane %v1562_v11, 2  ;;  %v1854_v15 = vadd.f32 %v1853_v41, %v1852_v32 }
 0x1b8   : > { %v1495_v37 = vadd.f32 %v1494_v18, %v1493_v61  ;;  %v1786_v36 = vrot.slane %v1785_v47, 2 }
 0x1b9   : > { %v1564_v22 = vadd.f32 %v1563_v30, %v1562_v11  ;;  %v1855_v31 = vrot.slane %v1854_v15, 2 }
 0x1ba   : > { %v1496_v0 = vrot.slane %v1495_v37, 1  ;;  %v1787_v51 = vadd.f32 %v1786_v36, %v1785_v47 }
 0x1bb   : > { %v1565_v7 = vrot.slane %v1564_v22, 1  ;;  %v1856_v60 = vadd.f32 %v1855_v31, %v1854_v15 }
 0x1bc   : > { %v1497_v8 = vadd.f32 %v1496_v0, %v1495_v37  ;;  %v1788_v44 = vrot.slane %v1787_v51, 1 }
 0x1bd   : > { %v1566_v6 = vadd.f32 %v1565_v7, %v1564_v22  ;;  %v1857_v14 = vrot.slane %v1856_v60, 1 }
 0x1be   : > { %v1789_v17 = vadd.f32 %v1788_v44, %v1787_v51 }
 0x1bf   : > { %v1569_v3 = vcombine.low %v1497_v8, %v1566_v6  ;;  %v1858_v16 = vadd.f32 %v1857_v14, %v1856_v60 }
 0x1c1   : > { %v1576_v29 = vrot.slane %v1569_v3, %v1575_v2  ;;  %v1861_v48 = vcombine.low %v1789_v17, %v1858_v16 }
 0x1c3   : > { %v1583_v39 = vrot.slane %v1576_v29, %v1575_v2  ;;  %v1868_v20 = vrot.slane %v1861_v48, %v1575_v2 }
 0x1c5   : > { %v1585_v49 = vadd.f32 %v1583_v39, %v1428_v33  ;;  %v1875_v1 = vrot.slane %v1868_v20, %v1575_v2 }
 0x1c7   : > { %1590 = vst.msk [vmem:[%s2720_s27] ss:$2 sm:$0x3] %vm1588_vm1, %v1585_v49  ;;  %v1877_v23 = vadd.f32 %v2130_v34, %v1875_v1 }
 0x1c9   : > { %2131 = vst.msk [vmem:[%s2720_s27 + $0x1] ss:$2 sm:$0x3] %vm1588_vm1, %v1877_v23 }
 0x1ca PF: > { %s15_s17 = sadd.s32 1, %s2301_s17   ;;  %s3203_s15 = smov %s2297_s16 }
 0x1cb   : > { %p12_p6 = scmp.ge.s32.totalorder %s15_s17, 4   ;;  %s3204_s16 = smov %s3206_s18 }
 0x1cd   :  { %14 = sbr.rel (!%p12_p6) target bundleno = 2 (0x2), region = 79 }

</bundles_post_ra>
